<compile_context>
chip_gen: v7x
topology: tpu7x:2x2x1
jax: 0.10.0
libtpu: 0.0.40
codegen_flags: <defaults>
</compile_context>

<pallas_src>
import numpy as np
import jax
import jax.numpy as jnp
from jax.experimental import pallas as pl
from jax.experimental.pallas import tpu as pltpu

LEAKY_SLOPE = 0.1
BN_EPS = 1e-5


# ----------------------------------------------------------------------------
# Fused BasicBlock kernel
# ----------------------------------------------------------------------------
def _make_block_kernel(B, H, W, Cin, Cout, d, equal_in_out, abr, compute_dtype):
    """One whole BasicBlock for a block of B images, fully VMEM-resident.

    d == block stride: conv1 is computed at stride 1 / full resolution and
    conv2 is dilated by d (mathematically identical to stride-d conv1 ->
    stride-1 conv2 at the strided output positions, which the wrapper then
    selects).  Each 3x3 conv is ONE matmul against a VMEM im2col patch."""
    M = B * H * W

    def kernel(x_ref, w1_ref, w2_ref, bn1s_ref, bn1b_ref, bn2b_ref, *rest):
        if equal_in_out:
            o_ref, pad1_ref, pad2_ref, patch1_ref, patch2_ref = rest
            wsc_ref = None
        else:
            wsc_ref, o_ref, pad1_ref, pad2_ref, patch1_ref, patch2_ref = rest

        # ---- zero ONLY the thin pad borders (interior fully overwritten) ----
        def zero_borders(pad_ref, pd, C):
            Hp, Wp = H + 2 * pd, W + 2 * pd
            zrow = jnp.zeros((B, pd, Wp, C), pad_ref.dtype)
            pad_ref[:, pl.ds(0, pd), :, :] = zrow
            pad_ref[:, pl.ds(Hp - pd, pd), :, :] = zrow
            zcol = jnp.zeros((B, Hp, pd, C), pad_ref.dtype)
            pad_ref[:, :, pl.ds(0, pd), :] = zcol
            pad_ref[:, :, pl.ds(Wp - pd, pd), :] = zcol

        zero_borders(pad1_ref, 1, Cin)
        zero_borders(pad2_ref, d, Cout)

        # ---- BN1 + LeakyReLU prologue (f32 math) -----------------------------
        x = x_ref[...].astype(jnp.float32)                      # (B, H, W, Cin)
        act = x * bn1s_ref[...] + bn1b_ref[...]                 # (1,Cin) broadcast
        act = jnp.where(act >= 0.0, act, LEAKY_SLOPE * act)
        # conv1 input (== shortcut input when not equal_in_out):
        #   equalInOut -> act ; (not equalInOut, abr) -> act ; else -> x
        conv1_in = act if (equal_in_out or abr) else x
        pad1_ref[:, pl.ds(1, H), pl.ds(1, W), :] = conv1_in.astype(compute_dtype)

        # ---- conv1: 3x3 pad 1 -> ONE matmul on a VMEM im2col patch (K=9*Cin) -
        for ky in range(3):
            for kx in range(3):
                tap = ky * 3 + kx
                win = pad1_ref[:, pl.ds(ky, H), pl.ds(kx, W), :]   # (B,H,W,Cin)
                patch1_ref[:, pl.ds(tap * Cin, Cin)] = win.reshape(M, Cin)
        h = jnp.dot(patch1_ref[...], w1_ref[...],
                    preferred_element_type=jnp.float32)            # (M, Cout)

        # ---- BN2 (scale pre-folded into w1) + LeakyReLU (f32 epilogue) -------
        h = h + bn2b_ref[...]
        h = jnp.where(h >= 0.0, h, LEAKY_SLOPE * h)
        # TODO(synk): dropout (dropRate > 0) would go here; dropRate=0.0 -> no-op.

        # ---- conv2: 3x3, pad d, dilation d -> ONE im2col matmul (K=9*Cout) ---
        pad2_ref[:, pl.ds(d, H), pl.ds(d, W), :] = (
            h.reshape(B, H, W, Cout).astype(compute_dtype))
        for ky in range(3):
            for kx in range(3):
                tap = ky * 3 + kx
                win = pad2_ref[:, pl.ds(ky * d, H), pl.ds(kx * d, W), :]
                patch2_ref[:, pl.ds(tap * Cout, Cout)] = win.reshape(M, Cout)
        out = jnp.dot(patch2_ref[...], w2_ref[...],
                      preferred_element_type=jnp.float32)          # (M, Cout)

        # ---- residual / 1x1 shortcut (computed last -> not live across convs)
        if equal_in_out:
            res = x_ref[...].astype(jnp.float32).reshape(M, Cout)  # identity
        else:
            # shortcut input == conv1 input == pad1 interior (compute dtype)
            sc_in = pad1_ref[:, pl.ds(1, H), pl.ds(1, W), :].reshape(M, Cin)
            res = jnp.dot(sc_in, wsc_ref[...],
                          preferred_element_type=jnp.float32)
        out = out + res
        o_ref[...] = out.reshape(B, H, W, Cout).astype(o_ref.dtype)

    return kernel


def _vmem_capacity_bytes():
    try:
        info = pltpu.get_tpu_info()
        cap = getattr(info, "vmem_capacity_bytes", None)
        if cap:
            return int(cap)
    except Exception:
        pass
    return 64 * 1024 * 1024   # conservative (v7x per-core VMEM)


def _pick_batch_block(N, per_image_bytes, budget_bytes, cap=8):
    cap = max(1, min(N, cap, budget_bytes // max(per_image_bytes, 1)))
    for b in range(int(cap), 0, -1):
        if N % b == 0:
            return b
    return 1


def _fused_basic_block(x, p, stride, equal_in_out, abr, compute_dtype):
    """x: (N, H, W, Cin) in compute_dtype. Returns full-resolution (N, H, W, Cout)."""
    N, H, W, Cin = x.shape
    Cout = p["w1"].shape[-1]
    d = stride
    itm = int(jnp.dtype(compute_dtype).itemsize)

    # Per-image VMEM working set: in/out blocks, padded scratches, im2col
    # patches, and live f32 epilogue values.
    per_img = (H * W * (Cin + Cout) * itm
               + ((H + 2) * (W + 2) * Cin + (H + 2 * d) * (W + 2 * d) * Cout) * itm
               + H * W * (9 * Cin + 9 * Cout) * itm
               + H * W * (2 * Cin + 3 * Cout) * 4)
    vmem_cap = _vmem_capacity_bytes()
    B_blk = _pick_batch_block(N, per_img, budget_bytes=vmem_cap // 4)
    M = B_blk * H * W

    kernel = _make_block_kernel(B_blk, H, W, Cin, Cout, d, equal_in_out, abr,
                                compute_dtype)

    # Host-side weight prep: fold bn2_scale into conv1's output channels and
    # reshape both 3x3 kernels to the im2col layout (tap-major, K = 9*C).
    w1 = (p["w1"] * p["bn2_scale"].reshape(1, 1, 1, Cout)).reshape(9 * Cin, Cout)
    w2 = p["w2"].reshape(9 * Cout, Cout)
    args = [x, w1.astype(compute_dtype), w2.astype(compute_dtype),
            p["bn1_scale"], p["bn1_shift"], p["bn2_shift"]]
    in_specs = [
        pl.BlockSpec((B_blk, H, W, Cin), lambda n: (n, 0, 0, 0)),
        pl.BlockSpec((9 * Cin, Cout), lambda n: (0, 0)),
        pl.BlockSpec((9 * Cout, Cout), lambda n: (0, 0)),
        pl.BlockSpec((1, Cin), lambda n: (0, 0)),
        pl.BlockSpec((1, Cin), lambda n: (0, 0)),
        pl.BlockSpec((1, Cout), lambda n: (0, 0)),
    ]
    if not equal_in_out:
        args.append(p["w_sc"].astype(compute_dtype))
        in_specs.append(pl.BlockSpec((Cin, Cout), lambda n: (0, 0)))

    # Advisory cost estimate (helps XLA schedule the surrounding glue ops).
    flops = 2 * N * H * W * (9 * Cin * Cout + 9 * Cout * Cout
                             + (0 if equal_in_out else Cin * Cout))
    in_bytes = sum(int(np.prod(a.shape)) * int(a.dtype.itemsize) for a in args)
    out_bytes = N * H * W * Cout * itm

    # Explicit, capacity-aware VMEM budget.
    w_bytes = (9 * Cin * Cout + 9 * Cout * Cout
               + (0 if equal_in_out else Cin * Cout)) * itm
    vmem_est = B_blk * per_img + 2 * w_bytes + M * (Cin + Cout) * itm
    vmem_limit = int(min(max(2 * vmem_est, 16 * 1024 * 1024),
                         int(0.6 * vmem_cap)))

    return pl.pallas_call(
        kernel,
        out_shape=jax.ShapeDtypeStruct((N, H, W, Cout), compute_dtype),
        grid=(N // B_blk,),
        in_specs=in_specs,
        out_specs=pl.BlockSpec((B_blk, H, W, Cout), lambda n: (n, 0, 0, 0)),
        scratch_shapes=[
            pltpu.VMEM((B_blk, H + 2, W + 2, Cin), compute_dtype),           # padded conv1 in
            pltpu.VMEM((B_blk, H + 2 * d, W + 2 * d, Cout), compute_dtype),  # padded conv2 in
            pltpu.VMEM((M, 9 * Cin), compute_dtype),                         # im2col patch 1
            pltpu.VMEM((M, 9 * Cout), compute_dtype),                        # im2col patch 2
        ],
        compiler_params=pltpu.CompilerParams(
            dimension_semantics=("parallel",),
            vmem_limit_bytes=vmem_limit),
        cost_estimate=pl.CostEstimate(flops=flops, transcendentals=0,
                                      bytes_accessed=in_bytes + out_bytes),
    )(*args)


# ----------------------------------------------------------------------------
# BasicBlock / NetworkBlock forward (Pallas path)
# ----------------------------------------------------------------------------
def basic_block_apply(x, p, stride, activate_before_residual, compute_dtype):
    """x: (N, H, W, Cin) NHWC in compute_dtype. Mirrors the MixMatch WRN BasicBlock."""
    N, H, W, Cin = x.shape
    Cout = p["w1"].shape[-1]
    equal_in_out = (Cin == Cout)
    assert not (equal_in_out and stride != 1), "identity shortcut with stride != 1 is invalid"
    assert W % 8 == 0 and H % stride == 0 and W % stride == 0

    y = _fused_basic_block(x, p, stride, equal_in_out, activate_before_residual,
                           compute_dtype)
    if stride != 1:
        # TODO(synk): fold the stride into conv1 via a strided im2col gather
        # (or space-to-depth) to avoid the extra FLOPs/output traffic of the
        # full-resolution + dilated-conv2 scheme for strided blocks.
        y = y[:, ::stride, ::stride, :]
    return y


def network_block_forward(x_nchw, layer_params, layer_cfgs, activate_before_residual,
                          compute_dtype=jnp.bfloat16):
    x = jnp.transpose(x_nchw, (0, 2, 3, 1)).astype(compute_dtype)   # NCHW -> NHWC
    for p, (cin, cout, s) in zip(layer_params, layer_cfgs):
        x = basic_block_apply(x, p, s, activate_before_residual, compute_dtype)
    return jnp.transpose(x, (0, 3, 1, 2)).astype(jnp.float32)        # NHWC -> NCHW


# ----------------------------------------------------------------------------
# Pure-JAX reference (for correctness check)
# ----------------------------------------------------------------------------
def _ref_bn_lrelu(x, scale, shift):
    y = x * scale.reshape(1, 1, 1, -1) + shift.reshape(1, 1, 1, -1)
    return jnp.where(y >= 0, y, LEAKY_SLOPE * y)


def _ref_conv(x, w, stride, padding):
    return jax.lax.conv_general_dilated(
        x, w, (stride, stride), padding,
        dimension_numbers=("NHWC", "HWIO", "NHWC"),
        precision=jax.lax.Precision.HIGHEST)


def _ref_basic_block(x, p, stride, activate_before_residual):
    cin = x.shape[-1]
    cout = p["w1"].shape[-1]
    equal_in_out = (cin == cout)
    act = _ref_bn_lrelu(x, p["bn1_scale"], p["bn1_shift"])
    if (not equal_in_out) and activate_before_residual:
        x = act
    conv1_in = act if equal_in_out else x
    out = _ref_conv(conv1_in, p["w1"], stride, ((1, 1), (1, 1)))
    out = _ref_bn_lrelu(out, p["bn2_scale"], p["bn2_shift"])
    out = _ref_conv(out, p["w2"], 1, ((1, 1), (1, 1)))
    if equal_in_out:
        sc = x
    else:
        sc = _ref_conv(x, p["w_sc"].reshape(1, 1, cin, cout), stride, "VALID")
    return sc + out


def network_block_ref(x_nchw, layer_params, layer_cfgs, activate_before_residual):
    x = jnp.transpose(x_nchw, (0, 2, 3, 1))
    for p, (cin, cout, s) in zip(layer_params, layer_cfgs):
        x = _ref_basic_block(x, p, s, activate_before_residual)
    return jnp.transpose(x, (0, 3, 1, 2))


# ----------------------------------------------------------------------------
# Deterministic parameter init (mirrors nn.Conv2d / nn.BatchNorm2d shapes)
# ----------------------------------------------------------------------------
def _init_bn(key, c):
    k1, k2, k3, k4 = jax.random.split(key, 4)
    gamma = 1.0 + 0.1 * jax.random.normal(k1, (c,), jnp.float32)
    beta = 0.1 * jax.random.normal(k2, (c,), jnp.float32)
    mean = 0.1 * jax.random.normal(k3, (c,), jnp.float32)
    var = 1.0 + 0.1 * jnp.abs(jax.random.normal(k4, (c,), jnp.float32))
    scale = gamma / jnp.sqrt(var + BN_EPS)          # eval-mode BN folded
    shift = beta - mean * scale
    return scale.reshape(1, c), shift.reshape(1, c)


def _init_block_params(key, cin, cout):
    ks = jax.random.split(key, 5)
    p = {}
    p["w1"] = jax.random.normal(ks[0], (3, 3, cin, cout), jnp.float32) * np.sqrt(2.0 / (9 * cout))
    p["w2"] = jax.random.normal(ks[1], (3, 3, cout, cout), jnp.float32) * np.sqrt(2.0 / (9 * cout))
    p["bn1_scale"], p["bn1_shift"] = _init_bn(ks[2], cin)
    p["bn2_scale"], p["bn2_shift"] = _init_bn(ks[3], cout)
    if cin != cout:
        p["w_sc"] = jax.random.normal(ks[4], (cin, cout), jnp.float32) * np.sqrt(2.0 / cout)
    return p


def make_layer_cfgs(nb_layers, in_planes, out_planes, stride):
    # mirrors NetworkBlock._make_layer:
    # block(i == 0 and in_planes or out_planes, out_planes, i == 0 and stride or 1, ...)
    cfgs = []
    for i in range(int(nb_layers)):
        cin = in_planes if i == 0 else out_planes
        s = stride if i == 0 else 1
        cfgs.append((cin, out_planes, s))
    return cfgs


# ----------------------------------------------------------------------------
if __name__ == "__main__":
    # NetworkBlock(nb_layers=2, in_planes=4, out_planes=8, block=BasicBlock,
    #              stride=2, dropRate=0.0, activate_before_residual=True)
    nb_layers, in_planes, out_planes, stride = 2, 4, 8, 2
    activate_before_residual = True

    key = jax.random.PRNGKey(0)
    kx_, kp = jax.random.split(key)
    x = jax.random.normal(kx_, (2, 4, 16, 16), jnp.float32)   # NCHW, like PyTorch

    cfgs = make_layer_cfgs(nb_layers, in_planes, out_planes, stride)
    pkeys = jax.random.split(kp, len(cfgs))
    layer_params = [_init_block_params(k, cin, cout)
                    for k, (cin, cout, s) in zip(pkeys, cfgs)]

    y_ref = network_block_ref(x, layer_params, cfgs, activate_before_residual)

    # f32 compute path: tight check of the fused-kernel math.
    y32 = network_block_forward(x, layer_params, cfgs, activate_before_residual,
                                compute_dtype=jnp.float32)
    y32 = jax.block_until_ready(y32)
    assert y32.shape == (2, out_planes, 8, 8), y32.shape
    assert jnp.allclose(y32, y_ref, atol=2e-3, rtol=2e-3), \
        float(jnp.max(jnp.abs(y32 - y_ref)))

    # bf16 MXU path (activations/weights bf16, f32 accumulation): looser tolerance.
    y16 = network_block_forward(x, layer_params, cfgs, activate_before_residual,
                                compute_dtype=jnp.bfloat16)
    y16 = jax.block_until_ready(y16)
    assert y16.shape == (2, out_planes, 8, 8), y16.shape
    assert jnp.allclose(y16, y_ref, atol=1.5e-1, rtol=1e-1), \
        float(jnp.max(jnp.abs(y16 - y_ref)))

    print("KERNEL_OK")
</pallas_src>

<mosaic_0001>
module attributes {stable_mosaic.version = 11 : i64} {
  func.func @kernel(%arg0: i32, %arg1: memref<2x16x16x4xf32, #tpu.memory_space<vmem>>, %arg2: memref<36x8xf32, #tpu.memory_space<vmem>>, %arg3: memref<72x8xf32, #tpu.memory_space<vmem>>, %arg4: memref<1x4xf32, #tpu.memory_space<vmem>>, %arg5: memref<1x4xf32, #tpu.memory_space<vmem>>, %arg6: memref<1x8xf32, #tpu.memory_space<vmem>>, %arg7: memref<4x8xf32, #tpu.memory_space<vmem>>, %arg8: memref<2x16x16x8xf32, #tpu.memory_space<vmem>>, %arg9: memref<2x18x18x4xf32, #tpu.memory_space<vmem>>, %arg10: memref<2x20x20x8xf32, #tpu.memory_space<vmem>>, %arg11: memref<512x36xf32, #tpu.memory_space<vmem>>, %arg12: memref<512x72xf32, #tpu.memory_space<vmem>>) attributes {dimension_semantics = [#tpu.dimension_semantics<parallel>], iteration_bounds = array<i64: 1>, scalar_prefetch = 0 : i64, scratch_operands = 4 : i64, tpu.core_type = #tpu.core_type<tc>, window_params = [{transform_indices = @transform_0, window_bounds = array<i64: 2, 16, 16, 4>}, {pipeline_mode = #tpu.pipeline_mode<synchronous>, transform_indices = @transform_1, window_bounds = array<i64: 36, 8>}, {pipeline_mode = #tpu.pipeline_mode<synchronous>, transform_indices = @transform_2, window_bounds = array<i64: 72, 8>}, {pipeline_mode = #tpu.pipeline_mode<synchronous>, transform_indices = @transform_3, window_bounds = array<i64: 1, 4>}, {pipeline_mode = #tpu.pipeline_mode<synchronous>, transform_indices = @transform_4, window_bounds = array<i64: 1, 4>}, {pipeline_mode = #tpu.pipeline_mode<synchronous>, transform_indices = @transform_5, window_bounds = array<i64: 1, 8>}, {pipeline_mode = #tpu.pipeline_mode<synchronous>, transform_indices = @transform_6, window_bounds = array<i64: 4, 8>}, {transform_indices = @transform_7, window_bounds = array<i64: 2, 16, 16, 8>}]} {
    %cst = arith.constant 0.000000e+00 : f32
    %0 = vector.broadcast %cst : f32 to vector<2x1x18x4xf32>
    %c0 = arith.constant 0 : index
    %c0_0 = arith.constant 0 : index
    %c0_1 = arith.constant 0 : index
    %c0_2 = arith.constant 0 : index
    %1 = vector.load %arg9[%c0, %c0_0, %c0_1, %c0_2] : memref<2x18x18x4xf32, #tpu.memory_space<vmem>>, vector<2x1x18x4xf32>
    tpu.vector_store %arg9[%c0, %c0_0, %c0_1, %c0_2], %0 {strides = array<i32>} : memref<2x18x18x4xf32, #tpu.memory_space<vmem>>, vector<2x1x18x4xf32>,
    %c0_3 = arith.constant 0 : index
    %c17 = arith.constant 17 : index
    %c0_4 = arith.constant 0 : index
    %c0_5 = arith.constant 0 : index
    %2 = vector.load %arg9[%c0_3, %c17, %c0_4, %c0_5] : memref<2x18x18x4xf32, #tpu.memory_space<vmem>>, vector<2x1x18x4xf32>
    tpu.vector_store %arg9[%c0_3, %c17, %c0_4, %c0_5], %0 {strides = array<i32>} : memref<2x18x18x4xf32, #tpu.memory_space<vmem>>, vector<2x1x18x4xf32>,
    %cst_6 = arith.constant 0.000000e+00 : f32
    %3 = vector.broadcast %cst_6 : f32 to vector<2x18x1x4xf32>
    %c0_7 = arith.constant 0 : index
    %c0_8 = arith.constant 0 : index
    %c0_9 = arith.constant 0 : index
    %c0_10 = arith.constant 0 : index
    %4 = vector.load %arg9[%c0_7, %c0_8, %c0_9, %c0_10] : memref<2x18x18x4xf32, #tpu.memory_space<vmem>>, vector<2x18x1x4xf32>
    tpu.vector_store %arg9[%c0_7, %c0_8, %c0_9, %c0_10], %3 {strides = array<i32>} : memref<2x18x18x4xf32, #tpu.memory_space<vmem>>, vector<2x18x1x4xf32>,
    %c0_11 = arith.constant 0 : index
    %c0_12 = arith.constant 0 : index
    %c17_13 = arith.constant 17 : index
    %c0_14 = arith.constant 0 : index
    %5 = vector.load %arg9[%c0_11, %c0_12, %c17_13, %c0_14] : memref<2x18x18x4xf32, #tpu.memory_space<vmem>>, vector<2x18x1x4xf32>
    tpu.vector_store %arg9[%c0_11, %c0_12, %c17_13, %c0_14], %3 {strides = array<i32>} : memref<2x18x18x4xf32, #tpu.memory_space<vmem>>, vector<2x18x1x4xf32>,
    %cst_15 = arith.constant 0.000000e+00 : f32
    %6 = vector.broadcast %cst_15 : f32 to vector<2x2x20x8xf32>
    %c0_16 = arith.constant 0 : index
    %c0_17 = arith.constant 0 : index
    %c0_18 = arith.constant 0 : index
    %c0_19 = arith.constant 0 : index
    %7 = vector.load %arg10[%c0_16, %c0_17, %c0_18, %c0_19] : memref<2x20x20x8xf32, #tpu.memory_space<vmem>>, vector<2x2x20x8xf32>
    tpu.vector_store %arg10[%c0_16, %c0_17, %c0_18, %c0_19], %6 {strides = array<i32>} : memref<2x20x20x8xf32, #tpu.memory_space<vmem>>, vector<2x2x20x8xf32>,
    %c0_20 = arith.constant 0 : index
    %c18 = arith.constant 18 : index
    %c0_21 = arith.constant 0 : index
    %c0_22 = arith.constant 0 : index
    %8 = vector.load %arg10[%c0_20, %c18, %c0_21, %c0_22] : memref<2x20x20x8xf32, #tpu.memory_space<vmem>>, vector<2x2x20x8xf32>
    tpu.vector_store %arg10[%c0_20, %c18, %c0_21, %c0_22], %6 {strides = array<i32>} : memref<2x20x20x8xf32, #tpu.memory_space<vmem>>, vector<2x2x20x8xf32>,
    %cst_23 = arith.constant 0.000000e+00 : f32
    %9 = vector.broadcast %cst_23 : f32 to vector<2x20x2x8xf32>
    %c0_24 = arith.constant 0 : index
    %c0_25 = arith.constant 0 : index
    %c0_26 = arith.constant 0 : index
    %c0_27 = arith.constant 0 : index
    %10 = vector.load %arg10[%c0_24, %c0_25, %c0_26, %c0_27] : memref<2x20x20x8xf32, #tpu.memory_space<vmem>>, vector<2x20x2x8xf32>
    tpu.vector_store %arg10[%c0_24, %c0_25, %c0_26, %c0_27], %9 {strides = array<i32>} : memref<2x20x20x8xf32, #tpu.memory_space<vmem>>, vector<2x20x2x8xf32>,
    %c0_28 = arith.constant 0 : index
    %c0_29 = arith.constant 0 : index
    %c18_30 = arith.constant 18 : index
    %c0_31 = arith.constant 0 : index
    %11 = vector.load %arg10[%c0_28, %c0_29, %c18_30, %c0_31] : memref<2x20x20x8xf32, #tpu.memory_space<vmem>>, vector<2x20x2x8xf32>
    tpu.vector_store %arg10[%c0_28, %c0_29, %c18_30, %c0_31], %9 {strides = array<i32>} : memref<2x20x20x8xf32, #tpu.memory_space<vmem>>, vector<2x20x2x8xf32>,
    %c0_32 = arith.constant 0 : index
    %c0_33 = arith.constant 0 : index
    %c0_34 = arith.constant 0 : index
    %c0_35 = arith.constant 0 : index
    %12 = vector.load %arg1[%c0_32, %c0_33, %c0_34, %c0_35] : memref<2x16x16x4xf32, #tpu.memory_space<vmem>>, vector<2x16x16x4xf32>
    %c0_36 = arith.constant 0 : index
    %c0_37 = arith.constant 0 : index
    %13 = vector.load %arg4[%c0_36, %c0_37] : memref<1x4xf32, #tpu.memory_space<vmem>>, vector<1x4xf32>
    %14 = vector.shape_cast %13 : vector<1x4xf32> to vector<1x1x1x4xf32>
    %15 = vector.broadcast %14 : vector<1x1x1x4xf32> to vector<2x16x16x4xf32>
    %16 = arith.mulf %12, %15 : vector<2x16x16x4xf32>
    %c0_38 = arith.constant 0 : index
    %c0_39 = arith.constant 0 : index
    %17 = vector.load %arg5[%c0_38, %c0_39] : memref<1x4xf32, #tpu.memory_space<vmem>>, vector<1x4xf32>
    %18 = vector.shape_cast %17 : vector<1x4xf32> to vector<1x1x1x4xf32>
    %19 = vector.broadcast %18 : vector<1x1x1x4xf32> to vector<2x16x16x4xf32>
    %20 = arith.addf %16, %19 : vector<2x16x16x4xf32>
    %cst_40 = arith.constant 0.000000e+00 : f32
    %21 = vector.broadcast %cst_40 : f32 to vector<2x16x16x4xf32>
    %22 = arith.cmpf oge, %20, %21 : vector<2x16x16x4xf32>
    %cst_41 = arith.constant 1.000000e-01 : f32
    %23 = vector.broadcast %cst_41 : f32 to vector<2x16x16x4xf32>
    %24 = arith.mulf %23, %20 : vector<2x16x16x4xf32>
    %25 = arith.select %22, %20, %24 : vector<2x16x16x4xi1>, vector<2x16x16x4xf32>
    %c0_42 = arith.constant 0 : index
    %c1 = arith.constant 1 : index
    %c1_43 = arith.constant 1 : index
    %c0_44 = arith.constant 0 : index
    %26 = vector.load %arg9[%c0_42, %c1, %c1_43, %c0_44] : memref<2x18x18x4xf32, #tpu.memory_space<vmem>>, vector<2x16x16x4xf32>
    tpu.vector_store %arg9[%c0_42, %c1, %c1_43, %c0_44], %25 {strides = array<i32>} : memref<2x18x18x4xf32, #tpu.memory_space<vmem>>, vector<2x16x16x4xf32>,
    %c0_45 = arith.constant 0 : index
    %c0_46 = arith.constant 0 : index
    %c0_47 = arith.constant 0 : index
    %c0_48 = arith.constant 0 : index
    %27 = vector.load %arg9[%c0_45, %c0_46, %c0_47, %c0_48] : memref<2x18x18x4xf32, #tpu.memory_space<vmem>>, vector<2x16x16x4xf32>
    %28 = vector.shape_cast %27 : vector<2x16x16x4xf32> to vector<512x4xf32>
    %c0_49 = arith.constant 0 : index
    %c0_50 = arith.constant 0 : index
    %29 = vector.load %arg11[%c0_49, %c0_50] : memref<512x36xf32, #tpu.memory_space<vmem>>, vector<512x4xf32>
    tpu.vector_store %arg11[%c0_49, %c0_50], %28 {strides = array<i32>} : memref<512x36xf32, #tpu.memory_space<vmem>>, vector<512x4xf32>,
    %c0_51 = arith.constant 0 : index
    %c0_52 = arith.constant 0 : index
    %c1_53 = arith.constant 1 : index
    %c0_54 = arith.constant 0 : index
    %30 = vector.load %arg9[%c0_51, %c0_52, %c1_53, %c0_54] : memref<2x18x18x4xf32, #tpu.memory_space<vmem>>, vector<2x16x16x4xf32>
    %31 = vector.shape_cast %30 : vector<2x16x16x4xf32> to vector<512x4xf32>
    %c0_55 = arith.constant 0 : index
    %c4 = arith.constant 4 : index
    %32 = vector.load %arg11[%c0_55, %c4] : memref<512x36xf32, #tpu.memory_space<vmem>>, vector<512x4xf32>
    tpu.vector_store %arg11[%c0_55, %c4], %31 {strides = array<i32>} : memref<512x36xf32, #tpu.memory_space<vmem>>, vector<512x4xf32>,
    %c0_56 = arith.constant 0 : index
    %c0_57 = arith.constant 0 : index
    %c2 = arith.constant 2 : index
    %c0_58 = arith.constant 0 : index
    %33 = vector.load %arg9[%c0_56, %c0_57, %c2, %c0_58] : memref<2x18x18x4xf32, #tpu.memory_space<vmem>>, vector<2x16x16x4xf32>
    %34 = vector.shape_cast %33 : vector<2x16x16x4xf32> to vector<512x4xf32>
    %c0_59 = arith.constant 0 : index
    %c8 = arith.constant 8 : index
    %35 = vector.load %arg11[%c0_59, %c8] : memref<512x36xf32, #tpu.memory_space<vmem>>, vector<512x4xf32>
    tpu.vector_store %arg11[%c0_59, %c8], %34 {strides = array<i32>} : memref<512x36xf32, #tpu.memory_space<vmem>>, vector<512x4xf32>,
    %c0_60 = arith.constant 0 : index
    %c1_61 = arith.constant 1 : index
    %c0_62 = arith.constant 0 : index
    %c0_63 = arith.constant 0 : index
    %36 = vector.load %arg9[%c0_60, %c1_61, %c0_62, %c0_63] : memref<2x18x18x4xf32, #tpu.memory_space<vmem>>, vector<2x16x16x4xf32>
    %37 = vector.shape_cast %36 : vector<2x16x16x4xf32> to vector<512x4xf32>
    %c0_64 = arith.constant 0 : index
    %c12 = arith.constant 12 : index
    %38 = vector.load %arg11[%c0_64, %c12] : memref<512x36xf32, #tpu.memory_space<vmem>>, vector<512x4xf32>
    tpu.vector_store %arg11[%c0_64, %c12], %37 {strides = array<i32>} : memref<512x36xf32, #tpu.memory_space<vmem>>, vector<512x4xf32>,
    %c0_65 = arith.constant 0 : index
    %c1_66 = arith.constant 1 : index
    %c1_67 = arith.constant 1 : index
    %c0_68 = arith.constant 0 : index
    %39 = vector.load %arg9[%c0_65, %c1_66, %c1_67, %c0_68] : memref<2x18x18x4xf32, #tpu.memory_space<vmem>>, vector<2x16x16x4xf32>
    %40 = vector.shape_cast %39 : vector<2x16x16x4xf32> to vector<512x4xf32>
    %c0_69 = arith.constant 0 : index
    %c16 = arith.constant 16 : index
    %41 = vector.load %arg11[%c0_69, %c16] : memref<512x36xf32, #tpu.memory_space<vmem>>, vector<512x4xf32>
    tpu.vector_store %arg11[%c0_69, %c16], %40 {strides = array<i32>} : memref<512x36xf32, #tpu.memory_space<vmem>>, vector<512x4xf32>,
    %c0_70 = arith.constant 0 : index
    %c1_71 = arith.constant 1 : index
    %c2_72 = arith.constant 2 : index
    %c0_73 = arith.constant 0 : index
    %42 = vector.load %arg9[%c0_70, %c1_71, %c2_72, %c0_73] : memref<2x18x18x4xf32, #tpu.memory_space<vmem>>, vector<2x16x16x4xf32>
    %43 = vector.shape_cast %42 : vector<2x16x16x4xf32> to vector<512x4xf32>
    %c0_74 = arith.constant 0 : index
    %c20 = arith.constant 20 : index
    %44 = vector.load %arg11[%c0_74, %c20] : memref<512x36xf32, #tpu.memory_space<vmem>>, vector<512x4xf32>
    tpu.vector_store %arg11[%c0_74, %c20], %43 {strides = array<i32>} : memref<512x36xf32, #tpu.memory_space<vmem>>, vector<512x4xf32>,
    %c0_75 = arith.constant 0 : index
    %c2_76 = arith.constant 2 : index
    %c0_77 = arith.constant 0 : index
    %c0_78 = arith.constant 0 : index
    %45 = vector.load %arg9[%c0_75, %c2_76, %c0_77, %c0_78] : memref<2x18x18x4xf32, #tpu.memory_space<vmem>>, vector<2x16x16x4xf32>
    %46 = vector.shape_cast %45 : vector<2x16x16x4xf32> to vector<512x4xf32>
    %c0_79 = arith.constant 0 : index
    %c24 = arith.constant 24 : index
    %47 = vector.load %arg11[%c0_79, %c24] : memref<512x36xf32, #tpu.memory_space<vmem>>, vector<512x4xf32>
    tpu.vector_store %arg11[%c0_79, %c24], %46 {strides = array<i32>} : memref<512x36xf32, #tpu.memory_space<vmem>>, vector<512x4xf32>,
    %c0_80 = arith.constant 0 : index
    %c2_81 = arith.constant 2 : index
    %c1_82 = arith.constant 1 : index
    %c0_83 = arith.constant 0 : index
    %48 = vector.load %arg9[%c0_80, %c2_81, %c1_82, %c0_83] : memref<2x18x18x4xf32, #tpu.memory_space<vmem>>, vector<2x16x16x4xf32>
    %49 = vector.shape_cast %48 : vector<2x16x16x4xf32> to vector<512x4xf32>
    %c0_84 = arith.constant 0 : index
    %c28 = arith.constant 28 : index
    %50 = vector.load %arg11[%c0_84, %c28] : memref<512x36xf32, #tpu.memory_space<vmem>>, vector<512x4xf32>
    tpu.vector_store %arg11[%c0_84, %c28], %49 {strides = array<i32>} : memref<512x36xf32, #tpu.memory_space<vmem>>, vector<512x4xf32>,
    %c0_85 = arith.constant 0 : index
    %c2_86 = arith.constant 2 : index
    %c2_87 = arith.constant 2 : index
    %c0_88 = arith.constant 0 : index
    %51 = vector.load %arg9[%c0_85, %c2_86, %c2_87, %c0_88] : memref<2x18x18x4xf32, #tpu.memory_space<vmem>>, vector<2x16x16x4xf32>
    %52 = vector.shape_cast %51 : vector<2x16x16x4xf32> to vector<512x4xf32>
    %c0_89 = arith.constant 0 : index
    %c32 = arith.constant 32 : index
    %53 = vector.load %arg11[%c0_89, %c32] : memref<512x36xf32, #tpu.memory_space<vmem>>, vector<512x4xf32>
    tpu.vector_store %arg11[%c0_89, %c32], %52 {strides = array<i32>} : memref<512x36xf32, #tpu.memory_space<vmem>>, vector<512x4xf32>,
    %c0_90 = arith.constant 0 : index
    %c0_91 = arith.constant 0 : index
    %54 = vector.load %arg11[%c0_90, %c0_91] : memref<512x36xf32, #tpu.memory_space<vmem>>, vector<512x36xf32>
    %c0_92 = arith.constant 0 : index
    %c0_93 = arith.constant 0 : index
    %55 = vector.load %arg2[%c0_92, %c0_93] : memref<36x8xf32, #tpu.memory_space<vmem>>, vector<36x8xf32>
    %cst_94 = arith.constant dense<0.000000e+00> : vector<512x8xf32>
    %56 = tpu.matmul %54, %55, %cst_94 {dimension_numbers = #tpu.dot_dimension_numbers<[1], [0], [0], [1], [0, 0, 1, 1], [], []>} : vector<512x36xf32>, vector<36x8xf32>, vector<512x8xf32> -> vector<512x8xf32>
    %c0_95 = arith.constant 0 : index
    %c0_96 = arith.constant 0 : index
    %57 = vector.load %arg6[%c0_95, %c0_96] : memref<1x8xf32, #tpu.memory_space<vmem>>, vector<1x8xf32>
    %58 = vector.broadcast %57 : vector<1x8xf32> to vector<512x8xf32>
    %59 = arith.addf %56, %58 : vector<512x8xf32>
    %cst_97 = arith.constant 0.000000e+00 : f32
    %60 = vector.broadcast %cst_97 : f32 to vector<512x8xf32>
    %61 = arith.cmpf oge, %59, %60 : vector<512x8xf32>
    %cst_98 = arith.constant 1.000000e-01 : f32
    %62 = vector.broadcast %cst_98 : f32 to vector<512x8xf32>
    %63 = arith.mulf %62, %59 : vector<512x8xf32>
    %64 = arith.select %61, %59, %63 : vector<512x8xi1>, vector<512x8xf32>
    %65 = vector.shape_cast %64 : vector<512x8xf32> to vector<2x16x16x8xf32>
    %c0_99 = arith.constant 0 : index
    %c2_100 = arith.constant 2 : index
    %c2_101 = arith.constant 2 : index
    %c0_102 = arith.constant 0 : index
    %66 = vector.load %arg10[%c0_99, %c2_100, %c2_101, %c0_102] : memref<2x20x20x8xf32, #tpu.memory_space<vmem>>, vector<2x16x16x8xf32>
    tpu.vector_store %arg10[%c0_99, %c2_100, %c2_101, %c0_102], %65 {strides = array<i32>} : memref<2x20x20x8xf32, #tpu.memory_space<vmem>>, vector<2x16x16x8xf32>,
    %c0_103 = arith.constant 0 : index
    %c0_104 = arith.constant 0 : index
    %c0_105 = arith.constant 0 : index
    %c0_106 = arith.constant 0 : index
    %67 = vector.load %arg10[%c0_103, %c0_104, %c0_105, %c0_106] : memref<2x20x20x8xf32, #tpu.memory_space<vmem>>, vector<2x16x16x8xf32>
    %68 = vector.shape_cast %67 : vector<2x16x16x8xf32> to vector<512x8xf32>
    %c0_107 = arith.constant 0 : index
    %c0_108 = arith.constant 0 : index
    %69 = vector.load %arg12[%c0_107, %c0_108] : memref<512x72xf32, #tpu.memory_space<vmem>>, vector<512x8xf32>
    tpu.vector_store %arg12[%c0_107, %c0_108], %68 {strides = array<i32>} : memref<512x72xf32, #tpu.memory_space<vmem>>, vector<512x8xf32>,
    %c0_109 = arith.constant 0 : index
    %c0_110 = arith.constant 0 : index
    %c2_111 = arith.constant 2 : index
    %c0_112 = arith.constant 0 : index
    %70 = vector.load %arg10[%c0_109, %c0_110, %c2_111, %c0_112] : memref<2x20x20x8xf32, #tpu.memory_space<vmem>>, vector<2x16x16x8xf32>
    %71 = vector.shape_cast %70 : vector<2x16x16x8xf32> to vector<512x8xf32>
    %c0_113 = arith.constant 0 : index
    %c8_114 = arith.constant 8 : index
    %72 = vector.load %arg12[%c0_113, %c8_114] : memref<512x72xf32, #tpu.memory_space<vmem>>, vector<512x8xf32>
    tpu.vector_store %arg12[%c0_113, %c8_114], %71 {strides = array<i32>} : memref<512x72xf32, #tpu.memory_space<vmem>>, vector<512x8xf32>,
    %c0_115 = arith.constant 0 : index
    %c0_116 = arith.constant 0 : index
    %c4_117 = arith.constant 4 : index
    %c0_118 = arith.constant 0 : index
    %73 = vector.load %arg10[%c0_115, %c0_116, %c4_117, %c0_118] : memref<2x20x20x8xf32, #tpu.memory_space<vmem>>, vector<2x16x16x8xf32>
    %74 = vector.shape_cast %73 : vector<2x16x16x8xf32> to vector<512x8xf32>
    %c0_119 = arith.constant 0 : index
    %c16_120 = arith.constant 16 : index
    %75 = vector.load %arg12[%c0_119, %c16_120] : memref<512x72xf32, #tpu.memory_space<vmem>>, vector<512x8xf32>
    tpu.vector_store %arg12[%c0_119, %c16_120], %74 {strides = array<i32>} : memref<512x72xf32, #tpu.memory_space<vmem>>, vector<512x8xf32>,
    %c0_121 = arith.constant 0 : index
    %c2_122 = arith.constant 2 : index
    %c0_123 = arith.constant 0 : index
    %c0_124 = arith.constant 0 : index
    %76 = vector.load %arg10[%c0_121, %c2_122, %c0_123, %c0_124] : memref<2x20x20x8xf32, #tpu.memory_space<vmem>>, vector<2x16x16x8xf32>
    %77 = vector.shape_cast %76 : vector<2x16x16x8xf32> to vector<512x8xf32>
    %c0_125 = arith.constant 0 : index
    %c24_126 = arith.constant 24 : index
    %78 = vector.load %arg12[%c0_125, %c24_126] : memref<512x72xf32, #tpu.memory_space<vmem>>, vector<512x8xf32>
    tpu.vector_store %arg12[%c0_125, %c24_126], %77 {strides = array<i32>} : memref<512x72xf32, #tpu.memory_space<vmem>>, vector<512x8xf32>,
    %c0_127 = arith.constant 0 : index
    %c2_128 = arith.constant 2 : index
    %c2_129 = arith.constant 2 : index
    %c0_130 = arith.constant 0 : index
    %79 = vector.load %arg10[%c0_127, %c2_128, %c2_129, %c0_130] : memref<2x20x20x8xf32, #tpu.memory_space<vmem>>, vector<2x16x16x8xf32>
    %80 = vector.shape_cast %79 : vector<2x16x16x8xf32> to vector<512x8xf32>
    %c0_131 = arith.constant 0 : index
    %c32_132 = arith.constant 32 : index
    %81 = vector.load %arg12[%c0_131, %c32_132] : memref<512x72xf32, #tpu.memory_space<vmem>>, vector<512x8xf32>
    tpu.vector_store %arg12[%c0_131, %c32_132], %80 {strides = array<i32>} : memref<512x72xf32, #tpu.memory_space<vmem>>, vector<512x8xf32>,
    %c0_133 = arith.constant 0 : index
    %c2_134 = arith.constant 2 : index
    %c4_135 = arith.constant 4 : index
    %c0_136 = arith.constant 0 : index
    %82 = vector.load %arg10[%c0_133, %c2_134, %c4_135, %c0_136] : memref<2x20x20x8xf32, #tpu.memory_space<vmem>>, vector<2x16x16x8xf32>
    %83 = vector.shape_cast %82 : vector<2x16x16x8xf32> to vector<512x8xf32>
    %c0_137 = arith.constant 0 : index
    %c40 = arith.constant 40 : index
    %84 = vector.load %arg12[%c0_137, %c40] : memref<512x72xf32, #tpu.memory_space<vmem>>, vector<512x8xf32>
    tpu.vector_store %arg12[%c0_137, %c40], %83 {strides = array<i32>} : memref<512x72xf32, #tpu.memory_space<vmem>>, vector<512x8xf32>,
    %c0_138 = arith.constant 0 : index
    %c4_139 = arith.constant 4 : index
    %c0_140 = arith.constant 0 : index
    %c0_141 = arith.constant 0 : index
    %85 = vector.load %arg10[%c0_138, %c4_139, %c0_140, %c0_141] : memref<2x20x20x8xf32, #tpu.memory_space<vmem>>, vector<2x16x16x8xf32>
    %86 = vector.shape_cast %85 : vector<2x16x16x8xf32> to vector<512x8xf32>
    %c0_142 = arith.constant 0 : index
    %c48 = arith.constant 48 : index
    %87 = vector.load %arg12[%c0_142, %c48] : memref<512x72xf32, #tpu.memory_space<vmem>>, vector<512x8xf32>
    tpu.vector_store %arg12[%c0_142, %c48], %86 {strides = array<i32>} : memref<512x72xf32, #tpu.memory_space<vmem>>, vector<512x8xf32>,
    %c0_143 = arith.constant 0 : index
    %c4_144 = arith.constant 4 : index
    %c2_145 = arith.constant 2 : index
    %c0_146 = arith.constant 0 : index
    %88 = vector.load %arg10[%c0_143, %c4_144, %c2_145, %c0_146] : memref<2x20x20x8xf32, #tpu.memory_space<vmem>>, vector<2x16x16x8xf32>
    %89 = vector.shape_cast %88 : vector<2x16x16x8xf32> to vector<512x8xf32>
    %c0_147 = arith.constant 0 : index
    %c56 = arith.constant 56 : index
    %90 = vector.load %arg12[%c0_147, %c56] : memref<512x72xf32, #tpu.memory_space<vmem>>, vector<512x8xf32>
    tpu.vector_store %arg12[%c0_147, %c56], %89 {strides = array<i32>} : memref<512x72xf32, #tpu.memory_space<vmem>>, vector<512x8xf32>,
    %c0_148 = arith.constant 0 : index
    %c4_149 = arith.constant 4 : index
    %c4_150 = arith.constant 4 : index
    %c0_151 = arith.constant 0 : index
    %91 = vector.load %arg10[%c0_148, %c4_149, %c4_150, %c0_151] : memref<2x20x20x8xf32, #tpu.memory_space<vmem>>, vector<2x16x16x8xf32>
    %92 = vector.shape_cast %91 : vector<2x16x16x8xf32> to vector<512x8xf32>
    %c0_152 = arith.constant 0 : index
    %c64 = arith.constant 64 : index
    %93 = vector.load %arg12[%c0_152, %c64] : memref<512x72xf32, #tpu.memory_space<vmem>>, vector<512x8xf32>
    tpu.vector_store %arg12[%c0_152, %c64], %92 {strides = array<i32>} : memref<512x72xf32, #tpu.memory_space<vmem>>, vector<512x8xf32>,
    %c0_153 = arith.constant 0 : index
    %c0_154 = arith.constant 0 : index
    %94 = vector.load %arg12[%c0_153, %c0_154] : memref<512x72xf32, #tpu.memory_space<vmem>>, vector<512x72xf32>
    %c0_155 = arith.constant 0 : index
    %c0_156 = arith.constant 0 : index
    %95 = vector.load %arg3[%c0_155, %c0_156] : memref<72x8xf32, #tpu.memory_space<vmem>>, vector<72x8xf32>
    %cst_157 = arith.constant dense<0.000000e+00> : vector<512x8xf32>
    %96 = tpu.matmul %94, %95, %cst_157 {dimension_numbers = #tpu.dot_dimension_numbers<[1], [0], [0], [1], [0, 0, 1, 1], [], []>} : vector<512x72xf32>, vector<72x8xf32>, vector<512x8xf32> -> vector<512x8xf32>
    %c0_158 = arith.constant 0 : index
    %c1_159 = arith.constant 1 : index
    %c1_160 = arith.constant 1 : index
    %c0_161 = arith.constant 0 : index
    %97 = vector.load %arg9[%c0_158, %c1_159, %c1_160, %c0_161] : memref<2x18x18x4xf32, #tpu.memory_space<vmem>>, vector<2x16x16x4xf32>
    %98 = vector.shape_cast %97 : vector<2x16x16x4xf32> to vector<512x4xf32>
    %c0_162 = arith.constant 0 : index
    %c0_163 = arith.constant 0 : index
    %99 = vector.load %arg7[%c0_162, %c0_163] : memref<4x8xf32, #tpu.memory_space<vmem>>, vector<4x8xf32>
    %cst_164 = arith.constant dense<0.000000e+00> : vector<512x8xf32>
    %100 = tpu.matmul %98, %99, %cst_164 {dimension_numbers = #tpu.dot_dimension_numbers<[1], [0], [0], [1], [0, 0, 1, 1], [], []>} : vector<512x4xf32>, vector<4x8xf32>, vector<512x8xf32> -> vector<512x8xf32>
    %101 = arith.addf %96, %100 : vector<512x8xf32>
    %102 = vector.shape_cast %101 : vector<512x8xf32> to vector<2x16x16x8xf32>
    %c0_165 = arith.constant 0 : index
    %c0_166 = arith.constant 0 : index
    %c0_167 = arith.constant 0 : index
    %c0_168 = arith.constant 0 : index
    %103 = vector.load %arg8[%c0_165, %c0_166, %c0_167, %c0_168] : memref<2x16x16x8xf32, #tpu.memory_space<vmem>>, vector<2x16x16x8xf32>
    tpu.vector_store %arg8[%c0_165, %c0_166, %c0_167, %c0_168], %102 {strides = array<i32>} : memref<2x16x16x8xf32, #tpu.memory_space<vmem>>, vector<2x16x16x8xf32>,
    return
  }
  func.func @transform_0(%arg0: i32) -> (i32, i32, i32, i32) {
    %c0_i32 = arith.constant 0 : i32
    %c0_i32_0 = arith.constant 0 : i32
    %c0_i32_1 = arith.constant 0 : i32
    %c0_i32_2 = arith.constant 0 : i32
    return %arg0, %c0_i32, %c0_i32_0, %c0_i32_1 : i32, i32, i32, i32
  }
  func.func @transform_1(%arg0: i32) -> (i32, i32) {
    %c0_i32 = arith.constant 0 : i32
    %c0_i32_0 = arith.constant 0 : i32
    %c0_i32_1 = arith.constant 0 : i32
    return %c0_i32, %c0_i32_0 : i32, i32
  }
  func.func @transform_2(%arg0: i32) -> (i32, i32) {
    %c0_i32 = arith.constant 0 : i32
    %c0_i32_0 = arith.constant 0 : i32
    %c0_i32_1 = arith.constant 0 : i32
    return %c0_i32, %c0_i32_0 : i32, i32
  }
  func.func @transform_3(%arg0: i32) -> (i32, i32) {
    %c0_i32 = arith.constant 0 : i32
    %c0_i32_0 = arith.constant 0 : i32
    %c0_i32_1 = arith.constant 0 : i32
    return %c0_i32, %c0_i32_0 : i32, i32
  }
  func.func @transform_4(%arg0: i32) -> (i32, i32) {
    %c0_i32 = arith.constant 0 : i32
    %c0_i32_0 = arith.constant 0 : i32
    %c0_i32_1 = arith.constant 0 : i32
    return %c0_i32, %c0_i32_0 : i32, i32
  }
  func.func @transform_5(%arg0: i32) -> (i32, i32) {
    %c0_i32 = arith.constant 0 : i32
    %c0_i32_0 = arith.constant 0 : i32
    %c0_i32_1 = arith.constant 0 : i32
    return %c0_i32, %c0_i32_0 : i32, i32
  }
  func.func @transform_6(%arg0: i32) -> (i32, i32) {
    %c0_i32 = arith.constant 0 : i32
    %c0_i32_0 = arith.constant 0 : i32
    %c0_i32_1 = arith.constant 0 : i32
    return %c0_i32, %c0_i32_0 : i32, i32
  }
  func.func @transform_7(%arg0: i32) -> (i32, i32, i32, i32) {
    %c0_i32 = arith.constant 0 : i32
    %c0_i32_0 = arith.constant 0 : i32
    %c0_i32_1 = arith.constant 0 : i32
    %c0_i32_2 = arith.constant 0 : i32
    return %arg0, %c0_i32, %c0_i32_0, %c0_i32_1 : i32, i32, i32, i32
  }
}

</mosaic_0001>

<bundles_post_ra>
// kernel: tpu_custom_call.1
= control target key start
LH: loop header
LB: loop body
LE: loop exit
PB: predicated region body
PF: predicated region fallthrough
CT: control target
= control target key end

     0   :  { %vm26_vm0 = vcmask 31744   ;;  %vm41_vm1 = vcmask 24576   ;;  %vm29_vm2 = vcmask 25600   ;;  %v14543_v0 = vmov 0.0   ;;  %s10218_s27 = smov 4   ;;  %s10221_s25 = smov 16   ;;  %s14535_s0 = inlined_call_operand.vmem [shape: f32[2,16,16,4], index: 0, kind: input, shape index: {}]   ;;  %s14536_s3 = inlined_call_operand.vmem [shape: f32[1,4], index: 3, kind: input, shape index: {}]   ;;  %s14537_s4 = inlined_call_operand.vmem [shape: f32[1,4], index: 4, kind: input, shape index: {}]   ;;  %s14538_s1 = inlined_call_operand.vmem [shape: f32[36,8], index: 1, kind: input, shape index: {}]   ;;  %s14539_s5 = inlined_call_operand.vmem [shape: f32[1,8], index: 5, kind: input, shape index: {}]   ;;  %s14540_s6 = inlined_call_operand.vmem [shape: f32[4,8], index: 6, kind: input, shape index: {}]   ;;  %s14541_s2 = inlined_call_operand.vmem [shape: f32[72,8], index: 2, kind: input, shape index: {}]   ;;  %s14542_s7 = inlined_call_operand.vmem [shape: f32[2,16,16,8], index: 7, kind: output, shape index: {}]  }
   0x1   :  { %27 = vst.msk [vmem:[#allocation2] sm:$0xff] %vm26_vm0, %v14543_v0  ;;  %28 = vst.msk [vmem:[#allocation2 + $0x8] sm:$0xff] %vm26_vm0, %v14543_v0  ;;  %v222_v1 = vld [vmem:[%s14535_s0] sm:$0xff]  ;;  %v223_v5 = vld [vmem:[%s14535_s0 + $0x8] sm:$0xff]  ;;  %s10222_s26 = smov 20   ;;  %s10223_s28 = smov 24  }
   0x2   :  { %31 = vst.msk [vmem:[#allocation2 + $0x1b0] sm:$0xff] %vm26_vm0, %v14543_v0  ;;  %32 = vst.msk [vmem:[#allocation2 + $0x1b8] sm:$0xff] %vm26_vm0, %v14543_v0  ;;  %v10420_v2 = vld [vmem:[%s14536_s3] ss:$0 sm:$0xff]  ;;  %v224_v6 = vld [vmem:[%s14535_s0 + $0x10] sm:$0xff]  ;;  %s10224_s29 = smov 28  }
   0x3   :  { %35 = vst.msk [vmem:[#allocation2 + $0x198] sm:$0xff] %vm26_vm0, %v14543_v0  ;;  %36 = vst.msk [vmem:[#allocation2 + $0x1a0] sm:$0xff] %vm26_vm0, %v14543_v0  ;;  %v10425_v3 = vld [vmem:[%s14537_s4] ss:$0 sm:$0xff]  ;;  %v293_v4 = vmul.f32 %v10420_v2, %v222_v1  ;;  %v225_v7 = vld [vmem:[%s14535_s0 + $0x18] sm:$0xff]  ;;  %v294_v8 = vmul.f32 %v10420_v2, %v223_v5  ;;  %v295_v9 = vmul.f32 %v10420_v2, %v224_v6  ;;  %s10225_s17 = smov 32  }
   0x4   :  { %38 = vst.msk [vmem:[#allocation2 + $0x348] sm:$0xff] %vm26_vm0, %v14543_v0  ;;  %39 = vst.msk [vmem:[#allocation2 + $0x350] sm:$0xff] %vm26_vm0, %v14543_v0  ;;  %v296_v10 = vmul.f32 %v10420_v2, %v225_v7  ;;  %v226_v11 = vld [vmem:[%s14535_s0 + $0x20] sm:$0xff]  ;;  %v227_v12 = vld [vmem:[%s14535_s0 + $0x28] sm:$0xff]  ;;  %s10227_s8 = smov 48   ;;  %s10228_s13 = smov 56  }
   0x5   :  { %43 = vst.msk [vmem:[#allocation2 + $0x18] sm:$0x1] %vm41_vm1, %v14543_v0  ;;  %44 = vst.msk [vmem:[#allocation2 + $0x30] sm:$0x1] %vm41_vm1, %v14543_v0  ;;  %v228_v13 = vld [vmem:[%s14535_s0 + $0x30] sm:$0xff]  ;;  %v364_v14 = vadd.f32 %v10425_v3, %v293_v4  ;;  %v297_v15 = vmul.f32 %v10420_v2, %v226_v11  ;;  %v298_v16 = vmul.f32 %v10420_v2, %v227_v12  ;;  %v229_v18 = vld [vmem:[%s14535_s0 + $0x38] sm:$0xff] }
   0x6   :  { %45 = vst.msk [vmem:[#allocation2 + $0x48] sm:$0x1] %vm41_vm1, %v14543_v0  ;;  %46 = vst.msk [vmem:[#allocation2 + $0x60] sm:$0x1] %vm41_vm1, %v14543_v0  ;;  %v299_v17 = vmul.f32 %v10420_v2, %v228_v13  ;;  %v365_v19 = vadd.f32 %v10425_v3, %v294_v8  ;;  %v366_v20 = vadd.f32 %v10425_v3, %v295_v9  ;;  %v230_v26 = vld [vmem:[%s14535_s0 + $0x40] sm:$0xff]  ;;  %v231_v27 = vld [vmem:[%s14535_s0 + $0x48] sm:$0xff] }
   0x7   :  { %47 = vst.msk [vmem:[#allocation2 + $0x78] sm:$0x1] %vm41_vm1, %v14543_v0  ;;  %48 = vst.msk [vmem:[#allocation2 + $0x90] sm:$0x1] %vm41_vm1, %v14543_v0  ;;  %v367_v21 = vadd.f32 %v10425_v3, %v296_v10  ;;  %v300_v22 = vmul.f32 %v10420_v2, %v229_v18  ;;  %vm428_vm3 = vcmp.ge.f32.partialorder %v364_v14, 0.0  ;;  %v368_v24 = vadd.f32 %v10425_v3, %v297_v15  ;;  %v232_v33 = vld [vmem:[%s14535_s0 + $0x50] sm:$0xff] }
   0x8   :  { %49 = vst.msk [vmem:[#allocation2 + $0xa8] sm:$0x1] %vm41_vm1, %v14543_v0  ;;  %50 = vst.msk [vmem:[#allocation2 + $0xc0] sm:$0x1] %vm41_vm1, %v14543_v0  ;;  %v492_v23 = vmul.f32 0.1, %v364_v14  ;;  %v369_v25 = vadd.f32 %v10425_v3, %v298_v16  ;;  %v370_v40 = vadd.f32 %v10425_v3, %v299_v17  ;;  %v301_v43 = vmul.f32 %v10420_v2, %v230_v26 }
   0x9   :  { %51 = vst.msk [vmem:[#allocation2 + $0xd8] sm:$0x1] %vm41_vm1, %v14543_v0  ;;  %52 = vst.msk [vmem:[#allocation2 + $0xf0] sm:$0x1] %vm41_vm1, %v14543_v0  ;;  %vm429_vm4 = vcmp.ge.f32.partialorder %v365_v19, 0.0  ;;  %vm430_vm5 = vcmp.ge.f32.partialorder %v366_v20, 0.0  ;;  %v371_v41 = vadd.f32 %v10425_v3, %v300_v22  ;;  %v302_v44 = vmul.f32 %v10420_v2, %v231_v27 }
   0xa   :  { %53 = vst.msk [vmem:[#allocation2 + $0x108] sm:$0x1] %vm41_vm1, %v14543_v0  ;;  %54 = vst.msk [vmem:[#allocation2 + $0x120] sm:$0x1] %vm41_vm1, %v14543_v0  ;;  %v493_v28 = vmul.f32 0.1, %v365_v19  ;;  %v556_v31 = vsel %vm428_vm3, %v364_v14, %v492_v23  ;;  %v303_v45 = vmul.f32 %v10420_v2, %v232_v33  ;;  %v372_v52 = vadd.f32 %v10425_v3, %v301_v43 }
   0xb   :  { %55 = vst.msk [vmem:[#allocation2 + $0x138] sm:$0x1] %vm41_vm1, %v14543_v0  ;;  %56 = vst.msk [vmem:[#allocation2 + $0x150] sm:$0x1] %vm41_vm1, %v14543_v0  ;;  %v494_v29 = vmul.f32 0.1, %v366_v20  ;;  %v373_v53 = vadd.f32 %v10425_v3, %v302_v44 }
   0xc   :  { %57 = vst.msk [vmem:[#allocation2 + $0x168] sm:$0x1] %vm41_vm1, %v14543_v0  ;;  %58 = vst.msk [vmem:[#allocation2 + $0x180] sm:$0x1] %vm41_vm1, %v14543_v0  ;;  %v813_v30 = vld [vmem:[#allocation2 + $0x1] sm:$0xff]  ;;  %vm431_vm6 = vcmp.ge.f32.partialorder %v367_v21, 0.0  ;;  %v557_v34 = vsel %vm429_vm4, %v365_v19, %v493_v28  ;;  %v374_v54 = vadd.f32 %v10425_v3, %v303_v45 }
   0xd   :  { %61 = vst.msk [vmem:[#allocation2 + $0x1c8] sm:$0x1] %vm41_vm1, %v14543_v0  ;;  %62 = vst.msk [vmem:[#allocation2 + $0x1e0] sm:$0x1] %vm41_vm1, %v14543_v0  ;;  %v495_v32 = vmul.f32 0.1, %v367_v21  ;;  %941 = vrot.lane.b32.xlu0 %v813_v30, %s10218_s27  ;;  %v558_v35 = vsel %vm430_vm5, %v366_v20, %v494_v29 }
   0xe   :  { %63 = vst.msk [vmem:[#allocation2 + $0x1f8] sm:$0x1] %vm41_vm1, %v14543_v0  ;;  %64 = vst.msk [vmem:[#allocation2 + $0x210] sm:$0x1] %vm41_vm1, %v14543_v0  ;;  %vm432_vm7 = vcmp.ge.f32.partialorder %v368_v24, 0.0  ;;  %vm433_vm8 = vcmp.ge.f32.partialorder %v369_v25, 0.0 }
   0xf   :  { %65 = vst.msk [vmem:[#allocation2 + $0x228] sm:$0x1] %vm41_vm1, %v14543_v0  ;;  %66 = vst.msk [vmem:[#allocation2 + $0x240] sm:$0x1] %vm41_vm1, %v14543_v0  ;;  %v496_v36 = vmul.f32 0.1, %v368_v24  ;;  %v559_v38 = vsel %vm431_vm6, %v367_v21, %v495_v32 }
  0x10   :  { %67 = vst.msk [vmem:[#allocation2 + $0x258] sm:$0x1] %vm41_vm1, %v14543_v0  ;;  %68 = vst.msk [vmem:[#allocation2 + $0x270] sm:$0x1] %vm41_vm1, %v14543_v0  ;;  %v497_v39 = vmul.f32 0.1, %v369_v25 }
  0x11   :  { %69 = vst.msk [vmem:[#allocation2 + $0x288] sm:$0x1] %vm41_vm1, %v14543_v0  ;;  %70 = vst.msk [vmem:[#allocation2 + $0x2a0] sm:$0x1] %vm41_vm1, %v14543_v0  ;;  %v560_v42 = vsel %vm432_vm7, %v368_v24, %v496_v36  ;;  %v233_v46 = vld [vmem:[%s14535_s0 + $0x58] sm:$0xff]  ;;  %v234_v47 = vld [vmem:[%s14535_s0 + $0x60] sm:$0xff] }
  0x12   :  { %71 = vst.msk [vmem:[#allocation2 + $0x2b8] sm:$0x1] %vm41_vm1, %v14543_v0  ;;  %72 = vst.msk [vmem:[#allocation2 + $0x2d0] sm:$0x1] %vm41_vm1, %v14543_v0  ;;  %v235_v48 = vld [vmem:[%s14535_s0 + $0x68] sm:$0xff]  ;;  %v561_v49 = vsel %vm433_vm8, %v369_v25, %v497_v39  ;;  %vm434_vm9 = vcmp.ge.f32.partialorder %v370_v40, 0.0  ;;  %v304_v56 = vmul.f32 %v10420_v2, %v233_v46  ;;  %v305_v57 = vmul.f32 %v10420_v2, %v234_v47 }
  0x13   :  { %73 = vst.msk [vmem:[#allocation2 + $0x2e8] sm:$0x1] %vm41_vm1, %v14543_v0  ;;  %74 = vst.msk [vmem:[#allocation2 + $0x300] sm:$0x1] %vm41_vm1, %v14543_v0  ;;  %v498_v50 = vmul.f32 0.1, %v370_v40  ;;  %v306_v58 = vmul.f32 %v10420_v2, %v235_v48 }
  0x14   :  { %75 = vst.msk [vmem:[#allocation2 + $0x318] sm:$0x1] %vm41_vm1, %v14543_v0  ;;  %76 = vst.msk [vmem:[#allocation2 + $0x330] sm:$0x1] %vm41_vm1, %v14543_v0  ;;  %vm435_vm10 = vcmp.ge.f32.partialorder %v371_v41, 0.0  ;;  %v236_v59 = vld [vmem:[%s14535_s0 + $0x70] sm:$0xff]  ;;  %v375_v4 = vadd.f32 %v10425_v3, %v304_v56  ;;  %v376_v7 = vadd.f32 %v10425_v3, %v305_v57 }
  0x15   :  { %79 = vst.msk [vmem:[#allocation2 + $0x29] sm:$0x1] %vm41_vm1, %v14543_v0  ;;  %80 = vst.msk [vmem:[#allocation2 + $0x41] sm:$0x1] %vm41_vm1, %v14543_v0  ;;  %v499_v51 = vmul.f32 0.1, %v371_v41  ;;  %v562_v55 = vsel %vm434_vm9, %v370_v40, %v498_v50  ;;  %v377_v8 = vadd.f32 %v10425_v3, %v306_v58  ;;  %v307_v9 = vmul.f32 %v10420_v2, %v236_v59 }
  0x16   :  { %81 = vst.msk [vmem:[#allocation2 + $0x59] sm:$0x1] %vm41_vm1, %v14543_v0  ;;  %82 = vst.msk [vmem:[#allocation2 + $0x71] sm:$0x1] %vm41_vm1, %v14543_v0  ;;  %vm436_vm11 = vcmp.ge.f32.partialorder %v372_v52, 0.0  ;;  %vm437_vm12 = vcmp.ge.f32.partialorder %v373_v53, 0.0 }
  0x17   :  { %83 = vst.msk [vmem:[#allocation2 + $0x89] sm:$0x1] %vm41_vm1, %v14543_v0  ;;  %84 = vst.msk [vmem:[#allocation2 + $0xa1] sm:$0x1] %vm41_vm1, %v14543_v0  ;;  %v563_v60 = vsel %vm435_vm10, %v371_v41, %v499_v51  ;;  %v500_v61 = vmul.f32 0.1, %v372_v52  ;;  %v378_v19 = vadd.f32 %v10425_v3, %v307_v9 }
  0x18   :  { %85 = vst.msk [vmem:[#allocation2 + $0xb9] sm:$0x1] %vm41_vm1, %v14543_v0  ;;  %86 = vst.msk [vmem:[#allocation2 + $0xd1] sm:$0x1] %vm41_vm1, %v14543_v0  ;;  %v501_v63 = vmul.f32 0.1, %v373_v53 }
  0x19   :  { %87 = vst.msk [vmem:[#allocation2 + $0xe9] sm:$0x1] %vm41_vm1, %v14543_v0  ;;  %88 = vst.msk [vmem:[#allocation2 + $0x101] sm:$0x1] %vm41_vm1, %v14543_v0  ;;  %vm438_vm13 = vcmp.ge.f32.partialorder %v374_v54, 0.0  ;;  %v564_v6 = vsel %vm436_vm11, %v372_v52, %v500_v61  ;;  %v237_v10 = vld [vmem:[%s14535_s0 + $0x78] sm:$0xff] }
  0x1a   :  { %89 = vst.msk [vmem:[#allocation2 + $0x119] sm:$0x1] %vm41_vm1, %v14543_v0  ;;  %90 = vst.msk [vmem:[#allocation2 + $0x131] sm:$0x1] %vm41_vm1, %v14543_v0  ;;  %v502_v1 = vmul.f32 0.1, %v374_v54  ;;  %v565_v13 = vsel %vm437_vm12, %v373_v53, %v501_v63  ;;  %v308_v23 = vmul.f32 %v10420_v2, %v237_v10 }
  0x1b   :  { %91 = vst.msk [vmem:[#allocation2 + $0x149] sm:$0x1] %vm41_vm1, %v14543_v0  ;;  %92 = vst.msk [vmem:[#allocation2 + $0x161] sm:$0x1] %vm41_vm1, %v14543_v0  ;;  %v238_v11 = vld [vmem:[%s14535_s0 + $0x80] sm:$0xff]  ;;  %vm439_vm14 = vcmp.ge.f32.partialorder %v375_v4, 0.0 }
  0x1c   :  { %93 = vst.msk [vmem:[#allocation2 + $0x179] sm:$0x1] %vm41_vm1, %v14543_v0  ;;  %94 = vst.msk [vmem:[#allocation2 + $0x191] sm:$0x1] %vm41_vm1, %v14543_v0  ;;  %v566_v14 = vsel %vm438_vm13, %v374_v54, %v502_v1  ;;  %v503_v15 = vmul.f32 0.1, %v375_v4  ;;  %v309_v24 = vmul.f32 %v10420_v2, %v238_v11  ;;  %v379_v32 = vadd.f32 %v10425_v3, %v308_v23 }
  0x1d   :  { %97 = vst.msk [vmem:[#allocation2 + $0x1d9] sm:$0x1] %vm41_vm1, %v14543_v0  ;;  %98 = vst.msk [vmem:[#allocation2 + $0x1f1] sm:$0x1] %vm41_vm1, %v14543_v0  ;;  %v239_v16 = vld [vmem:[%s14535_s0 + $0x88] sm:$0xff]  ;;  %vm440_vm15 = vcmp.ge.f32.partialorder %v376_v7, 0.0 }
  0x1e   :  { %99 = vst.msk [vmem:[#allocation2 + $0x209] sm:$0x1] %vm41_vm1, %v14543_v0  ;;  %100 = vst.msk [vmem:[#allocation2 + $0x221] sm:$0x1] %vm41_vm1, %v14543_v0  ;;  %v504_v18 = vmul.f32 0.1, %v376_v7  ;;  %v567_v21 = vsel %vm439_vm14, %v375_v4, %v503_v15  ;;  %v310_v29 = vmul.f32 %v10420_v2, %v239_v16  ;;  %v380_v33 = vadd.f32 %v10425_v3, %v309_v24 }
  0x1f   :  { %101 = vst.msk [vmem:[#allocation2 + $0x239] sm:$0x1] %vm41_vm1, %v14543_v0  ;;  %102 = vst.msk [vmem:[#allocation2 + $0x251] sm:$0x1] %vm41_vm1, %v14543_v0  ;;  %v240_v20 = vld [vmem:[%s14535_s0 + $0x90] sm:$0xff]  ;;  %v241_v25 = vld [vmem:[%s14535_s0 + $0x98] sm:$0xff] }
  0x20   :  { %103 = vst.msk [vmem:[#allocation2 + $0x269] sm:$0x1] %vm41_vm1, %v14543_v0  ;;  %104 = vst.msk [vmem:[#allocation2 + $0x281] sm:$0x1] %vm41_vm1, %v14543_v0  ;;  %v505_v22 = vmul.f32 0.1, %v377_v8  ;;  %v568_v27 = vsel %vm440_vm15, %v376_v7, %v504_v18 }
  0x21   :  { %105 = vst.msk [vmem:[#allocation2 + $0x299] sm:$0x1] %vm41_vm1, %v14543_v0  ;;  %106 = vst.msk [vmem:[#allocation2 + $0x2b1] sm:$0x1] %vm41_vm1, %v14543_v0  ;;  %v242_v26 = vld [vmem:[%s14535_s0 + $0xa0] sm:$0xff]  ;;  %v243_v40 = vld [vmem:[%s14535_s0 + $0xa8] sm:$0xff] }
  0x22   :  { %107 = vst.msk [vmem:[#allocation2 + $0x2c9] sm:$0x1] %vm41_vm1, %v14543_v0  ;;  %108 = vst.msk [vmem:[#allocation2 + $0x2e1] sm:$0x1] %vm41_vm1, %v14543_v0  ;;  %v506_v28 = vmul.f32 0.1, %v378_v19  ;;  %v313_v39 = vmul.f32 %v10420_v2, %v242_v26  ;;  %v314_v51 = vmul.f32 %v10420_v2, %v243_v40 }
  0x23   :  { %109 = vst.msk [vmem:[#allocation2 + $0x2f9] sm:$0x1] %vm41_vm1, %v14543_v0  ;;  %110 = vst.msk [vmem:[#allocation2 + $0x311] sm:$0x1] %vm41_vm1, %v14543_v0  ;;  %vm443_vm3 = vcmp.ge.f32.partialorder %v379_v32, 0.0  ;;  %vm444_vm4 = vcmp.ge.f32.partialorder %v380_v33, 0.0 }
  0x24   :  { %111 = vst.msk [vmem:[#allocation2 + $0x329] sm:$0x1] %vm41_vm1, %v14543_v0  ;;  %112 = vst.msk [vmem:[#allocation2 + $0x341] sm:$0x1] %vm41_vm1, %v14543_v0  ;;  %v507_v41 = vmul.f32 0.1, %v379_v32  ;;  %v384_v50 = vadd.f32 %v10425_v3, %v313_v39  ;;  %v385_v59 = vadd.f32 %v10425_v3, %v314_v51 }
  0x25   :  { %30 = vst.msk [vmem:[#allocation2 + $0x10] sm:$0x3] %vm29_vm2, %v14543_v0  ;;  %33 = vst.msk [vmem:[#allocation2 + $0x1c0] sm:$0x3] %vm29_vm2, %v14543_v0  ;;  %v244_v46 = vld [vmem:[%s14535_s0 + $0xb0] sm:$0xff]  ;;  %v245_v52 = vld [vmem:[%s14535_s0 + $0xb8] sm:$0xff] }
  0x26   :  { %37 = vst.msk [vmem:[#allocation2 + $0x1a8] sm:$0x3] %vm29_vm2, %v14543_v0  ;;  %40 = vst.msk [vmem:[#allocation2 + $0x358] sm:$0x3] %vm29_vm2, %v14543_v0  ;;  %vm442_vm2 = vcmp.ge.f32.partialorder %v378_v19, 0.0  ;;  %v571_v48 = vsel %vm443_vm3, %v379_v32, %v507_v41  ;;  %v246_v53 = vld [vmem:[%s14535_s0 + $0xc0] sm:$0xff]  ;;  %v316_v63 = vmul.f32 %v10420_v2, %v245_v52 }
  0x27   :  { %42 = vst.msk [vmem:[#allocation2] sm:$0x1] %vm41_vm1, %v14543_v0  ;;  %59 = vst.msk [vmem:[#allocation2 + $0x198] sm:$0x1] %vm41_vm1, %v14543_v0  ;;  %v570_v36 = vsel %vm442_vm2, %v378_v19, %v506_v28  ;;  %vm448_vm8 = vcmp.ge.f32.partialorder %v384_v50, 0.0  ;;  %v317_v1 = vmul.f32 %v10420_v2, %v246_v53  ;;  %v248_v4 = vld [vmem:[%s14535_s0 + $0xd0] sm:$0xff] }
  0x28   :  { %60 = vst.msk [vmem:[#allocation2 + $0x1b0] sm:$0x1] %vm41_vm1, %v14543_v0  ;;  %77 = vst.msk [vmem:[#allocation2 + $0x348] sm:$0x1] %vm41_vm1, %v14543_v0  ;;  %v512_v58 = vmul.f32 0.1, %v384_v50  ;;  %v319_v19 = vmul.f32 %v10420_v2, %v248_v4 }
  0x29   :  { %78 = vst.msk [vmem:[#allocation2 + $0x11] sm:$0x1] %vm41_vm1, %v14543_v0  ;;  %95 = vst.msk [vmem:[#allocation2 + $0x1a9] sm:$0x1] %vm41_vm1, %v14543_v0  ;;  %vm449_vm9 = vcmp.ge.f32.partialorder %v385_v59, 0.0  ;;  %v388_v15 = vadd.f32 %v10425_v3, %v317_v1  ;;  %v256_v41 = vld [vmem:[%s14535_s0 + $0x110] sm:$0xff] }
  0x2a   :  { %96 = vst.msk [vmem:[#allocation2 + $0x1c1] sm:$0x1] %vm41_vm1, %v14543_v0  ;;  %113 = vst.msk [vmem:[#allocation2 + $0x359] sm:$0x1] %vm41_vm1, %v14543_v0  ;;  %vm441_vm1 = vcmp.ge.f32.partialorder %v377_v8, 0.0  ;;  %v576_v9 = vsel %vm448_vm8, %v384_v50, %v512_v58  ;;  %v258_v51 = vld [vmem:[%s14535_s0 + $0x120] sm:$0xff] }
  0x2b   :  { %621 = vst.msk [vmem:[#allocation2 + $0x19] sm:$0xff] %vm26_vm0, %v556_v31  ;;  %622 = vst.msk [vmem:[#allocation2 + $0x21] sm:$0xff] %vm26_vm0, %v557_v34  ;;  %v569_v31 = vsel %vm441_vm1, %v377_v8, %v505_v22  ;;  %v311_v34 = vmul.f32 %v10420_v2, %v240_v20  ;;  %v513_v10 = vmul.f32 0.1, %v385_v59  ;;  %v686_v22 = vld [vmem:[#allocation2 + $0x8] sm:$0xff]  ;;  %vm452_vm12 = vcmp.ge.f32.partialorder %v388_v15, 0.0 }
  0x2c   :  { %v814_v37 = vld [vmem:[#allocation2 + $0x9] sm:$0xff]  ;;  %623 = vst.msk [vmem:[#allocation2 + $0x31] sm:$0xff] %vm26_vm0, %v558_v35  ;;  %624 = vst.msk [vmem:[#allocation2 + $0x39] sm:$0xff] %vm26_vm0, %v559_v38  ;;  %v312_v38 = vmul.f32 %v10420_v2, %v241_v25  ;;  %s10229_s16 = smov 64  }
  0x2d   :  { %625 = vst.msk [vmem:[#allocation2 + $0x49] sm:$0xff] %vm26_vm0, %v560_v42  ;;  %943 = vrot.lane.b32.xlu0 %v814_v37, %s10218_s27  ;;  %626 = vst.msk [vmem:[#allocation2 + $0x51] sm:$0xff] %vm26_vm0, %v561_v49  ;;  %v381_v37 = vadd.f32 %v10425_v3, %v310_v29  ;;  %v508_v42 = vmul.f32 0.1, %v380_v33  ;;  %v382_v44 = vadd.f32 %v10425_v3, %v311_v34 }
  0x2e   :  { %627 = vst.msk [vmem:[#allocation2 + $0x61] sm:$0xff] %vm26_vm0, %v562_v55  ;;  %628 = vst.msk [vmem:[#allocation2 + $0x69] sm:$0xff] %vm26_vm0, %v563_v60  ;;  %v383_v45 = vadd.f32 %v10425_v3, %v312_v38  ;;  %v247_v60 = vld [vmem:[%s14535_s0 + $0xc8] sm:$0xff]  ;;  %v685_v11 = vld [vmem:[#allocation2] sm:$0xff]  ;;  %v577_v18 = vsel %vm449_vm9, %v385_v59, %v513_v10  ;;  %v390_v29 = vadd.f32 %v10425_v3, %v319_v19 }
  0x2f   :  { %629 = vst.msk [vmem:[#allocation2 + $0x79] sm:$0xff] %vm26_vm0, %v564_v6  ;;  %630 = vst.msk [vmem:[#allocation2 + $0x81] sm:$0xff] %vm26_vm0, %v565_v13  ;;  %vm445_vm5 = vcmp.ge.f32.partialorder %v381_v37, 0.0  ;;  %v509_v43 = vmul.f32 0.1, %v381_v37  ;;  %v572_v49 = vsel %vm444_vm4, %v380_v33, %v508_v42  ;;  %vm446_vm6 = vcmp.ge.f32.partialorder %v382_v44, 0.0 }
  0x30   :  { %631 = vst.msk [vmem:[#allocation2 + $0x91] sm:$0xff] %vm26_vm0, %v566_v14  ;;  %632 = vst.msk [vmem:[#allocation2 + $0x99] sm:$0xff] %vm26_vm0, %v567_v21  ;;  %v510_v56 = vmul.f32 0.1, %v382_v44  ;;  %vm447_vm7 = vcmp.ge.f32.partialorder %v383_v45, 0.0  ;;  %v250_v6 = vld [vmem:[%s14535_s0 + $0xe0] sm:$0xff]  ;;  %v387_v14 = vadd.f32 %v10425_v3, %v316_v63  ;;  %v318_v16 = vmul.f32 %v10420_v2, %v247_v60 }
  0x31   :  { %633 = vst.msk [vmem:[#allocation2 + $0xa9] sm:$0xff] %vm26_vm0, %v568_v27  ;;  %634 = vst.msk [vmem:[#allocation2 + $0xb1] sm:$0xff] %vm26_vm0, %v569_v31  ;;  %v573_v55 = vsel %vm445_vm5, %v381_v37, %v509_v43  ;;  %v511_v57 = vmul.f32 0.1, %v383_v45  ;;  %v321_v21 = vmul.f32 %v10420_v2, %v250_v6  ;;  %v516_v27 = vmul.f32 0.1, %v388_v15 }
  0x32   :  { %v815_v62 = vld [vmem:[#allocation2 + $0x19] sm:$0xff]  ;;  %v816_v12 = vld [vmem:[#allocation2 + $0x21] sm:$0xff]  ;;  %635 = vst.msk [vmem:[#allocation2 + $0xc1] sm:$0xff] %vm26_vm0, %v570_v36  ;;  %636 = vst.msk [vmem:[#allocation2 + $0xc9] sm:$0xff] %vm26_vm0, %v571_v48  ;;  %v574_v61 = vsel %vm446_vm6, %v382_v44, %v510_v56  ;;  %vm451_vm11 = vcmp.ge.f32.partialorder %v387_v14, 0.0  ;;  %v389_v28 = vadd.f32 %v10425_v3, %v318_v16  ;;  %vm454_vm14 = vcmp.ge.f32.partialorder %v390_v29, 0.0 }
  0x33   :  { %945 = vrot.lane.b32.xlu1 %v815_v62, %s10218_s27  ;;  %v817_v5 = vld [vmem:[#allocation2 + $0x31] sm:$0xff]  ;;  %v818_v30 = vld [vmem:[#allocation2 + $0x39] sm:$0xff]  ;;  %637 = vst.msk [vmem:[#allocation2 + $0xd9] sm:$0xff] %vm26_vm0, %v572_v49  ;;  %638 = vst.msk [vmem:[#allocation2 + $0xe1] sm:$0xff] %vm26_vm0, %v573_v55  ;;  %v315_v62 = vmul.f32 %v10420_v2, %v244_v46  ;;  %v575_v8 = vsel %vm447_vm7, %v383_v45, %v511_v57  ;;  %v515_v25 = vmul.f32 0.1, %v387_v14 }
  0x34   :  { %949 = vrot.lane.b32.xlu0 %v817_v5, %s10218_s27  ;;  %v819_v17 = vld [vmem:[#allocation2 + $0x49] sm:$0xff]  ;;  %v820_v47 = vld [vmem:[#allocation2 + $0x51] sm:$0xff]  ;;  %639 = vst.msk [vmem:[#allocation2 + $0xf1] sm:$0xff] %vm26_vm0, %v574_v61  ;;  %640 = vst.msk [vmem:[#allocation2 + $0xf9] sm:$0xff] %vm26_vm0, %v575_v8  ;;  %v392_v36 = vadd.f32 %v10425_v3, %v321_v21  ;;  %v580_v39 = vsel %vm452_vm12, %v388_v15, %v516_v27  ;;  %vm453_vm13 = vcmp.ge.f32.partialorder %v389_v28, 0.0 }
  0x35   :  { %v821_v35 = vld [vmem:[#allocation2 + $0x61] sm:$0xff]  ;;  %v249_v5 = vld [vmem:[%s14535_s0 + $0xd8] sm:$0xff]  ;;  %v822_v7 = vld [vmem:[#allocation2 + $0x69] sm:$0xff]  ;;  %641 = vst.msk [vmem:[#allocation2 + $0x109] sm:$0xff] %vm26_vm0, %v576_v9  ;;  %v386_v13 = vadd.f32 %v10425_v3, %v315_v62  ;;  %v579_v34 = vsel %vm451_vm11, %v387_v14, %v515_v25  ;;  %v517_v40 = vmul.f32 0.1, %v389_v28  ;;  %v327_v61 = vmul.f32 %v10420_v2, %v256_v41 }
  0x36   :  { %v823_v54 = vld [vmem:[#allocation2 + $0x79] sm:$0xff]  ;;  %749 = vst.msk [vmem:[#allocation4] sm:$0xff] %vm26_vm0, %v685_v11  ;;  %v320_v20 = vmul.f32 %v10420_v2, %v249_v5  ;;  %642 = vst.msk [vmem:[#allocation2 + $0x111] sm:$0xff] %vm26_vm0, %v577_v18  ;;  %v824_v26 = vld [vmem:[#allocation2 + $0x81] sm:$0xff]  ;;  %v518_v43 = vmul.f32 0.1, %v390_v29  ;;  %v329_v5 = vmul.f32 %v10420_v2, %v258_v51 }
  0x37   :  { %947 = vrot.lane.b32.xlu1 %v816_v12, %s10218_s27  ;;  %v825_v12 = vld [vmem:[#allocation2 + $0x91] sm:$0xff]  ;;  %v10632_v23 = vld [vmem:[#allocation2 + $0x20] sm:$0xff]  ;;  %vm450_vm10 = vcmp.ge.f32.partialorder %v386_v13, 0.0  ;;  %v514_v24 = vmul.f32 0.1, %v386_v13  ;;  %750 = vst.msk [vmem:[#allocation4 + $0x8] sm:$0xff] %vm26_vm0, %v686_v22  ;;  %v581_v48 = vsel %vm453_vm13, %v389_v28, %v517_v40 }
  0x38   :  { %953 = vrot.lane.b32.xlu0 %v819_v17, %s10218_s27  ;;  %v10625_v17 = vld [vmem:[#allocation2 + $0x18] sm:$0xff]  ;;  %752 = vst.msk [vmem:[#allocation4 + $0x18] sm:$0xff] %vm26_vm0, %v10632_v23  ;;  %v254_v31 = vld [vmem:[%s14535_s0 + $0x100] sm:$0xff]  ;;  %v827_v32 = vld [vmem:[#allocation2 + $0xa9] sm:$0xff]  ;;  %vm456_vm1 = vcmp.ge.f32.partialorder %v392_v36, 0.0  ;;  %v582_v53 = vsel %vm454_vm14, %v390_v29, %v518_v43 }
  0x39   :  { %751 = vst.msk [vmem:[#allocation4 + $0x10] sm:$0xff] %vm26_vm0, %v10625_v17  ;;  %v578_v33 = vsel %vm450_vm10, %v386_v13, %v514_v24  ;;  %v255_v37 = vld [vmem:[%s14535_s0 + $0x108] sm:$0xff]  ;;  %v10653_v38 = vld [vmem:[#allocation2 + $0x30] sm:$0xff]  ;;  %644 = vst.msk [vmem:[#allocation2 + $0x129] sm:$0xff] %vm26_vm0, %v579_v34  ;;  %v520_v49 = vmul.f32 0.1, %v392_v36  ;;  %v325_v50 = vmul.f32 %v10420_v2, %v254_v31 }
  0x3a   :  { %643 = vst.msk [vmem:[#allocation2 + $0x121] sm:$0xff] %vm26_vm0, %v578_v33  ;;  %753 = vst.msk [vmem:[#allocation4 + $0x20] sm:$0xff] %vm26_vm0, %v10653_v38  ;;  %v10662_v42 = vld [vmem:[#allocation2 + $0x38] sm:$0xff]  ;;  %v829_v52 = vld [vmem:[#allocation2 + $0xc1] sm:$0xff]  ;;  %v326_v56 = vmul.f32 %v10420_v2, %v255_v37 }
  0x3b   :  { %951 = vrot.lane.b32.xlu1 %v818_v30, %s10218_s27  ;;  %v251_v30 = vld [vmem:[%s14535_s0 + $0xe8] sm:$0xff]  ;;  %645 = vst.msk [vmem:[#allocation2 + $0x139] sm:$0xff] %vm26_vm0, %v580_v39  ;;  %v257_v46 = vld [vmem:[%s14535_s0 + $0x118] sm:$0xff]  ;;  %754 = vst.msk [vmem:[#allocation4 + $0x28] sm:$0xff] %vm26_vm0, %v10662_v42  ;;  %v584_v59 = vsel %vm456_vm1, %v392_v36, %v520_v49  ;;  %v396_v60 = vadd.f32 %v10425_v3, %v325_v50 }
  0x3c   :  { %957 = vrot.lane.b32.xlu0 %v821_v35, %s10218_s27  ;;  %v391_v35 = vadd.f32 %v10425_v3, %v320_v20  ;;  %v322_v45 = vmul.f32 %v10420_v2, %v251_v30  ;;  %646 = vst.msk [vmem:[#allocation2 + $0x141] sm:$0xff] %vm26_vm0, %v581_v48  ;;  %v10682_v57 = vld [vmem:[#allocation2 + $0x48] sm:$0xff]  ;;  %v10684_v58 = vld [vmem:[#allocation2 + $0x50] sm:$0xff]  ;;  %647 = vst.msk [vmem:[#allocation2 + $0x151] sm:$0xff] %vm26_vm0, %v582_v53  ;;  %v328_v62 = vmul.f32 %v10420_v2, %v257_v46 }
  0x3d   :  { %755 = vst.msk [vmem:[#allocation4 + $0x30] sm:$0xff] %vm26_vm0, %v10682_v57  ;;  %756 = vst.msk [vmem:[#allocation4 + $0x38] sm:$0xff] %vm26_vm0, %v10684_v58  ;;  %v10695_v63 = vld [vmem:[#allocation2 + $0x60] sm:$0xff]  ;;  %v397_v4 = vadd.f32 %v10425_v3, %v326_v56  ;;  %v259_v6 = vld [vmem:[%s14535_s0 + $0x128] sm:$0xff]  ;;  %vm460_vm3 = vcmp.ge.f32.partialorder %v396_v60, 0.0  ;;  %v400_v20 = vadd.f32 %v10425_v3, %v329_v5 }
  0x3e   :  { %vm455_vm15 = vcmp.ge.f32.partialorder %v391_v35, 0.0  ;;  %v519_v44 = vmul.f32 0.1, %v391_v35  ;;  %v393_v55 = vadd.f32 %v10425_v3, %v322_v45  ;;  %649 = vst.msk [vmem:[#allocation2 + $0x169] sm:$0xff] %vm26_vm0, %v584_v59  ;;  %v261_v8 = vld [vmem:[%s14535_s0 + $0x138] sm:$0xff]  ;;  %757 = vst.msk [vmem:[#allocation4 + $0x40] sm:$0xff] %vm26_vm0, %v10695_v63  ;;  %v399_v13 = vadd.f32 %v10425_v3, %v328_v62 }
  0x3f   :  { %955 = vrot.lane.b32.xlu1 %v820_v47, %s10218_s27  ;;  %v826_v47 = vld [vmem:[#allocation2 + $0x99] sm:$0xff]  ;;  %v10712_v9 = vld [vmem:[#allocation2 + $0x68] sm:$0xff]  ;;  %v828_v10 = vld [vmem:[#allocation2 + $0xb1] sm:$0xff]  ;;  %v524_v11 = vmul.f32 0.1, %v396_v60  ;;  %vm461_vm4 = vcmp.ge.f32.partialorder %v397_v4, 0.0  ;;  %v330_v34 = vmul.f32 %v10420_v2, %v259_v6  ;;  %v332_v36 = vmul.f32 %v10420_v2, %v261_v8 }
  0x40   :  { %961 = vrot.lane.b32.xlu0 %v823_v54, %s10218_s27  ;;  %v583_v54 = vsel %vm455_vm15, %v391_v35, %v519_v44  ;;  %vm457_vm2 = vcmp.ge.f32.partialorder %v393_v55, 0.0  ;;  %v521_v1 = vmul.f32 0.1, %v393_v55  ;;  %758 = vst.msk [vmem:[#allocation4 + $0x48] sm:$0xff] %vm26_vm0, %v10712_v9  ;;  %v10719_v14 = vld [vmem:[#allocation2 + $0x78] sm:$0xff]  ;;  %v10721_v15 = vld [vmem:[#allocation2 + $0x80] sm:$0xff] }
  0x41   :  { %648 = vst.msk [vmem:[#allocation2 + $0x159] sm:$0xff] %vm26_vm0, %v583_v54  ;;  %v831_v16 = vld [vmem:[#allocation2 + $0xd9] sm:$0xff]  ;;  %v525_v19 = vmul.f32 0.1, %v397_v4  ;;  %v263_v22 = vld [vmem:[%s14535_s0 + $0x148] sm:$0xff]  ;;  %759 = vst.msk [vmem:[#allocation4 + $0x50] sm:$0xff] %vm26_vm0, %v10719_v14  ;;  %v588_v24 = vsel %vm460_vm3, %v396_v60, %v524_v11  ;;  %v403_v49 = vadd.f32 %v10425_v3, %v332_v36 }
  0x42   :  { %v585_v18 = vsel %vm457_vm2, %v393_v55, %v521_v1  ;;  %v262_v21 = vld [vmem:[%s14535_s0 + $0x140] sm:$0xff]  ;;  %760 = vst.msk [vmem:[#allocation4 + $0x58] sm:$0xff] %vm26_vm0, %v10721_v15  ;;  %vm463_vm6 = vcmp.ge.f32.partialorder %v399_v13, 0.0  ;;  %v10740_v27 = vld [vmem:[#allocation2 + $0x90] sm:$0xff]  ;;  %653 = vst.msk [vmem:[#allocation2 + $0x1c9] sm:$0xff] %vm26_vm0, %v588_v24  ;;  %vm464_vm7 = vcmp.ge.f32.partialorder %v400_v20, 0.0  ;;  %v334_v45 = vmul.f32 %v10420_v2, %v263_v22 }
  0x43   :  { %959 = vrot.lane.b32.xlu1 %v822_v7, %s10218_s27  ;;  %v260_v7 = vld [vmem:[%s14535_s0 + $0x130] sm:$0xff]  ;;  %650 = vst.msk [vmem:[#allocation2 + $0x171] sm:$0xff] %vm26_vm0, %v585_v18  ;;  %v589_v28 = vsel %vm461_vm4, %v397_v4, %v525_v19  ;;  %v527_v29 = vmul.f32 0.1, %v399_v13  ;;  %v528_v30 = vmul.f32 0.1, %v400_v20  ;;  %v333_v44 = vmul.f32 %v10420_v2, %v262_v21 }
  0x44   :  { %965 = vrot.lane.b32.xlu0 %v825_v12, %s10218_s27  ;;  %v398_v12 = vadd.f32 %v10425_v3, %v327_v61  ;;  %761 = vst.msk [vmem:[#allocation4 + $0x60] sm:$0xff] %vm26_vm0, %v10740_v27  ;;  %v10747_v31 = vld [vmem:[#allocation2 + $0x98] sm:$0xff]  ;;  %654 = vst.msk [vmem:[#allocation2 + $0x1d1] sm:$0xff] %vm26_vm0, %v589_v28  ;;  %v331_v35 = vmul.f32 %v10420_v2, %v260_v7  ;;  %v266_v39 = vld [vmem:[%s14535_s0 + $0x160] sm:$0xff]  ;;  %v405_v54 = vadd.f32 %v10425_v3, %v334_v45 }
  0x45   :  { %v265_v37 = vld [vmem:[%s14535_s0 + $0x158] sm:$0xff]  ;;  %762 = vst.msk [vmem:[#allocation4 + $0x68] sm:$0xff] %vm26_vm0, %v10747_v31  ;;  %v591_v41 = vsel %vm463_vm6, %v399_v13, %v527_v29  ;;  %v592_v43 = vsel %vm464_vm7, %v400_v20, %v528_v30  ;;  %v10768_v46 = vld [vmem:[#allocation2 + $0xa8] sm:$0xff]  ;;  %v10778_v51 = vld [vmem:[#allocation2 + $0xb0] sm:$0xff]  ;;  %v404_v53 = vadd.f32 %v10425_v3, %v333_v44  ;;  %v337_v56 = vmul.f32 %v10420_v2, %v266_v39 }
  0x46   :  { %vm462_vm5 = vcmp.ge.f32.partialorder %v398_v12, 0.0  ;;  %v526_v25 = vmul.f32 0.1, %v398_v12  ;;  %v833_v40 = vld [vmem:[#allocation2 + $0xf1] sm:$0xff]  ;;  %656 = vst.msk [vmem:[#allocation2 + $0x1e9] sm:$0xff] %vm26_vm0, %v591_v41  ;;  %657 = vst.msk [vmem:[#allocation2 + $0x1f9] sm:$0xff] %vm26_vm0, %v592_v43  ;;  %v402_v48 = vadd.f32 %v10425_v3, %v331_v35  ;;  %v336_v55 = vmul.f32 %v10420_v2, %v265_v37 }
  0x47   :  { %963 = vrot.lane.b32.xlu1 %v824_v26, %s10218_s27  ;;  %v264_v26 = vld [vmem:[%s14535_s0 + $0x150] sm:$0xff]  ;;  %763 = vst.msk [vmem:[#allocation4 + $0x70] sm:$0xff] %vm26_vm0, %v10768_v46  ;;  %v267_v59 = vld [vmem:[%s14535_s0 + $0x168] sm:$0xff]  ;;  %764 = vst.msk [vmem:[#allocation4 + $0x78] sm:$0xff] %vm26_vm0, %v10778_v51  ;;  %vm467_vm10 = vcmp.ge.f32.partialorder %v403_v49, 0.0  ;;  %vm468_vm11 = vcmp.ge.f32.partialorder %v404_v53, 0.0  ;;  %v408_v19 = vadd.f32 %v10425_v3, %v337_v56 }
  0x48   :  { %969 = vrot.lane.b32.xlu0 %v827_v32, %s10218_s27  ;;  %v830_v32 = vld [vmem:[#allocation2 + $0xc9] sm:$0xff]  ;;  %v590_v33 = vsel %vm462_vm5, %v398_v12, %v526_v25  ;;  %v335_v50 = vmul.f32 %v10420_v2, %v264_v26  ;;  %v10793_v61 = vld [vmem:[#allocation2 + $0xc0] sm:$0xff]  ;;  %vm466_vm9 = vcmp.ge.f32.partialorder %v402_v48, 0.0  ;;  %v530_v4 = vmul.f32 0.1, %v402_v48  ;;  %v269_v12 = vld [vmem:[%s14535_s0 + $0x178] sm:$0xff] }
  0x49   :  { %655 = vst.msk [vmem:[#allocation2 + $0x1e1] sm:$0xff] %vm26_vm0, %v590_v33  ;;  %v268_v60 = vld [vmem:[%s14535_s0 + $0x170] sm:$0xff]  ;;  %v10795_v62 = vld [vmem:[#allocation2 + $0xc8] sm:$0xff]  ;;  %765 = vst.msk [vmem:[#allocation4 + $0x80] sm:$0xff] %vm26_vm0, %v10793_v61  ;;  %v531_v6 = vmul.f32 0.1, %v403_v49  ;;  %v407_v18 = vadd.f32 %v10425_v3, %v336_v55  ;;  %v338_v25 = vmul.f32 %v10420_v2, %v267_v59  ;;  %v340_v33 = vmul.f32 %v10420_v2, %v269_v12 }
  0x4a   :  { %766 = vst.msk [vmem:[#allocation4 + $0x88] sm:$0xff] %vm26_vm0, %v10795_v62  ;;  %v835_v5 = vld [vmem:[#allocation2 + $0x109] sm:$0xff]  ;;  %vm469_vm12 = vcmp.ge.f32.partialorder %v405_v54, 0.0  ;;  %v594_v8 = vsel %vm466_vm9, %v402_v48, %v530_v4  ;;  %v533_v11 = vmul.f32 0.1, %v405_v54  ;;  %v10811_v20 = vld [vmem:[#allocation2 + $0xd8] sm:$0xff]  ;;  %v339_v26 = vmul.f32 %v10420_v2, %v268_v60 }
  0x4b   :  { %967 = vrot.lane.b32.xlu1 %v826_v47, %s10218_s27  ;;  %v401_v47 = vadd.f32 %v10425_v3, %v330_v34  ;;  %659 = vst.msk [vmem:[#allocation2 + $0x211] sm:$0xff] %vm26_vm0, %v594_v8  ;;  %v595_v13 = vsel %vm467_vm10, %v403_v49, %v531_v6  ;;  %v834_v21 = vld [vmem:[#allocation2 + $0xf9] sm:$0xff]  ;;  %767 = vst.msk [vmem:[#allocation4 + $0x90] sm:$0xff] %vm26_vm0, %v10811_v20  ;;  %v837_v30 = vld [vmem:[#allocation2 + $0x121] sm:$0xff]  ;;  %vm471_vm14 = vcmp.ge.f32.partialorder %v407_v18, 0.0  ;;  %vm472_vm15 = vcmp.ge.f32.partialorder %v408_v19, 0.0 }
  0x4c   :  { %973 = vrot.lane.b32.xlu0 %v829_v52, %s10218_s27  ;;  %v832_v52 = vld [vmem:[#allocation2 + $0xe1] sm:$0xff]  ;;  %660 = vst.msk [vmem:[#allocation2 + $0x219] sm:$0xff] %vm26_vm0, %v595_v13  ;;  %v597_v24 = vsel %vm469_vm12, %v405_v54, %v533_v11  ;;  %v272_v35 = vld [vmem:[%s14535_s0 + $0x190] sm:$0xff]  ;;  %v535_v36 = vmul.f32 0.1, %v407_v18  ;;  %v409_v39 = vadd.f32 %v10425_v3, %v338_v25  ;;  %v410_v45 = vadd.f32 %v10425_v3, %v339_v26 }
  0x4d   :  { %vm465_vm8 = vcmp.ge.f32.partialorder %v401_v47, 0.0  ;;  %v529_v1 = vmul.f32 0.1, %v401_v47  ;;  %v270_v28 = vld [vmem:[%s14535_s0 + $0x180] sm:$0xff]  ;;  %662 = vst.msk [vmem:[#allocation2 + $0x231] sm:$0xff] %vm26_vm0, %v597_v24  ;;  %v271_v34 = vld [vmem:[%s14535_s0 + $0x188] sm:$0xff] }
  0x4e   :  { %v10824_v29 = vld [vmem:[#allocation2 + $0xe0] sm:$0xff]  ;;  %v536_v37 = vmul.f32 0.1, %v408_v19  ;;  %v836_v43 = vld [vmem:[#allocation2 + $0x111] sm:$0xff]  ;;  %v341_v48 = vmul.f32 %v10420_v2, %v270_v28  ;;  %vm473_vm1 = vcmp.ge.f32.partialorder %v409_v39, 0.0  ;;  %v10860_v56 = vld [vmem:[#allocation2 + $0x108] sm:$0xff]  ;;  %v342_v6 = vmul.f32 %v10420_v2, %v271_v34 }
  0x4f   :  { %971 = vrot.lane.b32.xlu1 %v828_v10, %s10218_s27  ;;  %v593_v7 = vsel %vm465_vm8, %v401_v47, %v529_v1  ;;  %v532_v10 = vmul.f32 0.1, %v404_v53  ;;  %768 = vst.msk [vmem:[#allocation4 + $0x98] sm:$0xff] %vm26_vm0, %v10824_v29  ;;  %v274_v41 = vld [vmem:[%s14535_s0 + $0x1a0] sm:$0xff]  ;;  %v411_v47 = vadd.f32 %v10425_v3, %v340_v33  ;;  %v10848_v49 = vld [vmem:[#allocation2 + $0xf0] sm:$0xff]  ;;  %vm474_vm2 = vcmp.ge.f32.partialorder %v410_v45, 0.0 }
  0x50   :  { %977 = vrot.lane.b32.xlu0 %v831_v16, %s10218_s27  ;;  %658 = vst.msk [vmem:[#allocation2 + $0x201] sm:$0xff] %vm26_vm0, %v593_v7  ;;  %v406_v16 = vadd.f32 %v10425_v3, %v335_v50  ;;  %v10850_v50 = vld [vmem:[#allocation2 + $0xf8] sm:$0xff]  ;;  %v600_v54 = vsel %vm472_vm15, %v408_v19, %v536_v37  ;;  %v537_v55 = vmul.f32 0.1, %v409_v39  ;;  %769 = vst.msk [vmem:[#allocation4 + $0xa0] sm:$0xff] %vm26_vm0, %v10848_v49  ;;  %v10862_v59 = vld [vmem:[#allocation2 + $0x110] sm:$0xff] }
  0x51   :  { %v596_v22 = vsel %vm468_vm11, %v404_v53, %v532_v10  ;;  %v599_v53 = vsel %vm471_vm14, %v407_v18, %v535_v36  ;;  %770 = vst.msk [vmem:[#allocation4 + $0xa8] sm:$0xff] %vm26_vm0, %v10850_v50  ;;  %665 = vst.msk [vmem:[#allocation2 + $0x259] sm:$0xff] %vm26_vm0, %v600_v54  ;;  %v538_v60 = vmul.f32 0.1, %v410_v45  ;;  %vm475_vm3 = vcmp.ge.f32.partialorder %v411_v47, 0.0  ;;  %v275_v8 = vld [vmem:[%s14535_s0 + $0x1a8] sm:$0xff] }
  0x52   :  { %661 = vst.msk [vmem:[#allocation2 + $0x229] sm:$0xff] %vm26_vm0, %v596_v22  ;;  %vm470_vm13 = vcmp.ge.f32.partialorder %v406_v16, 0.0  ;;  %664 = vst.msk [vmem:[#allocation2 + $0x249] sm:$0xff] %vm26_vm0, %v599_v53  ;;  %v539_v1 = vmul.f32 0.1, %v411_v47  ;;  %v601_v4 = vsel %vm473_vm1, %v409_v39, %v537_v55  ;;  %v343_v7 = vmul.f32 %v10420_v2, %v272_v35  ;;  %v276_v10 = vld [vmem:[%s14535_s0 + $0x1b0] sm:$0xff] }
  0x53   :  { %975 = vrot.lane.b32.xlu1 %v830_v32, %s10218_s27  ;;  %v534_v32 = vmul.f32 0.1, %v406_v16  ;;  %771 = vst.msk [vmem:[#allocation4 + $0xb0] sm:$0xff] %vm26_vm0, %v10860_v56  ;;  %772 = vst.msk [vmem:[#allocation4 + $0xb8] sm:$0xff] %vm26_vm0, %v10862_v59  ;;  %v602_v11 = vsel %vm474_vm2, %v410_v45, %v538_v60  ;;  %v10883_v18 = vld [vmem:[#allocation2 + $0x120] sm:$0xff]  ;;  %v838_v19 = vld [vmem:[#allocation2 + $0x129] sm:$0xff]  ;;  %v413_v22 = vadd.f32 %v10425_v3, %v342_v6 }
  0x54   :  { %981 = vrot.lane.b32.xlu0 %v833_v40, %s10218_s27  ;;  %v273_v40 = vld [vmem:[%s14535_s0 + $0x198] sm:$0xff]  ;;  %666 = vst.msk [vmem:[#allocation2 + $0x261] sm:$0xff] %vm26_vm0, %v601_v4  ;;  %v603_v12 = vsel %vm475_vm3, %v411_v47, %v539_v1  ;;  %667 = vst.msk [vmem:[#allocation2 + $0x271] sm:$0xff] %vm26_vm0, %v602_v11  ;;  %v414_v24 = vadd.f32 %v10425_v3, %v343_v7  ;;  %v10892_v25 = vld [vmem:[#allocation2 + $0x128] sm:$0xff]  ;;  %v347_v33 = vmul.f32 %v10420_v2, %v276_v10  ;;  %vm1133_vm3 = vcmask 64544  }
  0x55   :  { %v598_v44 = vsel %vm470_vm13, %v406_v16, %v534_v32  ;;  %v344_v13 = vmul.f32 %v10420_v2, %v273_v40  ;;  %v345_v16 = vmul.f32 %v10420_v2, %v274_v41  ;;  %668 = vst.msk [vmem:[#allocation2 + $0x279] sm:$0xff] %vm26_vm0, %v603_v12  ;;  %773 = vst.msk [vmem:[#allocation4 + $0xc0] sm:$0xff] %vm26_vm0, %v10883_v18  ;;  %v841_v26 = vld [vmem:[#allocation2 + $0x151] sm:$0xff]  ;;  %vm477_vm5 = vcmp.ge.f32.partialorder %v413_v22, 0.0  ;;  %v278_v39 = vld [vmem:[%s14535_s0 + $0x1c0] sm:$0xff] }
  0x56   :  { %663 = vst.msk [vmem:[#allocation2 + $0x241] sm:$0xff] %vm26_vm0, %v598_v44  ;;  %v346_v32 = vmul.f32 %v10420_v2, %v275_v8  ;;  %v277_v34 = vld [vmem:[%s14535_s0 + $0x1b8] sm:$0xff]  ;;  %774 = vst.msk [vmem:[#allocation4 + $0xc8] sm:$0xff] %vm26_vm0, %v10892_v25  ;;  %v541_v37 = vmul.f32 0.1, %v413_v22  ;;  %vm478_vm6 = vcmp.ge.f32.partialorder %v414_v24, 0.0  ;;  %v418_v54 = vadd.f32 %v10425_v3, %v347_v33 }
  0x57   :  { %979 = vrot.lane.b32.xlu1 %v832_v52, %s10218_s27  ;;  %v839_v52 = vld [vmem:[#allocation2 + $0x139] sm:$0xff]  ;;  %v415_v28 = vadd.f32 %v10425_v3, %v344_v13  ;;  %v279_v40 = vld [vmem:[%s14535_s0 + $0x1c8] sm:$0xff]  ;;  %v280_v47 = vld [vmem:[%s14535_s0 + $0x1d0] sm:$0xff]  ;;  %v348_v11 = vmul.f32 %v10420_v2, %v277_v34 }
  0x58   :  { %985 = vrot.lane.b32.xlu0 %v835_v5, %s10218_s27  ;;  %v412_v5 = vadd.f32 %v10425_v3, %v341_v48  ;;  %v10903_v35 = vld [vmem:[#allocation2 + $0x138] sm:$0xff]  ;;  %v10913_v41 = vld [vmem:[#allocation2 + $0x140] sm:$0xff]  ;;  %v417_v45 = vadd.f32 %v10425_v3, %v346_v32  ;;  %v843_v1 = vld [vmem:[#allocation2 + $0x169] sm:$0xff]  ;;  %vm482_vm10 = vcmp.ge.f32.partialorder %v418_v54, 0.0  ;;  %v546_v10 = vmul.f32 0.1, %v418_v54 }
  0x59   :  { %775 = vst.msk [vmem:[#allocation4 + $0xd0] sm:$0xff] %vm26_vm0, %v10903_v35  ;;  %vm479_vm7 = vcmp.ge.f32.partialorder %v415_v28, 0.0  ;;  %v543_v44 = vmul.f32 0.1, %v415_v28  ;;  %776 = vst.msk [vmem:[#allocation4 + $0xd8] sm:$0xff] %vm26_vm0, %v10913_v41  ;;  %v840_v48 = vld [vmem:[#allocation2 + $0x141] sm:$0xff] }
  0x5a   :  { %vm476_vm4 = vcmp.ge.f32.partialorder %v412_v5, 0.0  ;;  %v281_v55 = vld [vmem:[%s14535_s0 + $0x1d8] sm:$0xff]  ;;  %v282_v60 = vld [vmem:[%s14535_s0 + $0x1e0] sm:$0xff]  ;;  %vm481_vm9 = vcmp.ge.f32.partialorder %v417_v45, 0.0  ;;  %v545_v6 = vmul.f32 0.1, %v417_v45 }
  0x5b   :  { %983 = vrot.lane.b32.xlu1 %v834_v21, %s10218_s27  ;;  %v540_v21 = vmul.f32 0.1, %v412_v5  ;;  %v10935_v7 = vld [vmem:[#allocation2 + $0x150] sm:$0xff]  ;;  %v283_v12 = vld [vmem:[%s14535_s0 + $0x1e8] sm:$0xff] }
  0x5c   :  { %989 = vrot.lane.b32.xlu0 %v837_v30, %s10218_s27  ;;  %v416_v30 = vadd.f32 %v10425_v3, %v345_v16  ;;  %v10937_v3 = vld [vmem:[#allocation2 + $0x158] sm:$0xff]  ;;  %777 = vst.msk [vmem:[#allocation4 + $0xe0] sm:$0xff] %vm26_vm0, %v10935_v7  ;;  %v10949_v13 = vld [vmem:[#allocation2 + $0x168] sm:$0xff]  ;;  %v609_v16 = vsel %vm481_vm9, %v417_v45, %v545_v6  ;;  %vm1903_vm9 = vcmask 130144  }
  0x5d   :  { %v604_v36 = vsel %vm476_vm4, %v412_v5, %v540_v21  ;;  %v607_v5 = vsel %vm479_vm7, %v415_v28, %v543_v44  ;;  %778 = vst.msk [vmem:[#allocation4 + $0xe8] sm:$0xff] %vm26_vm0, %v10937_v3  ;;  %v350_v21 = vmul.f32 %v10420_v2, %v279_v40  ;;  %779 = vst.msk [vmem:[#allocation4 + $0xf0] sm:$0xff] %vm26_vm0, %v10949_v13  ;;  %v842_v28 = vld [vmem:[#allocation2 + $0x159] sm:$0xff]  ;;  %v847_v6 = vld [vmem:[#allocation2 + $0x1c9] sm:$0xff] }
  0x5e   :  { %669 = vst.msk [vmem:[#allocation2 + $0x289] sm:$0xff] %vm26_vm0, %v604_v36  ;;  %vm480_vm8 = vcmp.ge.f32.partialorder %v416_v30, 0.0  ;;  %v544_v53 = vmul.f32 0.1, %v416_v30  ;;  %672 = vst.msk [vmem:[#allocation2 + $0x2a9] sm:$0xff] %vm26_vm0, %v607_v5  ;;  %v717_v36 = vld [vmem:[#allocation2 + $0x1b0] sm:$0xff] }
  0x5f   :  { %987 = vrot.lane.b32.xlu1 %v836_v43, %s10218_s27  ;;  %v542_v43 = vmul.f32 0.1, %v414_v24  ;;  %674 = vst.msk [vmem:[#allocation2 + $0x2c1] sm:$0xff] %vm26_vm0, %v609_v16  ;;  %781 = vst.msk [vmem:[#allocation4 + $0x100] sm:$0xff] %vm26_vm0, %v717_v36  ;;  %v718_v45 = vld [vmem:[#allocation2 + $0x1b8] sm:$0xff]  ;;  %v11019_v36 = vld [vmem:[#allocation2 + $0x200] sm:$0xff] }
  0x60   :  { %993 = vrot.lane.b32.xlu0 %v839_v52, %s10218_s27  ;;  %v605_v52 = vsel %vm477_vm5, %v413_v22, %v541_v37  ;;  %v608_v8 = vsel %vm480_vm8, %v416_v30, %v544_v53  ;;  %v10959_v22 = vld [vmem:[%s14536_s3] ss:$0 sm:$0xff]  ;;  %v610_v30 = vsel %vm482_vm10, %v418_v54, %v546_v10  ;;  %v845_v37 = vld [vmem:[#allocation2 + $0x1b1] sm:$0xff]  ;;  %782 = vst.msk [vmem:[#allocation4 + $0x108] sm:$0xff] %vm26_vm0, %v718_v45  ;;  %v10988_v53 = vld [vmem:[#allocation2 + $0x1c8] sm:$0xff]  ;;  %s10219_s3 = smov 8  }
  0x61   :  { %670 = vst.msk [vmem:[#allocation2 + $0x291] sm:$0xff] %vm26_vm0, %v605_v52  ;;  %v606_v4 = vsel %vm478_vm6, %v414_v24, %v542_v43  ;;  %673 = vst.msk [vmem:[#allocation2 + $0x2b9] sm:$0xff] %vm26_vm0, %v608_v8  ;;  %v351_v24 = vmul.f32 %v10959_v22, %v280_v47  ;;  %v352_v33 = vmul.f32 %v10959_v22, %v281_v55  ;;  %v10990_v54 = vld [vmem:[#allocation2 + $0x1d0] sm:$0xff]  ;;  %v851_v45 = vld [vmem:[#allocation2 + $0x1f9] sm:$0xff]  ;;  %vm1518_vm6 = vcmask 97344  }
  0x62   :  { %671 = vst.msk [vmem:[#allocation2 + $0x2a1] sm:$0xff] %vm26_vm0, %v606_v4  ;;  %v353_v34 = vmul.f32 %v10959_v22, %v282_v60  ;;  %675 = vst.msk [vmem:[#allocation2 + $0x2d1] sm:$0xff] %vm26_vm0, %v610_v30  ;;  %v354_v44 = vmul.f32 %v10959_v22, %v283_v12  ;;  %v846_v30 = vld [vmem:[#allocation2 + $0x1b9] sm:$0xff]  ;;  %vm2288_vm10 = vcmask 162944  }
  0x63   :  { %991 = vrot.lane.b32.xlu1 %v838_v19, %s10218_s27  ;;  %v349_v19 = vmul.f32 %v10420_v2, %v278_v39  ;;  %v10972_v2 = vld [vmem:[%s14537_s4] ss:$0 sm:$0xff]  ;;  %783 = vst.msk [vmem:[#allocation4 + $0x110] sm:$0xff] %vm26_vm0, %v10988_v53  ;;  %784 = vst.msk [vmem:[#allocation4 + $0x118] sm:$0xff] %vm26_vm0, %v10990_v54 }
  0x64   :  { %997 = vrot.lane.b32.xlu0 %v841_v26, %s10218_s27  ;;  %v10964_v26 = vld [vmem:[#allocation2 + $0x170] sm:$0xff]  ;;  %v419_v32 = vadd.f32 %v10972_v2, %v348_v11  ;;  %v421_v40 = vadd.f32 %v10972_v2, %v350_v21  ;;  %v422_v43 = vadd.f32 %v10972_v2, %v351_v24  ;;  %v424_v52 = vadd.f32 %v10972_v2, %v353_v34  ;;  %v11003_v21 = vld [vmem:[#allocation2 + $0x1e0] sm:$0xff]  ;;  %v11005_v24 = vld [vmem:[#allocation2 + $0x1e8] sm:$0xff] }
  0x65   :  { %780 = vst.msk [vmem:[#allocation4 + $0xf8] sm:$0xff] %vm26_vm0, %v10964_v26  ;;  %v420_v39 = vadd.f32 %v10972_v2, %v349_v19  ;;  %v425_v19 = vadd.f32 %v10972_v2, %v354_v44  ;;  %785 = vst.msk [vmem:[#allocation4 + $0x120] sm:$0xff] %vm26_vm0, %v11003_v21  ;;  %v11017_v34 = vld [vmem:[#allocation2 + $0x1f8] sm:$0xff] }
  0x66   :  { %vm483_vm11 = vcmp.ge.f32.partialorder %v419_v32, 0.0  ;;  %v547_v47 = vmul.f32 0.1, %v419_v32  ;;  %vm485_vm13 = vcmp.ge.f32.partialorder %v421_v40, 0.0  ;;  %v549_v60 = vmul.f32 0.1, %v421_v40 }
  0x67   :  { %995 = vrot.lane.b32.xlu1 %v840_v48, %s10218_s27  ;;  %v423_v48 = vadd.f32 %v10972_v2, %v352_v33  ;;  %vm484_vm12 = vcmp.ge.f32.partialorder %v420_v39, 0.0  ;;  %v548_v55 = vmul.f32 0.1, %v420_v39  ;;  %vm486_vm14 = vcmp.ge.f32.partialorder %v422_v43, 0.0  ;;  %786 = vst.msk [vmem:[#allocation4 + $0x128] sm:$0xff] %vm26_vm0, %v11005_v24  ;;  %787 = vst.msk [vmem:[#allocation4 + $0x130] sm:$0xff] %vm26_vm0, %v11017_v34 }
  0x68   :  { %1001 = vrot.lane.b32.xlu0 %v843_v1, %s10218_s27  ;;  %v844_v1 = vld [vmem:[#allocation2 + $0x171] sm:$0xff]  ;;  %v611_v4 = vsel %vm483_vm11, %v419_v32, %v547_v47  ;;  %v550_v5 = vmul.f32 0.1, %v422_v43  ;;  %v613_v10 = vsel %vm485_vm13, %v421_v40, %v549_v60  ;;  %vm488_vm1 = vcmp.ge.f32.partialorder %v424_v52, 0.0  ;;  %788 = vst.msk [vmem:[#allocation4 + $0x138] sm:$0xff] %vm26_vm0, %v11019_v36  ;;  %v11038_v47 = vld [vmem:[#allocation2 + $0x228] sm:$0xff] }
  0x69   :  { %vm487_vm15 = vcmp.ge.f32.partialorder %v423_v48, 0.0  ;;  %676 = vst.msk [vmem:[#allocation2 + $0x2d9] sm:$0xff] %vm26_vm0, %v611_v4  ;;  %v612_v8 = vsel %vm484_vm12, %v420_v39, %v548_v55  ;;  %v551_v11 = vmul.f32 0.1, %v423_v48  ;;  %678 = vst.msk [vmem:[#allocation2 + $0x2f1] sm:$0xff] %vm26_vm0, %v613_v10  ;;  %vm489_vm2 = vcmp.ge.f32.partialorder %v425_v19, 0.0 }
  0x6a   :  { %677 = vst.msk [vmem:[#allocation2 + $0x2e9] sm:$0xff] %vm26_vm0, %v612_v8  ;;  %v614_v12 = vsel %vm486_vm14, %v422_v43, %v550_v5  ;;  %v552_v16 = vmul.f32 0.1, %v424_v52  ;;  %v553_v33 = vmul.f32 0.1, %v425_v19  ;;  %v11028_v40 = vld [vmem:[#allocation2 + $0x210] sm:$0xff] }
  0x6b   :  { %999 = vrot.lane.b32.xlu1 %v842_v28, %s10218_s27  ;;  %679 = vst.msk [vmem:[#allocation2 + $0x301] sm:$0xff] %vm26_vm0, %v614_v12  ;;  %v615_v28 = vsel %vm487_vm15, %v423_v48, %v551_v11  ;;  %v11030_v43 = vld [vmem:[#allocation2 + $0x218] sm:$0xff]  ;;  %789 = vst.msk [vmem:[#allocation4 + $0x140] sm:$0xff] %vm26_vm0, %v11028_v40  ;;  %v11040_v48 = vld [vmem:[#allocation2 + $0x230] sm:$0xff]  ;;  %vm2673_vm11 = vcmask 195744   ;;  %vm3059_vm12 = vcmask 228544  }
  0x6c   :  { %1005 = vrot.lane.b32.xlu0 %v845_v37, %s10218_s27  ;;  %680 = vst.msk [vmem:[#allocation2 + $0x309] sm:$0xff] %vm26_vm0, %v615_v28  ;;  %v616_v32 = vsel %vm488_vm1, %v424_v52, %v552_v16  ;;  %v849_v37 = vld [vmem:[#allocation2 + $0x1e1] sm:$0xff]  ;;  %v617_v39 = vsel %vm489_vm2, %v425_v19, %v553_v33  ;;  %v848_v44 = vld [vmem:[#allocation2 + $0x1d1] sm:$0xff]  ;;  %790 = vst.msk [vmem:[#allocation4 + $0x148] sm:$0xff] %vm26_vm0, %v11030_v43  ;;  %vm3444_vm13 = vcmask 261344   ;;  %vm4163_vm14 = vcmask 1043456  }
  0x6d   :  { %681 = vst.msk [vmem:[#allocation2 + $0x319] sm:$0xff] %vm26_vm0, %v616_v32  ;;  %682 = vst.msk [vmem:[#allocation2 + $0x321] sm:$0xff] %vm26_vm0, %v617_v39  ;;  %v850_v52 = vld [vmem:[#allocation2 + $0x1e9] sm:$0xff]  ;;  %v853_v55 = vld [vmem:[#allocation2 + $0x211] sm:$0xff]  ;;  %vm3829_vm15 = vcmask 294144   ;;  %vm114_vm1 = vcmask 64512  }
  0x6e   :  { %791 = vst.msk [vmem:[#allocation4 + $0x150] sm:$0xff] %vm26_vm0, %v11038_v47  ;;  %792 = vst.msk [vmem:[#allocation4 + $0x158] sm:$0xff] %vm26_vm0, %v11040_v48  ;;  %v11048_v60 = vld [vmem:[#allocation2 + $0x240] sm:$0xff]  ;;  %v855_v5 = vld [vmem:[#allocation2 + $0x229] sm:$0xff]  ;;  %vm3970_vm2 = vcmask 293888  }
  0x6f   :  { %1003 = vrot.lane.b32.xlu1 %v844_v1, %s10218_s27  ;;  %v11050_v1 = vld [vmem:[#allocation2 + $0x248] sm:$0xff]  ;;  %793 = vst.msk [vmem:[#allocation4 + $0x160] sm:$0xff] %vm26_vm0, %v11048_v60  ;;  %v11060_v8 = vld [vmem:[#allocation2 + $0x260] sm:$0xff]  ;;  %v11068_v12 = vld [vmem:[#allocation2 + $0x270] sm:$0xff] }
  0x70   :  { %1009 = vrot.lane.b32.xlu0 %v847_v6, %s10218_s27  ;;  %v852_v4 = vld [vmem:[#allocation2 + $0x201] sm:$0xff]  ;;  %794 = vst.msk [vmem:[#allocation4 + $0x168] sm:$0xff] %vm26_vm0, %v11050_v1  ;;  %v11058_v6 = vld [vmem:[#allocation2 + $0x258] sm:$0xff]  ;;  %796 = vst.msk [vmem:[#allocation4 + $0x178] sm:$0xff] %vm26_vm0, %v11060_v8 }
  0x71   :  { %v854_v10 = vld [vmem:[#allocation2 + $0x219] sm:$0xff]  ;;  %795 = vst.msk [vmem:[#allocation4 + $0x170] sm:$0xff] %vm26_vm0, %v11058_v6  ;;  %v857_v11 = vld [vmem:[#allocation2 + $0x241] sm:$0xff]  ;;  %v856_v19 = vld [vmem:[#allocation2 + $0x231] sm:$0xff] }
  0x72   :  { %v11070_v16 = vld [vmem:[#allocation2 + $0x278] sm:$0xff]  ;;  %797 = vst.msk [vmem:[#allocation4 + $0x180] sm:$0xff] %vm26_vm0, %v11068_v12  ;;  %v11080_v32 = vld [vmem:[#allocation2 + $0x290] sm:$0xff]  ;;  %v11088_v39 = vld [vmem:[#allocation2 + $0x2a0] sm:$0xff] }
  0x73   :  { %1007 = vrot.lane.b32.xlu1 %v846_v30, %s10218_s27  ;;  %798 = vst.msk [vmem:[#allocation4 + $0x188] sm:$0xff] %vm26_vm0, %v11070_v16  ;;  %v859_v28 = vld [vmem:[#allocation2 + $0x259] sm:$0xff]  ;;  %v11078_v30 = vld [vmem:[#allocation2 + $0x288] sm:$0xff]  ;;  %14564 = vst [vmem:[#allocation6_spill] sm:$0xff] %v11080_v32 }
  0x74   :  { %1013 = vrot.lane.b32.xlu0 %v849_v37, %s10218_s27  ;;  %v858_v33 = vld [vmem:[#allocation2 + $0x249] sm:$0xff]  ;;  %799 = vst.msk [vmem:[#allocation4 + $0x190] sm:$0xff] %vm26_vm0, %v11078_v30  ;;  %800 = vst.msk [vmem:[#allocation4 + $0x198] sm:$0xff] %vm26_vm0, %v11080_v32  ;;  %v861_v37 = vld [vmem:[#allocation2 + $0x271] sm:$0xff] }
  0x75   :  { %801 = vst.msk [vmem:[#allocation4 + $0x1a0] sm:$0xff] %vm26_vm0, %v11088_v39  ;;  %v868_v0 = vld [vmem:[#allocation2 + $0x2c1] sm:$0xff] }
  0x77   :  { %1011 = vrot.lane.b32.xlu1 %v848_v44, %s10218_s27  ;;  %v11090_v44 = vld [vmem:[#allocation2 + $0x2a8] sm:$0xff] }
  0x78   :  { %1017 = vrot.lane.b32.xlu0 %v851_v45, %s10218_s27  ;;  %14565 = vst [vmem:[#allocation7_spill] sm:$0xff] %v11090_v44  ;;  %v860_v45 = vld [vmem:[#allocation2 + $0x261] sm:$0xff]  ;;  %802 = vst.msk [vmem:[#allocation4 + $0x1a8] sm:$0xff] %vm26_vm0, %v11090_v44 }
  0x79   :  { %v1225_v44 = vld [vmem:[#allocation2 + $0x142] sm:$0xff] }
  0x7b   :  { %1015 = vrot.lane.b32.xlu1 %v850_v52, %s10218_s27  ;;  %v863_v52 = vld [vmem:[#allocation2 + $0x289] sm:$0xff] }
  0x7c   :  { %1021 = vrot.lane.b32.xlu0 %v853_v55, %s10218_s27  ;;  %v11098_v55 = vld [vmem:[#allocation2 + $0x2b8] sm:$0xff] }
  0x7d   :  { %14566 = vst [vmem:[#allocation8_spill] sm:$0xff] %v11098_v55  ;;  %803 = vst.msk [vmem:[#allocation4 + $0x1b0] sm:$0xff] %vm26_vm0, %v11098_v55  ;;  %v1228_v55 = vld [vmem:[#allocation2 + $0x16a] sm:$0xff] }
  0x7f   :  { %1019 = vrot.lane.b32.xlu1 %v852_v4, %s10218_s27  ;;  %v11100_v4 = vld [vmem:[#allocation2 + $0x2c0] sm:$0xff] }
  0x80   :  { %1025 = vrot.lane.b32.xlu0 %v855_v5, %s10218_s27  ;;  %14567 = vst [vmem:[#allocation9_spill] sm:$0xff] %v11100_v4  ;;  %v862_v5 = vld [vmem:[#allocation2 + $0x279] sm:$0xff]  ;;  %804 = vst.msk [vmem:[#allocation4 + $0x1b8] sm:$0xff] %vm26_vm0, %v11100_v4  ;;  %v1198_v4 = vld [vmem:[#allocation2 + $0x2] sm:$0xff] }
  0x83   :  { %1023 = vrot.lane.b32.xlu1 %v854_v10, %s10218_s27  ;;  %v865_v10 = vld [vmem:[#allocation2 + $0x2a1] sm:$0xff] }
  0x84   :  { %1029 = vrot.lane.b32.xlu0 %v857_v11, %s10218_s27  ;;  %v11108_v11 = vld [vmem:[#allocation2 + $0x2d0] sm:$0xff] }
  0x85   :  { %14568 = vst [vmem:[#allocation10_spill] sm:$0xff] %v11108_v11  ;;  %805 = vst.msk [vmem:[#allocation4 + $0x1c0] sm:$0xff] %vm26_vm0, %v11108_v11 }
  0x87   :  { %1027 = vrot.lane.b32.xlu1 %v856_v19, %s10218_s27  ;;  %v11110_v19 = vld [vmem:[#allocation2 + $0x2d8] sm:$0xff] }
  0x88   :  { %1033 = vrot.lane.b32.xlu0 %v859_v28, %s10218_s27  ;;  %14569 = vst [vmem:[#allocation11_spill] sm:$0xff] %v11110_v19  ;;  %v864_v28 = vld [vmem:[#allocation2 + $0x291] sm:$0xff]  ;;  %806 = vst.msk [vmem:[#allocation4 + $0x1c8] sm:$0xff] %vm26_vm0, %v11110_v19  ;;  %v871_v19 = vld [vmem:[#allocation2 + $0x2e9] sm:$0xff] }
  0x8b   :  { %1031 = vrot.lane.b32.xlu1 %v858_v33, %s10218_s27  ;;  %v867_v33 = vld [vmem:[#allocation2 + $0x2b9] sm:$0xff] }
  0x8c   :  { %1037 = vrot.lane.b32.xlu0 %v861_v37, %s10218_s27  ;;  %v11118_v37 = vld [vmem:[#allocation2 + $0x2e8] sm:$0xff] }
  0x8d   :  { %14570 = vst [vmem:[#allocation12_spill] sm:$0xff] %v11118_v37  ;;  %807 = vst.msk [vmem:[#allocation4 + $0x1d0] sm:$0xff] %vm26_vm0, %v11118_v37  ;;  %v870_v37 = vld [vmem:[#allocation2 + $0x2d9] sm:$0xff] }
  0x8f   :  { %1035 = vrot.lane.b32.xlu1 %v860_v45, %s10218_s27  ;;  %v11120_v45 = vld [vmem:[#allocation2 + $0x2f0] sm:$0xff] }
  0x90   :  { %1041 = vrot.lane.b32.xlu0 %v863_v52, %s10218_s27  ;;  %14571 = vst [vmem:[#allocation13_spill] sm:$0xff] %v11120_v45  ;;  %v866_v52 = vld [vmem:[#allocation2 + $0x2a9] sm:$0xff]  ;;  %808 = vst.msk [vmem:[#allocation4 + $0x1d8] sm:$0xff] %vm26_vm0, %v11120_v45  ;;  %v11141_v45 = vld [vmem:[#allocation2 + $0x320] sm:$0xff] }
  0x91   :  { %14575 = vst [vmem:[#allocation17_spill] sm:$0xff] %v11141_v45  ;;  %812 = vst.msk [vmem:[#allocation4 + $0x1f8] sm:$0xff] %vm26_vm0, %v11141_v45 }
  0x93   :  { %1039 = vrot.lane.b32.xlu1 %v862_v5, %s10218_s27  ;;  %v869_v5 = vld [vmem:[#allocation2 + $0x2d1] sm:$0xff] }
  0x94   :  { %1045 = vrot.lane.b32.xlu0 %v865_v10, %s10218_s27  ;;  %v11128_v10 = vld [vmem:[#allocation2 + $0x300] sm:$0xff] }
  0x95   :  { %14572 = vst [vmem:[#allocation14_spill] sm:$0xff] %v11128_v10  ;;  %809 = vst.msk [vmem:[#allocation4 + $0x1e0] sm:$0xff] %vm26_vm0, %v11128_v10  ;;  %v875_v10 = vld [vmem:[#allocation2 + $0x319] sm:$0xff] }
  0x97   :  { %1043 = vrot.lane.b32.xlu1 %v864_v28, %s10218_s27  ;;  %v11130_v28 = vld [vmem:[#allocation2 + $0x308] sm:$0xff] }
  0x98   :  { %1049 = vrot.lane.b32.xlu0 %v867_v33, %s10218_s27  ;;  %14573 = vst [vmem:[#allocation15_spill] sm:$0xff] %v11130_v28  ;;  %810 = vst.msk [vmem:[#allocation4 + $0x1e8] sm:$0xff] %vm26_vm0, %v11130_v28  ;;  %v942_v33 = vpop.permute.xlu0 %941  ;;  %v873_v28 = vld [vmem:[#allocation2 + $0x301] sm:$0xff] }
  0x99   :  { %1134 = vst.msk [vmem:[#allocation4] sm:$0xff] %vm1133_vm3, %v942_v33 }
  0x9b   :  { %1047 = vrot.lane.b32.xlu1 %v866_v52, %s10218_s27  ;;  %v11139_v52 = vld [vmem:[#allocation2 + $0x318] sm:$0xff] }
  0x9c   :  { %1053 = vrot.lane.b32.xlu0 %v869_v5, %s10218_s27  ;;  %14574 = vst [vmem:[#allocation16_spill] sm:$0xff] %v11139_v52  ;;  %811 = vst.msk [vmem:[#allocation4 + $0x1f0] sm:$0xff] %vm26_vm0, %v11139_v52  ;;  %v874_v52 = vld [vmem:[#allocation2 + $0x309] sm:$0xff] }
  0x9f   :  { %1051 = vrot.lane.b32.xlu1 %v868_v0, %s10218_s27  ;;  %v944_v5 = vpop.permute.xlu0 %943  ;;  %v872_v0 = vld [vmem:[#allocation2 + $0x2f1] sm:$0xff] }
  0xa0   :  { %1057 = vrot.lane.b32.xlu0 %v871_v19, %s10218_s27  ;;  %1135 = vst.msk [vmem:[#allocation4 + $0x8] sm:$0xff] %vm1133_vm3, %v944_v5 }
  0xa3   :  { %1055 = vrot.lane.b32.xlu1 %v870_v37, %s10218_s27 }
  0xa4   :  { %1061 = vrot.lane.b32.xlu0 %v873_v28, %s10218_s27  ;;  %v876_v28 = vld [vmem:[#allocation2 + $0x321] sm:$0xff] }
  0xa5   :  { %v946_v33 = vpop.permute.xlu1 %945 }
  0xa6   :  { %1136 = vst.msk [vmem:[#allocation4 + $0x10] sm:$0xff] %vm1133_vm3, %v946_v33  ;;  %v950_v19 = vpop.permute.xlu0 %949 }
  0xa7   :  { %1059 = vrot.lane.b32.xlu1 %v872_v0, %s10218_s27  ;;  %1138 = vst.msk [vmem:[#allocation4 + $0x20] sm:$0xff] %vm1133_vm3, %v950_v19  ;;  %v1200_v0 = vld [vmem:[#allocation2 + $0x1a] sm:$0xff] }
  0xa8   :  { %1065 = vrot.lane.b32.xlu0 %v875_v10, %s10218_s27  ;;  %v1199_v10 = vld [vmem:[#allocation2 + $0xa] sm:$0xff] }
  0xa9   :  { %v948_v45 = vpop.permute.xlu1 %947 }
  0xaa   :  { %1137 = vst.msk [vmem:[#allocation4 + $0x18] sm:$0xff] %vm1133_vm3, %v948_v45  ;;  %v954_v37 = vpop.permute.xlu0 %953 }
  0xab   :  { %1063 = vrot.lane.b32.xlu1 %v874_v52, %s10218_s27  ;;  %1140 = vst.msk [vmem:[#allocation4 + $0x30] sm:$0xff] %vm1133_vm3, %v954_v37  ;;  %v1202_v52 = vld [vmem:[#allocation2 + $0x32] sm:$0xff] }
  0xac   :  { %1326 = vrot.lane.b32.xlu0 %v1198_v4, %s10219_s3  ;;  %v1201_v4 = vld [vmem:[#allocation2 + $0x22] sm:$0xff] }
  0xad   :  { %v952_v5 = vpop.permute.xlu1 %951 }
  0xae   :  { %1139 = vst.msk [vmem:[#allocation4 + $0x28] sm:$0xff] %vm1133_vm3, %v952_v5  ;;  %v958_v33 = vpop.permute.xlu0 %957  ;;  %v1204_v5 = vld [vmem:[#allocation2 + $0x4a] sm:$0xff] }
  0xaf   :  { %1067 = vrot.lane.b32.xlu1 %v876_v28, %s10218_s27  ;;  %1142 = vst.msk [vmem:[#allocation4 + $0x40] sm:$0xff] %vm1133_vm3, %v958_v33 }
  0xb0   :  { %1330 = vrot.lane.b32.xlu0 %v1200_v0, %s10219_s3  ;;  %v1203_v0 = vld [vmem:[#allocation2 + $0x3a] sm:$0xff] }
  0xb1   :  { %v956_v45 = vpop.permute.xlu1 %955 }
  0xb2   :  { %1141 = vst.msk [vmem:[#allocation4 + $0x38] sm:$0xff] %vm1133_vm3, %v956_v45  ;;  %v962_v19 = vpop.permute.xlu0 %961  ;;  %v1206_v45 = vld [vmem:[#allocation2 + $0x62] sm:$0xff] }
  0xb3   :  { %1328 = vrot.lane.b32.xlu1 %v1199_v10, %s10219_s3  ;;  %1144 = vst.msk [vmem:[#allocation4 + $0x50] sm:$0xff] %vm1133_vm3, %v962_v19 }
  0xb4   :  { %1334 = vrot.lane.b32.xlu0 %v1202_v52, %s10219_s3  ;;  %v1205_v52 = vld [vmem:[#allocation2 + $0x52] sm:$0xff] }
  0xb5   :  { %v960_v37 = vpop.permute.xlu1 %959 }
  0xb6   :  { %1143 = vst.msk [vmem:[#allocation4 + $0x48] sm:$0xff] %vm1133_vm3, %v960_v37  ;;  %v966_v28 = vpop.permute.xlu0 %965  ;;  %v1208_v37 = vld [vmem:[#allocation2 + $0x7a] sm:$0xff] }
  0xb7   :  { %1332 = vrot.lane.b32.xlu1 %v1201_v4, %s10219_s3  ;;  %1146 = vst.msk [vmem:[#allocation4 + $0x60] sm:$0xff] %vm1133_vm3, %v966_v28 }
  0xb8   :  { %1338 = vrot.lane.b32.xlu0 %v1204_v5, %s10219_s3  ;;  %v1207_v5 = vld [vmem:[#allocation2 + $0x6a] sm:$0xff] }
  0xb9   :  { %v964_v33 = vpop.permute.xlu1 %963 }
  0xba   :  { %1145 = vst.msk [vmem:[#allocation4 + $0x58] sm:$0xff] %vm1133_vm3, %v964_v33  ;;  %v970_v10 = vpop.permute.xlu0 %969  ;;  %v1210_v33 = vld [vmem:[#allocation2 + $0x92] sm:$0xff] }
  0xbb   :  { %1336 = vrot.lane.b32.xlu1 %v1203_v0, %s10219_s3  ;;  %1148 = vst.msk [vmem:[#allocation4 + $0x70] sm:$0xff] %vm1133_vm3, %v970_v10 }
  0xbc   :  { %1342 = vrot.lane.b32.xlu0 %v1206_v45, %s10219_s3  ;;  %v1209_v45 = vld [vmem:[#allocation2 + $0x82] sm:$0xff] }
  0xbd   :  { %v968_v19 = vpop.permute.xlu1 %967 }
  0xbe   :  { %1147 = vst.msk [vmem:[#allocation4 + $0x68] sm:$0xff] %vm1133_vm3, %v968_v19  ;;  %v974_v4 = vpop.permute.xlu0 %973  ;;  %v1212_v19 = vld [vmem:[#allocation2 + $0xaa] sm:$0xff] }
  0xbf   :  { %1340 = vrot.lane.b32.xlu1 %v1205_v52, %s10219_s3  ;;  %1150 = vst.msk [vmem:[#allocation4 + $0x80] sm:$0xff] %vm1133_vm3, %v974_v4 }
  0xc0   :  { %1346 = vrot.lane.b32.xlu0 %v1208_v37, %s10219_s3  ;;  %v1211_v37 = vld [vmem:[#allocation2 + $0x9a] sm:$0xff] }
  0xc1   :  { %v972_v28 = vpop.permute.xlu1 %971 }
  0xc2   :  { %1149 = vst.msk [vmem:[#allocation4 + $0x78] sm:$0xff] %vm1133_vm3, %v972_v28  ;;  %v978_v0 = vpop.permute.xlu0 %977  ;;  %v1214_v28 = vld [vmem:[#allocation2 + $0xc2] sm:$0xff] }
  0xc3   :  { %1344 = vrot.lane.b32.xlu1 %v1207_v5, %s10219_s3  ;;  %1152 = vst.msk [vmem:[#allocation4 + $0x90] sm:$0xff] %vm1133_vm3, %v978_v0 }
  0xc4   :  { %1350 = vrot.lane.b32.xlu0 %v1210_v33, %s10219_s3  ;;  %v1213_v33 = vld [vmem:[#allocation2 + $0xb2] sm:$0xff] }
  0xc5   :  { %v976_v10 = vpop.permute.xlu1 %975 }
  0xc6   :  { %1151 = vst.msk [vmem:[#allocation4 + $0x88] sm:$0xff] %vm1133_vm3, %v976_v10  ;;  %v982_v52 = vpop.permute.xlu0 %981  ;;  %v1216_v10 = vld [vmem:[#allocation2 + $0xda] sm:$0xff] }
  0xc7   :  { %1348 = vrot.lane.b32.xlu1 %v1209_v45, %s10219_s3  ;;  %1154 = vst.msk [vmem:[#allocation4 + $0xa0] sm:$0xff] %vm1133_vm3, %v982_v52 }
  0xc8   :  { %1354 = vrot.lane.b32.xlu0 %v1212_v19, %s10219_s3  ;;  %v1215_v19 = vld [vmem:[#allocation2 + $0xca] sm:$0xff] }
  0xc9   :  { %v980_v4 = vpop.permute.xlu1 %979 }
  0xca   :  { %1153 = vst.msk [vmem:[#allocation4 + $0x98] sm:$0xff] %vm1133_vm3, %v980_v4  ;;  %v986_v5 = vpop.permute.xlu0 %985  ;;  %v1218_v4 = vld [vmem:[#allocation2 + $0xf2] sm:$0xff] }
  0xcb   :  { %1352 = vrot.lane.b32.xlu1 %v1211_v37, %s10219_s3  ;;  %1156 = vst.msk [vmem:[#allocation4 + $0xb0] sm:$0xff] %vm1133_vm3, %v986_v5 }
  0xcc   :  { %1358 = vrot.lane.b32.xlu0 %v1214_v28, %s10219_s3  ;;  %v1217_v28 = vld [vmem:[#allocation2 + $0xe2] sm:$0xff] }
  0xcd   :  { %v984_v0 = vpop.permute.xlu1 %983 }
  0xce   :  { %1155 = vst.msk [vmem:[#allocation4 + $0xa8] sm:$0xff] %vm1133_vm3, %v984_v0  ;;  %v990_v45 = vpop.permute.xlu0 %989  ;;  %v1220_v0 = vld [vmem:[#allocation2 + $0x10a] sm:$0xff] }
  0xcf   :  { %1356 = vrot.lane.b32.xlu1 %v1213_v33, %s10219_s3  ;;  %1158 = vst.msk [vmem:[#allocation4 + $0xc0] sm:$0xff] %vm1133_vm3, %v990_v45 }
  0xd0   :  { %1362 = vrot.lane.b32.xlu0 %v1216_v10, %s10219_s3  ;;  %v1219_v10 = vld [vmem:[#allocation2 + $0xfa] sm:$0xff] }
  0xd1   :  { %v988_v52 = vpop.permute.xlu1 %987 }
  0xd2   :  { %1157 = vst.msk [vmem:[#allocation4 + $0xb8] sm:$0xff] %vm1133_vm3, %v988_v52  ;;  %v994_v37 = vpop.permute.xlu0 %993  ;;  %v1222_v52 = vld [vmem:[#allocation2 + $0x122] sm:$0xff] }
  0xd3   :  { %1360 = vrot.lane.b32.xlu1 %v1215_v19, %s10219_s3  ;;  %1160 = vst.msk [vmem:[#allocation4 + $0xd0] sm:$0xff] %vm1133_vm3, %v994_v37 }
  0xd4   :  { %1366 = vrot.lane.b32.xlu0 %v1218_v4, %s10219_s3  ;;  %v1221_v4 = vld [vmem:[#allocation2 + $0x112] sm:$0xff] }
  0xd5   :  { %v992_v5 = vpop.permute.xlu1 %991 }
  0xd6   :  { %1159 = vst.msk [vmem:[#allocation4 + $0xc8] sm:$0xff] %vm1133_vm3, %v992_v5  ;;  %v998_v33 = vpop.permute.xlu0 %997  ;;  %v1224_v5 = vld [vmem:[#allocation2 + $0x13a] sm:$0xff] }
  0xd7   :  { %1364 = vrot.lane.b32.xlu1 %v1217_v28, %s10219_s3  ;;  %1162 = vst.msk [vmem:[#allocation4 + $0xe0] sm:$0xff] %vm1133_vm3, %v998_v33 }
  0xd8   :  { %1370 = vrot.lane.b32.xlu0 %v1220_v0, %s10219_s3  ;;  %v252_v0 = vld [vmem:[%s14535_s0 + $0xf0] sm:$0xff] }
  0xd9   :  { %v996_v45 = vpop.permute.xlu1 %995  ;;  %v323_v33 = vmul.f32 %v10959_v22, %v252_v0 }
  0xda   :  { %1161 = vst.msk [vmem:[#allocation4 + $0xd8] sm:$0xff] %vm1133_vm3, %v996_v45  ;;  %v1002_v19 = vpop.permute.xlu0 %1001  ;;  %v1223_v45 = vld [vmem:[#allocation2 + $0x12a] sm:$0xff] }
  0xdb   :  { %1368 = vrot.lane.b32.xlu1 %v1219_v10, %s10219_s3  ;;  %1164 = vst.msk [vmem:[#allocation4 + $0xf0] sm:$0xff] %vm1133_vm3, %v1002_v19  ;;  %v253_v10 = vld [vmem:[%s14535_s0 + $0xf8] sm:$0xff]  ;;  %v394_v11 = vadd.f32 %v10972_v2, %v323_v33 }
  0xdc   :  { %1374 = vrot.lane.b32.xlu0 %v1222_v52, %s10219_s3  ;;  %v324_v52 = vmul.f32 %v10959_v22, %v253_v10 }
  0xdd   :  { %v1000_v37 = vpop.permute.xlu1 %999  ;;  %v522_v0 = vmul.f32 0.1, %v394_v11  ;;  %vm458_vm4 = vcmp.ge.f32.partialorder %v394_v11, 0.0 }
  0xde   :  { %1163 = vst.msk [vmem:[#allocation4 + $0xe8] sm:$0xff] %vm1133_vm3, %v1000_v37  ;;  %v1006_v28 = vpop.permute.xlu0 %1005  ;;  %v1226_v37 = vld [vmem:[#allocation2 + $0x152] sm:$0xff] }
  0xdf   :  { %1372 = vrot.lane.b32.xlu1 %v1221_v4, %s10219_s3  ;;  %1166 = vst.msk [vmem:[#allocation4 + $0x100] sm:$0xff] %vm1133_vm3, %v1006_v28  ;;  %v395_v28 = vadd.f32 %v10972_v2, %v324_v52  ;;  %v586_v32 = vsel %vm458_vm4, %v394_v11, %v522_v0  ;;  %vm141_vm4 = vcmask 58368  }
  0xe0   :  { %1378 = vrot.lane.b32.xlu0 %v1224_v5, %s10219_s3  ;;  %651 = vst.msk [vmem:[#allocation2 + $0x181] sm:$0xff] %vm26_vm0, %v586_v32  ;;  %v1229_v32 = vld [vmem:[#allocation2 + $0x172] sm:$0xff] }
  0xe1   :  { %v1004_v19 = vpop.permute.xlu1 %1003  ;;  %v523_v5 = vmul.f32 0.1, %v395_v28  ;;  %vm459_vm5 = vcmp.ge.f32.partialorder %v395_v28, 0.0 }
  0xe2   :  { %1165 = vst.msk [vmem:[#allocation4 + $0xf8] sm:$0xff] %vm1133_vm3, %v1004_v19  ;;  %v1010_v4 = vpop.permute.xlu0 %1009 }
  0xe3   :  { %1376 = vrot.lane.b32.xlu1 %v1223_v45, %s10219_s3  ;;  %1168 = vst.msk [vmem:[#allocation4 + $0x110] sm:$0xff] %vm1133_vm3, %v1010_v4  ;;  %v587_v52 = vsel %vm459_vm5, %v395_v28, %v523_v5  ;;  %v1227_v45 = vld [vmem:[#allocation2 + $0x15a] sm:$0xff]  ;;  %v1232_v4 = vld [vmem:[#allocation2 + $0x1ca] sm:$0xff]  ;;  %v1234_v5 = vld [vmem:[#allocation2 + $0x1e2] sm:$0xff]  ;;  %vm5257_vm5 = vcmask 130112  }
  0xe4   :  { %1382 = vrot.lane.b32.xlu0 %v1226_v37, %s10219_s3  ;;  %652 = vst.msk [vmem:[#allocation2 + $0x189] sm:$0xff] %vm26_vm0, %v587_v52  ;;  %v1230_v37 = vld [vmem:[#allocation2 + $0x1b2] sm:$0xff] }
  0xe5   :  { %v1008_v10 = vpop.permute.xlu1 %1007 }
  0xe6   :  { %1167 = vst.msk [vmem:[#allocation4 + $0x108] sm:$0xff] %vm1133_vm3, %v1008_v10  ;;  %v1014_v33 = vpop.permute.xlu0 %1013 }
  0xe7   :  { %1380 = vrot.lane.b32.xlu1 %v1225_v44, %s10219_s3  ;;  %1170 = vst.msk [vmem:[#allocation4 + $0x120] sm:$0xff] %vm1133_vm3, %v1014_v33  ;;  %v1233_v33 = vld [vmem:[#allocation2 + $0x1d2] sm:$0xff] }
  0xe8   :  { %1386 = vrot.lane.b32.xlu0 %v1228_v55, %s10219_s3  ;;  %v1231_v55 = vld [vmem:[#allocation2 + $0x1ba] sm:$0xff] }
  0xe9   :  { %v1012_v19 = vpop.permute.xlu1 %1011 }
  0xea   :  { %1169 = vst.msk [vmem:[#allocation4 + $0x118] sm:$0xff] %vm1133_vm3, %v1012_v19  ;;  %v1018_v11 = vpop.permute.xlu0 %1017 }
  0xeb   :  { %1384 = vrot.lane.b32.xlu1 %v1227_v45, %s10219_s3  ;;  %1172 = vst.msk [vmem:[#allocation4 + $0x130] sm:$0xff] %vm1133_vm3, %v1018_v11  ;;  %v1236_v45 = vld [vmem:[#allocation2 + $0x1fa] sm:$0xff] }
  0xec   :  { %1390 = vrot.lane.b32.xlu0 %v1230_v37, %s10219_s3  ;;  %v1235_v37 = vld [vmem:[#allocation2 + $0x1ea] sm:$0xff] }
  0xed   :  { %v1016_v44 = vpop.permute.xlu1 %1015 }
  0xee   :  { %1171 = vst.msk [vmem:[#allocation4 + $0x128] sm:$0xff] %vm1133_vm3, %v1016_v44  ;;  %v1022_v28 = vpop.permute.xlu0 %1021 }
  0xef   :  { %1388 = vrot.lane.b32.xlu1 %v1229_v32, %s10219_s3  ;;  %1174 = vst.msk [vmem:[#allocation4 + $0x140] sm:$0xff] %vm1133_vm3, %v1022_v28  ;;  %v1238_v32 = vld [vmem:[#allocation2 + $0x212] sm:$0xff] }
  0xf0   :  { %1394 = vrot.lane.b32.xlu0 %v1232_v4, %s10219_s3  ;;  %v1237_v4 = vld [vmem:[#allocation2 + $0x202] sm:$0xff] }
  0xf1   :  { %v1020_v0 = vpop.permute.xlu1 %1019 }
  0xf2   :  { %1173 = vst.msk [vmem:[#allocation4 + $0x138] sm:$0xff] %vm1133_vm3, %v1020_v0  ;;  %v1026_v10 = vpop.permute.xlu0 %1025 }
  0xf3   :  { %1392 = vrot.lane.b32.xlu1 %v1231_v55, %s10219_s3  ;;  %1176 = vst.msk [vmem:[#allocation4 + $0x150] sm:$0xff] %vm1133_vm3, %v1026_v10  ;;  %v1240_v55 = vld [vmem:[#allocation2 + $0x22a] sm:$0xff] }
  0xf4   :  { %1398 = vrot.lane.b32.xlu0 %v1234_v5, %s10219_s3  ;;  %v1239_v5 = vld [vmem:[#allocation2 + $0x21a] sm:$0xff] }
  0xf5   :  { %v1024_v52 = vpop.permute.xlu1 %1023 }
  0xf6   :  { %1175 = vst.msk [vmem:[#allocation4 + $0x148] sm:$0xff] %vm1133_vm3, %v1024_v52  ;;  %v1030_v19 = vpop.permute.xlu0 %1029 }
  0xf7   :  { %1396 = vrot.lane.b32.xlu1 %v1233_v33, %s10219_s3  ;;  %1178 = vst.msk [vmem:[#allocation4 + $0x160] sm:$0xff] %vm1133_vm3, %v1030_v19  ;;  %v1242_v33 = vld [vmem:[#allocation2 + $0x242] sm:$0xff] }
  0xf8   :  { %1402 = vrot.lane.b32.xlu0 %v1236_v45, %s10219_s3  ;;  %v1241_v45 = vld [vmem:[#allocation2 + $0x232] sm:$0xff] }
  0xf9   :  { %v1028_v11 = vpop.permute.xlu1 %1027 }
  0xfa   :  { %1177 = vst.msk [vmem:[#allocation4 + $0x158] sm:$0xff] %vm1133_vm3, %v1028_v11  ;;  %v1034_v44 = vpop.permute.xlu0 %1033 }
  0xfb   :  { %1400 = vrot.lane.b32.xlu1 %v1235_v37, %s10219_s3  ;;  %1180 = vst.msk [vmem:[#allocation4 + $0x170] sm:$0xff] %vm1133_vm3, %v1034_v44  ;;  %v1244_v37 = vld [vmem:[#allocation2 + $0x25a] sm:$0xff] }
  0xfc   :  { %1406 = vrot.lane.b32.xlu0 %v1238_v32, %s10219_s3  ;;  %v1243_v32 = vld [vmem:[#allocation2 + $0x24a] sm:$0xff] }
  0xfd   :  { %v1032_v28 = vpop.permute.xlu1 %1031 }
  0xfe   :  { %1179 = vst.msk [vmem:[#allocation4 + $0x168] sm:$0xff] %vm1133_vm3, %v1032_v28  ;;  %v1038_v0 = vpop.permute.xlu0 %1037 }
  0xff   :  { %1404 = vrot.lane.b32.xlu1 %v1237_v4, %s10219_s3  ;;  %1182 = vst.msk [vmem:[#allocation4 + $0x180] sm:$0xff] %vm1133_vm3, %v1038_v0  ;;  %v1246_v4 = vld [vmem:[#allocation2 + $0x272] sm:$0xff] }
 0x100   :  { %1410 = vrot.lane.b32.xlu0 %v1240_v55, %s10219_s3  ;;  %v1245_v55 = vld [vmem:[#allocation2 + $0x262] sm:$0xff] }
 0x101   :  { %v1036_v10 = vpop.permute.xlu1 %1035 }
 0x102   :  { %1181 = vst.msk [vmem:[#allocation4 + $0x178] sm:$0xff] %vm1133_vm3, %v1036_v10  ;;  %v1042_v52 = vpop.permute.xlu0 %1041 }
 0x103   :  { %1408 = vrot.lane.b32.xlu1 %v1239_v5, %s10219_s3  ;;  %1184 = vst.msk [vmem:[#allocation4 + $0x190] sm:$0xff] %vm1133_vm3, %v1042_v52  ;;  %v1248_v5 = vld [vmem:[#allocation2 + $0x28a] sm:$0xff] }
 0x104   :  { %1414 = vrot.lane.b32.xlu0 %v1242_v33, %s10219_s3  ;;  %v1247_v33 = vld [vmem:[#allocation2 + $0x27a] sm:$0xff] }
 0x105   :  { %v1040_v19 = vpop.permute.xlu1 %1039 }
 0x106   :  { %1183 = vst.msk [vmem:[#allocation4 + $0x188] sm:$0xff] %vm1133_vm3, %v1040_v19  ;;  %v1046_v11 = vpop.permute.xlu0 %1045 }
 0x107   :  { %1412 = vrot.lane.b32.xlu1 %v1241_v45, %s10219_s3  ;;  %1186 = vst.msk [vmem:[#allocation4 + $0x1a0] sm:$0xff] %vm1133_vm3, %v1046_v11  ;;  %v1250_v45 = vld [vmem:[#allocation2 + $0x2a2] sm:$0xff] }
 0x108   :  { %1418 = vrot.lane.b32.xlu0 %v1244_v37, %s10219_s3  ;;  %v1249_v37 = vld [vmem:[#allocation2 + $0x292] sm:$0xff] }
 0x109   :  { %v1044_v44 = vpop.permute.xlu1 %1043 }
 0x10a   :  { %1185 = vst.msk [vmem:[#allocation4 + $0x198] sm:$0xff] %vm1133_vm3, %v1044_v44  ;;  %v1050_v28 = vpop.permute.xlu0 %1049 }
 0x10b   :  { %1416 = vrot.lane.b32.xlu1 %v1243_v32, %s10219_s3  ;;  %1188 = vst.msk [vmem:[#allocation4 + $0x1b0] sm:$0xff] %vm1133_vm3, %v1050_v28  ;;  %v1252_v32 = vld [vmem:[#allocation2 + $0x2ba] sm:$0xff] }
 0x10c   :  { %1422 = vrot.lane.b32.xlu0 %v1246_v4, %s10219_s3  ;;  %v1251_v4 = vld [vmem:[#allocation2 + $0x2aa] sm:$0xff] }
 0x10d   :  { %v1048_v0 = vpop.permute.xlu1 %1047 }
 0x10e   :  { %1187 = vst.msk [vmem:[#allocation4 + $0x1a8] sm:$0xff] %vm1133_vm3, %v1048_v0  ;;  %v1054_v10 = vpop.permute.xlu0 %1053 }
 0x10f   :  { %1420 = vrot.lane.b32.xlu1 %v1245_v55, %s10219_s3  ;;  %1190 = vst.msk [vmem:[#allocation4 + $0x1c0] sm:$0xff] %vm1133_vm3, %v1054_v10  ;;  %v1254_v55 = vld [vmem:[#allocation2 + $0x2d2] sm:$0xff] }
 0x110   :  { %1426 = vrot.lane.b32.xlu0 %v1248_v5, %s10219_s3  ;;  %v1253_v5 = vld [vmem:[#allocation2 + $0x2c2] sm:$0xff] }
 0x111   :  { %v1052_v52 = vpop.permute.xlu1 %1051 }
 0x112   :  { %1189 = vst.msk [vmem:[#allocation4 + $0x1b8] sm:$0xff] %vm1133_vm3, %v1052_v52  ;;  %v1058_v19 = vpop.permute.xlu0 %1057 }
 0x113   :  { %1424 = vrot.lane.b32.xlu1 %v1247_v33, %s10219_s3  ;;  %1192 = vst.msk [vmem:[#allocation4 + $0x1d0] sm:$0xff] %vm1133_vm3, %v1058_v19  ;;  %v1256_v33 = vld [vmem:[#allocation2 + $0x2ea] sm:$0xff] }
 0x114   :  { %1430 = vrot.lane.b32.xlu0 %v1250_v45, %s10219_s3  ;;  %v284_v45 = vld [vmem:[%s14535_s0 + $0x1f0] sm:$0xff] }
 0x115   :  { %v1056_v11 = vpop.permute.xlu1 %1055  ;;  %v355_v19 = vmul.f32 %v10959_v22, %v284_v45 }
 0x116   :  { %1191 = vst.msk [vmem:[#allocation4 + $0x1c8] sm:$0xff] %vm1133_vm3, %v1056_v11  ;;  %v1062_v44 = vpop.permute.xlu0 %1061  ;;  %v1255_v11 = vld [vmem:[#allocation2 + $0x2da] sm:$0xff] }
 0x117   :  { %1428 = vrot.lane.b32.xlu1 %v1249_v37, %s10219_s3  ;;  %1194 = vst.msk [vmem:[#allocation4 + $0x1e0] sm:$0xff] %vm1133_vm3, %v1062_v44  ;;  %v285_v37 = vld [vmem:[%s14535_s0 + $0x1f8] sm:$0xff]  ;;  %s10220_s0 = smov 12  }
 0x118   :  { %1434 = vrot.lane.b32.xlu0 %v1252_v32, %s10219_s3  ;;  %v356_v32 = vmul.f32 %v10959_v22, %v285_v37  ;;  %v1259_v37 = vld [vmem:[#allocation2 + $0x30a] sm:$0xff] }
 0x119   :  { %v1060_v28 = vpop.permute.xlu1 %1059 }
 0x11a   :  { %1193 = vst.msk [vmem:[#allocation4 + $0x1d8] sm:$0xff] %vm1133_vm3, %v1060_v28  ;;  %v1066_v0 = vpop.permute.xlu0 %1065  ;;  %v426_v28 = vadd.f32 %v10972_v2, %v355_v19 }
 0x11b   :  { %1432 = vrot.lane.b32.xlu1 %v1251_v4, %s10219_s3  ;;  %1196 = vst.msk [vmem:[#allocation4 + $0x1f0] sm:$0xff] %vm1133_vm3, %v1066_v0  ;;  %v1258_v4 = vld [vmem:[#allocation2 + $0x302] sm:$0xff]  ;;  %v427_v0 = vadd.f32 %v10972_v2, %v356_v32 }
 0x11c   :  { %1438 = vrot.lane.b32.xlu0 %v1254_v55, %s10219_s3  ;;  %vm490_vm7 = vcmp.ge.f32.partialorder %v426_v28, 0.0 }
 0x11d   :  { %v1064_v10 = vpop.permute.xlu1 %1063  ;;  %vm491_vm8 = vcmp.ge.f32.partialorder %v427_v0, 0.0 }
 0x11e   :  { %1195 = vst.msk [vmem:[#allocation4 + $0x1e8] sm:$0xff] %vm1133_vm3, %v1064_v10  ;;  %v1327_v52 = vpop.permute.xlu0 %1326  ;;  %v1257_v10 = vld [vmem:[#allocation2 + $0x2f2] sm:$0xff] }
 0x11f   :  { %1436 = vrot.lane.b32.xlu1 %v1253_v5, %s10219_s3  ;;  %1519 = vst.msk [vmem:[#allocation4] sm:$0xff] %vm1518_vm6, %v1327_v52  ;;  %v554_v5 = vmul.f32 0.1, %v426_v28  ;;  %v1260_v52 = vld [vmem:[#allocation2 + $0x31a] sm:$0xff] }
 0x120   :  { %1442 = vrot.lane.b32.xlu0 %v1256_v33, %s10219_s3  ;;  %v555_v33 = vmul.f32 0.1, %v427_v0 }
 0x121   :  { %v1068_v44 = vpop.permute.xlu1 %1067  ;;  %v618_v45 = vsel %vm490_vm7, %v426_v28, %v554_v5 }
 0x122   :  { %1197 = vst.msk [vmem:[#allocation4 + $0x1f8] sm:$0xff] %vm1133_vm3, %v1068_v44  ;;  %v1331_v55 = vpop.permute.xlu0 %1330  ;;  %v619_v2 = vsel %vm491_vm8, %v427_v0, %v555_v33  ;;  %v1261_v44 = vld [vmem:[#allocation2 + $0x322] sm:$0xff]  ;;  %vm117_vm3 = vcmask 60416  }
 0x123   :  { %1440 = vrot.lane.b32.xlu1 %v1255_v11, %s10219_s3  ;;  %1521 = vst.msk [vmem:[#allocation4 + $0x10] sm:$0xff] %vm1518_vm6, %v1331_v55 }
 0x124   :  { %1446 = vrot.lane.b32.xlu0 %v1258_v4, %s10219_s3  ;;  %683 = vst.msk [vmem:[#allocation2 + $0x331] sm:$0xff] %vm26_vm0, %v618_v45  ;;  %684 = vst.msk [vmem:[#allocation2 + $0x339] sm:$0xff] %vm26_vm0, %v619_v2  ;;  %v14576_v45 = vld [vmem:[#allocation6_spill] sm:$0xff]  ;;  %v14578_v2 = vld [vmem:[#allocation7_spill] sm:$0xff] }
 0x125   :  { %v1329_v22 = vpop.permute.xlu1 %1328 }
 0x126   :  { %1520 = vst.msk [vmem:[#allocation4 + $0x8] sm:$0xff] %vm1518_vm6, %v1329_v22  ;;  %v1335_v19 = vpop.permute.xlu0 %1334 }
 0x127   :  { %1444 = vrot.lane.b32.xlu1 %v1257_v10, %s10219_s3  ;;  %1523 = vst.msk [vmem:[#allocation4 + $0x20] sm:$0xff] %vm1518_vm6, %v1335_v19  ;;  %v1613_v10 = vld [vmem:[#allocation2 + $0x180] sm:$0xff] }
 0x128   :  { %1450 = vrot.lane.b32.xlu0 %v1260_v52, %s10219_s3 }
 0x129   :  { %v1333_v11 = vpop.permute.xlu1 %1332 }
 0x12a   :  { %1522 = vst.msk [vmem:[#allocation4 + $0x18] sm:$0xff] %vm1518_vm6, %v1333_v11  ;;  %v1339_v32 = vpop.permute.xlu0 %1338 }
 0x12b   :  { %1448 = vrot.lane.b32.xlu1 %v1259_v37, %s10219_s3  ;;  %1525 = vst.msk [vmem:[#allocation4 + $0x30] sm:$0xff] %vm1518_vm6, %v1339_v32  ;;  %v14580_v32 = vld [vmem:[#allocation9_spill] sm:$0xff] }
 0x12c   :  { %1711 = vrot.lane.b32.xlu0 %v10625_v17, %s10220_s0 }
 0x12d   :  { %v1337_v4 = vpop.permute.xlu1 %1336 }
 0x12e   :  { %1524 = vst.msk [vmem:[#allocation4 + $0x28] sm:$0xff] %vm1518_vm6, %v1337_v4  ;;  %v1343_v28 = vpop.permute.xlu0 %1342 }
 0x12f   :  { %1452 = vrot.lane.b32.xlu1 %v1261_v44, %s10219_s3  ;;  %1527 = vst.msk [vmem:[#allocation4 + $0x40] sm:$0xff] %vm1518_vm6, %v1343_v28  ;;  %v14581_v44 = vld [vmem:[#allocation12_spill] sm:$0xff] }
 0x130   :  { %1715 = vrot.lane.b32.xlu0 %v10653_v38, %s10220_s0 }
 0x131   :  { %v1341_v55 = vpop.permute.xlu1 %1340 }
 0x132   :  { %1526 = vst.msk [vmem:[#allocation4 + $0x38] sm:$0xff] %vm1518_vm6, %v1341_v55  ;;  %v1347_v0 = vpop.permute.xlu0 %1346  ;;  %v14582_v55 = vld [vmem:[#allocation11_spill] sm:$0xff] }
 0x133   :  { %1713 = vrot.lane.b32.xlu1 %v10632_v23, %s10220_s0  ;;  %1529 = vst.msk [vmem:[#allocation4 + $0x50] sm:$0xff] %vm1518_vm6, %v1347_v0  ;;  %v14583_v0 = vld [vmem:[#allocation14_spill] sm:$0xff] }
 0x134   :  { %1719 = vrot.lane.b32.xlu0 %v10682_v57, %s10220_s0 }
 0x135   :  { %v1345_v17 = vpop.permute.xlu1 %1344 }
 0x136   :  { %1528 = vst.msk [vmem:[#allocation4 + $0x48] sm:$0xff] %vm1518_vm6, %v1345_v17  ;;  %v1351_v5 = vpop.permute.xlu0 %1350 }
 0x137   :  { %1717 = vrot.lane.b32.xlu1 %v10662_v42, %s10220_s0  ;;  %1531 = vst.msk [vmem:[#allocation4 + $0x60] sm:$0xff] %vm1518_vm6, %v1351_v5 }
 0x138   :  { %1723 = vrot.lane.b32.xlu0 %v10695_v63, %s10220_s0 }
 0x139   :  { %v1349_v38 = vpop.permute.xlu1 %1348 }
 0x13a   :  { %1530 = vst.msk [vmem:[#allocation4 + $0x58] sm:$0xff] %vm1518_vm6, %v1349_v38  ;;  %v1355_v23 = vpop.permute.xlu0 %1354  ;;  %v14584_v38 = vld [vmem:[#allocation13_spill] sm:$0xff] }
 0x13b   :  { %1721 = vrot.lane.b32.xlu1 %v10684_v58, %s10220_s0  ;;  %1533 = vst.msk [vmem:[#allocation4 + $0x70] sm:$0xff] %vm1518_vm6, %v1355_v23  ;;  %v14585_v23 = vld [vmem:[#allocation16_spill] sm:$0xff] }
 0x13c   :  { %1727 = vrot.lane.b32.xlu0 %v10719_v14, %s10220_s0 }
 0x13d   :  { %v1353_v57 = vpop.permute.xlu1 %1352 }
 0x13e   :  { %1532 = vst.msk [vmem:[#allocation4 + $0x68] sm:$0xff] %vm1518_vm6, %v1353_v57  ;;  %v1359_v42 = vpop.permute.xlu0 %1358 }
 0x13f   :  { %1725 = vrot.lane.b32.xlu1 %v10712_v9, %s10220_s0  ;;  %1535 = vst.msk [vmem:[#allocation4 + $0x80] sm:$0xff] %vm1518_vm6, %v1359_v42  ;;  %v1645_v42 = vld [vmem:[#allocation2 + $0x330] sm:$0xff] }
 0x140   :  { %1731 = vrot.lane.b32.xlu0 %v10740_v27, %s10220_s0 }
 0x141   :  { %v1357_v63 = vpop.permute.xlu1 %1356 }
 0x142   :  { %1534 = vst.msk [vmem:[#allocation4 + $0x78] sm:$0xff] %vm1518_vm6, %v1357_v63  ;;  %v1363_v58 = vpop.permute.xlu0 %1362 }
 0x143   :  { %1729 = vrot.lane.b32.xlu1 %v10721_v15, %s10220_s0  ;;  %1537 = vst.msk [vmem:[#allocation4 + $0x90] sm:$0xff] %vm1518_vm6, %v1363_v58  ;;  %v14586_v58 = vld [vmem:[#allocation15_spill] sm:$0xff] }
 0x144   :  { %1735 = vrot.lane.b32.xlu0 %v10768_v46, %s10220_s0 }
 0x145   :  { %v1361_v14 = vpop.permute.xlu1 %1360 }
 0x146   :  { %1536 = vst.msk [vmem:[#allocation4 + $0x88] sm:$0xff] %vm1518_vm6, %v1361_v14  ;;  %v1367_v9 = vpop.permute.xlu0 %1366 }
 0x147   :  { %1733 = vrot.lane.b32.xlu1 %v10747_v31, %s10220_s0  ;;  %1539 = vst.msk [vmem:[#allocation4 + $0xa0] sm:$0xff] %vm1518_vm6, %v1367_v9  ;;  %v1968_v9 = vld [vmem:[#allocation2 + $0x19] sm:$0xff] }
 0x148   :  { %1739 = vrot.lane.b32.xlu0 %v10793_v61, %s10220_s0 }
 0x149   :  { %v1365_v27 = vpop.permute.xlu1 %1364 }
 0x14a   :  { %1538 = vst.msk [vmem:[#allocation4 + $0x98] sm:$0xff] %vm1518_vm6, %v1365_v27  ;;  %v1371_v15 = vpop.permute.xlu0 %1370 }
 0x14b   :  { %1737 = vrot.lane.b32.xlu1 %v10778_v51, %s10220_s0  ;;  %1541 = vst.msk [vmem:[#allocation4 + $0xb0] sm:$0xff] %vm1518_vm6, %v1371_v15  ;;  %v14587_v15 = vld [vmem:[#allocation17_spill] sm:$0xff] }
 0x14c   :  { %1743 = vrot.lane.b32.xlu0 %v10811_v20, %s10220_s0 }
 0x14d   :  { %v1369_v46 = vpop.permute.xlu1 %1368 }
 0x14e   :  { %1540 = vst.msk [vmem:[#allocation4 + $0xa8] sm:$0xff] %vm1518_vm6, %v1369_v46  ;;  %v1375_v31 = vpop.permute.xlu0 %1374  ;;  %v1646_v46 = vld [vmem:[#allocation2 + $0x338] sm:$0xff] }
 0x14f   :  { %1741 = vrot.lane.b32.xlu1 %v10795_v62, %s10220_s0  ;;  %1543 = vst.msk [vmem:[#allocation4 + $0xc0] sm:$0xff] %vm1518_vm6, %v1375_v31 }
 0x150   :  { %1747 = vrot.lane.b32.xlu0 %v10848_v49, %s10220_s0 }
 0x151   :  { %v1373_v61 = vpop.permute.xlu1 %1372 }
 0x152   :  { %1542 = vst.msk [vmem:[#allocation4 + $0xb8] sm:$0xff] %vm1518_vm6, %v1373_v61  ;;  %v1379_v51 = vpop.permute.xlu0 %1378  ;;  %v1970_v61 = vld [vmem:[#allocation2 + $0x31] sm:$0xff] }
 0x153   :  { %1745 = vrot.lane.b32.xlu1 %v10824_v29, %s10220_s0  ;;  %1545 = vst.msk [vmem:[#allocation4 + $0xd0] sm:$0xff] %vm1518_vm6, %v1379_v51 }
 0x154   :  { %1751 = vrot.lane.b32.xlu0 %v10860_v56, %s10220_s0 }
 0x155   :  { %v1377_v20 = vpop.permute.xlu1 %1376 }
 0x156   :  { %1544 = vst.msk [vmem:[#allocation4 + $0xc8] sm:$0xff] %vm1518_vm6, %v1377_v20  ;;  %v1383_v62 = vpop.permute.xlu0 %1382  ;;  %v1969_v20 = vld [vmem:[#allocation2 + $0x21] sm:$0xff] }
 0x157   :  { %1749 = vrot.lane.b32.xlu1 %v10850_v50, %s10220_s0  ;;  %1547 = vst.msk [vmem:[#allocation4 + $0xe0] sm:$0xff] %vm1518_vm6, %v1383_v62 }
 0x158   :  { %1755 = vrot.lane.b32.xlu0 %v10883_v18, %s10220_s0 }
 0x159   :  { %v1381_v49 = vpop.permute.xlu1 %1380 }
 0x15a   :  { %1546 = vst.msk [vmem:[#allocation4 + $0xd8] sm:$0xff] %vm1518_vm6, %v1381_v49  ;;  %v1387_v29 = vpop.permute.xlu0 %1386  ;;  %v1972_v49 = vld [vmem:[#allocation2 + $0x49] sm:$0xff] }
 0x15b   :  { %1753 = vrot.lane.b32.xlu1 %v10862_v59, %s10220_s0  ;;  %1549 = vst.msk [vmem:[#allocation4 + $0xf0] sm:$0xff] %vm1518_vm6, %v1387_v29 }
 0x15c   :  { %1759 = vrot.lane.b32.xlu0 %v10903_v35, %s10220_s0 }
 0x15d   :  { %v1385_v56 = vpop.permute.xlu1 %1384 }
 0x15e   :  { %1548 = vst.msk [vmem:[#allocation4 + $0xe8] sm:$0xff] %vm1518_vm6, %v1385_v56  ;;  %v1391_v50 = vpop.permute.xlu0 %1390  ;;  %v1971_v56 = vld [vmem:[#allocation2 + $0x39] sm:$0xff] }
 0x15f   :  { %1757 = vrot.lane.b32.xlu1 %v10892_v25, %s10220_s0  ;;  %1551 = vst.msk [vmem:[#allocation4 + $0x100] sm:$0xff] %vm1518_vm6, %v1391_v50 }
 0x160   :  { %1763 = vrot.lane.b32.xlu0 %v10935_v7, %s10220_s0 }
 0x161   :  { %v1389_v18 = vpop.permute.xlu1 %1388 }
 0x162   :  { %1550 = vst.msk [vmem:[#allocation4 + $0xf8] sm:$0xff] %vm1518_vm6, %v1389_v18  ;;  %v1395_v59 = vpop.permute.xlu0 %1394  ;;  %v1974_v18 = vld [vmem:[#allocation2 + $0x61] sm:$0xff] }
 0x163   :  { %1761 = vrot.lane.b32.xlu1 %v10913_v41, %s10220_s0  ;;  %1553 = vst.msk [vmem:[#allocation4 + $0x110] sm:$0xff] %vm1518_vm6, %v1395_v59 }
 0x164   :  { %1767 = vrot.lane.b32.xlu0 %v10949_v13, %s10220_s0  ;;  %v1614_v13 = vld [vmem:[#allocation2 + $0x188] sm:$0xff] }
 0x165   :  { %v1393_v35 = vpop.permute.xlu1 %1392 }
 0x166   :  { %1552 = vst.msk [vmem:[#allocation4 + $0x108] sm:$0xff] %vm1518_vm6, %v1393_v35  ;;  %v1399_v25 = vpop.permute.xlu0 %1398  ;;  %v1973_v35 = vld [vmem:[#allocation2 + $0x51] sm:$0xff] }
 0x167   :  { %1765 = vrot.lane.b32.xlu1 %v10937_v3, %s10220_s0  ;;  %1555 = vst.msk [vmem:[#allocation4 + $0x120] sm:$0xff] %vm1518_vm6, %v1399_v25  ;;  %v1976_v25 = vld [vmem:[#allocation2 + $0x79] sm:$0xff] }
 0x168   :  { %1771 = vrot.lane.b32.xlu0 %v1613_v10, %s10220_s0 }
 0x169   :  { %v1397_v7 = vpop.permute.xlu1 %1396 }
 0x16a   :  { %1554 = vst.msk [vmem:[#allocation4 + $0x118] sm:$0xff] %vm1518_vm6, %v1397_v7  ;;  %v1403_v41 = vpop.permute.xlu0 %1402 }
 0x16b   :  { %1769 = vrot.lane.b32.xlu1 %v10964_v26, %s10220_s0  ;;  %1557 = vst.msk [vmem:[#allocation4 + $0x130] sm:$0xff] %vm1518_vm6, %v1403_v41  ;;  %v1975_v41 = vld [vmem:[#allocation2 + $0x69] sm:$0xff] }
 0x16c   :  { %1775 = vrot.lane.b32.xlu0 %v10988_v53, %s10220_s0 }
 0x16d   :  { %v1401_v33 = vpop.permute.xlu1 %1400 }
 0x16e   :  { %1556 = vst.msk [vmem:[#allocation4 + $0x128] sm:$0xff] %vm1518_vm6, %v1401_v33  ;;  %v1407_v3 = vpop.permute.xlu0 %1406  ;;  %v1978_v33 = vld [vmem:[#allocation2 + $0x91] sm:$0xff] }
 0x16f   :  { %1773 = vrot.lane.b32.xlu1 %v1614_v13, %s10220_s0  ;;  %1559 = vst.msk [vmem:[#allocation4 + $0x140] sm:$0xff] %vm1518_vm6, %v1407_v3 }
 0x170   :  { %1779 = vrot.lane.b32.xlu0 %v11003_v21, %s10220_s0 }
 0x171   :  { %v1405_v22 = vpop.permute.xlu1 %1404 }
 0x172   :  { %1558 = vst.msk [vmem:[#allocation4 + $0x138] sm:$0xff] %vm1518_vm6, %v1405_v22  ;;  %v1411_v26 = vpop.permute.xlu0 %1410  ;;  %v1977_v22 = vld [vmem:[#allocation2 + $0x81] sm:$0xff] }
 0x173   :  { %1777 = vrot.lane.b32.xlu1 %v10990_v54, %s10220_s0  ;;  %1561 = vst.msk [vmem:[#allocation4 + $0x150] sm:$0xff] %vm1518_vm6, %v1411_v26 }
 0x174   :  { %1783 = vrot.lane.b32.xlu0 %v11017_v34, %s10220_s0 }
 0x175   :  { %v1409_v53 = vpop.permute.xlu1 %1408 }
 0x176   :  { %1560 = vst.msk [vmem:[#allocation4 + $0x148] sm:$0xff] %vm1518_vm6, %v1409_v53  ;;  %v1415_v52 = vpop.permute.xlu0 %1414  ;;  %v1980_v53 = vld [vmem:[#allocation2 + $0xa9] sm:$0xff] }
 0x177   :  { %1781 = vrot.lane.b32.xlu1 %v11005_v24, %s10220_s0  ;;  %1563 = vst.msk [vmem:[#allocation4 + $0x160] sm:$0xff] %vm1518_vm6, %v1415_v52 }
 0x178   :  { %1787 = vrot.lane.b32.xlu0 %v11028_v40, %s10220_s0 }
 0x179   :  { %v1413_v21 = vpop.permute.xlu1 %1412 }
 0x17a   :  { %1562 = vst.msk [vmem:[#allocation4 + $0x158] sm:$0xff] %vm1518_vm6, %v1413_v21  ;;  %v1419_v54 = vpop.permute.xlu0 %1418  ;;  %v1979_v21 = vld [vmem:[#allocation2 + $0x99] sm:$0xff] }
 0x17b   :  { %1785 = vrot.lane.b32.xlu1 %v11019_v36, %s10220_s0  ;;  %1565 = vst.msk [vmem:[#allocation4 + $0x170] sm:$0xff] %vm1518_vm6, %v1419_v54 }
 0x17c   :  { %1791 = vrot.lane.b32.xlu0 %v11038_v47, %s10220_s0 }
 0x17d   :  { %v1417_v34 = vpop.permute.xlu1 %1416 }
 0x17e   :  { %1564 = vst.msk [vmem:[#allocation4 + $0x168] sm:$0xff] %vm1518_vm6, %v1417_v34  ;;  %v1423_v24 = vpop.permute.xlu0 %1422  ;;  %v1982_v34 = vld [vmem:[#allocation2 + $0xc1] sm:$0xff] }
 0x17f   :  { %1789 = vrot.lane.b32.xlu1 %v11030_v43, %s10220_s0  ;;  %1567 = vst.msk [vmem:[#allocation4 + $0x180] sm:$0xff] %vm1518_vm6, %v1423_v24 }
 0x180   :  { %1795 = vrot.lane.b32.xlu0 %v11048_v60, %s10220_s0 }
 0x181   :  { %v1421_v40 = vpop.permute.xlu1 %1420 }
 0x182   :  { %1566 = vst.msk [vmem:[#allocation4 + $0x178] sm:$0xff] %vm1518_vm6, %v1421_v40  ;;  %v1427_v36 = vpop.permute.xlu0 %1426  ;;  %v1981_v40 = vld [vmem:[#allocation2 + $0xb1] sm:$0xff] }
 0x183   :  { %1793 = vrot.lane.b32.xlu1 %v11040_v48, %s10220_s0  ;;  %1569 = vst.msk [vmem:[#allocation4 + $0x190] sm:$0xff] %vm1518_vm6, %v1427_v36 }
 0x184   :  { %1799 = vrot.lane.b32.xlu0 %v11058_v6, %s10220_s0 }
 0x185   :  { %v1425_v47 = vpop.permute.xlu1 %1424 }
 0x186   :  { %1568 = vst.msk [vmem:[#allocation4 + $0x188] sm:$0xff] %vm1518_vm6, %v1425_v47  ;;  %v1431_v43 = vpop.permute.xlu0 %1430  ;;  %v1984_v47 = vld [vmem:[#allocation2 + $0xd9] sm:$0xff] }
 0x187   :  { %1797 = vrot.lane.b32.xlu1 %v11050_v1, %s10220_s0  ;;  %1571 = vst.msk [vmem:[#allocation4 + $0x1a0] sm:$0xff] %vm1518_vm6, %v1431_v43 }
 0x188   :  { %1803 = vrot.lane.b32.xlu0 %v11068_v12, %s10220_s0 }
 0x189   :  { %v1429_v60 = vpop.permute.xlu1 %1428 }
 0x18a   :  { %1570 = vst.msk [vmem:[#allocation4 + $0x198] sm:$0xff] %vm1518_vm6, %v1429_v60  ;;  %v1435_v48 = vpop.permute.xlu0 %1434  ;;  %v1983_v60 = vld [vmem:[#allocation2 + $0xc9] sm:$0xff] }
 0x18b   :  { %1801 = vrot.lane.b32.xlu1 %v11060_v8, %s10220_s0  ;;  %1573 = vst.msk [vmem:[#allocation4 + $0x1b0] sm:$0xff] %vm1518_vm6, %v1435_v48 }
 0x18c   :  { %1807 = vrot.lane.b32.xlu0 %v11078_v30, %s10220_s0  ;;  %v14577_v30 = vld [vmem:[#allocation8_spill] sm:$0xff] }
 0x18d   :  { %v1433_v6 = vpop.permute.xlu1 %1432 }
 0x18e   :  { %1572 = vst.msk [vmem:[#allocation4 + $0x1a8] sm:$0xff] %vm1518_vm6, %v1433_v6  ;;  %v1439_v1 = vpop.permute.xlu0 %1438  ;;  %v1986_v6 = vld [vmem:[#allocation2 + $0xf1] sm:$0xff] }
 0x18f   :  { %1805 = vrot.lane.b32.xlu1 %v11070_v16, %s10220_s0  ;;  %1575 = vst.msk [vmem:[#allocation4 + $0x1c0] sm:$0xff] %vm1518_vm6, %v1439_v1 }
 0x190   :  { %1811 = vrot.lane.b32.xlu0 %v11088_v39, %s10220_s0  ;;  %v14579_v39 = vld [vmem:[#allocation10_spill] sm:$0xff] }
 0x191   :  { %v1437_v12 = vpop.permute.xlu1 %1436 }
 0x192   :  { %1574 = vst.msk [vmem:[#allocation4 + $0x1b8] sm:$0xff] %vm1518_vm6, %v1437_v12  ;;  %v1443_v8 = vpop.permute.xlu0 %1442  ;;  %v1985_v12 = vld [vmem:[#allocation2 + $0xe1] sm:$0xff] }
 0x193   :  { %1809 = vrot.lane.b32.xlu1 %v14576_v45, %s10220_s0  ;;  %1577 = vst.msk [vmem:[#allocation4 + $0x1d0] sm:$0xff] %vm1518_vm6, %v1443_v8  ;;  %v1988_v45 = vld [vmem:[#allocation2 + $0x109] sm:$0xff] }
 0x194   :  { %1815 = vrot.lane.b32.xlu0 %v14577_v30, %s10220_s0 }
 0x195   :  { %v1441_v19 = vpop.permute.xlu1 %1440 }
 0x196   :  { %1576 = vst.msk [vmem:[#allocation4 + $0x1c8] sm:$0xff] %vm1518_vm6, %v1441_v19  ;;  %v1447_v16 = vpop.permute.xlu0 %1446  ;;  %v1987_v19 = vld [vmem:[#allocation2 + $0xf9] sm:$0xff] }
 0x197   :  { %1813 = vrot.lane.b32.xlu1 %v14578_v2, %s10220_s0  ;;  %1579 = vst.msk [vmem:[#allocation4 + $0x1e0] sm:$0xff] %vm1518_vm6, %v1447_v16  ;;  %v1990_v2 = vld [vmem:[#allocation2 + $0x121] sm:$0xff] }
 0x198   :  { %1819 = vrot.lane.b32.xlu0 %v14579_v39, %s10220_s0 }
 0x199   :  { %v1445_v37 = vpop.permute.xlu1 %1444 }
 0x19a   :  { %1578 = vst.msk [vmem:[#allocation4 + $0x1d8] sm:$0xff] %vm1518_vm6, %v1445_v37  ;;  %v1451_v11 = vpop.permute.xlu0 %1450  ;;  %v1989_v37 = vld [vmem:[#allocation2 + $0x111] sm:$0xff] }
 0x19b   :  { %1817 = vrot.lane.b32.xlu1 %v14580_v32, %s10220_s0  ;;  %1581 = vst.msk [vmem:[#allocation4 + $0x1f0] sm:$0xff] %vm1518_vm6, %v1451_v11  ;;  %v1992_v32 = vld [vmem:[#allocation2 + $0x139] sm:$0xff] }
 0x19c   :  { %1823 = vrot.lane.b32.xlu0 %v14581_v44, %s10220_s0 }
 0x19d   :  { %v1449_v4 = vpop.permute.xlu1 %1448 }
 0x19e   :  { %1580 = vst.msk [vmem:[#allocation4 + $0x1e8] sm:$0xff] %vm1518_vm6, %v1449_v4  ;;  %v1712_v28 = vpop.permute.xlu0 %1711  ;;  %v1991_v4 = vld [vmem:[#allocation2 + $0x129] sm:$0xff] }
 0x19f   :  { %1821 = vrot.lane.b32.xlu1 %v14582_v55, %s10220_s0  ;;  %1904 = vst.msk [vmem:[#allocation4] sm:$0xff] %vm1903_vm9, %v1712_v28  ;;  %v1994_v55 = vld [vmem:[#allocation2 + $0x151] sm:$0xff] }
 0x1a0   :  { %1827 = vrot.lane.b32.xlu0 %v14583_v0, %s10220_s0 }
 0x1a1   :  { %v1453_v17 = vpop.permute.xlu1 %1452 }
 0x1a2   :  { %1582 = vst.msk [vmem:[#allocation4 + $0x1f8] sm:$0xff] %vm1518_vm6, %v1453_v17  ;;  %v1716_v5 = vpop.permute.xlu0 %1715  ;;  %v1993_v17 = vld [vmem:[#allocation2 + $0x141] sm:$0xff] }
 0x1a3   :  { %1825 = vrot.lane.b32.xlu1 %v14584_v38, %s10220_s0  ;;  %1906 = vst.msk [vmem:[#allocation4 + $0x10] sm:$0xff] %vm1903_vm9, %v1716_v5  ;;  %v1996_v38 = vld [vmem:[#allocation2 + $0x169] sm:$0xff] }
 0x1a4   :  { %1831 = vrot.lane.b32.xlu0 %v14585_v23, %s10220_s0 }
 0x1a5   :  { %v1714_v57 = vpop.permute.xlu1 %1713 }
 0x1a6   :  { %1905 = vst.msk [vmem:[#allocation4 + $0x8] sm:$0xff] %vm1903_vm9, %v1714_v57  ;;  %v1720_v63 = vpop.permute.xlu0 %1719  ;;  %v1995_v57 = vld [vmem:[#allocation2 + $0x159] sm:$0xff] }
 0x1a7   :  { %1829 = vrot.lane.b32.xlu1 %v14586_v58, %s10220_s0  ;;  %1908 = vst.msk [vmem:[#allocation4 + $0x20] sm:$0xff] %vm1903_vm9, %v1720_v63  ;;  %v1998_v63 = vld [vmem:[#allocation2 + $0x181] sm:$0xff] }
 0x1a8   :  { %1835 = vrot.lane.b32.xlu0 %v1645_v42, %s10220_s0 }
 0x1a9   :  { %v1718_v14 = vpop.permute.xlu1 %1717 }
 0x1aa   :  { %1907 = vst.msk [vmem:[#allocation4 + $0x18] sm:$0xff] %vm1903_vm9, %v1718_v14  ;;  %v1724_v27 = vpop.permute.xlu0 %1723  ;;  %v1997_v14 = vld [vmem:[#allocation2 + $0x171] sm:$0xff] }
 0x1ab   :  { %1833 = vrot.lane.b32.xlu1 %v14587_v15, %s10220_s0  ;;  %1910 = vst.msk [vmem:[#allocation4 + $0x30] sm:$0xff] %vm1903_vm9, %v1724_v27  ;;  %v2000_v27 = vld [vmem:[#allocation2 + $0x1c9] sm:$0xff] }
 0x1ac   :  { %2096 = vrot.lane.b32.xlu0 %v1968_v9, %s10221_s25 }
 0x1ad   :  { %v1722_v31 = vpop.permute.xlu1 %1721 }
 0x1ae   :  { %1909 = vst.msk [vmem:[#allocation4 + $0x28] sm:$0xff] %vm1903_vm9, %v1722_v31  ;;  %v1728_v51 = vpop.permute.xlu0 %1727 }
 0x1af   :  { %1837 = vrot.lane.b32.xlu1 %v1646_v46, %s10220_s0  ;;  %1912 = vst.msk [vmem:[#allocation4 + $0x40] sm:$0xff] %vm1903_vm9, %v1728_v51  ;;  %v1999_v46 = vld [vmem:[#allocation2 + $0x189] sm:$0xff] }
 0x1b0   :  { %2100 = vrot.lane.b32.xlu0 %v1970_v61, %s10221_s25  ;;  %v2002_v61 = vld [vmem:[#allocation2 + $0x1e1] sm:$0xff] }
 0x1b1   :  { %v1726_v62 = vpop.permute.xlu1 %1725 }
 0x1b2   :  { %1911 = vst.msk [vmem:[#allocation4 + $0x38] sm:$0xff] %vm1903_vm9, %v1726_v62  ;;  %v1732_v29 = vpop.permute.xlu0 %1731 }
 0x1b3   :  { %2098 = vrot.lane.b32.xlu1 %v1969_v20, %s10221_s25  ;;  %1914 = vst.msk [vmem:[#allocation4 + $0x50] sm:$0xff] %vm1903_vm9, %v1732_v29  ;;  %v2001_v20 = vld [vmem:[#allocation2 + $0x1d1] sm:$0xff] }
 0x1b4   :  { %2104 = vrot.lane.b32.xlu0 %v1972_v49, %s10221_s25  ;;  %v2004_v49 = vld [vmem:[#allocation2 + $0x1f9] sm:$0xff] }
 0x1b5   :  { %v1730_v50 = vpop.permute.xlu1 %1729 }
 0x1b6   :  { %1913 = vst.msk [vmem:[#allocation4 + $0x48] sm:$0xff] %vm1903_vm9, %v1730_v50  ;;  %v1736_v59 = vpop.permute.xlu0 %1735 }
 0x1b7   :  { %2102 = vrot.lane.b32.xlu1 %v1971_v56, %s10221_s25  ;;  %1916 = vst.msk [vmem:[#allocation4 + $0x60] sm:$0xff] %vm1903_vm9, %v1736_v59  ;;  %v2003_v56 = vld [vmem:[#allocation2 + $0x1e9] sm:$0xff] }
 0x1b8   :  { %2108 = vrot.lane.b32.xlu0 %v1974_v18, %s10221_s25  ;;  %v2006_v18 = vld [vmem:[#allocation2 + $0x211] sm:$0xff] }
 0x1b9   :  { %v1734_v10 = vpop.permute.xlu1 %1733 }
 0x1ba   :  { %1915 = vst.msk [vmem:[#allocation4 + $0x58] sm:$0xff] %vm1903_vm9, %v1734_v10  ;;  %v1740_v7 = vpop.permute.xlu0 %1739 }
 0x1bb   :  { %2106 = vrot.lane.b32.xlu1 %v1973_v35, %s10221_s25  ;;  %1918 = vst.msk [vmem:[#allocation4 + $0x70] sm:$0xff] %vm1903_vm9, %v1740_v7  ;;  %v2005_v35 = vld [vmem:[#allocation2 + $0x201] sm:$0xff] }
 0x1bc   :  { %2112 = vrot.lane.b32.xlu0 %v1976_v25, %s10221_s25  ;;  %v2008_v25 = vld [vmem:[#allocation2 + $0x229] sm:$0xff] }
 0x1bd   :  { %v1738_v13 = vpop.permute.xlu1 %1737 }
 0x1be   :  { %1917 = vst.msk [vmem:[#allocation4 + $0x68] sm:$0xff] %vm1903_vm9, %v1738_v13  ;;  %v1744_v3 = vpop.permute.xlu0 %1743 }
 0x1bf   :  { %2110 = vrot.lane.b32.xlu1 %v1975_v41, %s10221_s25  ;;  %1920 = vst.msk [vmem:[#allocation4 + $0x80] sm:$0xff] %vm1903_vm9, %v1744_v3  ;;  %v2007_v41 = vld [vmem:[#allocation2 + $0x219] sm:$0xff] }
 0x1c0   :  { %2116 = vrot.lane.b32.xlu0 %v1978_v33, %s10221_s25  ;;  %v2010_v33 = vld [vmem:[#allocation2 + $0x241] sm:$0xff] }
 0x1c1   :  { %v1742_v26 = vpop.permute.xlu1 %1741 }
 0x1c2   :  { %1919 = vst.msk [vmem:[#allocation4 + $0x78] sm:$0xff] %vm1903_vm9, %v1742_v26  ;;  %v1748_v52 = vpop.permute.xlu0 %1747 }
 0x1c3   :  { %2114 = vrot.lane.b32.xlu1 %v1977_v22, %s10221_s25  ;;  %1922 = vst.msk [vmem:[#allocation4 + $0x90] sm:$0xff] %vm1903_vm9, %v1748_v52  ;;  %v2009_v22 = vld [vmem:[#allocation2 + $0x231] sm:$0xff] }
 0x1c4   :  { %2120 = vrot.lane.b32.xlu0 %v1980_v53, %s10221_s25  ;;  %v2012_v53 = vld [vmem:[#allocation2 + $0x259] sm:$0xff] }
 0x1c5   :  { %v1746_v54 = vpop.permute.xlu1 %1745 }
 0x1c6   :  { %1921 = vst.msk [vmem:[#allocation4 + $0x88] sm:$0xff] %vm1903_vm9, %v1746_v54  ;;  %v1752_v24 = vpop.permute.xlu0 %1751 }
 0x1c7   :  { %2118 = vrot.lane.b32.xlu1 %v1979_v21, %s10221_s25  ;;  %1924 = vst.msk [vmem:[#allocation4 + $0xa0] sm:$0xff] %vm1903_vm9, %v1752_v24  ;;  %v2011_v21 = vld [vmem:[#allocation2 + $0x249] sm:$0xff] }
 0x1c8   :  { %2124 = vrot.lane.b32.xlu0 %v1982_v34, %s10221_s25  ;;  %v2014_v34 = vld [vmem:[#allocation2 + $0x271] sm:$0xff] }
 0x1c9   :  { %v1750_v36 = vpop.permute.xlu1 %1749 }
 0x1ca   :  { %1923 = vst.msk [vmem:[#allocation4 + $0x98] sm:$0xff] %vm1903_vm9, %v1750_v36  ;;  %v1756_v43 = vpop.permute.xlu0 %1755 }
 0x1cb   :  { %2122 = vrot.lane.b32.xlu1 %v1981_v40, %s10221_s25  ;;  %1926 = vst.msk [vmem:[#allocation4 + $0xb0] sm:$0xff] %vm1903_vm9, %v1756_v43  ;;  %v2013_v40 = vld [vmem:[#allocation2 + $0x261] sm:$0xff] }
 0x1cc   :  { %2128 = vrot.lane.b32.xlu0 %v1984_v47, %s10221_s25  ;;  %v2016_v47 = vld [vmem:[#allocation2 + $0x289] sm:$0xff] }
 0x1cd   :  { %v1754_v48 = vpop.permute.xlu1 %1753 }
 0x1ce   :  { %1925 = vst.msk [vmem:[#allocation4 + $0xa8] sm:$0xff] %vm1903_vm9, %v1754_v48  ;;  %v1760_v1 = vpop.permute.xlu0 %1759 }
 0x1cf   :  { %2126 = vrot.lane.b32.xlu1 %v1983_v60, %s10221_s25  ;;  %1928 = vst.msk [vmem:[#allocation4 + $0xc0] sm:$0xff] %vm1903_vm9, %v1760_v1  ;;  %v2015_v60 = vld [vmem:[#allocation2 + $0x279] sm:$0xff] }
 0x1d0   :  { %2132 = vrot.lane.b32.xlu0 %v1986_v6, %s10221_s25  ;;  %v2018_v6 = vld [vmem:[#allocation2 + $0x2a1] sm:$0xff] }
 0x1d1   :  { %v1758_v8 = vpop.permute.xlu1 %1757 }
 0x1d2   :  { %1927 = vst.msk [vmem:[#allocation4 + $0xb8] sm:$0xff] %vm1903_vm9, %v1758_v8  ;;  %v1764_v30 = vpop.permute.xlu0 %1763 }
 0x1d3   :  { %2130 = vrot.lane.b32.xlu1 %v1985_v12, %s10221_s25  ;;  %1930 = vst.msk [vmem:[#allocation4 + $0xd0] sm:$0xff] %vm1903_vm9, %v1764_v30  ;;  %v2017_v12 = vld [vmem:[#allocation2 + $0x291] sm:$0xff] }
 0x1d4   :  { %2136 = vrot.lane.b32.xlu0 %v1988_v45, %s10221_s25  ;;  %v2020_v45 = vld [vmem:[#allocation2 + $0x2b9] sm:$0xff] }
 0x1d5   :  { %v1762_v16 = vpop.permute.xlu1 %1761 }
 0x1d6   :  { %1929 = vst.msk [vmem:[#allocation4 + $0xc8] sm:$0xff] %vm1903_vm9, %v1762_v16  ;;  %v1768_v39 = vpop.permute.xlu0 %1767 }
 0x1d7   :  { %2134 = vrot.lane.b32.xlu1 %v1987_v19, %s10221_s25  ;;  %1932 = vst.msk [vmem:[#allocation4 + $0xe0] sm:$0xff] %vm1903_vm9, %v1768_v39  ;;  %v2019_v19 = vld [vmem:[#allocation2 + $0x2a9] sm:$0xff] }
 0x1d8   :  { %2140 = vrot.lane.b32.xlu0 %v1990_v2, %s10221_s25  ;;  %v2022_v2 = vld [vmem:[#allocation2 + $0x2d1] sm:$0xff] }
 0x1d9   :  { %v1766_v11 = vpop.permute.xlu1 %1765 }
 0x1da   :  { %1931 = vst.msk [vmem:[#allocation4 + $0xd8] sm:$0xff] %vm1903_vm9, %v1766_v11  ;;  %v1772_v44 = vpop.permute.xlu0 %1771 }
 0x1db   :  { %2138 = vrot.lane.b32.xlu1 %v1989_v37, %s10221_s25  ;;  %1934 = vst.msk [vmem:[#allocation4 + $0xf0] sm:$0xff] %vm1903_vm9, %v1772_v44  ;;  %v2021_v37 = vld [vmem:[#allocation2 + $0x2c1] sm:$0xff] }
 0x1dc   :  { %2144 = vrot.lane.b32.xlu0 %v1992_v32, %s10221_s25  ;;  %v2024_v32 = vld [vmem:[#allocation2 + $0x2e9] sm:$0xff] }
 0x1dd   :  { %v1770_v28 = vpop.permute.xlu1 %1769 }
 0x1de   :  { %1933 = vst.msk [vmem:[#allocation4 + $0xe8] sm:$0xff] %vm1903_vm9, %v1770_v28  ;;  %v1776_v0 = vpop.permute.xlu0 %1775 }
 0x1df   :  { %2142 = vrot.lane.b32.xlu1 %v1991_v4, %s10221_s25  ;;  %1936 = vst.msk [vmem:[#allocation4 + $0x100] sm:$0xff] %vm1903_vm9, %v1776_v0  ;;  %v2023_v4 = vld [vmem:[#allocation2 + $0x2d9] sm:$0xff] }
 0x1e0   :  { %2148 = vrot.lane.b32.xlu0 %v1994_v55, %s10221_s25  ;;  %v2026_v55 = vld [vmem:[#allocation2 + $0x301] sm:$0xff] }
 0x1e1   :  { %v1774_v5 = vpop.permute.xlu1 %1773 }
 0x1e2   :  { %1935 = vst.msk [vmem:[#allocation4 + $0xf8] sm:$0xff] %vm1903_vm9, %v1774_v5  ;;  %v1780_v23 = vpop.permute.xlu0 %1779 }
 0x1e3   :  { %2146 = vrot.lane.b32.xlu1 %v1993_v17, %s10221_s25  ;;  %1938 = vst.msk [vmem:[#allocation4 + $0x110] sm:$0xff] %vm1903_vm9, %v1780_v23  ;;  %v2025_v17 = vld [vmem:[#allocation2 + $0x2f1] sm:$0xff] }
 0x1e4   :  { %2152 = vrot.lane.b32.xlu0 %v1996_v38, %s10221_s25  ;;  %v2028_v38 = vld [vmem:[#allocation2 + $0x319] sm:$0xff] }
 0x1e5   :  { %v1778_v42 = vpop.permute.xlu1 %1777 }
 0x1e6   :  { %1937 = vst.msk [vmem:[#allocation4 + $0x108] sm:$0xff] %vm1903_vm9, %v1778_v42  ;;  %v1784_v58 = vpop.permute.xlu0 %1783 }
 0x1e7   :  { %2150 = vrot.lane.b32.xlu1 %v1995_v57, %s10221_s25  ;;  %1940 = vst.msk [vmem:[#allocation4 + $0x120] sm:$0xff] %vm1903_vm9, %v1784_v58  ;;  %v2027_v57 = vld [vmem:[#allocation2 + $0x309] sm:$0xff] }
 0x1e8   :  { %2156 = vrot.lane.b32.xlu0 %v1998_v63, %s10221_s25  ;;  %v2030_v63 = vld [vmem:[#allocation2 + $0x331] sm:$0xff] }
 0x1e9   :  { %v1782_v9 = vpop.permute.xlu1 %1781 }
 0x1ea   :  { %1939 = vst.msk [vmem:[#allocation4 + $0x118] sm:$0xff] %vm1903_vm9, %v1782_v9  ;;  %v1788_v15 = vpop.permute.xlu0 %1787 }
 0x1eb   :  { %2154 = vrot.lane.b32.xlu1 %v1997_v14, %s10221_s25  ;;  %1942 = vst.msk [vmem:[#allocation4 + $0x130] sm:$0xff] %vm1903_vm9, %v1788_v15  ;;  %v2029_v14 = vld [vmem:[#allocation2 + $0x321] sm:$0xff] }
 0x1ec   :  { %2160 = vrot.lane.b32.xlu0 %v2000_v27, %s10221_s25  ;;  %v2353_v27 = vld [vmem:[#allocation2 + $0x1a] sm:$0xff] }
 0x1ed   :  { %v1786_v31 = vpop.permute.xlu1 %1785 }
 0x1ee   :  { %1941 = vst.msk [vmem:[#allocation4 + $0x128] sm:$0xff] %vm1903_vm9, %v1786_v31  ;;  %v1792_v51 = vpop.permute.xlu0 %1791 }
 0x1ef   :  { %2158 = vrot.lane.b32.xlu1 %v1999_v46, %s10221_s25  ;;  %1944 = vst.msk [vmem:[#allocation4 + $0x140] sm:$0xff] %vm1903_vm9, %v1792_v51  ;;  %v2031_v46 = vld [vmem:[#allocation2 + $0x339] sm:$0xff] }
 0x1f0   :  { %2164 = vrot.lane.b32.xlu0 %v2002_v61, %s10221_s25  ;;  %v2355_v61 = vld [vmem:[#allocation2 + $0x32] sm:$0xff] }
 0x1f1   :  { %v1790_v62 = vpop.permute.xlu1 %1789 }
 0x1f2   :  { %1943 = vst.msk [vmem:[#allocation4 + $0x138] sm:$0xff] %vm1903_vm9, %v1790_v62  ;;  %v1796_v29 = vpop.permute.xlu0 %1795 }
 0x1f3   :  { %2162 = vrot.lane.b32.xlu1 %v2001_v20, %s10221_s25  ;;  %1946 = vst.msk [vmem:[#allocation4 + $0x150] sm:$0xff] %vm1903_vm9, %v1796_v29  ;;  %v2354_v20 = vld [vmem:[#allocation2 + $0x22] sm:$0xff] }
 0x1f4   :  { %2168 = vrot.lane.b32.xlu0 %v2004_v49, %s10221_s25  ;;  %v2357_v49 = vld [vmem:[#allocation2 + $0x4a] sm:$0xff] }
 0x1f5   :  { %v1794_v50 = vpop.permute.xlu1 %1793 }
 0x1f6   :  { %1945 = vst.msk [vmem:[#allocation4 + $0x148] sm:$0xff] %vm1903_vm9, %v1794_v50  ;;  %v1800_v59 = vpop.permute.xlu0 %1799 }
 0x1f7   :  { %2166 = vrot.lane.b32.xlu1 %v2003_v56, %s10221_s25  ;;  %1948 = vst.msk [vmem:[#allocation4 + $0x160] sm:$0xff] %vm1903_vm9, %v1800_v59  ;;  %v2356_v56 = vld [vmem:[#allocation2 + $0x3a] sm:$0xff] }
 0x1f8   :  { %2172 = vrot.lane.b32.xlu0 %v2006_v18, %s10221_s25  ;;  %v2359_v18 = vld [vmem:[#allocation2 + $0x62] sm:$0xff] }
 0x1f9   :  { %v1798_v10 = vpop.permute.xlu1 %1797 }
 0x1fa   :  { %1947 = vst.msk [vmem:[#allocation4 + $0x158] sm:$0xff] %vm1903_vm9, %v1798_v10  ;;  %v1804_v7 = vpop.permute.xlu0 %1803 }
 0x1fb   :  { %2170 = vrot.lane.b32.xlu1 %v2005_v35, %s10221_s25  ;;  %1950 = vst.msk [vmem:[#allocation4 + $0x170] sm:$0xff] %vm1903_vm9, %v1804_v7  ;;  %v2358_v35 = vld [vmem:[#allocation2 + $0x52] sm:$0xff] }
 0x1fc   :  { %2176 = vrot.lane.b32.xlu0 %v2008_v25, %s10221_s25  ;;  %v2361_v25 = vld [vmem:[#allocation2 + $0x7a] sm:$0xff] }
 0x1fd   :  { %v1802_v13 = vpop.permute.xlu1 %1801 }
 0x1fe   :  { %1949 = vst.msk [vmem:[#allocation4 + $0x168] sm:$0xff] %vm1903_vm9, %v1802_v13  ;;  %v1808_v3 = vpop.permute.xlu0 %1807 }
 0x1ff   :  { %2174 = vrot.lane.b32.xlu1 %v2007_v41, %s10221_s25  ;;  %1952 = vst.msk [vmem:[#allocation4 + $0x180] sm:$0xff] %vm1903_vm9, %v1808_v3  ;;  %v2360_v41 = vld [vmem:[#allocation2 + $0x6a] sm:$0xff] }
 0x200   :  { %2180 = vrot.lane.b32.xlu0 %v2010_v33, %s10221_s25  ;;  %v2363_v33 = vld [vmem:[#allocation2 + $0x92] sm:$0xff] }
 0x201   :  { %v1806_v26 = vpop.permute.xlu1 %1805 }
 0x202   :  { %1951 = vst.msk [vmem:[#allocation4 + $0x178] sm:$0xff] %vm1903_vm9, %v1806_v26  ;;  %v1812_v52 = vpop.permute.xlu0 %1811 }
 0x203   :  { %2178 = vrot.lane.b32.xlu1 %v2009_v22, %s10221_s25  ;;  %1954 = vst.msk [vmem:[#allocation4 + $0x190] sm:$0xff] %vm1903_vm9, %v1812_v52  ;;  %v2362_v22 = vld [vmem:[#allocation2 + $0x82] sm:$0xff] }
 0x204   :  { %2184 = vrot.lane.b32.xlu0 %v2012_v53, %s10221_s25  ;;  %v2365_v53 = vld [vmem:[#allocation2 + $0xaa] sm:$0xff] }
 0x205   :  { %v1810_v54 = vpop.permute.xlu1 %1809 }
 0x206   :  { %1953 = vst.msk [vmem:[#allocation4 + $0x188] sm:$0xff] %vm1903_vm9, %v1810_v54  ;;  %v1816_v24 = vpop.permute.xlu0 %1815 }
 0x207   :  { %2182 = vrot.lane.b32.xlu1 %v2011_v21, %s10221_s25  ;;  %1956 = vst.msk [vmem:[#allocation4 + $0x1a0] sm:$0xff] %vm1903_vm9, %v1816_v24  ;;  %v2364_v21 = vld [vmem:[#allocation2 + $0x9a] sm:$0xff] }
 0x208   :  { %2188 = vrot.lane.b32.xlu0 %v2014_v34, %s10221_s25  ;;  %v2367_v34 = vld [vmem:[#allocation2 + $0xc2] sm:$0xff] }
 0x209   :  { %v1814_v36 = vpop.permute.xlu1 %1813 }
 0x20a   :  { %1955 = vst.msk [vmem:[#allocation4 + $0x198] sm:$0xff] %vm1903_vm9, %v1814_v36  ;;  %v1820_v43 = vpop.permute.xlu0 %1819 }
 0x20b   :  { %2186 = vrot.lane.b32.xlu1 %v2013_v40, %s10221_s25  ;;  %1958 = vst.msk [vmem:[#allocation4 + $0x1b0] sm:$0xff] %vm1903_vm9, %v1820_v43  ;;  %v2366_v40 = vld [vmem:[#allocation2 + $0xb2] sm:$0xff] }
 0x20c   :  { %2192 = vrot.lane.b32.xlu0 %v2016_v47, %s10221_s25  ;;  %v2369_v47 = vld [vmem:[#allocation2 + $0xda] sm:$0xff] }
 0x20d   :  { %v1818_v48 = vpop.permute.xlu1 %1817 }
 0x20e   :  { %1957 = vst.msk [vmem:[#allocation4 + $0x1a8] sm:$0xff] %vm1903_vm9, %v1818_v48  ;;  %v1824_v1 = vpop.permute.xlu0 %1823 }
 0x20f   :  { %2190 = vrot.lane.b32.xlu1 %v2015_v60, %s10221_s25  ;;  %1960 = vst.msk [vmem:[#allocation4 + $0x1c0] sm:$0xff] %vm1903_vm9, %v1824_v1  ;;  %v2368_v60 = vld [vmem:[#allocation2 + $0xca] sm:$0xff] }
 0x210   :  { %2196 = vrot.lane.b32.xlu0 %v2018_v6, %s10221_s25  ;;  %v2371_v6 = vld [vmem:[#allocation2 + $0xf2] sm:$0xff] }
 0x211   :  { %v1822_v8 = vpop.permute.xlu1 %1821 }
 0x212   :  { %1959 = vst.msk [vmem:[#allocation4 + $0x1b8] sm:$0xff] %vm1903_vm9, %v1822_v8  ;;  %v1828_v30 = vpop.permute.xlu0 %1827 }
 0x213   :  { %2194 = vrot.lane.b32.xlu1 %v2017_v12, %s10221_s25  ;;  %1962 = vst.msk [vmem:[#allocation4 + $0x1d0] sm:$0xff] %vm1903_vm9, %v1828_v30  ;;  %v2370_v12 = vld [vmem:[#allocation2 + $0xe2] sm:$0xff] }
 0x214   :  { %2200 = vrot.lane.b32.xlu0 %v2020_v45, %s10221_s25  ;;  %v2373_v45 = vld [vmem:[#allocation2 + $0x10a] sm:$0xff] }
 0x215   :  { %v1826_v16 = vpop.permute.xlu1 %1825 }
 0x216   :  { %1961 = vst.msk [vmem:[#allocation4 + $0x1c8] sm:$0xff] %vm1903_vm9, %v1826_v16  ;;  %v1832_v39 = vpop.permute.xlu0 %1831 }
 0x217   :  { %2198 = vrot.lane.b32.xlu1 %v2019_v19, %s10221_s25  ;;  %1964 = vst.msk [vmem:[#allocation4 + $0x1e0] sm:$0xff] %vm1903_vm9, %v1832_v39  ;;  %v2372_v19 = vld [vmem:[#allocation2 + $0xfa] sm:$0xff] }
 0x218   :  { %2204 = vrot.lane.b32.xlu0 %v2022_v2, %s10221_s25  ;;  %v2375_v2 = vld [vmem:[#allocation2 + $0x122] sm:$0xff] }
 0x219   :  { %v1830_v11 = vpop.permute.xlu1 %1829 }
 0x21a   :  { %1963 = vst.msk [vmem:[#allocation4 + $0x1d8] sm:$0xff] %vm1903_vm9, %v1830_v11  ;;  %v1836_v44 = vpop.permute.xlu0 %1835 }
 0x21b   :  { %2202 = vrot.lane.b32.xlu1 %v2021_v37, %s10221_s25  ;;  %1966 = vst.msk [vmem:[#allocation4 + $0x1f0] sm:$0xff] %vm1903_vm9, %v1836_v44  ;;  %v2374_v37 = vld [vmem:[#allocation2 + $0x112] sm:$0xff] }
 0x21c   :  { %2208 = vrot.lane.b32.xlu0 %v2024_v32, %s10221_s25  ;;  %v2377_v32 = vld [vmem:[#allocation2 + $0x13a] sm:$0xff] }
 0x21d   :  { %v1834_v28 = vpop.permute.xlu1 %1833 }
 0x21e   :  { %1965 = vst.msk [vmem:[#allocation4 + $0x1e8] sm:$0xff] %vm1903_vm9, %v1834_v28  ;;  %v2097_v0 = vpop.permute.xlu0 %2096 }
 0x21f   :  { %2206 = vrot.lane.b32.xlu1 %v2023_v4, %s10221_s25  ;;  %2289 = vst.msk [vmem:[#allocation4] sm:$0xff] %vm2288_vm10, %v2097_v0  ;;  %v2376_v4 = vld [vmem:[#allocation2 + $0x12a] sm:$0xff] }
 0x220   :  { %2212 = vrot.lane.b32.xlu0 %v2026_v55, %s10221_s25  ;;  %v2379_v55 = vld [vmem:[#allocation2 + $0x152] sm:$0xff] }
 0x221   :  { %v1838_v5 = vpop.permute.xlu1 %1837 }
 0x222   :  { %1967 = vst.msk [vmem:[#allocation4 + $0x1f8] sm:$0xff] %vm1903_vm9, %v1838_v5  ;;  %v2101_v23 = vpop.permute.xlu0 %2100 }
 0x223   :  { %2210 = vrot.lane.b32.xlu1 %v2025_v17, %s10221_s25  ;;  %2291 = vst.msk [vmem:[#allocation4 + $0x10] sm:$0xff] %vm2288_vm10, %v2101_v23  ;;  %v2378_v17 = vld [vmem:[#allocation2 + $0x142] sm:$0xff] }
 0x224   :  { %2216 = vrot.lane.b32.xlu0 %v2028_v38, %s10221_s25  ;;  %v2381_v38 = vld [vmem:[#allocation2 + $0x16a] sm:$0xff] }
 0x225   :  { %v2099_v42 = vpop.permute.xlu1 %2098 }
 0x226   :  { %2290 = vst.msk [vmem:[#allocation4 + $0x8] sm:$0xff] %vm2288_vm10, %v2099_v42  ;;  %v2105_v58 = vpop.permute.xlu0 %2104 }
 0x227   :  { %2214 = vrot.lane.b32.xlu1 %v2027_v57, %s10221_s25  ;;  %2293 = vst.msk [vmem:[#allocation4 + $0x20] sm:$0xff] %vm2288_vm10, %v2105_v58  ;;  %v2380_v57 = vld [vmem:[#allocation2 + $0x15a] sm:$0xff] }
 0x228   :  { %2220 = vrot.lane.b32.xlu0 %v2030_v63, %s10221_s25  ;;  %v2383_v63 = vld [vmem:[#allocation2 + $0x182] sm:$0xff] }
 0x229   :  { %v2103_v9 = vpop.permute.xlu1 %2102 }
 0x22a   :  { %2292 = vst.msk [vmem:[#allocation4 + $0x18] sm:$0xff] %vm2288_vm10, %v2103_v9  ;;  %v2109_v15 = vpop.permute.xlu0 %2108 }
 0x22b   :  { %2218 = vrot.lane.b32.xlu1 %v2029_v14, %s10221_s25  ;;  %2295 = vst.msk [vmem:[#allocation4 + $0x30] sm:$0xff] %vm2288_vm10, %v2109_v15  ;;  %v2382_v14 = vld [vmem:[#allocation2 + $0x172] sm:$0xff] }
 0x22c   :  { %2481 = vrot.lane.b32.xlu0 %v2353_v27, %s10222_s26  ;;  %v2385_v27 = vld [vmem:[#allocation2 + $0x1ca] sm:$0xff] }
 0x22d   :  { %v2107_v31 = vpop.permute.xlu1 %2106 }
 0x22e   :  { %2294 = vst.msk [vmem:[#allocation4 + $0x28] sm:$0xff] %vm2288_vm10, %v2107_v31  ;;  %v2113_v51 = vpop.permute.xlu0 %2112 }
 0x22f   :  { %2222 = vrot.lane.b32.xlu1 %v2031_v46, %s10221_s25  ;;  %2297 = vst.msk [vmem:[#allocation4 + $0x40] sm:$0xff] %vm2288_vm10, %v2113_v51  ;;  %v2384_v46 = vld [vmem:[#allocation2 + $0x18a] sm:$0xff] }
 0x230   :  { %2485 = vrot.lane.b32.xlu0 %v2355_v61, %s10222_s26  ;;  %v2387_v61 = vld [vmem:[#allocation2 + $0x1e2] sm:$0xff] }
 0x231   :  { %v2111_v62 = vpop.permute.xlu1 %2110 }
 0x232   :  { %2296 = vst.msk [vmem:[#allocation4 + $0x38] sm:$0xff] %vm2288_vm10, %v2111_v62  ;;  %v2117_v29 = vpop.permute.xlu0 %2116 }
 0x233   :  { %2483 = vrot.lane.b32.xlu1 %v2354_v20, %s10222_s26  ;;  %2299 = vst.msk [vmem:[#allocation4 + $0x50] sm:$0xff] %vm2288_vm10, %v2117_v29  ;;  %v2386_v20 = vld [vmem:[#allocation2 + $0x1d2] sm:$0xff] }
 0x234   :  { %2489 = vrot.lane.b32.xlu0 %v2357_v49, %s10222_s26  ;;  %v2389_v49 = vld [vmem:[#allocation2 + $0x1fa] sm:$0xff] }
 0x235   :  { %v2115_v50 = vpop.permute.xlu1 %2114 }
 0x236   :  { %2298 = vst.msk [vmem:[#allocation4 + $0x48] sm:$0xff] %vm2288_vm10, %v2115_v50  ;;  %v2121_v59 = vpop.permute.xlu0 %2120 }
 0x237   :  { %2487 = vrot.lane.b32.xlu1 %v2356_v56, %s10222_s26  ;;  %2301 = vst.msk [vmem:[#allocation4 + $0x60] sm:$0xff] %vm2288_vm10, %v2121_v59  ;;  %v2388_v56 = vld [vmem:[#allocation2 + $0x1ea] sm:$0xff] }
 0x238   :  { %2493 = vrot.lane.b32.xlu0 %v2359_v18, %s10222_s26  ;;  %v2391_v18 = vld [vmem:[#allocation2 + $0x212] sm:$0xff] }
 0x239   :  { %v2119_v10 = vpop.permute.xlu1 %2118 }
 0x23a   :  { %2300 = vst.msk [vmem:[#allocation4 + $0x58] sm:$0xff] %vm2288_vm10, %v2119_v10  ;;  %v2125_v7 = vpop.permute.xlu0 %2124 }
 0x23b   :  { %2491 = vrot.lane.b32.xlu1 %v2358_v35, %s10222_s26  ;;  %2303 = vst.msk [vmem:[#allocation4 + $0x70] sm:$0xff] %vm2288_vm10, %v2125_v7  ;;  %v2390_v35 = vld [vmem:[#allocation2 + $0x202] sm:$0xff] }
 0x23c   :  { %2497 = vrot.lane.b32.xlu0 %v2361_v25, %s10222_s26  ;;  %v2393_v25 = vld [vmem:[#allocation2 + $0x22a] sm:$0xff] }
 0x23d   :  { %v2123_v13 = vpop.permute.xlu1 %2122 }
 0x23e   :  { %2302 = vst.msk [vmem:[#allocation4 + $0x68] sm:$0xff] %vm2288_vm10, %v2123_v13  ;;  %v2129_v3 = vpop.permute.xlu0 %2128 }
 0x23f   :  { %2495 = vrot.lane.b32.xlu1 %v2360_v41, %s10222_s26  ;;  %2305 = vst.msk [vmem:[#allocation4 + $0x80] sm:$0xff] %vm2288_vm10, %v2129_v3  ;;  %v2392_v41 = vld [vmem:[#allocation2 + $0x21a] sm:$0xff] }
 0x240   :  { %2501 = vrot.lane.b32.xlu0 %v2363_v33, %s10222_s26  ;;  %v2395_v33 = vld [vmem:[#allocation2 + $0x242] sm:$0xff] }
 0x241   :  { %v2127_v26 = vpop.permute.xlu1 %2126 }
 0x242   :  { %2304 = vst.msk [vmem:[#allocation4 + $0x78] sm:$0xff] %vm2288_vm10, %v2127_v26  ;;  %v2133_v52 = vpop.permute.xlu0 %2132 }
 0x243   :  { %2499 = vrot.lane.b32.xlu1 %v2362_v22, %s10222_s26  ;;  %2307 = vst.msk [vmem:[#allocation4 + $0x90] sm:$0xff] %vm2288_vm10, %v2133_v52  ;;  %v2394_v22 = vld [vmem:[#allocation2 + $0x232] sm:$0xff] }
 0x244   :  { %2505 = vrot.lane.b32.xlu0 %v2365_v53, %s10222_s26  ;;  %v2397_v53 = vld [vmem:[#allocation2 + $0x25a] sm:$0xff] }
 0x245   :  { %v2131_v54 = vpop.permute.xlu1 %2130 }
 0x246   :  { %2306 = vst.msk [vmem:[#allocation4 + $0x88] sm:$0xff] %vm2288_vm10, %v2131_v54  ;;  %v2137_v24 = vpop.permute.xlu0 %2136 }
 0x247   :  { %2503 = vrot.lane.b32.xlu1 %v2364_v21, %s10222_s26  ;;  %2309 = vst.msk [vmem:[#allocation4 + $0xa0] sm:$0xff] %vm2288_vm10, %v2137_v24  ;;  %v2396_v21 = vld [vmem:[#allocation2 + $0x24a] sm:$0xff] }
 0x248   :  { %2509 = vrot.lane.b32.xlu0 %v2367_v34, %s10222_s26  ;;  %v2399_v34 = vld [vmem:[#allocation2 + $0x272] sm:$0xff] }
 0x249   :  { %v2135_v36 = vpop.permute.xlu1 %2134 }
 0x24a   :  { %2308 = vst.msk [vmem:[#allocation4 + $0x98] sm:$0xff] %vm2288_vm10, %v2135_v36  ;;  %v2141_v43 = vpop.permute.xlu0 %2140 }
 0x24b   :  { %2507 = vrot.lane.b32.xlu1 %v2366_v40, %s10222_s26  ;;  %2311 = vst.msk [vmem:[#allocation4 + $0xb0] sm:$0xff] %vm2288_vm10, %v2141_v43  ;;  %v2398_v40 = vld [vmem:[#allocation2 + $0x262] sm:$0xff] }
 0x24c   :  { %2513 = vrot.lane.b32.xlu0 %v2369_v47, %s10222_s26  ;;  %v2401_v47 = vld [vmem:[#allocation2 + $0x28a] sm:$0xff] }
 0x24d   :  { %v2139_v48 = vpop.permute.xlu1 %2138 }
 0x24e   :  { %2310 = vst.msk [vmem:[#allocation4 + $0xa8] sm:$0xff] %vm2288_vm10, %v2139_v48  ;;  %v2145_v1 = vpop.permute.xlu0 %2144 }
 0x24f   :  { %2511 = vrot.lane.b32.xlu1 %v2368_v60, %s10222_s26  ;;  %2313 = vst.msk [vmem:[#allocation4 + $0xc0] sm:$0xff] %vm2288_vm10, %v2145_v1  ;;  %v2400_v60 = vld [vmem:[#allocation2 + $0x27a] sm:$0xff] }
 0x250   :  { %2517 = vrot.lane.b32.xlu0 %v2371_v6, %s10222_s26  ;;  %v2403_v6 = vld [vmem:[#allocation2 + $0x2a2] sm:$0xff] }
 0x251   :  { %v2143_v8 = vpop.permute.xlu1 %2142 }
 0x252   :  { %2312 = vst.msk [vmem:[#allocation4 + $0xb8] sm:$0xff] %vm2288_vm10, %v2143_v8  ;;  %v2149_v30 = vpop.permute.xlu0 %2148 }
 0x253   :  { %2515 = vrot.lane.b32.xlu1 %v2370_v12, %s10222_s26  ;;  %2315 = vst.msk [vmem:[#allocation4 + $0xd0] sm:$0xff] %vm2288_vm10, %v2149_v30  ;;  %v2402_v12 = vld [vmem:[#allocation2 + $0x292] sm:$0xff] }
 0x254   :  { %2521 = vrot.lane.b32.xlu0 %v2373_v45, %s10222_s26  ;;  %v2405_v45 = vld [vmem:[#allocation2 + $0x2ba] sm:$0xff] }
 0x255   :  { %v2147_v16 = vpop.permute.xlu1 %2146 }
 0x256   :  { %2314 = vst.msk [vmem:[#allocation4 + $0xc8] sm:$0xff] %vm2288_vm10, %v2147_v16  ;;  %v2153_v39 = vpop.permute.xlu0 %2152 }
 0x257   :  { %2519 = vrot.lane.b32.xlu1 %v2372_v19, %s10222_s26  ;;  %2317 = vst.msk [vmem:[#allocation4 + $0xe0] sm:$0xff] %vm2288_vm10, %v2153_v39  ;;  %v2404_v19 = vld [vmem:[#allocation2 + $0x2aa] sm:$0xff] }
 0x258   :  { %2525 = vrot.lane.b32.xlu0 %v2375_v2, %s10222_s26  ;;  %v2407_v2 = vld [vmem:[#allocation2 + $0x2d2] sm:$0xff] }
 0x259   :  { %v2151_v11 = vpop.permute.xlu1 %2150 }
 0x25a   :  { %2316 = vst.msk [vmem:[#allocation4 + $0xd8] sm:$0xff] %vm2288_vm10, %v2151_v11  ;;  %v2157_v44 = vpop.permute.xlu0 %2156 }
 0x25b   :  { %2523 = vrot.lane.b32.xlu1 %v2374_v37, %s10222_s26  ;;  %2319 = vst.msk [vmem:[#allocation4 + $0xf0] sm:$0xff] %vm2288_vm10, %v2157_v44  ;;  %v2406_v37 = vld [vmem:[#allocation2 + $0x2c2] sm:$0xff] }
 0x25c   :  { %2529 = vrot.lane.b32.xlu0 %v2377_v32, %s10222_s26  ;;  %v2409_v32 = vld [vmem:[#allocation2 + $0x2ea] sm:$0xff] }
 0x25d   :  { %v2155_v28 = vpop.permute.xlu1 %2154 }
 0x25e   :  { %2318 = vst.msk [vmem:[#allocation4 + $0xe8] sm:$0xff] %vm2288_vm10, %v2155_v28  ;;  %v2161_v0 = vpop.permute.xlu0 %2160 }
 0x25f   :  { %2527 = vrot.lane.b32.xlu1 %v2376_v4, %s10222_s26  ;;  %2321 = vst.msk [vmem:[#allocation4 + $0x100] sm:$0xff] %vm2288_vm10, %v2161_v0  ;;  %v2408_v4 = vld [vmem:[#allocation2 + $0x2da] sm:$0xff] }
 0x260   :  { %2533 = vrot.lane.b32.xlu0 %v2379_v55, %s10222_s26  ;;  %v2411_v55 = vld [vmem:[#allocation2 + $0x302] sm:$0xff] }
 0x261   :  { %v2159_v5 = vpop.permute.xlu1 %2158 }
 0x262   :  { %2320 = vst.msk [vmem:[#allocation4 + $0xf8] sm:$0xff] %vm2288_vm10, %v2159_v5  ;;  %v2165_v23 = vpop.permute.xlu0 %2164 }
 0x263   :  { %2531 = vrot.lane.b32.xlu1 %v2378_v17, %s10222_s26  ;;  %2323 = vst.msk [vmem:[#allocation4 + $0x110] sm:$0xff] %vm2288_vm10, %v2165_v23  ;;  %v2410_v17 = vld [vmem:[#allocation2 + $0x2f2] sm:$0xff] }
 0x264   :  { %2537 = vrot.lane.b32.xlu0 %v2381_v38, %s10222_s26  ;;  %v2413_v38 = vld [vmem:[#allocation2 + $0x31a] sm:$0xff] }
 0x265   :  { %v2163_v42 = vpop.permute.xlu1 %2162 }
 0x266   :  { %2322 = vst.msk [vmem:[#allocation4 + $0x108] sm:$0xff] %vm2288_vm10, %v2163_v42  ;;  %v2169_v58 = vpop.permute.xlu0 %2168 }
 0x267   :  { %2535 = vrot.lane.b32.xlu1 %v2380_v57, %s10222_s26  ;;  %2325 = vst.msk [vmem:[#allocation4 + $0x120] sm:$0xff] %vm2288_vm10, %v2169_v58  ;;  %v2412_v57 = vld [vmem:[#allocation2 + $0x30a] sm:$0xff] }
 0x268   :  { %2541 = vrot.lane.b32.xlu0 %v2383_v63, %s10222_s26  ;;  %v2415_v63 = vld [vmem:[#allocation2 + $0x332] sm:$0xff] }
 0x269   :  { %v2167_v9 = vpop.permute.xlu1 %2166 }
 0x26a   :  { %2324 = vst.msk [vmem:[#allocation4 + $0x118] sm:$0xff] %vm2288_vm10, %v2167_v9  ;;  %v2173_v15 = vpop.permute.xlu0 %2172 }
 0x26b   :  { %2539 = vrot.lane.b32.xlu1 %v2382_v14, %s10222_s26  ;;  %2327 = vst.msk [vmem:[#allocation4 + $0x130] sm:$0xff] %vm2288_vm10, %v2173_v15  ;;  %v2414_v14 = vld [vmem:[#allocation2 + $0x322] sm:$0xff] }
 0x26c   :  { %2545 = vrot.lane.b32.xlu0 %v2385_v27, %s10222_s26  ;;  %v2739_v27 = vld [vmem:[#allocation2 + $0x30] sm:$0xff] }
 0x26d   :  { %v2171_v31 = vpop.permute.xlu1 %2170 }
 0x26e   :  { %2326 = vst.msk [vmem:[#allocation4 + $0x128] sm:$0xff] %vm2288_vm10, %v2171_v31  ;;  %v2177_v51 = vpop.permute.xlu0 %2176 }
 0x26f   :  { %2543 = vrot.lane.b32.xlu1 %v2384_v46, %s10222_s26  ;;  %2329 = vst.msk [vmem:[#allocation4 + $0x140] sm:$0xff] %vm2288_vm10, %v2177_v51  ;;  %v2416_v46 = vld [vmem:[#allocation2 + $0x33a] sm:$0xff] }
 0x270   :  { %2549 = vrot.lane.b32.xlu0 %v2387_v61, %s10222_s26  ;;  %v2741_v61 = vld [vmem:[#allocation2 + $0x48] sm:$0xff] }
 0x271   :  { %v2175_v62 = vpop.permute.xlu1 %2174 }
 0x272   :  { %2328 = vst.msk [vmem:[#allocation4 + $0x138] sm:$0xff] %vm2288_vm10, %v2175_v62  ;;  %v2181_v29 = vpop.permute.xlu0 %2180 }
 0x273   :  { %2547 = vrot.lane.b32.xlu1 %v2386_v20, %s10222_s26  ;;  %2331 = vst.msk [vmem:[#allocation4 + $0x150] sm:$0xff] %vm2288_vm10, %v2181_v29  ;;  %v2740_v20 = vld [vmem:[#allocation2 + $0x38] sm:$0xff] }
 0x274   :  { %2553 = vrot.lane.b32.xlu0 %v2389_v49, %s10222_s26  ;;  %v2743_v49 = vld [vmem:[#allocation2 + $0x60] sm:$0xff] }
 0x275   :  { %v2179_v50 = vpop.permute.xlu1 %2178 }
 0x276   :  { %2330 = vst.msk [vmem:[#allocation4 + $0x148] sm:$0xff] %vm2288_vm10, %v2179_v50  ;;  %v2185_v59 = vpop.permute.xlu0 %2184 }
 0x277   :  { %2551 = vrot.lane.b32.xlu1 %v2388_v56, %s10222_s26  ;;  %2333 = vst.msk [vmem:[#allocation4 + $0x160] sm:$0xff] %vm2288_vm10, %v2185_v59  ;;  %v2742_v56 = vld [vmem:[#allocation2 + $0x50] sm:$0xff] }
 0x278   :  { %2557 = vrot.lane.b32.xlu0 %v2391_v18, %s10222_s26  ;;  %v2745_v18 = vld [vmem:[#allocation2 + $0x78] sm:$0xff] }
 0x279   :  { %v2183_v10 = vpop.permute.xlu1 %2182 }
 0x27a   :  { %2332 = vst.msk [vmem:[#allocation4 + $0x158] sm:$0xff] %vm2288_vm10, %v2183_v10  ;;  %v2189_v7 = vpop.permute.xlu0 %2188 }
 0x27b   :  { %2555 = vrot.lane.b32.xlu1 %v2390_v35, %s10222_s26  ;;  %2335 = vst.msk [vmem:[#allocation4 + $0x170] sm:$0xff] %vm2288_vm10, %v2189_v7  ;;  %v2744_v35 = vld [vmem:[#allocation2 + $0x68] sm:$0xff] }
 0x27c   :  { %2561 = vrot.lane.b32.xlu0 %v2393_v25, %s10222_s26  ;;  %v2747_v25 = vld [vmem:[#allocation2 + $0x90] sm:$0xff] }
 0x27d   :  { %v2187_v13 = vpop.permute.xlu1 %2186 }
 0x27e   :  { %2334 = vst.msk [vmem:[#allocation4 + $0x168] sm:$0xff] %vm2288_vm10, %v2187_v13  ;;  %v2193_v3 = vpop.permute.xlu0 %2192 }
 0x27f   :  { %2559 = vrot.lane.b32.xlu1 %v2392_v41, %s10222_s26  ;;  %2337 = vst.msk [vmem:[#allocation4 + $0x180] sm:$0xff] %vm2288_vm10, %v2193_v3  ;;  %v2746_v41 = vld [vmem:[#allocation2 + $0x80] sm:$0xff] }
 0x280   :  { %2565 = vrot.lane.b32.xlu0 %v2395_v33, %s10222_s26  ;;  %v2749_v33 = vld [vmem:[#allocation2 + $0xa8] sm:$0xff] }
 0x281   :  { %v2191_v26 = vpop.permute.xlu1 %2190 }
 0x282   :  { %2336 = vst.msk [vmem:[#allocation4 + $0x178] sm:$0xff] %vm2288_vm10, %v2191_v26  ;;  %v2197_v52 = vpop.permute.xlu0 %2196 }
 0x283   :  { %2563 = vrot.lane.b32.xlu1 %v2394_v22, %s10222_s26  ;;  %2339 = vst.msk [vmem:[#allocation4 + $0x190] sm:$0xff] %vm2288_vm10, %v2197_v52  ;;  %v2748_v22 = vld [vmem:[#allocation2 + $0x98] sm:$0xff] }
 0x284   :  { %2569 = vrot.lane.b32.xlu0 %v2397_v53, %s10222_s26  ;;  %v2751_v53 = vld [vmem:[#allocation2 + $0xc0] sm:$0xff] }
 0x285   :  { %v2195_v54 = vpop.permute.xlu1 %2194 }
 0x286   :  { %2338 = vst.msk [vmem:[#allocation4 + $0x188] sm:$0xff] %vm2288_vm10, %v2195_v54  ;;  %v2201_v24 = vpop.permute.xlu0 %2200 }
 0x287   :  { %2567 = vrot.lane.b32.xlu1 %v2396_v21, %s10222_s26  ;;  %2341 = vst.msk [vmem:[#allocation4 + $0x1a0] sm:$0xff] %vm2288_vm10, %v2201_v24  ;;  %v2750_v21 = vld [vmem:[#allocation2 + $0xb0] sm:$0xff] }
 0x288   :  { %2573 = vrot.lane.b32.xlu0 %v2399_v34, %s10222_s26  ;;  %v2753_v34 = vld [vmem:[#allocation2 + $0xd8] sm:$0xff] }
 0x289   :  { %v2199_v36 = vpop.permute.xlu1 %2198 }
 0x28a   :  { %2340 = vst.msk [vmem:[#allocation4 + $0x198] sm:$0xff] %vm2288_vm10, %v2199_v36  ;;  %v2205_v43 = vpop.permute.xlu0 %2204 }
 0x28b   :  { %2571 = vrot.lane.b32.xlu1 %v2398_v40, %s10222_s26  ;;  %2343 = vst.msk [vmem:[#allocation4 + $0x1b0] sm:$0xff] %vm2288_vm10, %v2205_v43  ;;  %v2752_v40 = vld [vmem:[#allocation2 + $0xc8] sm:$0xff] }
 0x28c   :  { %2577 = vrot.lane.b32.xlu0 %v2401_v47, %s10222_s26  ;;  %v2755_v47 = vld [vmem:[#allocation2 + $0xf0] sm:$0xff] }
 0x28d   :  { %v2203_v48 = vpop.permute.xlu1 %2202 }
 0x28e   :  { %2342 = vst.msk [vmem:[#allocation4 + $0x1a8] sm:$0xff] %vm2288_vm10, %v2203_v48  ;;  %v2209_v1 = vpop.permute.xlu0 %2208 }
 0x28f   :  { %2575 = vrot.lane.b32.xlu1 %v2400_v60, %s10222_s26  ;;  %2345 = vst.msk [vmem:[#allocation4 + $0x1c0] sm:$0xff] %vm2288_vm10, %v2209_v1  ;;  %v2754_v60 = vld [vmem:[#allocation2 + $0xe0] sm:$0xff] }
 0x290   :  { %2581 = vrot.lane.b32.xlu0 %v2403_v6, %s10222_s26  ;;  %v2757_v6 = vld [vmem:[#allocation2 + $0x108] sm:$0xff] }
 0x291   :  { %v2207_v8 = vpop.permute.xlu1 %2206 }
 0x292   :  { %2344 = vst.msk [vmem:[#allocation4 + $0x1b8] sm:$0xff] %vm2288_vm10, %v2207_v8  ;;  %v2213_v30 = vpop.permute.xlu0 %2212 }
 0x293   :  { %2579 = vrot.lane.b32.xlu1 %v2402_v12, %s10222_s26  ;;  %2347 = vst.msk [vmem:[#allocation4 + $0x1d0] sm:$0xff] %vm2288_vm10, %v2213_v30  ;;  %v2756_v12 = vld [vmem:[#allocation2 + $0xf8] sm:$0xff] }
 0x294   :  { %2585 = vrot.lane.b32.xlu0 %v2405_v45, %s10222_s26  ;;  %v2759_v45 = vld [vmem:[#allocation2 + $0x120] sm:$0xff] }
 0x295   :  { %v2211_v16 = vpop.permute.xlu1 %2210 }
 0x296   :  { %2346 = vst.msk [vmem:[#allocation4 + $0x1c8] sm:$0xff] %vm2288_vm10, %v2211_v16  ;;  %v2217_v39 = vpop.permute.xlu0 %2216 }
 0x297   :  { %2583 = vrot.lane.b32.xlu1 %v2404_v19, %s10222_s26  ;;  %2349 = vst.msk [vmem:[#allocation4 + $0x1e0] sm:$0xff] %vm2288_vm10, %v2217_v39  ;;  %v2758_v19 = vld [vmem:[#allocation2 + $0x110] sm:$0xff] }
 0x298   :  { %2589 = vrot.lane.b32.xlu0 %v2407_v2, %s10222_s26  ;;  %v2761_v2 = vld [vmem:[#allocation2 + $0x138] sm:$0xff] }
 0x299   :  { %v2215_v11 = vpop.permute.xlu1 %2214 }
 0x29a   :  { %2348 = vst.msk [vmem:[#allocation4 + $0x1d8] sm:$0xff] %vm2288_vm10, %v2215_v11  ;;  %v2221_v44 = vpop.permute.xlu0 %2220 }
 0x29b   :  { %2587 = vrot.lane.b32.xlu1 %v2406_v37, %s10222_s26  ;;  %2351 = vst.msk [vmem:[#allocation4 + $0x1f0] sm:$0xff] %vm2288_vm10, %v2221_v44  ;;  %v2760_v37 = vld [vmem:[#allocation2 + $0x128] sm:$0xff] }
 0x29c   :  { %2593 = vrot.lane.b32.xlu0 %v2409_v32, %s10222_s26  ;;  %v2763_v32 = vld [vmem:[#allocation2 + $0x150] sm:$0xff] }
 0x29d   :  { %v2219_v28 = vpop.permute.xlu1 %2218 }
 0x29e   :  { %2350 = vst.msk [vmem:[#allocation4 + $0x1e8] sm:$0xff] %vm2288_vm10, %v2219_v28  ;;  %v2482_v0 = vpop.permute.xlu0 %2481 }
 0x29f   :  { %2591 = vrot.lane.b32.xlu1 %v2408_v4, %s10222_s26  ;;  %2674 = vst.msk [vmem:[#allocation4] sm:$0xff] %vm2673_vm11, %v2482_v0  ;;  %v2762_v4 = vld [vmem:[#allocation2 + $0x140] sm:$0xff] }
 0x2a0   :  { %2597 = vrot.lane.b32.xlu0 %v2411_v55, %s10222_s26  ;;  %v2765_v55 = vld [vmem:[#allocation2 + $0x168] sm:$0xff] }
 0x2a1   :  { %v2223_v5 = vpop.permute.xlu1 %2222 }
 0x2a2   :  { %2352 = vst.msk [vmem:[#allocation4 + $0x1f8] sm:$0xff] %vm2288_vm10, %v2223_v5  ;;  %v2486_v23 = vpop.permute.xlu0 %2485 }
 0x2a3   :  { %2595 = vrot.lane.b32.xlu1 %v2410_v17, %s10222_s26  ;;  %2676 = vst.msk [vmem:[#allocation4 + $0x10] sm:$0xff] %vm2673_vm11, %v2486_v23  ;;  %v2764_v17 = vld [vmem:[#allocation2 + $0x158] sm:$0xff] }
 0x2a4   :  { %2601 = vrot.lane.b32.xlu0 %v2413_v38, %s10222_s26  ;;  %v2767_v38 = vld [vmem:[#allocation2 + $0x180] sm:$0xff] }
 0x2a5   :  { %v2484_v42 = vpop.permute.xlu1 %2483 }
 0x2a6   :  { %2675 = vst.msk [vmem:[#allocation4 + $0x8] sm:$0xff] %vm2673_vm11, %v2484_v42  ;;  %v2490_v58 = vpop.permute.xlu0 %2489 }
 0x2a7   :  { %2599 = vrot.lane.b32.xlu1 %v2412_v57, %s10222_s26  ;;  %2678 = vst.msk [vmem:[#allocation4 + $0x20] sm:$0xff] %vm2673_vm11, %v2490_v58  ;;  %v2766_v57 = vld [vmem:[#allocation2 + $0x170] sm:$0xff] }
 0x2a8   :  { %2605 = vrot.lane.b32.xlu0 %v2415_v63, %s10222_s26  ;;  %v2769_v63 = vld [vmem:[#allocation2 + $0x198] sm:$0xff] }
 0x2a9   :  { %v2488_v9 = vpop.permute.xlu1 %2487 }
 0x2aa   :  { %2677 = vst.msk [vmem:[#allocation4 + $0x18] sm:$0xff] %vm2673_vm11, %v2488_v9  ;;  %v2494_v15 = vpop.permute.xlu0 %2493 }
 0x2ab   :  { %2603 = vrot.lane.b32.xlu1 %v2414_v14, %s10222_s26  ;;  %2680 = vst.msk [vmem:[#allocation4 + $0x30] sm:$0xff] %vm2673_vm11, %v2494_v15  ;;  %v2768_v14 = vld [vmem:[#allocation2 + $0x188] sm:$0xff] }
 0x2ac   :  { %2867 = vrot.lane.b32.xlu0 %v2739_v27, %s10223_s28  ;;  %v2771_v27 = vld [vmem:[#allocation2 + $0x1e0] sm:$0xff] }
 0x2ad   :  { %v2492_v31 = vpop.permute.xlu1 %2491 }
 0x2ae   :  { %2679 = vst.msk [vmem:[#allocation4 + $0x28] sm:$0xff] %vm2673_vm11, %v2492_v31  ;;  %v2498_v51 = vpop.permute.xlu0 %2497 }
 0x2af   :  { %2607 = vrot.lane.b32.xlu1 %v2416_v46, %s10222_s26  ;;  %2682 = vst.msk [vmem:[#allocation4 + $0x40] sm:$0xff] %vm2673_vm11, %v2498_v51  ;;  %v2770_v46 = vld [vmem:[#allocation2 + $0x1a0] sm:$0xff] }
 0x2b0   :  { %2871 = vrot.lane.b32.xlu0 %v2741_v61, %s10223_s28  ;;  %v2773_v61 = vld [vmem:[#allocation2 + $0x1f8] sm:$0xff] }
 0x2b1   :  { %v2496_v62 = vpop.permute.xlu1 %2495 }
 0x2b2   :  { %2681 = vst.msk [vmem:[#allocation4 + $0x38] sm:$0xff] %vm2673_vm11, %v2496_v62  ;;  %v2502_v29 = vpop.permute.xlu0 %2501 }
 0x2b3   :  { %2869 = vrot.lane.b32.xlu1 %v2740_v20, %s10223_s28  ;;  %2684 = vst.msk [vmem:[#allocation4 + $0x50] sm:$0xff] %vm2673_vm11, %v2502_v29  ;;  %v2772_v20 = vld [vmem:[#allocation2 + $0x1e8] sm:$0xff] }
 0x2b4   :  { %2875 = vrot.lane.b32.xlu0 %v2743_v49, %s10223_s28  ;;  %v2775_v49 = vld [vmem:[#allocation2 + $0x210] sm:$0xff] }
 0x2b5   :  { %v2500_v50 = vpop.permute.xlu1 %2499 }
 0x2b6   :  { %2683 = vst.msk [vmem:[#allocation4 + $0x48] sm:$0xff] %vm2673_vm11, %v2500_v50  ;;  %v2506_v59 = vpop.permute.xlu0 %2505 }
 0x2b7   :  { %2873 = vrot.lane.b32.xlu1 %v2742_v56, %s10223_s28  ;;  %2686 = vst.msk [vmem:[#allocation4 + $0x60] sm:$0xff] %vm2673_vm11, %v2506_v59  ;;  %v2774_v56 = vld [vmem:[#allocation2 + $0x200] sm:$0xff] }
 0x2b8   :  { %2879 = vrot.lane.b32.xlu0 %v2745_v18, %s10223_s28  ;;  %v2777_v18 = vld [vmem:[#allocation2 + $0x228] sm:$0xff] }
 0x2b9   :  { %v2504_v10 = vpop.permute.xlu1 %2503 }
 0x2ba   :  { %2685 = vst.msk [vmem:[#allocation4 + $0x58] sm:$0xff] %vm2673_vm11, %v2504_v10  ;;  %v2510_v7 = vpop.permute.xlu0 %2509 }
 0x2bb   :  { %2877 = vrot.lane.b32.xlu1 %v2744_v35, %s10223_s28  ;;  %2688 = vst.msk [vmem:[#allocation4 + $0x70] sm:$0xff] %vm2673_vm11, %v2510_v7  ;;  %v2776_v35 = vld [vmem:[#allocation2 + $0x218] sm:$0xff] }
 0x2bc   :  { %2883 = vrot.lane.b32.xlu0 %v2747_v25, %s10223_s28  ;;  %v2779_v25 = vld [vmem:[#allocation2 + $0x240] sm:$0xff] }
 0x2bd   :  { %v2508_v13 = vpop.permute.xlu1 %2507 }
 0x2be   :  { %2687 = vst.msk [vmem:[#allocation4 + $0x68] sm:$0xff] %vm2673_vm11, %v2508_v13  ;;  %v2514_v3 = vpop.permute.xlu0 %2513 }
 0x2bf   :  { %2881 = vrot.lane.b32.xlu1 %v2746_v41, %s10223_s28  ;;  %2690 = vst.msk [vmem:[#allocation4 + $0x80] sm:$0xff] %vm2673_vm11, %v2514_v3  ;;  %v2778_v41 = vld [vmem:[#allocation2 + $0x230] sm:$0xff] }
 0x2c0   :  { %2887 = vrot.lane.b32.xlu0 %v2749_v33, %s10223_s28  ;;  %v2781_v33 = vld [vmem:[#allocation2 + $0x258] sm:$0xff] }
 0x2c1   :  { %v2512_v26 = vpop.permute.xlu1 %2511 }
 0x2c2   :  { %2689 = vst.msk [vmem:[#allocation4 + $0x78] sm:$0xff] %vm2673_vm11, %v2512_v26  ;;  %v2518_v52 = vpop.permute.xlu0 %2517 }
 0x2c3   :  { %2885 = vrot.lane.b32.xlu1 %v2748_v22, %s10223_s28  ;;  %2692 = vst.msk [vmem:[#allocation4 + $0x90] sm:$0xff] %vm2673_vm11, %v2518_v52  ;;  %v2780_v22 = vld [vmem:[#allocation2 + $0x248] sm:$0xff] }
 0x2c4   :  { %2891 = vrot.lane.b32.xlu0 %v2751_v53, %s10223_s28  ;;  %v2783_v53 = vld [vmem:[#allocation2 + $0x270] sm:$0xff] }
 0x2c5   :  { %v2516_v54 = vpop.permute.xlu1 %2515 }
 0x2c6   :  { %2691 = vst.msk [vmem:[#allocation4 + $0x88] sm:$0xff] %vm2673_vm11, %v2516_v54  ;;  %v2522_v24 = vpop.permute.xlu0 %2521 }
 0x2c7   :  { %2889 = vrot.lane.b32.xlu1 %v2750_v21, %s10223_s28  ;;  %2694 = vst.msk [vmem:[#allocation4 + $0xa0] sm:$0xff] %vm2673_vm11, %v2522_v24  ;;  %v2782_v21 = vld [vmem:[#allocation2 + $0x260] sm:$0xff] }
 0x2c8   :  { %2895 = vrot.lane.b32.xlu0 %v2753_v34, %s10223_s28  ;;  %v2785_v34 = vld [vmem:[#allocation2 + $0x288] sm:$0xff] }
 0x2c9   :  { %v2520_v36 = vpop.permute.xlu1 %2519 }
 0x2ca   :  { %2693 = vst.msk [vmem:[#allocation4 + $0x98] sm:$0xff] %vm2673_vm11, %v2520_v36  ;;  %v2526_v43 = vpop.permute.xlu0 %2525 }
 0x2cb   :  { %2893 = vrot.lane.b32.xlu1 %v2752_v40, %s10223_s28  ;;  %2696 = vst.msk [vmem:[#allocation4 + $0xb0] sm:$0xff] %vm2673_vm11, %v2526_v43  ;;  %v2784_v40 = vld [vmem:[#allocation2 + $0x278] sm:$0xff] }
 0x2cc   :  { %2899 = vrot.lane.b32.xlu0 %v2755_v47, %s10223_s28  ;;  %v2787_v47 = vld [vmem:[#allocation2 + $0x2a0] sm:$0xff] }
 0x2cd   :  { %v2524_v48 = vpop.permute.xlu1 %2523 }
 0x2ce   :  { %2695 = vst.msk [vmem:[#allocation4 + $0xa8] sm:$0xff] %vm2673_vm11, %v2524_v48  ;;  %v2530_v1 = vpop.permute.xlu0 %2529 }
 0x2cf   :  { %2897 = vrot.lane.b32.xlu1 %v2754_v60, %s10223_s28  ;;  %2698 = vst.msk [vmem:[#allocation4 + $0xc0] sm:$0xff] %vm2673_vm11, %v2530_v1  ;;  %v2786_v60 = vld [vmem:[#allocation2 + $0x290] sm:$0xff] }
 0x2d0   :  { %2903 = vrot.lane.b32.xlu0 %v2757_v6, %s10223_s28  ;;  %v2789_v6 = vld [vmem:[#allocation2 + $0x2b8] sm:$0xff] }
 0x2d1   :  { %v2528_v8 = vpop.permute.xlu1 %2527 }
 0x2d2   :  { %2697 = vst.msk [vmem:[#allocation4 + $0xb8] sm:$0xff] %vm2673_vm11, %v2528_v8  ;;  %v2534_v30 = vpop.permute.xlu0 %2533 }
 0x2d3   :  { %2901 = vrot.lane.b32.xlu1 %v2756_v12, %s10223_s28  ;;  %2700 = vst.msk [vmem:[#allocation4 + $0xd0] sm:$0xff] %vm2673_vm11, %v2534_v30  ;;  %v2788_v12 = vld [vmem:[#allocation2 + $0x2a8] sm:$0xff] }
 0x2d4   :  { %2907 = vrot.lane.b32.xlu0 %v2759_v45, %s10223_s28  ;;  %v2791_v45 = vld [vmem:[#allocation2 + $0x2d0] sm:$0xff] }
 0x2d5   :  { %v2532_v16 = vpop.permute.xlu1 %2531 }
 0x2d6   :  { %2699 = vst.msk [vmem:[#allocation4 + $0xc8] sm:$0xff] %vm2673_vm11, %v2532_v16  ;;  %v2538_v39 = vpop.permute.xlu0 %2537 }
 0x2d7   :  { %2905 = vrot.lane.b32.xlu1 %v2758_v19, %s10223_s28  ;;  %2702 = vst.msk [vmem:[#allocation4 + $0xe0] sm:$0xff] %vm2673_vm11, %v2538_v39  ;;  %v2790_v19 = vld [vmem:[#allocation2 + $0x2c0] sm:$0xff] }
 0x2d8   :  { %2911 = vrot.lane.b32.xlu0 %v2761_v2, %s10223_s28  ;;  %v2793_v2 = vld [vmem:[#allocation2 + $0x2e8] sm:$0xff] }
 0x2d9   :  { %v2536_v11 = vpop.permute.xlu1 %2535 }
 0x2da   :  { %2701 = vst.msk [vmem:[#allocation4 + $0xd8] sm:$0xff] %vm2673_vm11, %v2536_v11  ;;  %v2542_v44 = vpop.permute.xlu0 %2541 }
 0x2db   :  { %2909 = vrot.lane.b32.xlu1 %v2760_v37, %s10223_s28  ;;  %2704 = vst.msk [vmem:[#allocation4 + $0xf0] sm:$0xff] %vm2673_vm11, %v2542_v44  ;;  %v2792_v37 = vld [vmem:[#allocation2 + $0x2d8] sm:$0xff] }
 0x2dc   :  { %2915 = vrot.lane.b32.xlu0 %v2763_v32, %s10223_s28  ;;  %v2795_v32 = vld [vmem:[#allocation2 + $0x300] sm:$0xff] }
 0x2dd   :  { %v2540_v28 = vpop.permute.xlu1 %2539 }
 0x2de   :  { %2703 = vst.msk [vmem:[#allocation4 + $0xe8] sm:$0xff] %vm2673_vm11, %v2540_v28  ;;  %v2546_v0 = vpop.permute.xlu0 %2545 }
 0x2df   :  { %2913 = vrot.lane.b32.xlu1 %v2762_v4, %s10223_s28  ;;  %2706 = vst.msk [vmem:[#allocation4 + $0x100] sm:$0xff] %vm2673_vm11, %v2546_v0  ;;  %v2794_v4 = vld [vmem:[#allocation2 + $0x2f0] sm:$0xff] }
 0x2e0   :  { %2919 = vrot.lane.b32.xlu0 %v2765_v55, %s10223_s28  ;;  %v2797_v55 = vld [vmem:[#allocation2 + $0x318] sm:$0xff] }
 0x2e1   :  { %v2544_v5 = vpop.permute.xlu1 %2543 }
 0x2e2   :  { %2705 = vst.msk [vmem:[#allocation4 + $0xf8] sm:$0xff] %vm2673_vm11, %v2544_v5  ;;  %v2550_v23 = vpop.permute.xlu0 %2549 }
 0x2e3   :  { %2917 = vrot.lane.b32.xlu1 %v2764_v17, %s10223_s28  ;;  %2708 = vst.msk [vmem:[#allocation4 + $0x110] sm:$0xff] %vm2673_vm11, %v2550_v23  ;;  %v2796_v17 = vld [vmem:[#allocation2 + $0x308] sm:$0xff] }
 0x2e4   :  { %2923 = vrot.lane.b32.xlu0 %v2767_v38, %s10223_s28  ;;  %v2799_v38 = vld [vmem:[#allocation2 + $0x330] sm:$0xff] }
 0x2e5   :  { %v2548_v42 = vpop.permute.xlu1 %2547 }
 0x2e6   :  { %2707 = vst.msk [vmem:[#allocation4 + $0x108] sm:$0xff] %vm2673_vm11, %v2548_v42  ;;  %v2554_v58 = vpop.permute.xlu0 %2553 }
 0x2e7   :  { %2921 = vrot.lane.b32.xlu1 %v2766_v57, %s10223_s28  ;;  %2710 = vst.msk [vmem:[#allocation4 + $0x120] sm:$0xff] %vm2673_vm11, %v2554_v58  ;;  %v2798_v57 = vld [vmem:[#allocation2 + $0x320] sm:$0xff] }
 0x2e8   :  { %2927 = vrot.lane.b32.xlu0 %v2769_v63, %s10223_s28  ;;  %v2801_v63 = vld [vmem:[#allocation2 + $0x348] sm:$0xff] }
 0x2e9   :  { %v2552_v9 = vpop.permute.xlu1 %2551 }
 0x2ea   :  { %2709 = vst.msk [vmem:[#allocation4 + $0x118] sm:$0xff] %vm2673_vm11, %v2552_v9  ;;  %v2558_v15 = vpop.permute.xlu0 %2557 }
 0x2eb   :  { %2925 = vrot.lane.b32.xlu1 %v2768_v14, %s10223_s28  ;;  %2712 = vst.msk [vmem:[#allocation4 + $0x130] sm:$0xff] %vm2673_vm11, %v2558_v15  ;;  %v2800_v14 = vld [vmem:[#allocation2 + $0x338] sm:$0xff] }
 0x2ec   :  { %2931 = vrot.lane.b32.xlu0 %v2771_v27, %s10223_s28  ;;  %v3124_v27 = vld [vmem:[#allocation2 + $0x31] sm:$0xff] }
 0x2ed   :  { %v2556_v31 = vpop.permute.xlu1 %2555 }
 0x2ee   :  { %2711 = vst.msk [vmem:[#allocation4 + $0x128] sm:$0xff] %vm2673_vm11, %v2556_v31  ;;  %v2562_v51 = vpop.permute.xlu0 %2561 }
 0x2ef   :  { %2929 = vrot.lane.b32.xlu1 %v2770_v46, %s10223_s28  ;;  %2714 = vst.msk [vmem:[#allocation4 + $0x140] sm:$0xff] %vm2673_vm11, %v2562_v51  ;;  %v2802_v46 = vld [vmem:[#allocation2 + $0x350] sm:$0xff] }
 0x2f0   :  { %2935 = vrot.lane.b32.xlu0 %v2773_v61, %s10223_s28  ;;  %v3126_v61 = vld [vmem:[#allocation2 + $0x49] sm:$0xff] }
 0x2f1   :  { %v2560_v62 = vpop.permute.xlu1 %2559 }
 0x2f2   :  { %2713 = vst.msk [vmem:[#allocation4 + $0x138] sm:$0xff] %vm2673_vm11, %v2560_v62  ;;  %v2566_v29 = vpop.permute.xlu0 %2565 }
 0x2f3   :  { %2933 = vrot.lane.b32.xlu1 %v2772_v20, %s10223_s28  ;;  %2716 = vst.msk [vmem:[#allocation4 + $0x150] sm:$0xff] %vm2673_vm11, %v2566_v29  ;;  %v3125_v20 = vld [vmem:[#allocation2 + $0x39] sm:$0xff] }
 0x2f4   :  { %2939 = vrot.lane.b32.xlu0 %v2775_v49, %s10223_s28  ;;  %v3128_v49 = vld [vmem:[#allocation2 + $0x61] sm:$0xff] }
 0x2f5   :  { %v2564_v50 = vpop.permute.xlu1 %2563 }
 0x2f6   :  { %2715 = vst.msk [vmem:[#allocation4 + $0x148] sm:$0xff] %vm2673_vm11, %v2564_v50  ;;  %v2570_v59 = vpop.permute.xlu0 %2569 }
 0x2f7   :  { %2937 = vrot.lane.b32.xlu1 %v2774_v56, %s10223_s28  ;;  %2718 = vst.msk [vmem:[#allocation4 + $0x160] sm:$0xff] %vm2673_vm11, %v2570_v59  ;;  %v3127_v56 = vld [vmem:[#allocation2 + $0x51] sm:$0xff] }
 0x2f8   :  { %2943 = vrot.lane.b32.xlu0 %v2777_v18, %s10223_s28  ;;  %v3130_v18 = vld [vmem:[#allocation2 + $0x79] sm:$0xff] }
 0x2f9   :  { %v2568_v10 = vpop.permute.xlu1 %2567 }
 0x2fa   :  { %2717 = vst.msk [vmem:[#allocation4 + $0x158] sm:$0xff] %vm2673_vm11, %v2568_v10  ;;  %v2574_v7 = vpop.permute.xlu0 %2573 }
 0x2fb   :  { %2941 = vrot.lane.b32.xlu1 %v2776_v35, %s10223_s28  ;;  %2720 = vst.msk [vmem:[#allocation4 + $0x170] sm:$0xff] %vm2673_vm11, %v2574_v7  ;;  %v3129_v35 = vld [vmem:[#allocation2 + $0x69] sm:$0xff] }
 0x2fc   :  { %2947 = vrot.lane.b32.xlu0 %v2779_v25, %s10223_s28  ;;  %v3132_v25 = vld [vmem:[#allocation2 + $0x91] sm:$0xff] }
 0x2fd   :  { %v2572_v13 = vpop.permute.xlu1 %2571 }
 0x2fe   :  { %2719 = vst.msk [vmem:[#allocation4 + $0x168] sm:$0xff] %vm2673_vm11, %v2572_v13  ;;  %v2578_v3 = vpop.permute.xlu0 %2577 }
 0x2ff   :  { %2945 = vrot.lane.b32.xlu1 %v2778_v41, %s10223_s28  ;;  %2722 = vst.msk [vmem:[#allocation4 + $0x180] sm:$0xff] %vm2673_vm11, %v2578_v3  ;;  %v3131_v41 = vld [vmem:[#allocation2 + $0x81] sm:$0xff] }
 0x300   :  { %2951 = vrot.lane.b32.xlu0 %v2781_v33, %s10223_s28  ;;  %v3134_v33 = vld [vmem:[#allocation2 + $0xa9] sm:$0xff] }
 0x301   :  { %v2576_v26 = vpop.permute.xlu1 %2575 }
 0x302   :  { %2721 = vst.msk [vmem:[#allocation4 + $0x178] sm:$0xff] %vm2673_vm11, %v2576_v26  ;;  %v2582_v52 = vpop.permute.xlu0 %2581 }
 0x303   :  { %2949 = vrot.lane.b32.xlu1 %v2780_v22, %s10223_s28  ;;  %2724 = vst.msk [vmem:[#allocation4 + $0x190] sm:$0xff] %vm2673_vm11, %v2582_v52  ;;  %v3133_v22 = vld [vmem:[#allocation2 + $0x99] sm:$0xff] }
 0x304   :  { %2955 = vrot.lane.b32.xlu0 %v2783_v53, %s10223_s28  ;;  %v3136_v53 = vld [vmem:[#allocation2 + $0xc1] sm:$0xff] }
 0x305   :  { %v2580_v54 = vpop.permute.xlu1 %2579 }
 0x306   :  { %2723 = vst.msk [vmem:[#allocation4 + $0x188] sm:$0xff] %vm2673_vm11, %v2580_v54  ;;  %v2586_v24 = vpop.permute.xlu0 %2585 }
 0x307   :  { %2953 = vrot.lane.b32.xlu1 %v2782_v21, %s10223_s28  ;;  %2726 = vst.msk [vmem:[#allocation4 + $0x1a0] sm:$0xff] %vm2673_vm11, %v2586_v24  ;;  %v3135_v21 = vld [vmem:[#allocation2 + $0xb1] sm:$0xff] }
 0x308   :  { %2959 = vrot.lane.b32.xlu0 %v2785_v34, %s10223_s28  ;;  %v3138_v34 = vld [vmem:[#allocation2 + $0xd9] sm:$0xff] }
 0x309   :  { %v2584_v36 = vpop.permute.xlu1 %2583 }
 0x30a   :  { %2725 = vst.msk [vmem:[#allocation4 + $0x198] sm:$0xff] %vm2673_vm11, %v2584_v36  ;;  %v2590_v43 = vpop.permute.xlu0 %2589 }
 0x30b   :  { %2957 = vrot.lane.b32.xlu1 %v2784_v40, %s10223_s28  ;;  %2728 = vst.msk [vmem:[#allocation4 + $0x1b0] sm:$0xff] %vm2673_vm11, %v2590_v43  ;;  %v3137_v40 = vld [vmem:[#allocation2 + $0xc9] sm:$0xff] }
 0x30c   :  { %2963 = vrot.lane.b32.xlu0 %v2787_v47, %s10223_s28  ;;  %v3140_v47 = vld [vmem:[#allocation2 + $0xf1] sm:$0xff] }
 0x30d   :  { %v2588_v48 = vpop.permute.xlu1 %2587 }
 0x30e   :  { %2727 = vst.msk [vmem:[#allocation4 + $0x1a8] sm:$0xff] %vm2673_vm11, %v2588_v48  ;;  %v2594_v1 = vpop.permute.xlu0 %2593 }
 0x30f   :  { %2961 = vrot.lane.b32.xlu1 %v2786_v60, %s10223_s28  ;;  %2730 = vst.msk [vmem:[#allocation4 + $0x1c0] sm:$0xff] %vm2673_vm11, %v2594_v1  ;;  %v3139_v60 = vld [vmem:[#allocation2 + $0xe1] sm:$0xff] }
 0x310   :  { %2967 = vrot.lane.b32.xlu0 %v2789_v6, %s10223_s28  ;;  %v3142_v6 = vld [vmem:[#allocation2 + $0x109] sm:$0xff] }
 0x311   :  { %v2592_v8 = vpop.permute.xlu1 %2591 }
 0x312   :  { %2729 = vst.msk [vmem:[#allocation4 + $0x1b8] sm:$0xff] %vm2673_vm11, %v2592_v8  ;;  %v2598_v30 = vpop.permute.xlu0 %2597 }
 0x313   :  { %2965 = vrot.lane.b32.xlu1 %v2788_v12, %s10223_s28  ;;  %2732 = vst.msk [vmem:[#allocation4 + $0x1d0] sm:$0xff] %vm2673_vm11, %v2598_v30  ;;  %v3141_v12 = vld [vmem:[#allocation2 + $0xf9] sm:$0xff] }
 0x314   :  { %2971 = vrot.lane.b32.xlu0 %v2791_v45, %s10223_s28  ;;  %v3144_v45 = vld [vmem:[#allocation2 + $0x121] sm:$0xff] }
 0x315   :  { %v2596_v16 = vpop.permute.xlu1 %2595 }
 0x316   :  { %2731 = vst.msk [vmem:[#allocation4 + $0x1c8] sm:$0xff] %vm2673_vm11, %v2596_v16  ;;  %v2602_v39 = vpop.permute.xlu0 %2601 }
 0x317   :  { %2969 = vrot.lane.b32.xlu1 %v2790_v19, %s10223_s28  ;;  %2734 = vst.msk [vmem:[#allocation4 + $0x1e0] sm:$0xff] %vm2673_vm11, %v2602_v39  ;;  %v3143_v19 = vld [vmem:[#allocation2 + $0x111] sm:$0xff] }
 0x318   :  { %2975 = vrot.lane.b32.xlu0 %v2793_v2, %s10223_s28  ;;  %v3146_v2 = vld [vmem:[#allocation2 + $0x139] sm:$0xff] }
 0x319   :  { %v2600_v11 = vpop.permute.xlu1 %2599 }
 0x31a   :  { %2733 = vst.msk [vmem:[#allocation4 + $0x1d8] sm:$0xff] %vm2673_vm11, %v2600_v11  ;;  %v2606_v44 = vpop.permute.xlu0 %2605 }
 0x31b   :  { %2973 = vrot.lane.b32.xlu1 %v2792_v37, %s10223_s28  ;;  %2736 = vst.msk [vmem:[#allocation4 + $0x1f0] sm:$0xff] %vm2673_vm11, %v2606_v44  ;;  %v3145_v37 = vld [vmem:[#allocation2 + $0x129] sm:$0xff] }
 0x31c   :  { %2979 = vrot.lane.b32.xlu0 %v2795_v32, %s10223_s28  ;;  %v3148_v32 = vld [vmem:[#allocation2 + $0x151] sm:$0xff] }
 0x31d   :  { %v2604_v28 = vpop.permute.xlu1 %2603 }
 0x31e   :  { %2735 = vst.msk [vmem:[#allocation4 + $0x1e8] sm:$0xff] %vm2673_vm11, %v2604_v28  ;;  %v2868_v0 = vpop.permute.xlu0 %2867 }
 0x31f   :  { %2977 = vrot.lane.b32.xlu1 %v2794_v4, %s10223_s28  ;;  %3060 = vst.msk [vmem:[#allocation4] sm:$0xff] %vm3059_vm12, %v2868_v0  ;;  %v3147_v4 = vld [vmem:[#allocation2 + $0x141] sm:$0xff] }
 0x320   :  { %2983 = vrot.lane.b32.xlu0 %v2797_v55, %s10223_s28  ;;  %v3150_v55 = vld [vmem:[#allocation2 + $0x169] sm:$0xff] }
 0x321   :  { %v2608_v5 = vpop.permute.xlu1 %2607 }
 0x322   :  { %2737 = vst.msk [vmem:[#allocation4 + $0x1f8] sm:$0xff] %vm2673_vm11, %v2608_v5  ;;  %v2872_v23 = vpop.permute.xlu0 %2871 }
 0x323   :  { %2981 = vrot.lane.b32.xlu1 %v2796_v17, %s10223_s28  ;;  %3062 = vst.msk [vmem:[#allocation4 + $0x10] sm:$0xff] %vm3059_vm12, %v2872_v23  ;;  %v3149_v17 = vld [vmem:[#allocation2 + $0x159] sm:$0xff] }
 0x324   :  { %2987 = vrot.lane.b32.xlu0 %v2799_v38, %s10223_s28  ;;  %v3152_v38 = vld [vmem:[#allocation2 + $0x181] sm:$0xff] }
 0x325   :  { %v2870_v42 = vpop.permute.xlu1 %2869 }
 0x326   :  { %3061 = vst.msk [vmem:[#allocation4 + $0x8] sm:$0xff] %vm3059_vm12, %v2870_v42  ;;  %v2876_v58 = vpop.permute.xlu0 %2875 }
 0x327   :  { %2985 = vrot.lane.b32.xlu1 %v2798_v57, %s10223_s28  ;;  %3064 = vst.msk [vmem:[#allocation4 + $0x20] sm:$0xff] %vm3059_vm12, %v2876_v58  ;;  %v3151_v57 = vld [vmem:[#allocation2 + $0x171] sm:$0xff] }
 0x328   :  { %2991 = vrot.lane.b32.xlu0 %v2801_v63, %s10223_s28  ;;  %v3154_v63 = vld [vmem:[#allocation2 + $0x199] sm:$0xff] }
 0x329   :  { %v2874_v9 = vpop.permute.xlu1 %2873 }
 0x32a   :  { %3063 = vst.msk [vmem:[#allocation4 + $0x18] sm:$0xff] %vm3059_vm12, %v2874_v9  ;;  %v2880_v15 = vpop.permute.xlu0 %2879 }
 0x32b   :  { %2989 = vrot.lane.b32.xlu1 %v2800_v14, %s10223_s28  ;;  %3066 = vst.msk [vmem:[#allocation4 + $0x30] sm:$0xff] %vm3059_vm12, %v2880_v15  ;;  %v3153_v14 = vld [vmem:[#allocation2 + $0x189] sm:$0xff] }
 0x32c   :  { %3252 = vrot.lane.b32.xlu0 %v3124_v27, %s10224_s29  ;;  %v3156_v27 = vld [vmem:[#allocation2 + $0x1e1] sm:$0xff] }
 0x32d   :  { %v2878_v31 = vpop.permute.xlu1 %2877 }
 0x32e   :  { %3065 = vst.msk [vmem:[#allocation4 + $0x28] sm:$0xff] %vm3059_vm12, %v2878_v31  ;;  %v2884_v51 = vpop.permute.xlu0 %2883 }
 0x32f   :  { %2993 = vrot.lane.b32.xlu1 %v2802_v46, %s10223_s28  ;;  %3068 = vst.msk [vmem:[#allocation4 + $0x40] sm:$0xff] %vm3059_vm12, %v2884_v51  ;;  %v3155_v46 = vld [vmem:[#allocation2 + $0x1a1] sm:$0xff] }
 0x330   :  { %3256 = vrot.lane.b32.xlu0 %v3126_v61, %s10224_s29  ;;  %v3158_v61 = vld [vmem:[#allocation2 + $0x1f9] sm:$0xff] }
 0x331   :  { %v2882_v62 = vpop.permute.xlu1 %2881 }
 0x332   :  { %3067 = vst.msk [vmem:[#allocation4 + $0x38] sm:$0xff] %vm3059_vm12, %v2882_v62  ;;  %v2888_v29 = vpop.permute.xlu0 %2887 }
 0x333   :  { %3254 = vrot.lane.b32.xlu1 %v3125_v20, %s10224_s29  ;;  %3070 = vst.msk [vmem:[#allocation4 + $0x50] sm:$0xff] %vm3059_vm12, %v2888_v29  ;;  %v3157_v20 = vld [vmem:[#allocation2 + $0x1e9] sm:$0xff] }
 0x334   :  { %3260 = vrot.lane.b32.xlu0 %v3128_v49, %s10224_s29  ;;  %v3160_v49 = vld [vmem:[#allocation2 + $0x211] sm:$0xff] }
 0x335   :  { %v2886_v50 = vpop.permute.xlu1 %2885 }
 0x336   :  { %3069 = vst.msk [vmem:[#allocation4 + $0x48] sm:$0xff] %vm3059_vm12, %v2886_v50  ;;  %v2892_v59 = vpop.permute.xlu0 %2891 }
 0x337   :  { %3258 = vrot.lane.b32.xlu1 %v3127_v56, %s10224_s29  ;;  %3072 = vst.msk [vmem:[#allocation4 + $0x60] sm:$0xff] %vm3059_vm12, %v2892_v59  ;;  %v3159_v56 = vld [vmem:[#allocation2 + $0x201] sm:$0xff] }
 0x338   :  { %3264 = vrot.lane.b32.xlu0 %v3130_v18, %s10224_s29  ;;  %v3162_v18 = vld [vmem:[#allocation2 + $0x229] sm:$0xff] }
 0x339   :  { %v2890_v10 = vpop.permute.xlu1 %2889 }
 0x33a   :  { %3071 = vst.msk [vmem:[#allocation4 + $0x58] sm:$0xff] %vm3059_vm12, %v2890_v10  ;;  %v2896_v7 = vpop.permute.xlu0 %2895 }
 0x33b   :  { %3262 = vrot.lane.b32.xlu1 %v3129_v35, %s10224_s29  ;;  %3074 = vst.msk [vmem:[#allocation4 + $0x70] sm:$0xff] %vm3059_vm12, %v2896_v7  ;;  %v3161_v35 = vld [vmem:[#allocation2 + $0x219] sm:$0xff] }
 0x33c   :  { %3268 = vrot.lane.b32.xlu0 %v3132_v25, %s10224_s29  ;;  %v3164_v25 = vld [vmem:[#allocation2 + $0x241] sm:$0xff] }
 0x33d   :  { %v2894_v13 = vpop.permute.xlu1 %2893 }
 0x33e   :  { %3073 = vst.msk [vmem:[#allocation4 + $0x68] sm:$0xff] %vm3059_vm12, %v2894_v13  ;;  %v2900_v3 = vpop.permute.xlu0 %2899 }
 0x33f   :  { %3266 = vrot.lane.b32.xlu1 %v3131_v41, %s10224_s29  ;;  %3076 = vst.msk [vmem:[#allocation4 + $0x80] sm:$0xff] %vm3059_vm12, %v2900_v3  ;;  %v3163_v41 = vld [vmem:[#allocation2 + $0x231] sm:$0xff] }
 0x340   :  { %3272 = vrot.lane.b32.xlu0 %v3134_v33, %s10224_s29  ;;  %v3166_v33 = vld [vmem:[#allocation2 + $0x259] sm:$0xff] }
 0x341   :  { %v2898_v26 = vpop.permute.xlu1 %2897 }
 0x342   :  { %3075 = vst.msk [vmem:[#allocation4 + $0x78] sm:$0xff] %vm3059_vm12, %v2898_v26  ;;  %v2904_v52 = vpop.permute.xlu0 %2903 }
 0x343   :  { %3270 = vrot.lane.b32.xlu1 %v3133_v22, %s10224_s29  ;;  %3078 = vst.msk [vmem:[#allocation4 + $0x90] sm:$0xff] %vm3059_vm12, %v2904_v52  ;;  %v3165_v22 = vld [vmem:[#allocation2 + $0x249] sm:$0xff] }
 0x344   :  { %3276 = vrot.lane.b32.xlu0 %v3136_v53, %s10224_s29  ;;  %v3168_v53 = vld [vmem:[#allocation2 + $0x271] sm:$0xff] }
 0x345   :  { %v2902_v54 = vpop.permute.xlu1 %2901 }
 0x346   :  { %3077 = vst.msk [vmem:[#allocation4 + $0x88] sm:$0xff] %vm3059_vm12, %v2902_v54  ;;  %v2908_v24 = vpop.permute.xlu0 %2907 }
 0x347   :  { %3274 = vrot.lane.b32.xlu1 %v3135_v21, %s10224_s29  ;;  %3080 = vst.msk [vmem:[#allocation4 + $0xa0] sm:$0xff] %vm3059_vm12, %v2908_v24  ;;  %v3167_v21 = vld [vmem:[#allocation2 + $0x261] sm:$0xff] }
 0x348   :  { %3280 = vrot.lane.b32.xlu0 %v3138_v34, %s10224_s29  ;;  %v3170_v34 = vld [vmem:[#allocation2 + $0x289] sm:$0xff] }
 0x349   :  { %v2906_v36 = vpop.permute.xlu1 %2905 }
 0x34a   :  { %3079 = vst.msk [vmem:[#allocation4 + $0x98] sm:$0xff] %vm3059_vm12, %v2906_v36  ;;  %v2912_v43 = vpop.permute.xlu0 %2911 }
 0x34b   :  { %3278 = vrot.lane.b32.xlu1 %v3137_v40, %s10224_s29  ;;  %3082 = vst.msk [vmem:[#allocation4 + $0xb0] sm:$0xff] %vm3059_vm12, %v2912_v43  ;;  %v3169_v40 = vld [vmem:[#allocation2 + $0x279] sm:$0xff] }
 0x34c   :  { %3284 = vrot.lane.b32.xlu0 %v3140_v47, %s10224_s29  ;;  %v3172_v47 = vld [vmem:[#allocation2 + $0x2a1] sm:$0xff] }
 0x34d   :  { %v2910_v48 = vpop.permute.xlu1 %2909 }
 0x34e   :  { %3081 = vst.msk [vmem:[#allocation4 + $0xa8] sm:$0xff] %vm3059_vm12, %v2910_v48  ;;  %v2916_v1 = vpop.permute.xlu0 %2915 }
 0x34f   :  { %3282 = vrot.lane.b32.xlu1 %v3139_v60, %s10224_s29  ;;  %3084 = vst.msk [vmem:[#allocation4 + $0xc0] sm:$0xff] %vm3059_vm12, %v2916_v1  ;;  %v3171_v60 = vld [vmem:[#allocation2 + $0x291] sm:$0xff] }
 0x350   :  { %3288 = vrot.lane.b32.xlu0 %v3142_v6, %s10224_s29  ;;  %v3174_v6 = vld [vmem:[#allocation2 + $0x2b9] sm:$0xff] }
 0x351   :  { %v2914_v8 = vpop.permute.xlu1 %2913 }
 0x352   :  { %3083 = vst.msk [vmem:[#allocation4 + $0xb8] sm:$0xff] %vm3059_vm12, %v2914_v8  ;;  %v2920_v30 = vpop.permute.xlu0 %2919 }
 0x353   :  { %3286 = vrot.lane.b32.xlu1 %v3141_v12, %s10224_s29  ;;  %3086 = vst.msk [vmem:[#allocation4 + $0xd0] sm:$0xff] %vm3059_vm12, %v2920_v30  ;;  %v3173_v12 = vld [vmem:[#allocation2 + $0x2a9] sm:$0xff] }
 0x354   :  { %3292 = vrot.lane.b32.xlu0 %v3144_v45, %s10224_s29  ;;  %v3176_v45 = vld [vmem:[#allocation2 + $0x2d1] sm:$0xff] }
 0x355   :  { %v2918_v16 = vpop.permute.xlu1 %2917 }
 0x356   :  { %3085 = vst.msk [vmem:[#allocation4 + $0xc8] sm:$0xff] %vm3059_vm12, %v2918_v16  ;;  %v2924_v39 = vpop.permute.xlu0 %2923 }
 0x357   :  { %3290 = vrot.lane.b32.xlu1 %v3143_v19, %s10224_s29  ;;  %3088 = vst.msk [vmem:[#allocation4 + $0xe0] sm:$0xff] %vm3059_vm12, %v2924_v39  ;;  %v3175_v19 = vld [vmem:[#allocation2 + $0x2c1] sm:$0xff] }
 0x358   :  { %3296 = vrot.lane.b32.xlu0 %v3146_v2, %s10224_s29  ;;  %v3178_v2 = vld [vmem:[#allocation2 + $0x2e9] sm:$0xff] }
 0x359   :  { %v2922_v11 = vpop.permute.xlu1 %2921 }
 0x35a   :  { %3087 = vst.msk [vmem:[#allocation4 + $0xd8] sm:$0xff] %vm3059_vm12, %v2922_v11  ;;  %v2928_v44 = vpop.permute.xlu0 %2927 }
 0x35b   :  { %3294 = vrot.lane.b32.xlu1 %v3145_v37, %s10224_s29  ;;  %3090 = vst.msk [vmem:[#allocation4 + $0xf0] sm:$0xff] %vm3059_vm12, %v2928_v44  ;;  %v3177_v37 = vld [vmem:[#allocation2 + $0x2d9] sm:$0xff] }
 0x35c   :  { %3300 = vrot.lane.b32.xlu0 %v3148_v32, %s10224_s29  ;;  %v3180_v32 = vld [vmem:[#allocation2 + $0x301] sm:$0xff] }
 0x35d   :  { %v2926_v28 = vpop.permute.xlu1 %2925 }
 0x35e   :  { %3089 = vst.msk [vmem:[#allocation4 + $0xe8] sm:$0xff] %vm3059_vm12, %v2926_v28  ;;  %v2932_v0 = vpop.permute.xlu0 %2931 }
 0x35f   :  { %3298 = vrot.lane.b32.xlu1 %v3147_v4, %s10224_s29  ;;  %3092 = vst.msk [vmem:[#allocation4 + $0x100] sm:$0xff] %vm3059_vm12, %v2932_v0  ;;  %v3179_v4 = vld [vmem:[#allocation2 + $0x2f1] sm:$0xff] }
 0x360   :  { %3304 = vrot.lane.b32.xlu0 %v3150_v55, %s10224_s29  ;;  %v3182_v55 = vld [vmem:[#allocation2 + $0x319] sm:$0xff] }
 0x361   :  { %v2930_v5 = vpop.permute.xlu1 %2929 }
 0x362   :  { %3091 = vst.msk [vmem:[#allocation4 + $0xf8] sm:$0xff] %vm3059_vm12, %v2930_v5  ;;  %v2936_v23 = vpop.permute.xlu0 %2935 }
 0x363   :  { %3302 = vrot.lane.b32.xlu1 %v3149_v17, %s10224_s29  ;;  %3094 = vst.msk [vmem:[#allocation4 + $0x110] sm:$0xff] %vm3059_vm12, %v2936_v23  ;;  %v3181_v17 = vld [vmem:[#allocation2 + $0x309] sm:$0xff]  ;;  %v3958_v23 = vld [vmem:[%s14538_s1] sm:$0xff] }
 0x364   :  { %3308 = vrot.lane.b32.xlu0 %v3152_v38, %s10224_s29  ;;  %v3184_v38 = vld [vmem:[#allocation2 + $0x331] sm:$0xff] }
 0x365   :  { %v2934_v42 = vpop.permute.xlu1 %2933 }
 0x366   :  { %3093 = vst.msk [vmem:[#allocation4 + $0x108] sm:$0xff] %vm3059_vm12, %v2934_v42  ;;  %v2940_v58 = vpop.permute.xlu0 %2939 }
 0x367   :  { %3306 = vrot.lane.b32.xlu1 %v3151_v57, %s10224_s29  ;;  %3096 = vst.msk [vmem:[#allocation4 + $0x120] sm:$0xff] %vm3059_vm12, %v2940_v58  ;;  %v3959_v57 = vld [vmem:[%s14538_s1 + $0x8] sm:$0xff] }
 0x368   :  { %3312 = vrot.lane.b32.xlu0 %v3154_v63, %s10224_s29  ;;  %v10104_v63 = vpack.c.bf16 %v3959_v57, %v3958_v23  ;;  %v3183_v58 = vld [vmem:[#allocation2 + $0x321] sm:$0xff] }
 0x369   :  { %v2938_v9 = vpop.permute.xlu1 %2937  ;;  %v3532_v23 = vld [vmem:[#allocation2 + $0x142] sm:$0xff] }
 0x36a   :  { %3095 = vst.msk [vmem:[#allocation4 + $0x118] sm:$0xff] %vm3059_vm12, %v2938_v9  ;;  %v2944_v15 = vpop.permute.xlu0 %2943  ;;  %10105 = vmatprep.subr.bf16.mxu0 %v10104_v63  ;;  %v3186_v9 = vld [vmem:[#allocation2 + $0x349] sm:$0xff] }
 0x36b   :  { %3310 = vrot.lane.b32.xlu1 %v3153_v14, %s10224_s29  ;;  %3098 = vst.msk [vmem:[#allocation4 + $0x130] sm:$0xff] %vm3059_vm12, %v2944_v15  ;;  %10107 = vmatpush3.bf16.msra.mxu0 %v10104_v63  ;;  %v3961_v15 = vld [vmem:[%s14538_s1 + $0x18] sm:$0xff] }
 0x36c   :  { %3316 = vrot.lane.b32.xlu0 %v3156_v27, %s10224_s29  ;;  %v3960_v27 = vld [vmem:[%s14538_s1 + $0x10] sm:$0xff] }
 0x36d   :  { %v2942_v31 = vpop.permute.xlu1 %2941 }
 0x36e   :  { %3097 = vst.msk [vmem:[#allocation4 + $0x128] sm:$0xff] %vm3059_vm12, %v2942_v31  ;;  %v2948_v51 = vpop.permute.xlu0 %2947  ;;  %v10108_v31 = vpack.c.bf16 %v3961_v15, %v3960_v27  ;;  %v3536_v15 = vld [vmem:[#allocation2 + $0x172] sm:$0xff] }
 0x36f   :  { %3314 = vrot.lane.b32.xlu1 %v3155_v46, %s10224_s29  ;;  %3100 = vst.msk [vmem:[#allocation4 + $0x140] sm:$0xff] %vm3059_vm12, %v2948_v51 }
 0x370   :  { %3320 = vrot.lane.b32.xlu0 %v3158_v61, %s10224_s29  ;;  %v3185_v61 = vld [vmem:[#allocation2 + $0x339] sm:$0xff]  ;;  %10109 = vmatprep.subr.bf16.mxu0 %v10108_v31 }
 0x371   :  { %v2946_v62 = vpop.permute.xlu1 %2945  ;;  %10111 = vmatpush3.bf16.msra.mxu0 %v10108_v31  ;;  %v3539_v31 = vld [vmem:[#allocation2 + $0x19a] sm:$0xff] }
 0x372   :  { %3099 = vst.msk [vmem:[#allocation4 + $0x138] sm:$0xff] %vm3059_vm12, %v2946_v62  ;;  %v2952_v29 = vpop.permute.xlu0 %2951 }
 0x373   :  { %3318 = vrot.lane.b32.xlu1 %v3157_v20, %s10224_s29  ;;  %3102 = vst.msk [vmem:[#allocation4 + $0x150] sm:$0xff] %vm3059_vm12, %v2952_v29  ;;  %v3509_v20 = vld [vmem:[#allocation2 + $0x32] sm:$0xff] }
 0x374   :  { %3324 = vrot.lane.b32.xlu0 %v3160_v49, %s10224_s29  ;;  %v3962_v49 = vld [vmem:[%s14538_s1 + $0x20] sm:$0xf]  ;;  %v3187_v29 = vld [vmem:[#allocation2 + $0x351] sm:$0xff] }
 0x375   :  { %v2950_v50 = vpop.permute.xlu1 %2949  ;;  %9794 = vmatprep.subr.msk.mxu0 %vm4163_vm14, %v3962_v49 }
 0x376   :  { %3101 = vst.msk [vmem:[#allocation4 + $0x148] sm:$0xff] %vm3059_vm12, %v2950_v50  ;;  %v2956_v59 = vpop.permute.xlu0 %2955  ;;  %v3511_v50 = vld [vmem:[#allocation2 + $0x4a] sm:$0xff]  ;;  %9795 = vmatpush3.msk.msra.mxu0 %vm4163_vm14, %v3962_v49 }
 0x377   :  { %3322 = vrot.lane.b32.xlu1 %v3159_v56, %s10224_s29  ;;  %3104 = vst.msk [vmem:[#allocation4 + $0x160] sm:$0xff] %vm3059_vm12, %v2956_v59  ;;  %v3510_v59 = vld [vmem:[#allocation2 + $0x3a] sm:$0xff] }
 0x378   :  { %3328 = vrot.lane.b32.xlu0 %v3162_v18, %s10224_s29 }
 0x379   :  { %v2954_v10 = vpop.permute.xlu1 %2953 }
 0x37a   :  { %3103 = vst.msk [vmem:[#allocation4 + $0x158] sm:$0xff] %vm3059_vm12, %v2954_v10  ;;  %v2960_v7 = vpop.permute.xlu0 %2959  ;;  %v3513_v10 = vld [vmem:[#allocation2 + $0x62] sm:$0xff] }
 0x37b   :  { %3326 = vrot.lane.b32.xlu1 %v3161_v35, %s10224_s29  ;;  %3106 = vst.msk [vmem:[#allocation4 + $0x170] sm:$0xff] %vm3059_vm12, %v2960_v7  ;;  %v3512_v7 = vld [vmem:[#allocation2 + $0x52] sm:$0xff] }
 0x37c   :  { %3332 = vrot.lane.b32.xlu0 %v3164_v25, %s10224_s29 }
 0x37d   :  { %v2958_v13 = vpop.permute.xlu1 %2957 }
 0x37e   :  { %3105 = vst.msk [vmem:[#allocation4 + $0x168] sm:$0xff] %vm3059_vm12, %v2958_v13  ;;  %v2964_v3 = vpop.permute.xlu0 %2963  ;;  %v3515_v13 = vld [vmem:[#allocation2 + $0x7a] sm:$0xff] }
 0x37f   :  { %3330 = vrot.lane.b32.xlu1 %v3163_v41, %s10224_s29  ;;  %3108 = vst.msk [vmem:[#allocation4 + $0x180] sm:$0xff] %vm3059_vm12, %v2964_v3  ;;  %v3514_v3 = vld [vmem:[#allocation2 + $0x6a] sm:$0xff] }
 0x380   :  { %3336 = vrot.lane.b32.xlu0 %v3166_v33, %s10224_s29 }
 0x381   :  { %v2962_v26 = vpop.permute.xlu1 %2961 }
 0x382   :  { %3107 = vst.msk [vmem:[#allocation4 + $0x178] sm:$0xff] %vm3059_vm12, %v2962_v26  ;;  %v2968_v52 = vpop.permute.xlu0 %2967  ;;  %v3517_v26 = vld [vmem:[#allocation2 + $0x92] sm:$0xff] }
 0x383   :  { %3334 = vrot.lane.b32.xlu1 %v3165_v22, %s10224_s29  ;;  %3110 = vst.msk [vmem:[#allocation4 + $0x190] sm:$0xff] %vm3059_vm12, %v2968_v52  ;;  %v3516_v52 = vld [vmem:[#allocation2 + $0x82] sm:$0xff] }
 0x384   :  { %3340 = vrot.lane.b32.xlu0 %v3168_v53, %s10224_s29 }
 0x385   :  { %v2966_v54 = vpop.permute.xlu1 %2965 }
 0x386   :  { %3109 = vst.msk [vmem:[#allocation4 + $0x188] sm:$0xff] %vm3059_vm12, %v2966_v54  ;;  %v2972_v24 = vpop.permute.xlu0 %2971  ;;  %v3519_v54 = vld [vmem:[#allocation2 + $0xaa] sm:$0xff] }
 0x387   :  { %3338 = vrot.lane.b32.xlu1 %v3167_v21, %s10224_s29  ;;  %3112 = vst.msk [vmem:[#allocation4 + $0x1a0] sm:$0xff] %vm3059_vm12, %v2972_v24  ;;  %v3518_v24 = vld [vmem:[#allocation2 + $0x9a] sm:$0xff] }
 0x388   :  { %3344 = vrot.lane.b32.xlu0 %v3170_v34, %s10224_s29 }
 0x389   :  { %v2970_v36 = vpop.permute.xlu1 %2969 }
 0x38a   :  { %3111 = vst.msk [vmem:[#allocation4 + $0x198] sm:$0xff] %vm3059_vm12, %v2970_v36  ;;  %v2976_v43 = vpop.permute.xlu0 %2975  ;;  %v3521_v36 = vld [vmem:[#allocation2 + $0xc2] sm:$0xff] }
 0x38b   :  { %3342 = vrot.lane.b32.xlu1 %v3169_v40, %s10224_s29  ;;  %3114 = vst.msk [vmem:[#allocation4 + $0x1b0] sm:$0xff] %vm3059_vm12, %v2976_v43  ;;  %v3520_v43 = vld [vmem:[#allocation2 + $0xb2] sm:$0xff] }
 0x38c   :  { %3348 = vrot.lane.b32.xlu0 %v3172_v47, %s10224_s29 }
 0x38d   :  { %v2974_v48 = vpop.permute.xlu1 %2973 }
 0x38e   :  { %3113 = vst.msk [vmem:[#allocation4 + $0x1a8] sm:$0xff] %vm3059_vm12, %v2974_v48  ;;  %v2980_v1 = vpop.permute.xlu0 %2979  ;;  %v3523_v48 = vld [vmem:[#allocation2 + $0xda] sm:$0xff] }
 0x38f   :  { %3346 = vrot.lane.b32.xlu1 %v3171_v60, %s10224_s29  ;;  %3116 = vst.msk [vmem:[#allocation4 + $0x1c0] sm:$0xff] %vm3059_vm12, %v2980_v1  ;;  %v3522_v1 = vld [vmem:[#allocation2 + $0xca] sm:$0xff] }
 0x390   :  { %3352 = vrot.lane.b32.xlu0 %v3174_v6, %s10224_s29 }
 0x391   :  { %v2978_v8 = vpop.permute.xlu1 %2977 }
 0x392   :  { %3115 = vst.msk [vmem:[#allocation4 + $0x1b8] sm:$0xff] %vm3059_vm12, %v2978_v8  ;;  %v2984_v30 = vpop.permute.xlu0 %2983  ;;  %v3525_v8 = vld [vmem:[#allocation2 + $0xf2] sm:$0xff] }
 0x393   :  { %3350 = vrot.lane.b32.xlu1 %v3173_v12, %s10224_s29  ;;  %3118 = vst.msk [vmem:[#allocation4 + $0x1d0] sm:$0xff] %vm3059_vm12, %v2984_v30  ;;  %v3524_v30 = vld [vmem:[#allocation2 + $0xe2] sm:$0xff] }
 0x394   :  { %3356 = vrot.lane.b32.xlu0 %v3176_v45, %s10224_s29 }
 0x395   :  { %v2982_v16 = vpop.permute.xlu1 %2981 }
 0x396   :  { %3117 = vst.msk [vmem:[#allocation4 + $0x1c8] sm:$0xff] %vm3059_vm12, %v2982_v16  ;;  %v2988_v39 = vpop.permute.xlu0 %2987  ;;  %v3527_v16 = vld [vmem:[#allocation2 + $0x10a] sm:$0xff] }
 0x397   :  { %3354 = vrot.lane.b32.xlu1 %v3175_v19, %s10224_s29  ;;  %3120 = vst.msk [vmem:[#allocation4 + $0x1e0] sm:$0xff] %vm3059_vm12, %v2988_v39  ;;  %v3526_v39 = vld [vmem:[#allocation2 + $0xfa] sm:$0xff] }
 0x398   :  { %3360 = vrot.lane.b32.xlu0 %v3178_v2, %s10224_s29 }
 0x399   :  { %v2986_v11 = vpop.permute.xlu1 %2985 }
 0x39a   :  { %3119 = vst.msk [vmem:[#allocation4 + $0x1d8] sm:$0xff] %vm3059_vm12, %v2986_v11  ;;  %v2992_v44 = vpop.permute.xlu0 %2991  ;;  %v3529_v11 = vld [vmem:[#allocation2 + $0x122] sm:$0xff] }
 0x39b   :  { %3358 = vrot.lane.b32.xlu1 %v3177_v37, %s10224_s29  ;;  %3122 = vst.msk [vmem:[#allocation4 + $0x1f0] sm:$0xff] %vm3059_vm12, %v2992_v44  ;;  %v3528_v44 = vld [vmem:[#allocation2 + $0x112] sm:$0xff] }
 0x39c   :  { %3364 = vrot.lane.b32.xlu0 %v3180_v32, %s10224_s29 }
 0x39d   :  { %v2990_v28 = vpop.permute.xlu1 %2989 }
 0x39e   :  { %3121 = vst.msk [vmem:[#allocation4 + $0x1e8] sm:$0xff] %vm3059_vm12, %v2990_v28  ;;  %v3253_v0 = vpop.permute.xlu0 %3252  ;;  %v3531_v28 = vld [vmem:[#allocation2 + $0x13a] sm:$0xff] }
 0x39f   :  { %3362 = vrot.lane.b32.xlu1 %v3179_v4, %s10224_s29  ;;  %3445 = vst.msk [vmem:[#allocation4] sm:$0xff] %vm3444_vm13, %v3253_v0  ;;  %v3530_v0 = vld [vmem:[#allocation2 + $0x12a] sm:$0xff] }
 0x3a0   :  { %3368 = vrot.lane.b32.xlu0 %v3182_v55, %s10224_s29 }
 0x3a1   :  { %v2994_v5 = vpop.permute.xlu1 %2993 }
 0x3a2   :  { %3123 = vst.msk [vmem:[#allocation4 + $0x1f8] sm:$0xff] %vm3059_vm12, %v2994_v5  ;;  %v3257_v42 = vpop.permute.xlu0 %3256  ;;  %v3533_v5 = vld [vmem:[#allocation2 + $0x152] sm:$0xff] }
 0x3a3   :  { %3366 = vrot.lane.b32.xlu1 %v3181_v17, %s10224_s29  ;;  %3447 = vst.msk [vmem:[#allocation4 + $0x10] sm:$0xff] %vm3444_vm13, %v3257_v42  ;;  %v3535_v42 = vld [vmem:[#allocation2 + $0x16a] sm:$0xff] }
 0x3a4   :  { %3372 = vrot.lane.b32.xlu0 %v3184_v38, %s10224_s29 }
 0x3a5   :  { %v3255_v14 = vpop.permute.xlu1 %3254 }
 0x3a6   :  { %3446 = vst.msk [vmem:[#allocation4 + $0x8] sm:$0xff] %vm3444_vm13, %v3255_v14  ;;  %v3261_v46 = vpop.permute.xlu0 %3260 }
 0x3a7   :  { %3370 = vrot.lane.b32.xlu1 %v3183_v58, %s10224_s29  ;;  %3449 = vst.msk [vmem:[#allocation4 + $0x20] sm:$0xff] %vm3444_vm13, %v3261_v46  ;;  %v3534_v58 = vld [vmem:[#allocation2 + $0x15a] sm:$0xff] }
 0x3a8   :  { %3376 = vrot.lane.b32.xlu0 %v3186_v9, %s10224_s29  ;;  %v3537_v9 = vld [vmem:[#allocation2 + $0x182] sm:$0xff] }
 0x3a9   :  { %v3259_v51 = vpop.permute.xlu1 %3258 }
 0x3aa   :  { %3448 = vst.msk [vmem:[#allocation4 + $0x18] sm:$0xff] %vm3444_vm13, %v3259_v51  ;;  %v3265_v62 = vpop.permute.xlu0 %3264  ;;  %v3538_v51 = vld [vmem:[#allocation2 + $0x18a] sm:$0xff] }
 0x3ab   :  { %3374 = vrot.lane.b32.xlu1 %v3185_v61, %s10224_s29  ;;  %3451 = vst.msk [vmem:[#allocation4 + $0x30] sm:$0xff] %vm3444_vm13, %v3265_v62  ;;  %v3541_v62 = vld [vmem:[#allocation2 + $0x1e2] sm:$0xff] }
 0x3ac   :  { %3637 = vrot.lane.b32.xlu0 %v3509_v20, %s10225_s17 }
 0x3ad   :  { %v3263_v56 = vpop.permute.xlu1 %3262 }
 0x3ae   :  { %3450 = vst.msk [vmem:[#allocation4 + $0x28] sm:$0xff] %vm3444_vm13, %v3263_v56  ;;  %v3269_v18 = vpop.permute.xlu0 %3268 }
 0x3af   :  { %3378 = vrot.lane.b32.xlu1 %v3187_v29, %s10224_s29  ;;  %3453 = vst.msk [vmem:[#allocation4 + $0x40] sm:$0xff] %vm3444_vm13, %v3269_v18  ;;  %v3540_v29 = vld [vmem:[#allocation2 + $0x1a2] sm:$0xff] }
 0x3b0   :  { %3641 = vrot.lane.b32.xlu0 %v3511_v50, %s10225_s17  ;;  %v3543_v50 = vld [vmem:[#allocation2 + $0x1fa] sm:$0xff] }
 0x3b1   :  { %v3267_v35 = vpop.permute.xlu1 %3266 }
 0x3b2   :  { %3452 = vst.msk [vmem:[#allocation4 + $0x38] sm:$0xff] %vm3444_vm13, %v3267_v35  ;;  %v3273_v25 = vpop.permute.xlu0 %3272 }
 0x3b3   :  { %3639 = vrot.lane.b32.xlu1 %v3510_v59, %s10225_s17  ;;  %3455 = vst.msk [vmem:[#allocation4 + $0x50] sm:$0xff] %vm3444_vm13, %v3273_v25  ;;  %v3542_v59 = vld [vmem:[#allocation2 + $0x1ea] sm:$0xff] }
 0x3b4   :  { %3645 = vrot.lane.b32.xlu0 %v3513_v10, %s10225_s17  ;;  %v3545_v10 = vld [vmem:[#allocation2 + $0x212] sm:$0xff] }
 0x3b5   :  { %v3271_v41 = vpop.permute.xlu1 %3270 }
 0x3b6   :  { %3454 = vst.msk [vmem:[#allocation4 + $0x48] sm:$0xff] %vm3444_vm13, %v3271_v41  ;;  %v3277_v33 = vpop.permute.xlu0 %3276 }
 0x3b7   :  { %3643 = vrot.lane.b32.xlu1 %v3512_v7, %s10225_s17  ;;  %3457 = vst.msk [vmem:[#allocation4 + $0x60] sm:$0xff] %vm3444_vm13, %v3277_v33  ;;  %v3544_v7 = vld [vmem:[#allocation2 + $0x202] sm:$0xff] }
 0x3b8   :  { %3649 = vrot.lane.b32.xlu0 %v3515_v13, %s10225_s17  ;;  %v3547_v13 = vld [vmem:[#allocation2 + $0x22a] sm:$0xff] }
 0x3b9   :  { %v3275_v22 = vpop.permute.xlu1 %3274 }
 0x3ba   :  { %3456 = vst.msk [vmem:[#allocation4 + $0x58] sm:$0xff] %vm3444_vm13, %v3275_v22  ;;  %v3281_v53 = vpop.permute.xlu0 %3280 }
 0x3bb   :  { %3647 = vrot.lane.b32.xlu1 %v3514_v3, %s10225_s17  ;;  %3459 = vst.msk [vmem:[#allocation4 + $0x70] sm:$0xff] %vm3444_vm13, %v3281_v53  ;;  %v3546_v3 = vld [vmem:[#allocation2 + $0x21a] sm:$0xff] }
 0x3bc   :  { %3653 = vrot.lane.b32.xlu0 %v3517_v26, %s10225_s17  ;;  %v3549_v26 = vld [vmem:[#allocation2 + $0x242] sm:$0xff] }
 0x3bd   :  { %v3279_v21 = vpop.permute.xlu1 %3278 }
 0x3be   :  { %3458 = vst.msk [vmem:[#allocation4 + $0x68] sm:$0xff] %vm3444_vm13, %v3279_v21  ;;  %v3285_v34 = vpop.permute.xlu0 %3284 }
 0x3bf   :  { %3651 = vrot.lane.b32.xlu1 %v3516_v52, %s10225_s17  ;;  %3461 = vst.msk [vmem:[#allocation4 + $0x80] sm:$0xff] %vm3444_vm13, %v3285_v34  ;;  %v3548_v52 = vld [vmem:[#allocation2 + $0x232] sm:$0xff] }
 0x3c0   :  { %3657 = vrot.lane.b32.xlu0 %v3519_v54, %s10225_s17  ;;  %v3551_v54 = vld [vmem:[#allocation2 + $0x25a] sm:$0xff] }
 0x3c1   :  { %v3283_v40 = vpop.permute.xlu1 %3282 }
 0x3c2   :  { %3460 = vst.msk [vmem:[#allocation4 + $0x78] sm:$0xff] %vm3444_vm13, %v3283_v40  ;;  %v3289_v47 = vpop.permute.xlu0 %3288 }
 0x3c3   :  { %3655 = vrot.lane.b32.xlu1 %v3518_v24, %s10225_s17  ;;  %3463 = vst.msk [vmem:[#allocation4 + $0x90] sm:$0xff] %vm3444_vm13, %v3289_v47  ;;  %v3550_v24 = vld [vmem:[#allocation2 + $0x24a] sm:$0xff] }
 0x3c4   :  { %3661 = vrot.lane.b32.xlu0 %v3521_v36, %s10225_s17  ;;  %v3553_v36 = vld [vmem:[#allocation2 + $0x272] sm:$0xff] }
 0x3c5   :  { %v3287_v60 = vpop.permute.xlu1 %3286 }
 0x3c6   :  { %3462 = vst.msk [vmem:[#allocation4 + $0x88] sm:$0xff] %vm3444_vm13, %v3287_v60  ;;  %v3293_v6 = vpop.permute.xlu0 %3292 }
 0x3c7   :  { %3659 = vrot.lane.b32.xlu1 %v3520_v43, %s10225_s17  ;;  %3465 = vst.msk [vmem:[#allocation4 + $0xa0] sm:$0xff] %vm3444_vm13, %v3293_v6  ;;  %v3552_v43 = vld [vmem:[#allocation2 + $0x262] sm:$0xff] }
 0x3c8   :  { %3665 = vrot.lane.b32.xlu0 %v3523_v48, %s10225_s17  ;;  %v3555_v48 = vld [vmem:[#allocation2 + $0x28a] sm:$0xff] }
 0x3c9   :  { %v3291_v12 = vpop.permute.xlu1 %3290 }
 0x3ca   :  { %3464 = vst.msk [vmem:[#allocation4 + $0x98] sm:$0xff] %vm3444_vm13, %v3291_v12  ;;  %v3297_v45 = vpop.permute.xlu0 %3296 }
 0x3cb   :  { %3663 = vrot.lane.b32.xlu1 %v3522_v1, %s10225_s17  ;;  %3467 = vst.msk [vmem:[#allocation4 + $0xb0] sm:$0xff] %vm3444_vm13, %v3297_v45  ;;  %v3554_v1 = vld [vmem:[#allocation2 + $0x27a] sm:$0xff] }
 0x3cc   :  { %3669 = vrot.lane.b32.xlu0 %v3525_v8, %s10225_s17  ;;  %v3557_v8 = vld [vmem:[#allocation2 + $0x2a2] sm:$0xff] }
 0x3cd   :  { %v3295_v19 = vpop.permute.xlu1 %3294 }
 0x3ce   :  { %3466 = vst.msk [vmem:[#allocation4 + $0xa8] sm:$0xff] %vm3444_vm13, %v3295_v19  ;;  %v3301_v2 = vpop.permute.xlu0 %3300 }
 0x3cf   :  { %3667 = vrot.lane.b32.xlu1 %v3524_v30, %s10225_s17  ;;  %3469 = vst.msk [vmem:[#allocation4 + $0xc0] sm:$0xff] %vm3444_vm13, %v3301_v2  ;;  %v3556_v30 = vld [vmem:[#allocation2 + $0x292] sm:$0xff] }
 0x3d0   :  { %3673 = vrot.lane.b32.xlu0 %v3527_v16, %s10225_s17  ;;  %v3559_v16 = vld [vmem:[#allocation2 + $0x2ba] sm:$0xff] }
 0x3d1   :  { %v3299_v37 = vpop.permute.xlu1 %3298 }
 0x3d2   :  { %3468 = vst.msk [vmem:[#allocation4 + $0xb8] sm:$0xff] %vm3444_vm13, %v3299_v37  ;;  %v3305_v32 = vpop.permute.xlu0 %3304 }
 0x3d3   :  { %3671 = vrot.lane.b32.xlu1 %v3526_v39, %s10225_s17  ;;  %3471 = vst.msk [vmem:[#allocation4 + $0xd0] sm:$0xff] %vm3444_vm13, %v3305_v32  ;;  %v3558_v39 = vld [vmem:[#allocation2 + $0x2aa] sm:$0xff] }
 0x3d4   :  { %3677 = vrot.lane.b32.xlu0 %v3529_v11, %s10225_s17  ;;  %v3561_v11 = vld [vmem:[#allocation2 + $0x2d2] sm:$0xff] }
 0x3d5   :  { %v3303_v4 = vpop.permute.xlu1 %3302 }
 0x3d6   :  { %3470 = vst.msk [vmem:[#allocation4 + $0xc8] sm:$0xff] %vm3444_vm13, %v3303_v4  ;;  %v3309_v55 = vpop.permute.xlu0 %3308 }
 0x3d7   :  { %3675 = vrot.lane.b32.xlu1 %v3528_v44, %s10225_s17  ;;  %3473 = vst.msk [vmem:[#allocation4 + $0xe0] sm:$0xff] %vm3444_vm13, %v3309_v55  ;;  %v3560_v44 = vld [vmem:[#allocation2 + $0x2c2] sm:$0xff] }
 0x3d8   :  { %3681 = vrot.lane.b32.xlu0 %v3531_v28, %s10225_s17  ;;  %v3563_v28 = vld [vmem:[#allocation2 + $0x2ea] sm:$0xff] }
 0x3d9   :  { %v3307_v17 = vpop.permute.xlu1 %3306 }
 0x3da   :  { %3472 = vst.msk [vmem:[#allocation4 + $0xd8] sm:$0xff] %vm3444_vm13, %v3307_v17  ;;  %v3313_v38 = vpop.permute.xlu0 %3312 }
 0x3db   :  { %3679 = vrot.lane.b32.xlu1 %v3530_v0, %s10225_s17  ;;  %3475 = vst.msk [vmem:[#allocation4 + $0xf0] sm:$0xff] %vm3444_vm13, %v3313_v38  ;;  %v3562_v0 = vld [vmem:[#allocation2 + $0x2da] sm:$0xff] }
 0x3dc   :  { %3685 = vrot.lane.b32.xlu0 %v3533_v5, %s10225_s17  ;;  %v3565_v5 = vld [vmem:[#allocation2 + $0x302] sm:$0xff] }
 0x3dd   :  { %v3311_v57 = vpop.permute.xlu1 %3310 }
 0x3de   :  { %3474 = vst.msk [vmem:[#allocation4 + $0xe8] sm:$0xff] %vm3444_vm13, %v3311_v57  ;;  %v3317_v63 = vpop.permute.xlu0 %3316 }
 0x3df   :  { %3683 = vrot.lane.b32.xlu1 %v3532_v23, %s10225_s17  ;;  %3477 = vst.msk [vmem:[#allocation4 + $0x100] sm:$0xff] %vm3444_vm13, %v3317_v63  ;;  %v3564_v23 = vld [vmem:[#allocation2 + $0x2f2] sm:$0xff] }
 0x3e0   :  { %3689 = vrot.lane.b32.xlu0 %v3535_v42, %s10225_s17  ;;  %v3567_v42 = vld [vmem:[#allocation2 + $0x31a] sm:$0xff] }
 0x3e1   :  { %v3315_v14 = vpop.permute.xlu1 %3314 }
 0x3e2   :  { %3476 = vst.msk [vmem:[#allocation4 + $0xf8] sm:$0xff] %vm3444_vm13, %v3315_v14  ;;  %v3321_v27 = vpop.permute.xlu0 %3320 }
 0x3e3   :  { %3687 = vrot.lane.b32.xlu1 %v3534_v58, %s10225_s17  ;;  %3479 = vst.msk [vmem:[#allocation4 + $0x110] sm:$0xff] %vm3444_vm13, %v3321_v27  ;;  %v3566_v58 = vld [vmem:[#allocation2 + $0x30a] sm:$0xff]  ;;  %v3569_v27 = vld [vmem:[#allocation2 + $0x332] sm:$0xff] }
 0x3e4   :  { %3693 = vrot.lane.b32.xlu0 %v3537_v9, %s10225_s17 }
 0x3e5   :  { %v3319_v46 = vpop.permute.xlu1 %3318 }
 0x3e6   :  { %3478 = vst.msk [vmem:[#allocation4 + $0x108] sm:$0xff] %vm3444_vm13, %v3319_v46  ;;  %v3325_v61 = vpop.permute.xlu0 %3324  ;;  %v3568_v46 = vld [vmem:[#allocation2 + $0x322] sm:$0xff] }
 0x3e7   :  { %3691 = vrot.lane.b32.xlu1 %v3536_v15, %s10225_s17  ;;  %3481 = vst.msk [vmem:[#allocation4 + $0x120] sm:$0xff] %vm3444_vm13, %v3325_v61  ;;  %v14588_v15 = vmov 0.0   ;;  %v3571_v61 = vld [vmem:[#allocation2 + $0x34a] sm:$0xff] }
 0x3e8   :  { %3697 = vrot.lane.b32.xlu0 %v3539_v31, %s10225_s17  ;;  %115 = vst.msk [vmem:[#allocation3] sm:$0xff] %vm114_vm1, %v14588_v15  ;;  %116 = vst.msk [vmem:[#allocation3 + $0x8] sm:$0xff] %vm114_vm1, %v14588_v15 }
 0x3e9   :  { %v3323_v20 = vpop.permute.xlu1 %3322  ;;  %119 = vst.msk [vmem:[#allocation3 + $0x18] sm:$0xff] %vm114_vm1, %v14588_v15  ;;  %120 = vst.msk [vmem:[#allocation3 + $0x20] sm:$0xff] %vm114_vm1, %v14588_v15 }
 0x3ea   :  { %3480 = vst.msk [vmem:[#allocation4 + $0x118] sm:$0xff] %vm3444_vm13, %v3323_v20  ;;  %v3329_v49 = vpop.permute.xlu0 %3328 }
 0x3eb   :  { %3695 = vrot.lane.b32.xlu1 %v3538_v51, %s10225_s17  ;;  %3483 = vst.msk [vmem:[#allocation4 + $0x130] sm:$0xff] %vm3444_vm13, %v3329_v49 }
 0x3ec   :  { %3701 = vrot.lane.b32.xlu0 %v3541_v62, %s10225_s17  ;;  %122 = vst.msk [vmem:[#allocation3 + $0x1e0] sm:$0xff] %vm114_vm1, %v14588_v15  ;;  %123 = vst.msk [vmem:[#allocation3 + $0x1e8] sm:$0xff] %vm114_vm1, %v14588_v15  ;;  %v3570_v62 = vld [vmem:[#allocation2 + $0x33a] sm:$0xff] }
 0x3ed   :  { %v3327_v56 = vpop.permute.xlu1 %3326  ;;  %125 = vst.msk [vmem:[#allocation3 + $0x1f8] sm:$0xff] %vm114_vm1, %v14588_v15  ;;  %126 = vst.msk [vmem:[#allocation3 + $0x200] sm:$0xff] %vm114_vm1, %v14588_v15 }
 0x3ee   :  { %3482 = vst.msk [vmem:[#allocation4 + $0x128] sm:$0xff] %vm3444_vm13, %v3327_v56  ;;  %v3333_v18 = vpop.permute.xlu0 %3332 }
 0x3ef   :  { %3699 = vrot.lane.b32.xlu1 %v3540_v29, %s10225_s17  ;;  %3485 = vst.msk [vmem:[#allocation4 + $0x140] sm:$0xff] %vm3444_vm13, %v3333_v18 }
 0x3f0   :  { %3705 = vrot.lane.b32.xlu0 %v3543_v50, %s10225_s17  ;;  %129 = vst.msk [vmem:[#allocation3 + $0x1b0] sm:$0xff] %vm114_vm1, %v14588_v15  ;;  %130 = vst.msk [vmem:[#allocation3 + $0x1b8] sm:$0xff] %vm114_vm1, %v14588_v15 }
 0x3f1   :  { %v3331_v35 = vpop.permute.xlu1 %3330  ;;  %132 = vst.msk [vmem:[#allocation3 + $0x1c8] sm:$0xff] %vm114_vm1, %v14588_v15  ;;  %133 = vst.msk [vmem:[#allocation3 + $0x1d0] sm:$0xff] %vm114_vm1, %v14588_v15 }
 0x3f2   :  { %3484 = vst.msk [vmem:[#allocation4 + $0x138] sm:$0xff] %vm3444_vm13, %v3331_v35  ;;  %v3337_v25 = vpop.permute.xlu0 %3336 }
 0x3f3   :  { %3703 = vrot.lane.b32.xlu1 %v3542_v59, %s10225_s17  ;;  %3487 = vst.msk [vmem:[#allocation4 + $0x150] sm:$0xff] %vm3444_vm13, %v3337_v25 }
 0x3f4   :  { %3709 = vrot.lane.b32.xlu0 %v3545_v10, %s10225_s17  ;;  %135 = vst.msk [vmem:[#allocation3 + $0x390] sm:$0xff] %vm114_vm1, %v14588_v15  ;;  %136 = vst.msk [vmem:[#allocation3 + $0x398] sm:$0xff] %vm114_vm1, %v14588_v15 }
 0x3f5   :  { %v3335_v41 = vpop.permute.xlu1 %3334  ;;  %138 = vst.msk [vmem:[#allocation3 + $0x3a8] sm:$0xff] %vm114_vm1, %v14588_v15  ;;  %139 = vst.msk [vmem:[#allocation3 + $0x3b0] sm:$0xff] %vm114_vm1, %v14588_v15 }
 0x3f6   :  { %3486 = vst.msk [vmem:[#allocation4 + $0x148] sm:$0xff] %vm3444_vm13, %v3335_v41  ;;  %v3341_v33 = vpop.permute.xlu0 %3340 }
 0x3f7   :  { %3707 = vrot.lane.b32.xlu1 %v3544_v7, %s10225_s17  ;;  %3489 = vst.msk [vmem:[#allocation4 + $0x160] sm:$0xff] %vm3444_vm13, %v3341_v33 }
 0x3f8   :  { %3713 = vrot.lane.b32.xlu0 %v3547_v13, %s10225_s17  ;;  %118 = vst.msk [vmem:[#allocation3 + $0x10] sm:$0xf] %vm117_vm3, %v14588_v15  ;;  %121 = vst.msk [vmem:[#allocation3 + $0x28] sm:$0xf] %vm117_vm3, %v14588_v15 }
 0x3f9   :  { %v3339_v22 = vpop.permute.xlu1 %3338  ;;  %124 = vst.msk [vmem:[#allocation3 + $0x1f0] sm:$0xf] %vm117_vm3, %v14588_v15  ;;  %127 = vst.msk [vmem:[#allocation3 + $0x208] sm:$0xf] %vm117_vm3, %v14588_v15 }
 0x3fa   :  { %3488 = vst.msk [vmem:[#allocation4 + $0x158] sm:$0xff] %vm3444_vm13, %v3339_v22  ;;  %v3345_v53 = vpop.permute.xlu0 %3344 }
 0x3fb   :  { %3711 = vrot.lane.b32.xlu1 %v3546_v3, %s10225_s17  ;;  %3491 = vst.msk [vmem:[#allocation4 + $0x170] sm:$0xff] %vm3444_vm13, %v3345_v53 }
 0x3fc   :  { %3717 = vrot.lane.b32.xlu0 %v3549_v26, %s10225_s17  ;;  %131 = vst.msk [vmem:[#allocation3 + $0x1c0] sm:$0xf] %vm117_vm3, %v14588_v15  ;;  %134 = vst.msk [vmem:[#allocation3 + $0x1d8] sm:$0xf] %vm117_vm3, %v14588_v15 }
 0x3fd   :  { %v3343_v21 = vpop.permute.xlu1 %3342  ;;  %137 = vst.msk [vmem:[#allocation3 + $0x3a0] sm:$0xf] %vm117_vm3, %v14588_v15  ;;  %140 = vst.msk [vmem:[#allocation3 + $0x3b8] sm:$0xf] %vm117_vm3, %v14588_v15 }
 0x3fe   :  { %3490 = vst.msk [vmem:[#allocation4 + $0x168] sm:$0xff] %vm3444_vm13, %v3343_v21  ;;  %v3349_v34 = vpop.permute.xlu0 %3348 }
 0x3ff   :  { %3715 = vrot.lane.b32.xlu1 %v3548_v52, %s10225_s17  ;;  %3493 = vst.msk [vmem:[#allocation4 + $0x180] sm:$0xff] %vm3444_vm13, %v3349_v34 }
 0x400   :  { %3721 = vrot.lane.b32.xlu0 %v3551_v54, %s10225_s17  ;;  %142 = vst.msk [vmem:[#allocation3] sm:$0x3] %vm141_vm4, %v14588_v15  ;;  %143 = vst.msk [vmem:[#allocation3 + $0x18] sm:$0x3] %vm141_vm4, %v14588_v15 }
 0x401   :  { %v3347_v40 = vpop.permute.xlu1 %3346  ;;  %144 = vst.msk [vmem:[#allocation3 + $0x30] sm:$0x3] %vm141_vm4, %v14588_v15  ;;  %145 = vst.msk [vmem:[#allocation3 + $0x48] sm:$0x3] %vm141_vm4, %v14588_v15 }
 0x402   :  { %3492 = vst.msk [vmem:[#allocation4 + $0x178] sm:$0xff] %vm3444_vm13, %v3347_v40  ;;  %v3353_v47 = vpop.permute.xlu0 %3352 }
 0x403   :  { %3719 = vrot.lane.b32.xlu1 %v3550_v24, %s10225_s17  ;;  %3495 = vst.msk [vmem:[#allocation4 + $0x190] sm:$0xff] %vm3444_vm13, %v3353_v47 }
 0x404   :  { %3725 = vrot.lane.b32.xlu0 %v3553_v36, %s10225_s17  ;;  %146 = vst.msk [vmem:[#allocation3 + $0x60] sm:$0x3] %vm141_vm4, %v14588_v15  ;;  %147 = vst.msk [vmem:[#allocation3 + $0x78] sm:$0x3] %vm141_vm4, %v14588_v15 }
 0x405   :  { %v3351_v60 = vpop.permute.xlu1 %3350  ;;  %148 = vst.msk [vmem:[#allocation3 + $0x90] sm:$0x3] %vm141_vm4, %v14588_v15  ;;  %149 = vst.msk [vmem:[#allocation3 + $0xa8] sm:$0x3] %vm141_vm4, %v14588_v15 }
 0x406   :  { %3494 = vst.msk [vmem:[#allocation4 + $0x188] sm:$0xff] %vm3444_vm13, %v3351_v60  ;;  %v3357_v6 = vpop.permute.xlu0 %3356 }
 0x407   :  { %3723 = vrot.lane.b32.xlu1 %v3552_v43, %s10225_s17  ;;  %3497 = vst.msk [vmem:[#allocation4 + $0x1a0] sm:$0xff] %vm3444_vm13, %v3357_v6 }
 0x408   :  { %3729 = vrot.lane.b32.xlu0 %v3555_v48, %s10225_s17  ;;  %150 = vst.msk [vmem:[#allocation3 + $0xc0] sm:$0x3] %vm141_vm4, %v14588_v15  ;;  %151 = vst.msk [vmem:[#allocation3 + $0xd8] sm:$0x3] %vm141_vm4, %v14588_v15 }
 0x409   :  { %v3355_v12 = vpop.permute.xlu1 %3354  ;;  %152 = vst.msk [vmem:[#allocation3 + $0xf0] sm:$0x3] %vm141_vm4, %v14588_v15  ;;  %153 = vst.msk [vmem:[#allocation3 + $0x108] sm:$0x3] %vm141_vm4, %v14588_v15 }
 0x40a   :  { %3496 = vst.msk [vmem:[#allocation4 + $0x198] sm:$0xff] %vm3444_vm13, %v3355_v12  ;;  %v3361_v45 = vpop.permute.xlu0 %3360 }
 0x40b   :  { %3727 = vrot.lane.b32.xlu1 %v3554_v1, %s10225_s17  ;;  %3499 = vst.msk [vmem:[#allocation4 + $0x1b0] sm:$0xff] %vm3444_vm13, %v3361_v45 }
 0x40c   :  { %3733 = vrot.lane.b32.xlu0 %v3557_v8, %s10225_s17  ;;  %154 = vst.msk [vmem:[#allocation3 + $0x120] sm:$0x3] %vm141_vm4, %v14588_v15  ;;  %155 = vst.msk [vmem:[#allocation3 + $0x138] sm:$0x3] %vm141_vm4, %v14588_v15 }
 0x40d   :  { %v3359_v19 = vpop.permute.xlu1 %3358  ;;  %156 = vst.msk [vmem:[#allocation3 + $0x150] sm:$0x3] %vm141_vm4, %v14588_v15  ;;  %157 = vst.msk [vmem:[#allocation3 + $0x168] sm:$0x3] %vm141_vm4, %v14588_v15 }
 0x40e   :  { %3498 = vst.msk [vmem:[#allocation4 + $0x1a8] sm:$0xff] %vm3444_vm13, %v3359_v19  ;;  %v3365_v2 = vpop.permute.xlu0 %3364 }
 0x40f   :  { %3731 = vrot.lane.b32.xlu1 %v3556_v30, %s10225_s17  ;;  %3501 = vst.msk [vmem:[#allocation4 + $0x1c0] sm:$0xff] %vm3444_vm13, %v3365_v2 }
 0x410   :  { %3737 = vrot.lane.b32.xlu0 %v3559_v16, %s10225_s17  ;;  %158 = vst.msk [vmem:[#allocation3 + $0x180] sm:$0x3] %vm141_vm4, %v14588_v15  ;;  %159 = vst.msk [vmem:[#allocation3 + $0x198] sm:$0x3] %vm141_vm4, %v14588_v15 }
 0x411   :  { %v3363_v37 = vpop.permute.xlu1 %3362  ;;  %160 = vst.msk [vmem:[#allocation3 + $0x1b0] sm:$0x3] %vm141_vm4, %v14588_v15  ;;  %161 = vst.msk [vmem:[#allocation3 + $0x1c8] sm:$0x3] %vm141_vm4, %v14588_v15 }
 0x412   :  { %3500 = vst.msk [vmem:[#allocation4 + $0x1b8] sm:$0xff] %vm3444_vm13, %v3363_v37  ;;  %v3369_v32 = vpop.permute.xlu0 %3368 }
 0x413   :  { %3735 = vrot.lane.b32.xlu1 %v3558_v39, %s10225_s17  ;;  %3503 = vst.msk [vmem:[#allocation4 + $0x1d0] sm:$0xff] %vm3444_vm13, %v3369_v32 }
 0x414   :  { %3741 = vrot.lane.b32.xlu0 %v3561_v11, %s10225_s17  ;;  %162 = vst.msk [vmem:[#allocation3 + $0x1e0] sm:$0x3] %vm141_vm4, %v14588_v15  ;;  %163 = vst.msk [vmem:[#allocation3 + $0x1f8] sm:$0x3] %vm141_vm4, %v14588_v15 }
 0x415   :  { %v3367_v4 = vpop.permute.xlu1 %3366  ;;  %164 = vst.msk [vmem:[#allocation3 + $0x210] sm:$0x3] %vm141_vm4, %v14588_v15  ;;  %165 = vst.msk [vmem:[#allocation3 + $0x228] sm:$0x3] %vm141_vm4, %v14588_v15 }
 0x416   :  { %3502 = vst.msk [vmem:[#allocation4 + $0x1c8] sm:$0xff] %vm3444_vm13, %v3367_v4  ;;  %v3373_v55 = vpop.permute.xlu0 %3372 }
 0x417   :  { %3739 = vrot.lane.b32.xlu1 %v3560_v44, %s10225_s17  ;;  %3505 = vst.msk [vmem:[#allocation4 + $0x1e0] sm:$0xff] %vm3444_vm13, %v3373_v55 }
 0x418   :  { %3745 = vrot.lane.b32.xlu0 %v3563_v28, %s10225_s17  ;;  %166 = vst.msk [vmem:[#allocation3 + $0x240] sm:$0x3] %vm141_vm4, %v14588_v15  ;;  %167 = vst.msk [vmem:[#allocation3 + $0x258] sm:$0x3] %vm141_vm4, %v14588_v15 }
 0x419   :  { %v3371_v17 = vpop.permute.xlu1 %3370  ;;  %168 = vst.msk [vmem:[#allocation3 + $0x270] sm:$0x3] %vm141_vm4, %v14588_v15  ;;  %169 = vst.msk [vmem:[#allocation3 + $0x288] sm:$0x3] %vm141_vm4, %v14588_v15 }
 0x41a   :  { %3504 = vst.msk [vmem:[#allocation4 + $0x1d8] sm:$0xff] %vm3444_vm13, %v3371_v17  ;;  %v3377_v38 = vpop.permute.xlu0 %3376 }
 0x41b   :  { %3743 = vrot.lane.b32.xlu1 %v3562_v0, %s10225_s17  ;;  %3507 = vst.msk [vmem:[#allocation4 + $0x1f0] sm:$0xff] %vm3444_vm13, %v3377_v38 }
 0x41c   :  { %3749 = vrot.lane.b32.xlu0 %v3565_v5, %s10225_s17  ;;  %170 = vst.msk [vmem:[#allocation3 + $0x2a0] sm:$0x3] %vm141_vm4, %v14588_v15  ;;  %171 = vst.msk [vmem:[#allocation3 + $0x2b8] sm:$0x3] %vm141_vm4, %v14588_v15 }
 0x41d   :  { %v3375_v57 = vpop.permute.xlu1 %3374  ;;  %172 = vst.msk [vmem:[#allocation3 + $0x2d0] sm:$0x3] %vm141_vm4, %v14588_v15  ;;  %173 = vst.msk [vmem:[#allocation3 + $0x2e8] sm:$0x3] %vm141_vm4, %v14588_v15 }
 0x41e   :  { %3506 = vst.msk [vmem:[#allocation4 + $0x1e8] sm:$0xff] %vm3444_vm13, %v3375_v57  ;;  %v3638_v63 = vpop.permute.xlu0 %3637 }
 0x41f   :  { %3747 = vrot.lane.b32.xlu1 %v3564_v23, %s10225_s17  ;;  %3830 = vst.msk [vmem:[#allocation4] sm:$0xff] %vm3829_vm15, %v3638_v63 }
 0x420   :  { %3753 = vrot.lane.b32.xlu0 %v3567_v42, %s10225_s17  ;;  %174 = vst.msk [vmem:[#allocation3 + $0x300] sm:$0x3] %vm141_vm4, %v14588_v15  ;;  %175 = vst.msk [vmem:[#allocation3 + $0x318] sm:$0x3] %vm141_vm4, %v14588_v15 }
 0x421   :  { %v3379_v14 = vpop.permute.xlu1 %3378  ;;  %176 = vst.msk [vmem:[#allocation3 + $0x330] sm:$0x3] %vm141_vm4, %v14588_v15  ;;  %177 = vst.msk [vmem:[#allocation3 + $0x348] sm:$0x3] %vm141_vm4, %v14588_v15 }
 0x422   :  { %3508 = vst.msk [vmem:[#allocation4 + $0x1f8] sm:$0xff] %vm3444_vm13, %v3379_v14  ;;  %v3642_v9 = vpop.permute.xlu0 %3641 }
 0x423   :  { %3751 = vrot.lane.b32.xlu1 %v3566_v58, %s10225_s17  ;;  %3832 = vst.msk [vmem:[#allocation4 + $0x10] sm:$0xff] %vm3829_vm15, %v3642_v9 }
 0x424   :  { %3757 = vrot.lane.b32.xlu0 %v3569_v27, %s10225_s17  ;;  %178 = vst.msk [vmem:[#allocation3 + $0x360] sm:$0x3] %vm141_vm4, %v14588_v15  ;;  %179 = vst.msk [vmem:[#allocation3 + $0x378] sm:$0x3] %vm141_vm4, %v14588_v15 }
 0x425   :  { %v3640_v31 = vpop.permute.xlu1 %3639  ;;  %180 = vst.msk [vmem:[#allocation3 + $0x390] sm:$0x3] %vm141_vm4, %v14588_v15  ;;  %181 = vst.msk [vmem:[#allocation3 + $0x3a8] sm:$0x3] %vm141_vm4, %v14588_v15 }
 0x426   :  { %3831 = vst.msk [vmem:[#allocation4 + $0x8] sm:$0xff] %vm3829_vm15, %v3640_v31  ;;  %v3646_v51 = vpop.permute.xlu0 %3645  ;;  %v3894_v20 = vld [vmem:[#allocation4] sm:$0xff] }
 0x427   :  { %3755 = vrot.lane.b32.xlu1 %v3568_v46, %s10225_s17  ;;  %3834 = vst.msk [vmem:[#allocation4 + $0x20] sm:$0xff] %vm3829_vm15, %v3646_v51  ;;  %9796 = vmatprep.mubr.msk.f32.mxu0 %vm3970_vm2, %v3894_v20 }
 0x428   :  { %3761 = vrot.lane.b32.xlu0 %v3571_v61, %s10225_s17  ;;  %182 = vst.msk [vmem:[#allocation3 + $0x12] sm:$0x3] %vm141_vm4, %v14588_v15  ;;  %183 = vst.msk [vmem:[#allocation3 + $0x2a] sm:$0x3] %vm141_vm4, %v14588_v15 }
 0x429   :  { %v3644_v49 = vpop.permute.xlu1 %3643  ;;  %184 = vst.msk [vmem:[#allocation3 + $0x42] sm:$0x3] %vm141_vm4, %v14588_v15  ;;  %185 = vst.msk [vmem:[#allocation3 + $0x5a] sm:$0x3] %vm141_vm4, %v14588_v15 }
 0x42a   :  { %3833 = vst.msk [vmem:[#allocation4 + $0x18] sm:$0xff] %vm3829_vm15, %v3644_v49  ;;  %v3650_v29 = vpop.permute.xlu0 %3649  ;;  %v3896_v56 = vld [vmem:[#allocation4 + $0x10] sm:$0xff] }
 0x42b   :  { %3836 = vst.msk [vmem:[#allocation4 + $0x30] sm:$0xff] %vm3829_vm15, %v3650_v29  ;;  %3759 = vrot.lane.b32.xlu1 %v3570_v62, %s10225_s17 }
 0x42c   :  { %186 = vst.msk [vmem:[#allocation3 + $0x72] sm:$0x3] %vm141_vm4, %v14588_v15  ;;  %187 = vst.msk [vmem:[#allocation3 + $0x8a] sm:$0x3] %vm141_vm4, %v14588_v15 }
 0x42d   :  { %v3648_v50 = vpop.permute.xlu1 %3647  ;;  %v3895_v18 = vld [vmem:[#allocation4 + $0x8] sm:$0xff]  ;;  %188 = vst.msk [vmem:[#allocation3 + $0xa2] sm:$0x3] %vm141_vm4, %v14588_v15  ;;  %189 = vst.msk [vmem:[#allocation3 + $0xba] sm:$0x3] %vm141_vm4, %v14588_v15 }
 0x42e   :  { %3835 = vst.msk [vmem:[#allocation4 + $0x28] sm:$0xff] %vm3829_vm15, %v3648_v50  ;;  %9797 = vmatmul.mubr.msk.f32.vlgmr.msra.gmra.mrb[0].mxu0 %vm3970_vm2, %v3895_v18  ;;  %v3654_v59 = vpop.permute.xlu0 %3653  ;;  %v3898_v35 = vld [vmem:[#allocation4 + $0x20] sm:$0xff] }
 0x42f   :  { %9799 = vmatprep.mubr.msk.f32.mxu0 %vm3970_vm2, %v3896_v56  ;;  %3838 = vst.msk [vmem:[#allocation4 + $0x40] sm:$0xff] %vm3829_vm15, %v3654_v59 }
 0x430   :  { %190 = vst.msk [vmem:[#allocation3 + $0xd2] sm:$0x3] %vm141_vm4, %v14588_v15  ;;  %191 = vst.msk [vmem:[#allocation3 + $0xea] sm:$0x3] %vm141_vm4, %v14588_v15 }
 0x431   :  { %v3652_v10 = vpop.permute.xlu1 %3651  ;;  %v3897_v25 = vld [vmem:[#allocation4 + $0x18] sm:$0xff]  ;;  %192 = vst.msk [vmem:[#allocation3 + $0x102] sm:$0x3] %vm141_vm4, %v14588_v15  ;;  %193 = vst.msk [vmem:[#allocation3 + $0x11a] sm:$0x3] %vm141_vm4, %v14588_v15 }
 0x432   :  { %3837 = vst.msk [vmem:[#allocation4 + $0x38] sm:$0xff] %vm3829_vm15, %v3652_v10  ;;  %9800 = vmatmul.mubr.msk.f32.gmra.mrb[2].mxu0 %vm3970_vm2, %v3897_v25  ;;  %v3658_v7 = vpop.permute.xlu0 %3657  ;;  %v3900_v41 = vld [vmem:[#allocation4 + $0x30] sm:$0xff] }
 0x433   :  { %9802 = vmatprep.mubr.msk.f32.mxu0 %vm3970_vm2, %v3898_v35  ;;  %3840 = vst.msk [vmem:[#allocation4 + $0x50] sm:$0xff] %vm3829_vm15, %v3658_v7 }
 0x434   :  { %194 = vst.msk [vmem:[#allocation3 + $0x132] sm:$0x3] %vm141_vm4, %v14588_v15  ;;  %195 = vst.msk [vmem:[#allocation3 + $0x14a] sm:$0x3] %vm141_vm4, %v14588_v15 }
 0x435   :  { %v3656_v13 = vpop.permute.xlu1 %3655  ;;  %v3899_v33 = vld [vmem:[#allocation4 + $0x28] sm:$0xff]  ;;  %196 = vst.msk [vmem:[#allocation3 + $0x162] sm:$0x3] %vm141_vm4, %v14588_v15  ;;  %197 = vst.msk [vmem:[#allocation3 + $0x17a] sm:$0x3] %vm141_vm4, %v14588_v15 }
 0x436   :  { %3839 = vst.msk [vmem:[#allocation4 + $0x48] sm:$0xff] %vm3829_vm15, %v3656_v13  ;;  %9803 = vmatmul.mubr.msk.f32.gmra.mrb[4].mxu0 %vm3970_vm2, %v3899_v33  ;;  %v3662_v3 = vpop.permute.xlu0 %3661  ;;  %v3902_v22 = vld [vmem:[#allocation4 + $0x40] sm:$0xff] }
 0x437   :  { %9805 = vmatprep.mubr.msk.f32.mxu0 %vm3970_vm2, %v3900_v41  ;;  %3842 = vst.msk [vmem:[#allocation4 + $0x60] sm:$0xff] %vm3829_vm15, %v3662_v3 }
 0x438   :  { %198 = vst.msk [vmem:[#allocation3 + $0x192] sm:$0x3] %vm141_vm4, %v14588_v15  ;;  %199 = vst.msk [vmem:[#allocation3 + $0x1aa] sm:$0x3] %vm141_vm4, %v14588_v15 }
 0x439   :  { %v3660_v26 = vpop.permute.xlu1 %3659  ;;  %v3901_v53 = vld [vmem:[#allocation4 + $0x38] sm:$0xff]  ;;  %200 = vst.msk [vmem:[#allocation3 + $0x1c2] sm:$0x3] %vm141_vm4, %v14588_v15  ;;  %201 = vst.msk [vmem:[#allocation3 + $0x1da] sm:$0x3] %vm141_vm4, %v14588_v15 }
 0x43a   :  { %3841 = vst.msk [vmem:[#allocation4 + $0x58] sm:$0xff] %vm3829_vm15, %v3660_v26  ;;  %9806 = vmatmul.mubr.msk.f32.gmra.mrb[6].mxu0 %vm3970_vm2, %v3901_v53  ;;  %v3666_v52 = vpop.permute.xlu0 %3665  ;;  %v3904_v21 = vld [vmem:[#allocation4 + $0x50] sm:$0xff] }
 0x43b   :  { %9808 = vmatprep.mubr.msk.f32.mxu0 %vm3970_vm2, %v3902_v22  ;;  %3844 = vst.msk [vmem:[#allocation4 + $0x70] sm:$0xff] %vm3829_vm15, %v3666_v52 }
 0x43c   :  { %202 = vst.msk [vmem:[#allocation3 + $0x1f2] sm:$0x3] %vm141_vm4, %v14588_v15  ;;  %203 = vst.msk [vmem:[#allocation3 + $0x20a] sm:$0x3] %vm141_vm4, %v14588_v15 }
 0x43d   :  { %v3664_v54 = vpop.permute.xlu1 %3663  ;;  %v3903_v34 = vld [vmem:[#allocation4 + $0x48] sm:$0xff]  ;;  %204 = vst.msk [vmem:[#allocation3 + $0x222] sm:$0x3] %vm141_vm4, %v14588_v15  ;;  %205 = vst.msk [vmem:[#allocation3 + $0x23a] sm:$0x3] %vm141_vm4, %v14588_v15 }
 0x43e   :  { %3843 = vst.msk [vmem:[#allocation4 + $0x68] sm:$0xff] %vm3829_vm15, %v3664_v54  ;;  %9809 = vmatmul.mubr.msk.f32.gmra.mrb[8].mxu0 %vm3970_vm2, %v3903_v34  ;;  %v3670_v24 = vpop.permute.xlu0 %3669  ;;  %v3906_v40 = vld [vmem:[#allocation4 + $0x60] sm:$0xff] }
 0x43f   :  { %9811 = vmatprep.mubr.msk.f32.mxu0 %vm3970_vm2, %v3904_v21  ;;  %3846 = vst.msk [vmem:[#allocation4 + $0x80] sm:$0xff] %vm3829_vm15, %v3670_v24 }
 0x440   :  { %206 = vst.msk [vmem:[#allocation3 + $0x252] sm:$0x3] %vm141_vm4, %v14588_v15  ;;  %207 = vst.msk [vmem:[#allocation3 + $0x26a] sm:$0x3] %vm141_vm4, %v14588_v15 }
 0x441   :  { %v3668_v36 = vpop.permute.xlu1 %3667  ;;  %v3905_v47 = vld [vmem:[#allocation4 + $0x58] sm:$0xff]  ;;  %208 = vst.msk [vmem:[#allocation3 + $0x282] sm:$0x3] %vm141_vm4, %v14588_v15  ;;  %209 = vst.msk [vmem:[#allocation3 + $0x29a] sm:$0x3] %vm141_vm4, %v14588_v15 }
 0x442   :  { %3845 = vst.msk [vmem:[#allocation4 + $0x78] sm:$0xff] %vm3829_vm15, %v3668_v36  ;;  %9812 = vmatmul.mubr.msk.f32.gmra.mrb[10].mxu0 %vm3970_vm2, %v3905_v47  ;;  %v3674_v43 = vpop.permute.xlu0 %3673  ;;  %v3908_v60 = vld [vmem:[#allocation4 + $0x70] sm:$0xff] }
 0x443   :  { %9814 = vmatprep.mubr.msk.f32.mxu0 %vm3970_vm2, %v3906_v40  ;;  %3848 = vst.msk [vmem:[#allocation4 + $0x90] sm:$0xff] %vm3829_vm15, %v3674_v43 }
 0x444   :  { %210 = vst.msk [vmem:[#allocation3 + $0x2b2] sm:$0x3] %vm141_vm4, %v14588_v15  ;;  %211 = vst.msk [vmem:[#allocation3 + $0x2ca] sm:$0x3] %vm141_vm4, %v14588_v15 }
 0x445   :  { %v3672_v48 = vpop.permute.xlu1 %3671  ;;  %v3907_v6 = vld [vmem:[#allocation4 + $0x68] sm:$0xff]  ;;  %212 = vst.msk [vmem:[#allocation3 + $0x2e2] sm:$0x3] %vm141_vm4, %v14588_v15  ;;  %213 = vst.msk [vmem:[#allocation3 + $0x2fa] sm:$0x3] %vm141_vm4, %v14588_v15 }
 0x446   :  { %3847 = vst.msk [vmem:[#allocation4 + $0x88] sm:$0xff] %vm3829_vm15, %v3672_v48  ;;  %9815 = vmatmul.mubr.msk.f32.gmra.mrb[12].mxu0 %vm3970_vm2, %v3907_v6  ;;  %v3678_v1 = vpop.permute.xlu0 %3677  ;;  %v3910_v12 = vld [vmem:[#allocation4 + $0x80] sm:$0xff] }
 0x447   :  { %9817 = vmatprep.mubr.msk.f32.mxu0 %vm3970_vm2, %v3908_v60  ;;  %3850 = vst.msk [vmem:[#allocation4 + $0xa0] sm:$0xff] %vm3829_vm15, %v3678_v1  ;;  %v3572_v60 = vld [vmem:[#allocation2 + $0x352] sm:$0xff] }
 0x448   :  { %3763 = vrot.lane.b32.xlu1 %v3572_v60, %s10225_s17  ;;  %214 = vst.msk [vmem:[#allocation3 + $0x312] sm:$0x3] %vm141_vm4, %v14588_v15  ;;  %215 = vst.msk [vmem:[#allocation3 + $0x32a] sm:$0x3] %vm141_vm4, %v14588_v15 }
 0x449   :  { %v3676_v8 = vpop.permute.xlu1 %3675  ;;  %v3909_v45 = vld [vmem:[#allocation4 + $0x78] sm:$0xff]  ;;  %216 = vst.msk [vmem:[#allocation3 + $0x342] sm:$0x3] %vm141_vm4, %v14588_v15  ;;  %217 = vst.msk [vmem:[#allocation3 + $0x35a] sm:$0x3] %vm141_vm4, %v14588_v15 }
 0x44a   :  { %3849 = vst.msk [vmem:[#allocation4 + $0x98] sm:$0xff] %vm3829_vm15, %v3676_v8  ;;  %9818 = vmatmul.mubr.msk.f32.gmra.mrb[14].mxu0 %vm3970_vm2, %v3909_v45  ;;  %v3682_v30 = vpop.permute.xlu0 %3681  ;;  %v3912_v19 = vld [vmem:[#allocation4 + $0x90] sm:$0xff] }
 0x44b   :  { %9820 = vmatprep.mubr.msk.f32.mxu0 %vm3970_vm2, %v3910_v12  ;;  %3852 = vst.msk [vmem:[#allocation4 + $0xb0] sm:$0xff] %vm3829_vm15, %v3682_v30  ;;  %v4938_v45 = vld [vmem:[#allocation3 + $0xa] sm:$0xff]  ;;  %v12290_v30 = vld [vmem:[#allocation3 + $0x2] sm:$0xff] }
 0x44c   :  { %5067 = vrot.lane.b32.xlu1 %v4938_v45, %s10219_s3  ;;  %218 = vst.msk [vmem:[#allocation3 + $0x372] sm:$0x3] %vm141_vm4, %v14588_v15  ;;  %219 = vst.msk [vmem:[#allocation3 + $0x38a] sm:$0x3] %vm141_vm4, %v14588_v15  ;;  %5065 = vrot.lane.b32.xlu0 %v12290_v30, %s10219_s3 }
 0x44d   :  { %v3680_v16 = vpop.permute.xlu1 %3679  ;;  %v3911_v2 = vld [vmem:[#allocation4 + $0x88] sm:$0xff]  ;;  %220 = vst.msk [vmem:[#allocation3 + $0x3a2] sm:$0x3] %vm141_vm4, %v14588_v15  ;;  %221 = vst.msk [vmem:[#allocation3 + $0x3ba] sm:$0x3] %vm141_vm4, %v14588_v15 }
 0x44e   :  { %3851 = vst.msk [vmem:[#allocation4 + $0xa8] sm:$0xff] %vm3829_vm15, %v3680_v16  ;;  %9821 = vmatmul.mubr.msk.f32.gmra.mrb[16].mxu0 %vm3970_vm2, %v3911_v2  ;;  %v3686_v39 = vpop.permute.xlu0 %3685  ;;  %v3914_v37 = vld [vmem:[#allocation4 + $0xa0] sm:$0xff] }
 0x44f   :  { %9823 = vmatprep.mubr.msk.f32.mxu0 %vm3970_vm2, %v3912_v19  ;;  %3854 = vst.msk [vmem:[#allocation4 + $0xc0] sm:$0xff] %vm3829_vm15, %v3686_v39 }
 0x451   :  { %v3684_v11 = vpop.permute.xlu1 %3683  ;;  %v3913_v32 = vld [vmem:[#allocation4 + $0x98] sm:$0xff] }
 0x452   :  { %3853 = vst.msk [vmem:[#allocation4 + $0xb8] sm:$0xff] %vm3829_vm15, %v3684_v11  ;;  %9824 = vmatmul.mubr.msk.f32.gmra.mrb[18].mxu0 %vm3970_vm2, %v3913_v32  ;;  %v3690_v44 = vpop.permute.xlu0 %3689  ;;  %v3916_v4 = vld [vmem:[#allocation4 + $0xb0] sm:$0xff]  ;;  %v4939_v11 = vld [vmem:[#allocation3 + $0x1a] sm:$0xff] }
 0x453   :  { %9826 = vmatprep.mubr.msk.f32.mxu0 %vm3970_vm2, %v3914_v37  ;;  %3856 = vst.msk [vmem:[#allocation4 + $0xd0] sm:$0xff] %vm3829_vm15, %v3690_v44  ;;  %v4940_v37 = vld [vmem:[#allocation3 + $0x22] sm:$0xff]  ;;  %5069 = vrot.lane.b32.xlu0 %v4939_v11, %s10219_s3 }
 0x454   :  { %5071 = vrot.lane.b32.xlu1 %v4940_v37, %s10219_s3 }
 0x455   :  { %v3688_v28 = vpop.permute.xlu1 %3687  ;;  %v3915_v55 = vld [vmem:[#allocation4 + $0xa8] sm:$0xff] }
 0x456   :  { %3855 = vst.msk [vmem:[#allocation4 + $0xc8] sm:$0xff] %vm3829_vm15, %v3688_v28  ;;  %9827 = vmatmul.mubr.msk.f32.gmra.mrb[20].mxu0 %vm3970_vm2, %v3915_v55  ;;  %v3694_v0 = vpop.permute.xlu0 %3693  ;;  %v3918_v17 = vld [vmem:[#allocation4 + $0xc0] sm:$0xff] }
 0x457   :  { %9829 = vmatprep.mubr.msk.f32.mxu0 %vm3970_vm2, %v3916_v4  ;;  %3858 = vst.msk [vmem:[#allocation4 + $0xe0] sm:$0xff] %vm3829_vm15, %v3694_v0 }
 0x459   :  { %v3692_v5 = vpop.permute.xlu1 %3691  ;;  %v3917_v38 = vld [vmem:[#allocation4 + $0xb8] sm:$0xff] }
 0x45a   :  { %3857 = vst.msk [vmem:[#allocation4 + $0xd8] sm:$0xff] %vm3829_vm15, %v3692_v5  ;;  %9830 = vmatmul.mubr.msk.f32.gmra.mrb[22].mxu0 %vm3970_vm2, %v3917_v38  ;;  %v3698_v23 = vpop.permute.xlu0 %3697  ;;  %v3920_v57 = vld [vmem:[#allocation4 + $0xd0] sm:$0xff] }
 0x45b   :  { %9832 = vmatprep.mubr.msk.f32.mxu0 %vm3970_vm2, %v3918_v17  ;;  %3860 = vst.msk [vmem:[#allocation4 + $0xf0] sm:$0xff] %vm3829_vm15, %v3698_v23 }
 0x45d   :  { %v3696_v42 = vpop.permute.xlu1 %3695  ;;  %v3919_v63 = vld [vmem:[#allocation4 + $0xc8] sm:$0xff] }
 0x45e   :  { %3859 = vst.msk [vmem:[#allocation4 + $0xe8] sm:$0xff] %vm3829_vm15, %v3696_v42  ;;  %9833 = vmatmul.mubr.msk.f32.gmra.mrb[24].mxu0 %vm3970_vm2, %v3919_v63  ;;  %v3702_v58 = vpop.permute.xlu0 %3701  ;;  %v3922_v14 = vld [vmem:[#allocation4 + $0xe0] sm:$0xff] }
 0x45f   :  { %9835 = vmatprep.mubr.msk.f32.mxu0 %vm3970_vm2, %v3920_v57  ;;  %3862 = vst.msk [vmem:[#allocation4 + $0x100] sm:$0xff] %vm3829_vm15, %v3702_v58 }
 0x461   :  { %v3700_v9 = vpop.permute.xlu1 %3699  ;;  %v3921_v27 = vld [vmem:[#allocation4 + $0xd8] sm:$0xff] }
 0x462   :  { %3861 = vst.msk [vmem:[#allocation4 + $0xf8] sm:$0xff] %vm3829_vm15, %v3700_v9  ;;  %9836 = vmatmul.mubr.msk.f32.gmra.mrb[26].mxu0 %vm3970_vm2, %v3921_v27  ;;  %v3706_v46 = vpop.permute.xlu0 %3705  ;;  %v3924_v31 = vld [vmem:[#allocation4 + $0xf0] sm:$0xff] }
 0x463   :  { %9838 = vmatprep.mubr.msk.f32.mxu0 %vm3970_vm2, %v3922_v14  ;;  %3864 = vst.msk [vmem:[#allocation4 + $0x110] sm:$0xff] %vm3829_vm15, %v3706_v46 }
 0x465   :  { %v3704_v61 = vpop.permute.xlu1 %3703  ;;  %v3923_v51 = vld [vmem:[#allocation4 + $0xe8] sm:$0xff] }
 0x466   :  { %3863 = vst.msk [vmem:[#allocation4 + $0x108] sm:$0xff] %vm3829_vm15, %v3704_v61  ;;  %9839 = vmatmul.mubr.msk.f32.gmra.mrb[28].mxu0 %vm3970_vm2, %v3923_v51  ;;  %v3710_v20 = vpop.permute.xlu0 %3709  ;;  %v3926_v62 = vld [vmem:[#allocation4 + $0x100] sm:$0xff] }
 0x467   :  { %9841 = vmatprep.mubr.msk.f32.mxu0 %vm3970_vm2, %v3924_v31  ;;  %3866 = vst.msk [vmem:[#allocation4 + $0x120] sm:$0xff] %vm3829_vm15, %v3710_v20 }
 0x469   :  { %v3708_v49 = vpop.permute.xlu1 %3707  ;;  %v3925_v29 = vld [vmem:[#allocation4 + $0xf8] sm:$0xff] }
 0x46a   :  { %3865 = vst.msk [vmem:[#allocation4 + $0x118] sm:$0xff] %vm3829_vm15, %v3708_v49  ;;  %9842 = vmatmul.mubr.msk.f32.gmra.mrb[30].mxu0 %vm3970_vm2, %v3925_v29  ;;  %v3714_v56 = vpop.permute.xlu0 %3713  ;;  %v3928_v50 = vld [vmem:[#allocation4 + $0x110] sm:$0xff]  ;;  %v4809_v49 = vld [vmem:[#allocation3] sm:$0xff]  ;;  %v4810_v29 = vld [vmem:[#allocation3 + $0x8] sm:$0xff] }
 0x46b   :  { %9844 = vmatprep.mubr.msk.f32.mxu0 %vm3970_vm2, %v3926_v62  ;;  %3868 = vst.msk [vmem:[#allocation4 + $0x130] sm:$0xff] %vm3829_vm15, %v3714_v56 }
 0x46c   :  { %4873 = vst.msk [vmem:[#allocation5] sm:$0xff] %vm114_vm1, %v4809_v49  ;;  %4874 = vst.msk [vmem:[#allocation5 + $0x8] sm:$0xff] %vm114_vm1, %v4810_v29 }
 0x46d   :  { %v3712_v18 = vpop.permute.xlu1 %3711  ;;  %v3927_v59 = vld [vmem:[#allocation4 + $0x108] sm:$0xff] }
 0x46e   :  { %3867 = vst.msk [vmem:[#allocation4 + $0x128] sm:$0xff] %vm3829_vm15, %v3712_v18  ;;  %9845 = vmatmul.mubr.msk.f32.gmra.mrb[32].mxu0 %vm3970_vm2, %v3927_v59  ;;  %v3718_v35 = vpop.permute.xlu0 %3717  ;;  %v3930_v10 = vld [vmem:[#allocation4 + $0x120] sm:$0xff] }
 0x46f   :  { %9847 = vmatprep.mubr.msk.f32.mxu0 %vm3970_vm2, %v3928_v50  ;;  %3870 = vst.msk [vmem:[#allocation4 + $0x140] sm:$0xff] %vm3829_vm15, %v3718_v35  ;;  %v4812_v18 = vld [vmem:[#allocation3 + $0x20] sm:$0xff]  ;;  %v4811_v35 = vld [vmem:[#allocation3 + $0x18] sm:$0xff] }
 0x470   :  { %4876 = vst.msk [vmem:[#allocation5 + $0x18] sm:$0xff] %vm114_vm1, %v4812_v18  ;;  %4875 = vst.msk [vmem:[#allocation5 + $0x10] sm:$0xff] %vm114_vm1, %v4811_v35 }
 0x471   :  { %v3716_v25 = vpop.permute.xlu1 %3715  ;;  %v3929_v7 = vld [vmem:[#allocation4 + $0x118] sm:$0xff] }
 0x472   :  { %3869 = vst.msk [vmem:[#allocation4 + $0x138] sm:$0xff] %vm3829_vm15, %v3716_v25  ;;  %9848 = vmatmul.mubr.msk.f32.gmra.mrb[34].mxu0 %vm3970_vm2, %v3929_v7  ;;  %v3722_v41 = vpop.permute.xlu0 %3721  ;;  %v3932_v13 = vld [vmem:[#allocation4 + $0x130] sm:$0xff]  ;;  %v12495_v7 = vld [vmem:[%s14539_s5] ss:$0 sm:$0xff] }
 0x473   :  { %9850 = vmatprep.mubr.msk.f32.mxu0 %vm3970_vm2, %v3930_v10  ;;  %3872 = vst.msk [vmem:[#allocation4 + $0x150] sm:$0xff] %vm3829_vm15, %v3722_v41 }
 0x475   :  { %v3720_v33 = vpop.permute.xlu1 %3719  ;;  %v3931_v3 = vld [vmem:[#allocation4 + $0x128] sm:$0xff] }
 0x476   :  { %3871 = vst.msk [vmem:[#allocation4 + $0x148] sm:$0xff] %vm3829_vm15, %v3720_v33  ;;  %9851 = vmatmul.mubr.msk.f32.gmra.mrb[36].mxu0 %vm3970_vm2, %v3931_v3  ;;  %v3726_v22 = vpop.permute.xlu0 %3725  ;;  %v3934_v26 = vld [vmem:[#allocation4 + $0x140] sm:$0xff] }
 0x477   :  { %9853 = vmatprep.mubr.msk.f32.mxu0 %vm3970_vm2, %v3932_v13  ;;  %3874 = vst.msk [vmem:[#allocation4 + $0x160] sm:$0xff] %vm3829_vm15, %v3726_v22 }
 0x479   :  { %v3724_v53 = vpop.permute.xlu1 %3723  ;;  %v3933_v52 = vld [vmem:[#allocation4 + $0x138] sm:$0xff] }
 0x47a   :  { %3873 = vst.msk [vmem:[#allocation4 + $0x158] sm:$0xff] %vm3829_vm15, %v3724_v53  ;;  %9854 = vmatmul.mubr.msk.f32.gmra.mrb[38].mxu0 %vm3970_vm2, %v3933_v52  ;;  %v3730_v21 = vpop.permute.xlu0 %3729  ;;  %v3936_v54 = vld [vmem:[#allocation4 + $0x150] sm:$0xff] }
 0x47b   :  { %9856 = vmatprep.mubr.msk.f32.mxu0 %vm3970_vm2, %v3934_v26  ;;  %3876 = vst.msk [vmem:[#allocation4 + $0x170] sm:$0xff] %vm3829_vm15, %v3730_v21 }
 0x47d   :  { %v3728_v34 = vpop.permute.xlu1 %3727  ;;  %v3935_v24 = vld [vmem:[#allocation4 + $0x148] sm:$0xff] }
 0x47e   :  { %3875 = vst.msk [vmem:[#allocation4 + $0x168] sm:$0xff] %vm3829_vm15, %v3728_v34  ;;  %9857 = vmatmul.mubr.msk.f32.gmra.mrb[40].mxu0 %vm3970_vm2, %v3935_v24  ;;  %v3734_v40 = vpop.permute.xlu0 %3733  ;;  %v3938_v36 = vld [vmem:[#allocation4 + $0x160] sm:$0xff] }
 0x47f   :  { %9859 = vmatprep.mubr.msk.f32.mxu0 %vm3970_vm2, %v3936_v54  ;;  %3878 = vst.msk [vmem:[#allocation4 + $0x180] sm:$0xff] %vm3829_vm15, %v3734_v40 }
 0x481   :  { %v3732_v47 = vpop.permute.xlu1 %3731  ;;  %v3937_v43 = vld [vmem:[#allocation4 + $0x158] sm:$0xff] }
 0x482   :  { %3877 = vst.msk [vmem:[#allocation4 + $0x178] sm:$0xff] %vm3829_vm15, %v3732_v47  ;;  %9860 = vmatmul.mubr.msk.f32.gmra.mrb[42].mxu0 %vm3970_vm2, %v3937_v43  ;;  %v3738_v48 = vpop.permute.xlu0 %3737  ;;  %v3940_v6 = vld [vmem:[#allocation4 + $0x170] sm:$0xff] }
 0x483   :  { %9862 = vmatprep.mubr.msk.f32.mxu0 %vm3970_vm2, %v3938_v36  ;;  %3880 = vst.msk [vmem:[#allocation4 + $0x190] sm:$0xff] %vm3829_vm15, %v3738_v48 }
 0x485   :  { %v3736_v1 = vpop.permute.xlu1 %3735  ;;  %v3939_v12 = vld [vmem:[#allocation4 + $0x168] sm:$0xff] }
 0x486   :  { %3879 = vst.msk [vmem:[#allocation4 + $0x188] sm:$0xff] %vm3829_vm15, %v3736_v1  ;;  %9863 = vmatmul.mubr.msk.f32.gmra.mrb[44].mxu0 %vm3970_vm2, %v3939_v12  ;;  %v3742_v8 = vpop.permute.xlu0 %3741  ;;  %v3942_v19 = vld [vmem:[#allocation4 + $0x180] sm:$0xff] }
 0x487   :  { %9865 = vmatprep.mubr.msk.f32.mxu0 %vm3970_vm2, %v3940_v6  ;;  %3882 = vst.msk [vmem:[#allocation4 + $0x1a0] sm:$0xff] %vm3829_vm15, %v3742_v8 }
 0x489   :  { %v3740_v16 = vpop.permute.xlu1 %3739  ;;  %v3941_v2 = vld [vmem:[#allocation4 + $0x178] sm:$0xff] }
 0x48a   :  { %3881 = vst.msk [vmem:[#allocation4 + $0x198] sm:$0xff] %vm3829_vm15, %v3740_v16  ;;  %9866 = vmatmul.mubr.msk.f32.gmra.mrb[46].mxu0 %vm3970_vm2, %v3941_v2  ;;  %v3746_v39 = vpop.permute.xlu0 %3745  ;;  %v3944_v15 = vld [vmem:[#allocation4 + $0x190] sm:$0xff] }
 0x48b   :  { %9868 = vmatprep.mubr.msk.f32.mxu0 %vm3970_vm2, %v3942_v19  ;;  %3884 = vst.msk [vmem:[#allocation4 + $0x1b0] sm:$0xff] %vm3829_vm15, %v3746_v39 }
 0x48d   :  { %v3744_v32 = vpop.permute.xlu1 %3743  ;;  %v3943_v44 = vld [vmem:[#allocation4 + $0x188] sm:$0xff] }
 0x48e   :  { %3883 = vst.msk [vmem:[#allocation4 + $0x1a8] sm:$0xff] %vm3829_vm15, %v3744_v32  ;;  %9869 = vmatmul.mubr.msk.f32.gmra.mrb[48].mxu0 %vm3970_vm2, %v3943_v44  ;;  %v3750_v4 = vpop.permute.xlu0 %3749  ;;  %v3946_v28 = vld [vmem:[#allocation4 + $0x1a0] sm:$0xff] }
 0x48f   :  { %9871 = vmatprep.mubr.msk.f32.mxu0 %vm3970_vm2, %v3944_v15  ;;  %3886 = vst.msk [vmem:[#allocation4 + $0x1c0] sm:$0xff] %vm3829_vm15, %v3750_v4 }
 0x491   :  { %v3748_v55 = vpop.permute.xlu1 %3747  ;;  %v3945_v0 = vld [vmem:[#allocation4 + $0x198] sm:$0xff] }
 0x492   :  { %3885 = vst.msk [vmem:[#allocation4 + $0x1b8] sm:$0xff] %vm3829_vm15, %v3748_v55  ;;  %9872 = vmatmul.mubr.msk.f32.gmra.mrb[50].mxu0 %vm3970_vm2, %v3945_v0  ;;  %v3754_v17 = vpop.permute.xlu0 %3753  ;;  %v3948_v5 = vld [vmem:[#allocation4 + $0x1b0] sm:$0xff] }
 0x493   :  { %9874 = vmatprep.mubr.msk.f32.mxu0 %vm3970_vm2, %v3946_v28  ;;  %3888 = vst.msk [vmem:[#allocation4 + $0x1d0] sm:$0xff] %vm3829_vm15, %v3754_v17 }
 0x495   :  { %v3752_v38 = vpop.permute.xlu1 %3751  ;;  %v3947_v23 = vld [vmem:[#allocation4 + $0x1a8] sm:$0xff] }
 0x496   :  { %3887 = vst.msk [vmem:[#allocation4 + $0x1c8] sm:$0xff] %vm3829_vm15, %v3752_v38  ;;  %9875 = vmatmul.mubr.msk.f32.gmra.mrb[52].mxu0 %vm3970_vm2, %v3947_v23  ;;  %v3950_v57 = vld [vmem:[#allocation4 + $0x1c0] sm:$0xff]  ;;  %v3758_v27 = vpop.permute.xlu0 %3757 }
 0x497   :  { %9877 = vmatprep.mubr.msk.f32.mxu0 %vm3970_vm2, %v3948_v5  ;;  %3890 = vst.msk [vmem:[#allocation4 + $0x1e0] sm:$0xff] %vm3829_vm15, %v3758_v27 }
 0x499   :  { %v3756_v42 = vpop.permute.xlu1 %3755  ;;  %v3949_v63 = vld [vmem:[#allocation4 + $0x1b8] sm:$0xff] }
 0x49a   :  { %3889 = vst.msk [vmem:[#allocation4 + $0x1d8] sm:$0xff] %vm3829_vm15, %v3756_v42  ;;  %9878 = vmatmul.mubr.msk.f32.gmra.mrb[54].mxu0 %vm3970_vm2, %v3949_v63  ;;  %v3952_v58 = vld [vmem:[#allocation4 + $0x1d0] sm:$0xff]  ;;  %v3762_v31 = vpop.permute.xlu0 %3761 }
 0x49b   :  { %9880 = vmatprep.mubr.msk.f32.mxu0 %vm3970_vm2, %v3950_v57  ;;  %3892 = vst.msk [vmem:[#allocation4 + $0x1f0] sm:$0xff] %vm3829_vm15, %v3762_v31 }
 0x49d   :  { %v3951_v14 = vld [vmem:[#allocation4 + $0x1c8] sm:$0xff]  ;;  %v3760_v46 = vpop.permute.xlu1 %3759 }
 0x49e   :  { %9881 = vmatmul.mubr.msk.f32.gmra.mrb[56].mxu0 %vm3970_vm2, %v3951_v14  ;;  %3891 = vst.msk [vmem:[#allocation4 + $0x1e8] sm:$0xff] %vm3829_vm15, %v3760_v46  ;;  %v3954_v51 = vld [vmem:[#allocation4 + $0x1e0] sm:$0xff] }
 0x49f   :  { %9883 = vmatprep.mubr.msk.f32.mxu0 %vm3970_vm2, %v3952_v58 }
 0x4a1   :  { %v3953_v9 = vld [vmem:[#allocation4 + $0x1d8] sm:$0xff] }
 0x4a2   :  { %9884 = vmatmul.mubr.msk.f32.gmra.mrb[58].mxu0 %vm3970_vm2, %v3953_v9  ;;  %v3956_v50 = vld [vmem:[#allocation4 + $0x1f0] sm:$0xff] }
 0x4a3   :  { %9886 = vmatprep.mubr.msk.f32.mxu0 %vm3970_vm2, %v3954_v51 }
 0x4a5   :  { %v3955_v20 = vld [vmem:[#allocation4 + $0x1e8] sm:$0xff] }
 0x4a6   :  { %9887 = vmatmul.mubr.msk.f32.gmra.mrb[60].mxu0 %vm3970_vm2, %v3955_v20 }
 0x4a7   :  { %9889 = vmatprep.mubr.msk.f32.mxu0 %vm3970_vm2, %v3956_v50 }
 0x4ba   :  { %v3764_v61 = vpop.permute.xlu1 %3763 }
 0x4bb   :  { %3893 = vst.msk [vmem:[#allocation4 + $0x1f8] sm:$0xff] %vm3829_vm15, %v3764_v61 }
 0x4be   :  { %v5068_v62 = vpop.permute.xlu1 %5067  ;;  %v5066_v56 = vpop.permute.xlu0 %5065 }
 0x4bf   :  { %5258 = vst.msk [vmem:[#allocation5] sm:$0xff] %vm5257_vm5, %v5066_v56  ;;  %5259 = vst.msk [vmem:[#allocation5 + $0x8] sm:$0xff] %vm5257_vm5, %v5068_v62 }
 0x4c2   :  { %v3957_v59 = vld [vmem:[#allocation4 + $0x1f8] sm:$0xff] }
 0x4c3   :  { %9890 = vmatmul.mubr.msk.f32.gmra.mrb[62].mxu0 %vm3970_vm2, %v3957_v59 }
 0x4c5   :  { %v5070_v25 = vpop.permute.xlu0 %5069 }
 0x4c6   :  { %v5072_v10 = vpop.permute.xlu1 %5071  ;;  %5260 = vst.msk [vmem:[#allocation5 + $0x10] sm:$0xff] %vm5257_vm5, %v5070_v25 }
 0x4c7   :  { %5261 = vst.msk [vmem:[#allocation5 + $0x18] sm:$0xff] %vm5257_vm5, %v5072_v10 }
 0x501   :  { %v9798_v41 = vpop.f32.mrb[0].mxu0 }
 0x502   :  { %v4239_v13 = vadd.f32 %v9798_v41, %v12495_v7  ;;  %v4233_v33 = vpop.f32.mrb[1].mxu0 }
 0x503   :  { %v4234_v3 = vadd.f32 %v12495_v7, %v4233_v33 }
 0x504   :  { %vm4553_vm6 = vcmp.ge.f32.partialorder %v4239_v13, 0.0  ;;  %v4617_v22 = vmul.f32 0.1, %v4239_v13 }
 0x505   :  { %vm4552_vm7 = vcmp.ge.f32.partialorder %v4234_v3, 0.0  ;;  %v4616_v26 = vmul.f32 0.1, %v4234_v3  ;;  %v9801_v53 = vpop.f32.mrb[2].mxu0 }
 0x506   :  { %v4681_v52 = vsel %vm4553_vm6, %v4239_v13, %v4617_v22  ;;  %v4249_v21 = vadd.f32 %v9801_v53, %v12495_v7  ;;  %v4243_v54 = vpop.f32.mrb[3].mxu0 }
 0x507   :  { %4746 = vst.msk [vmem:[#allocation3 + $0x3a] sm:$0xff] %vm114_vm1, %v4681_v52  ;;  %v4680_v34 = vsel %vm4552_vm7, %v4234_v3, %v4616_v26  ;;  %v4244_v24 = vadd.f32 %v12495_v7, %v4243_v54 }
 0x508   :  { %4745 = vst.msk [vmem:[#allocation3 + $0x32] sm:$0xff] %vm114_vm1, %v4680_v34  ;;  %vm4555_vm8 = vcmp.ge.f32.partialorder %v4249_v21, 0.0  ;;  %v4619_v40 = vmul.f32 0.1, %v4249_v21 }
 0x509   :  { %vm4554_vm9 = vcmp.ge.f32.partialorder %v4244_v24, 0.0  ;;  %v4618_v36 = vmul.f32 0.1, %v4244_v24  ;;  %v9804_v47 = vpop.f32.mrb[4].mxu0 }
 0x50a   :  { %v4683_v43 = vsel %vm4555_vm8, %v4249_v21, %v4619_v40  ;;  %v4259_v60 = vadd.f32 %v9804_v47, %v12495_v7  ;;  %v4253_v48 = vpop.f32.mrb[5].mxu0 }
 0x50b   :  { %4748 = vst.msk [vmem:[#allocation3 + $0x52] sm:$0xff] %vm114_vm1, %v4683_v43  ;;  %v4682_v6 = vsel %vm4554_vm9, %v4244_v24, %v4618_v36  ;;  %v4254_v1 = vadd.f32 %v12495_v7, %v4253_v48 }
 0x50c   :  { %4747 = vst.msk [vmem:[#allocation3 + $0x4a] sm:$0xff] %vm114_vm1, %v4682_v6  ;;  %vm4557_vm10 = vcmp.ge.f32.partialorder %v4259_v60, 0.0  ;;  %v4621_v12 = vmul.f32 0.1, %v4259_v60 }
 0x50d   :  { %vm4556_vm11 = vcmp.ge.f32.partialorder %v4254_v1, 0.0  ;;  %v4620_v8 = vmul.f32 0.1, %v4254_v1  ;;  %v9807_v45 = vpop.f32.mrb[6].mxu0 }
 0x50e   :  { %v4685_v30 = vsel %vm4557_vm10, %v4259_v60, %v4621_v12  ;;  %v4269_v19 = vadd.f32 %v9807_v45, %v12495_v7  ;;  %v4263_v16 = vpop.f32.mrb[7].mxu0  ;;  %v4942_v2 = vld [vmem:[#allocation3 + $0x3a] sm:$0xff] }
 0x50f   :  { %4750 = vst.msk [vmem:[#allocation3 + $0x6a] sm:$0xff] %vm114_vm1, %v4685_v30  ;;  %v4684_v39 = vsel %vm4556_vm11, %v4254_v1, %v4620_v8  ;;  %v4264_v37 = vadd.f32 %v12495_v7, %v4263_v16  ;;  %5075 = vrot.lane.b32.xlu1 %v4942_v2, %s10219_s3  ;;  %v4941_v11 = vld [vmem:[#allocation3 + $0x32] sm:$0xff] }
 0x510   :  { %v12512_v15 = vld [vmem:[#allocation3 + $0x38] sm:$0xff]  ;;  %v12514_v32 = vld [vmem:[#allocation3 + $0x30] sm:$0xff]  ;;  %4749 = vst.msk [vmem:[#allocation3 + $0x62] sm:$0xff] %vm114_vm1, %v4684_v39  ;;  %vm4559_vm12 = vcmp.ge.f32.partialorder %v4269_v19, 0.0  ;;  %v4623_v44 = vmul.f32 0.1, %v4269_v19  ;;  %5073 = vrot.lane.b32.xlu0 %v4941_v11, %s10219_s3 }
 0x511   :  { %4878 = vst.msk [vmem:[#allocation5 + $0x28] sm:$0xff] %vm114_vm1, %v12512_v15  ;;  %4877 = vst.msk [vmem:[#allocation5 + $0x20] sm:$0xff] %vm114_vm1, %v12514_v32  ;;  %vm4558_vm13 = vcmp.ge.f32.partialorder %v4264_v37, 0.0  ;;  %v4622_v4 = vmul.f32 0.1, %v4264_v37  ;;  %v9810_v28 = vpop.f32.mrb[8].mxu0 }
 0x512   :  { %v4687_v55 = vsel %vm4559_vm12, %v4269_v19, %v4623_v44  ;;  %v4279_v0 = vadd.f32 %v9810_v28, %v12495_v7  ;;  %v4273_v17 = vpop.f32.mrb[9].mxu0  ;;  %v4944_v5 = vld [vmem:[#allocation3 + $0x52] sm:$0xff] }
 0x513   :  { %4752 = vst.msk [vmem:[#allocation3 + $0x82] sm:$0xff] %vm114_vm1, %v4687_v55  ;;  %v4686_v38 = vsel %vm4558_vm13, %v4264_v37, %v4622_v4  ;;  %v4274_v23 = vadd.f32 %v12495_v7, %v4273_v17  ;;  %5079 = vrot.lane.b32.xlu1 %v4944_v5, %s10219_s3  ;;  %v4943_v57 = vld [vmem:[#allocation3 + $0x4a] sm:$0xff] }
 0x514   :  { %v12526_v42 = vld [vmem:[#allocation3 + $0x50] sm:$0xff]  ;;  %v12528_v63 = vld [vmem:[#allocation3 + $0x48] sm:$0xff]  ;;  %4751 = vst.msk [vmem:[#allocation3 + $0x7a] sm:$0xff] %vm114_vm1, %v4686_v38  ;;  %vm4561_vm15 = vcmp.ge.f32.partialorder %v4279_v0, 0.0  ;;  %v4625_v58 = vmul.f32 0.1, %v4279_v0  ;;  %5077 = vrot.lane.b32.xlu0 %v4943_v57, %s10219_s3 }
 0x515   :  { %4880 = vst.msk [vmem:[#allocation5 + $0x38] sm:$0xff] %vm114_vm1, %v12526_v42  ;;  %4879 = vst.msk [vmem:[#allocation5 + $0x30] sm:$0xff] %vm114_vm1, %v12528_v63  ;;  %vm4560_vm2 = vcmp.ge.f32.partialorder %v4274_v23, 0.0  ;;  %v4624_v14 = vmul.f32 0.1, %v4274_v23  ;;  %v9813_v9 = vpop.f32.mrb[10].mxu0 }
 0x516   :  { %v4689_v27 = vsel %vm4561_vm15, %v4279_v0, %v4625_v58  ;;  %v4289_v46 = vadd.f32 %v9813_v9, %v12495_v7  ;;  %v4283_v31 = vpop.f32.mrb[11].mxu0  ;;  %v4946_v61 = vld [vmem:[#allocation3 + $0x6a] sm:$0xff] }
 0x517   :  { %4754 = vst.msk [vmem:[#allocation3 + $0x9a] sm:$0xff] %vm114_vm1, %v4689_v27  ;;  %v4688_v51 = vsel %vm4560_vm2, %v4274_v23, %v4624_v14  ;;  %v4284_v20 = vadd.f32 %v12495_v7, %v4283_v31  ;;  %5083 = vrot.lane.b32.xlu1 %v4946_v61, %s10219_s3  ;;  %v4945_v62 = vld [vmem:[#allocation3 + $0x62] sm:$0xff] }
 0x518   :  { %v12540_v49 = vld [vmem:[#allocation3 + $0x68] sm:$0xff]  ;;  %v12542_v29 = vld [vmem:[#allocation3 + $0x60] sm:$0xff]  ;;  %4753 = vst.msk [vmem:[#allocation3 + $0x92] sm:$0xff] %vm114_vm1, %v4688_v51  ;;  %vm4563_vm3 = vcmp.ge.f32.partialorder %v4289_v46, 0.0  ;;  %v4627_v56 = vmul.f32 0.1, %v4289_v46  ;;  %5081 = vrot.lane.b32.xlu0 %v4945_v62, %s10219_s3 }
 0x519   :  { %4882 = vst.msk [vmem:[#allocation5 + $0x48] sm:$0xff] %vm114_vm1, %v12540_v49  ;;  %4881 = vst.msk [vmem:[#allocation5 + $0x40] sm:$0xff] %vm114_vm1, %v12542_v29  ;;  %vm4562_vm4 = vcmp.ge.f32.partialorder %v4284_v20, 0.0  ;;  %v4626_v50 = vmul.f32 0.1, %v4284_v20  ;;  %v9816_v18 = vpop.f32.mrb[12].mxu0 }
 0x51a   :  { %v4691_v59 = vsel %vm4563_vm3, %v4289_v46, %v4627_v56  ;;  %v4299_v35 = vadd.f32 %v9816_v18, %v12495_v7  ;;  %v4293_v10 = vpop.f32.mrb[13].mxu0  ;;  %v4948_v25 = vld [vmem:[#allocation3 + $0x82] sm:$0xff] }
 0x51b   :  { %4756 = vst.msk [vmem:[#allocation3 + $0xb2] sm:$0xff] %vm114_vm1, %v4691_v59  ;;  %v4690_v41 = vsel %vm4562_vm4, %v4284_v20, %v4626_v50  ;;  %v4294_v13 = vadd.f32 %v12495_v7, %v4293_v10  ;;  %5087 = vrot.lane.b32.xlu1 %v4948_v25, %s10219_s3  ;;  %v4947_v33 = vld [vmem:[#allocation3 + $0x7a] sm:$0xff] }
 0x51c   :  { %v12554_v3 = vld [vmem:[#allocation3 + $0x80] sm:$0xff]  ;;  %v12556_v22 = vld [vmem:[#allocation3 + $0x78] sm:$0xff]  ;;  %4755 = vst.msk [vmem:[#allocation3 + $0xaa] sm:$0xff] %vm114_vm1, %v4690_v41  ;;  %vm4565_vm6 = vcmp.ge.f32.partialorder %v4299_v35, 0.0  ;;  %v4629_v26 = vmul.f32 0.1, %v4299_v35  ;;  %5085 = vrot.lane.b32.xlu0 %v4947_v33, %s10219_s3 }
 0x51d   :  { %4884 = vst.msk [vmem:[#allocation5 + $0x58] sm:$0xff] %vm114_vm1, %v12554_v3  ;;  %4883 = vst.msk [vmem:[#allocation5 + $0x50] sm:$0xff] %vm114_vm1, %v12556_v22  ;;  %vm4564_vm7 = vcmp.ge.f32.partialorder %v4294_v13, 0.0  ;;  %v4628_v53 = vmul.f32 0.1, %v4294_v13  ;;  %v9819_v52 = vpop.f32.mrb[14].mxu0 }
 0x51e   :  { %v4693_v21 = vsel %vm4565_vm6, %v4299_v35, %v4629_v26  ;;  %v4309_v54 = vadd.f32 %v9819_v52, %v12495_v7  ;;  %v4303_v34 = vpop.f32.mrb[15].mxu0  ;;  %v4950_v24 = vld [vmem:[#allocation3 + $0x9a] sm:$0xff] }
 0x51f   :  { %4758 = vst.msk [vmem:[#allocation3 + $0xca] sm:$0xff] %vm114_vm1, %v4693_v21  ;;  %v4692_v40 = vsel %vm4564_vm7, %v4294_v13, %v4628_v53  ;;  %v4304_v36 = vadd.f32 %v12495_v7, %v4303_v34  ;;  %5091 = vrot.lane.b32.xlu1 %v4950_v24, %s10219_s3  ;;  %v4949_v47 = vld [vmem:[#allocation3 + $0x92] sm:$0xff] }
 0x520   :  { %v12568_v43 = vld [vmem:[#allocation3 + $0x98] sm:$0xff]  ;;  %v12570_v60 = vld [vmem:[#allocation3 + $0x90] sm:$0xff]  ;;  %4757 = vst.msk [vmem:[#allocation3 + $0xc2] sm:$0xff] %vm114_vm1, %v4692_v40  ;;  %vm4567_vm8 = vcmp.ge.f32.partialorder %v4309_v54, 0.0  ;;  %v4631_v48 = vmul.f32 0.1, %v4309_v54  ;;  %5089 = vrot.lane.b32.xlu0 %v4949_v47, %s10219_s3 }
 0x521   :  { %4886 = vst.msk [vmem:[#allocation5 + $0x68] sm:$0xff] %vm114_vm1, %v12568_v43  ;;  %4885 = vst.msk [vmem:[#allocation5 + $0x60] sm:$0xff] %vm114_vm1, %v12570_v60  ;;  %vm4566_vm9 = vcmp.ge.f32.partialorder %v4304_v36, 0.0  ;;  %v4630_v6 = vmul.f32 0.1, %v4304_v36  ;;  %v9822_v1 = vpop.f32.mrb[16].mxu0 }
 0x522   :  { %v4695_v12 = vsel %vm4567_vm8, %v4309_v54, %v4631_v48  ;;  %v4319_v8 = vadd.f32 %v9822_v1, %v12495_v7  ;;  %v4313_v45 = vpop.f32.mrb[17].mxu0  ;;  %v4952_v30 = vld [vmem:[#allocation3 + $0xb2] sm:$0xff] }
 0x523   :  { %4760 = vst.msk [vmem:[#allocation3 + $0xe2] sm:$0xff] %vm114_vm1, %v4695_v12  ;;  %v4694_v19 = vsel %vm4566_vm9, %v4304_v36, %v4630_v6  ;;  %v4314_v16 = vadd.f32 %v12495_v7, %v4313_v45  ;;  %5095 = vrot.lane.b32.xlu1 %v4952_v30, %s10219_s3  ;;  %v4951_v2 = vld [vmem:[#allocation3 + $0xaa] sm:$0xff] }
 0x524   :  { %v12582_v39 = vld [vmem:[#allocation3 + $0xb0] sm:$0xff]  ;;  %v12584_v37 = vld [vmem:[#allocation3 + $0xa8] sm:$0xff]  ;;  %4759 = vst.msk [vmem:[#allocation3 + $0xda] sm:$0xff] %vm114_vm1, %v4694_v19  ;;  %vm4569_vm10 = vcmp.ge.f32.partialorder %v4319_v8, 0.0  ;;  %v4633_v11 = vmul.f32 0.1, %v4319_v8  ;;  %5093 = vrot.lane.b32.xlu0 %v4951_v2, %s10219_s3 }
 0x525   :  { %4888 = vst.msk [vmem:[#allocation5 + $0x78] sm:$0xff] %vm114_vm1, %v12582_v39  ;;  %4887 = vst.msk [vmem:[#allocation5 + $0x70] sm:$0xff] %vm114_vm1, %v12584_v37  ;;  %vm4568_vm11 = vcmp.ge.f32.partialorder %v4314_v16, 0.0  ;;  %v4632_v44 = vmul.f32 0.1, %v4314_v16  ;;  %v9825_v4 = vpop.f32.mrb[18].mxu0 }
 0x526   :  { %v4697_v28 = vsel %vm4569_vm10, %v4319_v8, %v4633_v11  ;;  %v4329_v55 = vadd.f32 %v9825_v4, %v12495_v7  ;;  %v4323_v0 = vpop.f32.mrb[19].mxu0  ;;  %v4954_v17 = vld [vmem:[#allocation3 + $0xca] sm:$0xff] }
 0x527   :  { %4762 = vst.msk [vmem:[#allocation3 + $0xfa] sm:$0xff] %vm114_vm1, %v4697_v28  ;;  %v4696_v5 = vsel %vm4568_vm11, %v4314_v16, %v4632_v44  ;;  %v4324_v38 = vadd.f32 %v12495_v7, %v4323_v0  ;;  %5099 = vrot.lane.b32.xlu1 %v4954_v17, %s10219_s3  ;;  %v4953_v23 = vld [vmem:[#allocation3 + $0xc2] sm:$0xff] }
 0x528   :  { %v12596_v57 = vld [vmem:[#allocation3 + $0xc8] sm:$0xff]  ;;  %v12598_v58 = vld [vmem:[#allocation3 + $0xc0] sm:$0xff]  ;;  %4761 = vst.msk [vmem:[#allocation3 + $0xf2] sm:$0xff] %vm114_vm1, %v4696_v5  ;;  %vm4571_vm12 = vcmp.ge.f32.partialorder %v4329_v55, 0.0  ;;  %v4635_v14 = vmul.f32 0.1, %v4329_v55  ;;  %5097 = vrot.lane.b32.xlu0 %v4953_v23, %s10219_s3 }
 0x529   :  { %4890 = vst.msk [vmem:[#allocation5 + $0x88] sm:$0xff] %vm114_vm1, %v12596_v57  ;;  %4889 = vst.msk [vmem:[#allocation5 + $0x80] sm:$0xff] %vm114_vm1, %v12598_v58  ;;  %vm4570_vm13 = vcmp.ge.f32.partialorder %v4324_v38, 0.0  ;;  %v4634_v9 = vmul.f32 0.1, %v4324_v38  ;;  %v9828_v27 = vpop.f32.mrb[20].mxu0 }
 0x52a   :  { %v4699_v46 = vsel %vm4571_vm12, %v4329_v55, %v4635_v14  ;;  %v4339_v31 = vadd.f32 %v9828_v27, %v12495_v7  ;;  %v4333_v61 = vpop.f32.mrb[21].mxu0  ;;  %v4956_v51 = vld [vmem:[#allocation3 + $0xe2] sm:$0xff] }
 0x52b   :  { %4764 = vst.msk [vmem:[#allocation3 + $0x112] sm:$0xff] %vm114_vm1, %v4699_v46  ;;  %v4698_v20 = vsel %vm4570_vm13, %v4324_v38, %v4634_v9  ;;  %v4334_v62 = vadd.f32 %v12495_v7, %v4333_v61  ;;  %5103 = vrot.lane.b32.xlu1 %v4956_v51, %s10219_s3  ;;  %v4955_v56 = vld [vmem:[#allocation3 + $0xda] sm:$0xff]  ;;  %v4842_v14 = vld [vmem:[#allocation3 + $0x1e8] sm:$0xff] }
 0x52c   :  { %v12610_v50 = vld [vmem:[#allocation3 + $0xe0] sm:$0xff]  ;;  %v12612_v18 = vld [vmem:[#allocation3 + $0xd8] sm:$0xff]  ;;  %4763 = vst.msk [vmem:[#allocation3 + $0x10a] sm:$0xff] %vm114_vm1, %v4698_v20  ;;  %vm4573_vm15 = vcmp.ge.f32.partialorder %v4339_v31, 0.0  ;;  %v4637_v59 = vmul.f32 0.1, %v4339_v31  ;;  %5101 = vrot.lane.b32.xlu0 %v4955_v56, %s10219_s3 }
 0x52d   :  { %4892 = vst.msk [vmem:[#allocation5 + $0x98] sm:$0xff] %vm114_vm1, %v12610_v50  ;;  %4891 = vst.msk [vmem:[#allocation5 + $0x90] sm:$0xff] %vm114_vm1, %v12612_v18  ;;  %vm4572_vm2 = vcmp.ge.f32.partialorder %v4334_v62, 0.0  ;;  %v4636_v35 = vmul.f32 0.1, %v4334_v62  ;;  %v9831_v10 = vpop.f32.mrb[22].mxu0 }
 0x52e   :  { %v4701_v25 = vsel %vm4573_vm15, %v4339_v31, %v4637_v59  ;;  %v4349_v41 = vadd.f32 %v9831_v10, %v12495_v7  ;;  %v4343_v13 = vpop.f32.mrb[23].mxu0  ;;  %v4958_v33 = vld [vmem:[#allocation3 + $0xfa] sm:$0xff]  ;;  %4906 = vst.msk [vmem:[#allocation5 + $0x108] sm:$0xff] %vm114_vm1, %v4842_v14 }
 0x52f   :  { %4766 = vst.msk [vmem:[#allocation3 + $0x12a] sm:$0xff] %vm114_vm1, %v4701_v25  ;;  %v4700_v26 = vsel %vm4572_vm2, %v4334_v62, %v4636_v35  ;;  %v4344_v53 = vadd.f32 %v12495_v7, %v4343_v13  ;;  %5107 = vrot.lane.b32.xlu1 %v4958_v33, %s10219_s3  ;;  %v4957_v52 = vld [vmem:[#allocation3 + $0xf2] sm:$0xff]  ;;  %v4841_v20 = vld [vmem:[#allocation3 + $0x1e0] sm:$0xff] }
 0x530   :  { %v12624_v21 = vld [vmem:[#allocation3 + $0xf8] sm:$0xff]  ;;  %v12626_v54 = vld [vmem:[#allocation3 + $0xf0] sm:$0xff]  ;;  %4765 = vst.msk [vmem:[#allocation3 + $0x122] sm:$0xff] %vm114_vm1, %v4700_v26  ;;  %vm4575_vm3 = vcmp.ge.f32.partialorder %v4349_v41, 0.0  ;;  %v4639_v34 = vmul.f32 0.1, %v4349_v41  ;;  %5105 = vrot.lane.b32.xlu0 %v4957_v52, %s10219_s3 }
 0x531   :  { %4894 = vst.msk [vmem:[#allocation5 + $0xa8] sm:$0xff] %vm114_vm1, %v12624_v21  ;;  %4893 = vst.msk [vmem:[#allocation5 + $0xa0] sm:$0xff] %vm114_vm1, %v12626_v54  ;;  %vm4574_vm4 = vcmp.ge.f32.partialorder %v4344_v53, 0.0  ;;  %v4638_v24 = vmul.f32 0.1, %v4344_v53  ;;  %v9834_v40 = vpop.f32.mrb[24].mxu0 }
 0x532   :  { %v4703_v36 = vsel %vm4575_vm3, %v4349_v41, %v4639_v34  ;;  %v4359_v47 = vadd.f32 %v9834_v40, %v12495_v7  ;;  %v4353_v48 = vpop.f32.mrb[25].mxu0  ;;  %v4960_v6 = vld [vmem:[#allocation3 + $0x112] sm:$0xff]  ;;  %4905 = vst.msk [vmem:[#allocation5 + $0x100] sm:$0xff] %vm114_vm1, %v4841_v20  ;;  %v4844_v41 = vld [vmem:[#allocation3 + $0x200] sm:$0xff] }
 0x533   :  { %4768 = vst.msk [vmem:[#allocation3 + $0x142] sm:$0xff] %vm114_vm1, %v4703_v36  ;;  %v4702_v1 = vsel %vm4574_vm4, %v4344_v53, %v4638_v24  ;;  %v4354_v12 = vadd.f32 %v12495_v7, %v4353_v48  ;;  %5111 = vrot.lane.b32.xlu1 %v4960_v6, %s10219_s3  ;;  %v4959_v8 = vld [vmem:[#allocation3 + $0x10a] sm:$0xff]  ;;  %4908 = vst.msk [vmem:[#allocation5 + $0x118] sm:$0xff] %vm114_vm1, %v4844_v41  ;;  %v4843_v24 = vld [vmem:[#allocation3 + $0x1f8] sm:$0xff] }
 0x534   :  { %v12638_v45 = vld [vmem:[#allocation3 + $0x110] sm:$0xff]  ;;  %v12640_v30 = vld [vmem:[#allocation3 + $0x108] sm:$0xff]  ;;  %4767 = vst.msk [vmem:[#allocation3 + $0x13a] sm:$0xff] %vm114_vm1, %v4702_v1  ;;  %vm4577_vm6 = vcmp.ge.f32.partialorder %v4359_v47, 0.0  ;;  %v4641_v19 = vmul.f32 0.1, %v4359_v47  ;;  %5109 = vrot.lane.b32.xlu0 %v4959_v8, %s10219_s3 }
 0x535   :  { %4896 = vst.msk [vmem:[#allocation5 + $0xb8] sm:$0xff] %vm114_vm1, %v12638_v45  ;;  %4895 = vst.msk [vmem:[#allocation5 + $0xb0] sm:$0xff] %vm114_vm1, %v12640_v30  ;;  %vm4576_vm7 = vcmp.ge.f32.partialorder %v4354_v12, 0.0  ;;  %v4640_v16 = vmul.f32 0.1, %v4354_v12  ;;  %v9837_v2 = vpop.f32.mrb[26].mxu0 }
 0x536   :  { %v4705_v11 = vsel %vm4577_vm6, %v4359_v47, %v4641_v19  ;;  %v4369_v44 = vadd.f32 %v9837_v2, %v12495_v7  ;;  %v4363_v4 = vpop.f32.mrb[27].mxu0  ;;  %v4962_v28 = vld [vmem:[#allocation3 + $0x12a] sm:$0xff]  ;;  %4907 = vst.msk [vmem:[#allocation5 + $0x110] sm:$0xff] %vm114_vm1, %v4843_v24  ;;  %v4971_v41 = vld [vmem:[#allocation3 + $0x1fa] sm:$0xff] }
 0x537   :  { %4770 = vst.msk [vmem:[#allocation3 + $0x15a] sm:$0xff] %vm114_vm1, %v4705_v11  ;;  %v4704_v55 = vsel %vm4576_vm7, %v4354_v12, %v4640_v16  ;;  %v4364_v0 = vadd.f32 %v12495_v7, %v4363_v4  ;;  %5115 = vrot.lane.b32.xlu1 %v4962_v28, %s10219_s3  ;;  %v4961_v17 = vld [vmem:[#allocation3 + $0x122] sm:$0xff] }
 0x538   :  { %v12652_v5 = vld [vmem:[#allocation3 + $0x128] sm:$0xff]  ;;  %v12654_v38 = vld [vmem:[#allocation3 + $0x120] sm:$0xff]  ;;  %4769 = vst.msk [vmem:[#allocation3 + $0x152] sm:$0xff] %vm114_vm1, %v4704_v55  ;;  %vm4579_vm8 = vcmp.ge.f32.partialorder %v4369_v44, 0.0  ;;  %v4643_v23 = vmul.f32 0.1, %v4369_v44  ;;  %5113 = vrot.lane.b32.xlu0 %v4961_v17, %s10219_s3 }
 0x539   :  { %4898 = vst.msk [vmem:[#allocation5 + $0xc8] sm:$0xff] %vm114_vm1, %v12652_v5  ;;  %4897 = vst.msk [vmem:[#allocation5 + $0xc0] sm:$0xff] %vm114_vm1, %v12654_v38  ;;  %vm4578_vm9 = vcmp.ge.f32.partialorder %v4364_v0, 0.0  ;;  %v4642_v9 = vmul.f32 0.1, %v4364_v0  ;;  %v9840_v27 = vpop.f32.mrb[28].mxu0 }
 0x53a   :  { %v4707_v46 = vsel %vm4579_vm8, %v4369_v44, %v4643_v23  ;;  %v4379_v31 = vadd.f32 %v9840_v27, %v12495_v7  ;;  %v4373_v61 = vpop.f32.mrb[29].mxu0  ;;  %v4964_v51 = vld [vmem:[#allocation3 + $0x142] sm:$0xff]  ;;  %v4970_v23 = vld [vmem:[#allocation3 + $0x1ea] sm:$0xff] }
 0x53b   :  { %4772 = vst.msk [vmem:[#allocation3 + $0x172] sm:$0xff] %vm114_vm1, %v4707_v46  ;;  %v4706_v62 = vsel %vm4578_vm9, %v4364_v0, %v4642_v9  ;;  %v4374_v56 = vadd.f32 %v12495_v7, %v4373_v61  ;;  %5119 = vrot.lane.b32.xlu1 %v4964_v51, %s10219_s3  ;;  %v4963_v59 = vld [vmem:[#allocation3 + $0x13a] sm:$0xff]  ;;  %v4969_v27 = vld [vmem:[#allocation3 + $0x1e2] sm:$0xff] }
 0x53c   :  { %v12667_v35 = vld [vmem:[#allocation3 + $0x140] sm:$0xff]  ;;  %v12669_v10 = vld [vmem:[#allocation3 + $0x138] sm:$0xff]  ;;  %4771 = vst.msk [vmem:[#allocation3 + $0x16a] sm:$0xff] %vm114_vm1, %v4706_v62  ;;  %vm4581_vm10 = vcmp.ge.f32.partialorder %v4379_v31, 0.0  ;;  %v4645_v25 = vmul.f32 0.1, %v4379_v31  ;;  %5117 = vrot.lane.b32.xlu0 %v4963_v59, %s10219_s3 }
 0x53d   :  { %4900 = vst.msk [vmem:[#allocation5 + $0xd8] sm:$0xff] %vm114_vm1, %v12667_v35  ;;  %4899 = vst.msk [vmem:[#allocation5 + $0xd0] sm:$0xff] %vm114_vm1, %v12669_v10  ;;  %vm4580_vm11 = vcmp.ge.f32.partialorder %v4374_v56, 0.0  ;;  %v4644_v13 = vmul.f32 0.1, %v4374_v56  ;;  %v9843_v33 = vpop.f32.mrb[30].mxu0 }
 0x53e   :  { %v4709_v26 = vsel %vm4581_vm10, %v4379_v31, %v4645_v25  ;;  %v4389_v53 = vadd.f32 %v9843_v33, %v12495_v7  ;;  %v4383_v52 = vpop.f32.mrb[31].mxu0  ;;  %v4966_v34 = vld [vmem:[#allocation3 + $0x15a] sm:$0xff] }
 0x53f   :  { %4774 = vst.msk [vmem:[#allocation3 + $0x18a] sm:$0xff] %vm114_vm1, %v4709_v26  ;;  %v4708_v40 = vsel %vm4580_vm11, %v4374_v56, %v4644_v13  ;;  %v4384_v36 = vadd.f32 %v12495_v7, %v4383_v52  ;;  %5123 = vrot.lane.b32.xlu1 %v4966_v34, %s10219_s3  ;;  %v4965_v47 = vld [vmem:[#allocation3 + $0x152] sm:$0xff]  ;;  %v4972_v56 = vld [vmem:[#allocation3 + $0x202] sm:$0xff] }
 0x540   :  { %v12683_v48 = vld [vmem:[#allocation3 + $0x158] sm:$0xff]  ;;  %v12685_v6 = vld [vmem:[#allocation3 + $0x150] sm:$0xff]  ;;  %4773 = vst.msk [vmem:[#allocation3 + $0x182] sm:$0xff] %vm114_vm1, %v4708_v40  ;;  %vm4583_vm12 = vcmp.ge.f32.partialorder %v4389_v53, 0.0  ;;  %v4647_v1 = vmul.f32 0.1, %v4389_v53  ;;  %5121 = vrot.lane.b32.xlu0 %v4965_v47, %s10219_s3 }
 0x541   :  { %4902 = vst.msk [vmem:[#allocation5 + $0xe8] sm:$0xff] %vm114_vm1, %v12683_v48  ;;  %4901 = vst.msk [vmem:[#allocation5 + $0xe0] sm:$0xff] %vm114_vm1, %v12685_v6  ;;  %vm4582_vm13 = vcmp.ge.f32.partialorder %v4384_v36, 0.0  ;;  %v4646_v12 = vmul.f32 0.1, %v4384_v36  ;;  %v9846_v8 = vpop.f32.mrb[32].mxu0 }
 0x542   :  { %v4711_v19 = vsel %vm4583_vm12, %v4389_v53, %v4647_v1  ;;  %v4399_v16 = vadd.f32 %v9846_v8, %v12495_v7  ;;  %v4393_v2 = vpop.f32.mrb[33].mxu0  ;;  %v4968_v11 = vld [vmem:[#allocation3 + $0x172] sm:$0xff] }
 0x543   :  { %4776 = vst.msk [vmem:[#allocation3 + $0x1a2] sm:$0xff] %vm114_vm1, %v4711_v19  ;;  %v4710_v44 = vsel %vm4582_vm13, %v4384_v36, %v4646_v12  ;;  %v4394_v4 = vadd.f32 %v12495_v7, %v4393_v2  ;;  %5127 = vrot.lane.b32.xlu1 %v4968_v11, %s10219_s3  ;;  %v4967_v28 = vld [vmem:[#allocation3 + $0x16a] sm:$0xff] }
 0x544   :  { %v12698_v55 = vld [vmem:[#allocation3 + $0x170] sm:$0xff]  ;;  %v12700_v0 = vld [vmem:[#allocation3 + $0x168] sm:$0xff]  ;;  %4775 = vst.msk [vmem:[#allocation3 + $0x19a] sm:$0xff] %vm114_vm1, %v4710_v44  ;;  %vm4585_vm15 = vcmp.ge.f32.partialorder %v4399_v16, 0.0  ;;  %v4649_v17 = vmul.f32 0.1, %v4399_v16  ;;  %5125 = vrot.lane.b32.xlu0 %v4967_v28, %s10219_s3 }
 0x545   :  { %4904 = vst.msk [vmem:[#allocation5 + $0xf8] sm:$0xff] %vm114_vm1, %v12698_v55  ;;  %4903 = vst.msk [vmem:[#allocation5 + $0xf0] sm:$0xff] %vm114_vm1, %v12700_v0  ;;  %vm4584_vm2 = vcmp.ge.f32.partialorder %v4394_v4, 0.0  ;;  %v4648_v14 = vmul.f32 0.1, %v4394_v4  ;;  %v9849_v9 = vpop.f32.mrb[34].mxu0 }
 0x546   :  { %v4713_v46 = vsel %vm4585_vm15, %v4399_v16, %v4649_v17  ;;  %v4409_v31 = vadd.f32 %v9849_v9, %v12495_v7  ;;  %v4403_v61 = vpop.f32.mrb[35].mxu0 }
 0x547   :  { %4778 = vst.msk [vmem:[#allocation3 + $0x21a] sm:$0xff] %vm114_vm1, %v4713_v46  ;;  %v4712_v51 = vsel %vm4584_vm2, %v4394_v4, %v4648_v14  ;;  %v4404_v20 = vadd.f32 %v12495_v7, %v4403_v61  ;;  %5131 = vrot.lane.b32.xlu1 %v4970_v23, %s10219_s3 }
 0x548   :  { %4777 = vst.msk [vmem:[#allocation3 + $0x212] sm:$0xff] %vm114_vm1, %v4712_v51  ;;  %vm4587_vm3 = vcmp.ge.f32.partialorder %v4409_v31, 0.0  ;;  %v4651_v62 = vmul.f32 0.1, %v4409_v31  ;;  %5129 = vrot.lane.b32.xlu0 %v4969_v27, %s10219_s3 }
 0x549   :  { %vm4586_vm4 = vcmp.ge.f32.partialorder %v4404_v20, 0.0  ;;  %v4650_v59 = vmul.f32 0.1, %v4404_v20  ;;  %v9852_v25 = vpop.f32.mrb[36].mxu0 }
 0x54a   :  { %v4715_v13 = vsel %vm4587_vm3, %v4409_v31, %v4651_v62  ;;  %v4419_v33 = vadd.f32 %v9852_v25, %v12495_v7  ;;  %v4413_v26 = vpop.f32.mrb[37].mxu0 }
 0x54b   :  { %4780 = vst.msk [vmem:[#allocation3 + $0x232] sm:$0xff] %vm114_vm1, %v4715_v13  ;;  %v4714_v53 = vsel %vm4586_vm4, %v4404_v20, %v4650_v59  ;;  %v4414_v52 = vadd.f32 %v12495_v7, %v4413_v26  ;;  %5135 = vrot.lane.b32.xlu1 %v4972_v56, %s10219_s3 }
 0x54c   :  { %4779 = vst.msk [vmem:[#allocation3 + $0x22a] sm:$0xff] %vm114_vm1, %v4714_v53  ;;  %vm4589_vm6 = vcmp.ge.f32.partialorder %v4419_v33, 0.0  ;;  %v4653_v34 = vmul.f32 0.1, %v4419_v33  ;;  %5133 = vrot.lane.b32.xlu0 %v4971_v41, %s10219_s3 }
 0x54d   :  { %vm4588_vm7 = vcmp.ge.f32.partialorder %v4414_v52, 0.0  ;;  %v4652_v24 = vmul.f32 0.1, %v4414_v52  ;;  %v9855_v40 = vpop.f32.mrb[38].mxu0 }
 0x54e   :  { %v4717_v36 = vsel %vm4589_vm6, %v4419_v33, %v4653_v34  ;;  %v4429_v47 = vadd.f32 %v9855_v40, %v12495_v7  ;;  %v4423_v1 = vpop.f32.mrb[39].mxu0  ;;  %v4974_v12 = vld [vmem:[#allocation3 + $0x21a] sm:$0xff] }
 0x54f   :  { %4782 = vst.msk [vmem:[#allocation3 + $0x24a] sm:$0xff] %vm114_vm1, %v4717_v36  ;;  %v4716_v8 = vsel %vm4588_vm7, %v4414_v52, %v4652_v24  ;;  %v4424_v19 = vadd.f32 %v12495_v7, %v4423_v1  ;;  %5139 = vrot.lane.b32.xlu1 %v4974_v12, %s10219_s3  ;;  %v4973_v16 = vld [vmem:[#allocation3 + $0x212] sm:$0xff] }
 0x550   :  { %v12724_v2 = vld [vmem:[#allocation3 + $0x218] sm:$0xff]  ;;  %v12726_v11 = vld [vmem:[#allocation3 + $0x210] sm:$0xff]  ;;  %4781 = vst.msk [vmem:[#allocation3 + $0x242] sm:$0xff] %vm114_vm1, %v4716_v8  ;;  %vm4591_vm8 = vcmp.ge.f32.partialorder %v4429_v47, 0.0  ;;  %v4655_v44 = vmul.f32 0.1, %v4429_v47  ;;  %5137 = vrot.lane.b32.xlu0 %v4973_v16, %s10219_s3 }
 0x551   :  { %4910 = vst.msk [vmem:[#allocation5 + $0x128] sm:$0xff] %vm114_vm1, %v12724_v2  ;;  %4909 = vst.msk [vmem:[#allocation5 + $0x120] sm:$0xff] %vm114_vm1, %v12726_v11  ;;  %vm4590_vm9 = vcmp.ge.f32.partialorder %v4424_v19, 0.0  ;;  %v4654_v4 = vmul.f32 0.1, %v4424_v19  ;;  %v9858_v28 = vpop.f32.mrb[40].mxu0 }
 0x552   :  { %v4719_v17 = vsel %vm4591_vm8, %v4429_v47, %v4655_v44  ;;  %v4439_v23 = vadd.f32 %v9858_v28, %v12495_v7  ;;  %v4433_v14 = vpop.f32.mrb[41].mxu0  ;;  %v4976_v9 = vld [vmem:[#allocation3 + $0x232] sm:$0xff] }
 0x553   :  { %4784 = vst.msk [vmem:[#allocation3 + $0x262] sm:$0xff] %vm114_vm1, %v4719_v17  ;;  %v4718_v27 = vsel %vm4590_vm9, %v4424_v19, %v4654_v4  ;;  %v4434_v46 = vadd.f32 %v12495_v7, %v4433_v14  ;;  %5143 = vrot.lane.b32.xlu1 %v4976_v9, %s10219_s3  ;;  %v4975_v31 = vld [vmem:[#allocation3 + $0x22a] sm:$0xff] }
 0x554   :  { %v12738_v61 = vld [vmem:[#allocation3 + $0x230] sm:$0xff]  ;;  %v12740_v51 = vld [vmem:[#allocation3 + $0x228] sm:$0xff]  ;;  %4783 = vst.msk [vmem:[#allocation3 + $0x25a] sm:$0xff] %vm114_vm1, %v4718_v27  ;;  %vm4593_vm10 = vcmp.ge.f32.partialorder %v4439_v23, 0.0  ;;  %v4657_v20 = vmul.f32 0.1, %v4439_v23  ;;  %5141 = vrot.lane.b32.xlu0 %v4975_v31, %s10219_s3 }
 0x555   :  { %4912 = vst.msk [vmem:[#allocation5 + $0x138] sm:$0xff] %vm114_vm1, %v12738_v61  ;;  %4911 = vst.msk [vmem:[#allocation5 + $0x130] sm:$0xff] %vm114_vm1, %v12740_v51  ;;  %vm4592_vm11 = vcmp.ge.f32.partialorder %v4434_v46, 0.0  ;;  %v4656_v62 = vmul.f32 0.1, %v4434_v46  ;;  %v9861_v56 = vpop.f32.mrb[42].mxu0 }
 0x556   :  { %v4721_v59 = vsel %vm4593_vm10, %v4439_v23, %v4657_v20  ;;  %v4449_v25 = vadd.f32 %v9861_v56, %v12495_v7  ;;  %v4443_v41 = vpop.f32.mrb[43].mxu0  ;;  %v4978_v13 = vld [vmem:[#allocation3 + $0x24a] sm:$0xff] }
 0x557   :  { %4786 = vst.msk [vmem:[#allocation3 + $0x27a] sm:$0xff] %vm114_vm1, %v4721_v59  ;;  %v4720_v33 = vsel %vm4592_vm11, %v4434_v46, %v4656_v62  ;;  %v4444_v26 = vadd.f32 %v12495_v7, %v4443_v41  ;;  %5147 = vrot.lane.b32.xlu1 %v4978_v13, %s10219_s3  ;;  %v4977_v53 = vld [vmem:[#allocation3 + $0x242] sm:$0xff] }
 0x558   :  { %v12752_v52 = vld [vmem:[#allocation3 + $0x248] sm:$0xff]  ;;  %v12754_v34 = vld [vmem:[#allocation3 + $0x240] sm:$0xff]  ;;  %4785 = vst.msk [vmem:[#allocation3 + $0x272] sm:$0xff] %vm114_vm1, %v4720_v33  ;;  %vm4595_vm12 = vcmp.ge.f32.partialorder %v4449_v25, 0.0  ;;  %v4659_v24 = vmul.f32 0.1, %v4449_v25  ;;  %5145 = vrot.lane.b32.xlu0 %v4977_v53, %s10219_s3 }
 0x559   :  { %4914 = vst.msk [vmem:[#allocation5 + $0x148] sm:$0xff] %vm114_vm1, %v12752_v52  ;;  %4913 = vst.msk [vmem:[#allocation5 + $0x140] sm:$0xff] %vm114_vm1, %v12754_v34  ;;  %vm4594_vm13 = vcmp.ge.f32.partialorder %v4444_v26, 0.0  ;;  %v4658_v40 = vmul.f32 0.1, %v4444_v26  ;;  %v9864_v36 = vpop.f32.mrb[44].mxu0 }
 0x55a   :  { %v4723_v47 = vsel %vm4595_vm12, %v4449_v25, %v4659_v24  ;;  %v4459_v1 = vadd.f32 %v9864_v36, %v12495_v7  ;;  %v4453_v12 = vpop.f32.mrb[45].mxu0  ;;  %v4980_v8 = vld [vmem:[#allocation3 + $0x262] sm:$0xff] }
 0x55b   :  { %4788 = vst.msk [vmem:[#allocation3 + $0x292] sm:$0xff] %vm114_vm1, %v4723_v47  ;;  %v4722_v19 = vsel %vm4594_vm13, %v4444_v26, %v4658_v40  ;;  %v4454_v16 = vadd.f32 %v12495_v7, %v4453_v12  ;;  %5151 = vrot.lane.b32.xlu1 %v4980_v8, %s10219_s3  ;;  %v4979_v44 = vld [vmem:[#allocation3 + $0x25a] sm:$0xff] }
 0x55c   :  { %v12766_v4 = vld [vmem:[#allocation3 + $0x260] sm:$0xff]  ;;  %v12768_v28 = vld [vmem:[#allocation3 + $0x258] sm:$0xff]  ;;  %4787 = vst.msk [vmem:[#allocation3 + $0x28a] sm:$0xff] %vm114_vm1, %v4722_v19  ;;  %vm4597_vm15 = vcmp.ge.f32.partialorder %v4459_v1, 0.0  ;;  %v4661_v17 = vmul.f32 0.1, %v4459_v1  ;;  %5149 = vrot.lane.b32.xlu0 %v4979_v44, %s10219_s3 }
 0x55d   :  { %4916 = vst.msk [vmem:[#allocation5 + $0x158] sm:$0xff] %vm114_vm1, %v12766_v4  ;;  %4915 = vst.msk [vmem:[#allocation5 + $0x150] sm:$0xff] %vm114_vm1, %v12768_v28  ;;  %vm4596_vm2 = vcmp.ge.f32.partialorder %v4454_v16, 0.0  ;;  %v4660_v23 = vmul.f32 0.1, %v4454_v16  ;;  %v9867_v14 = vpop.f32.mrb[46].mxu0 }
 0x55e   :  { %v4725_v9 = vsel %vm4597_vm15, %v4459_v1, %v4661_v17  ;;  %v4469_v27 = vadd.f32 %v9867_v14, %v12495_v7  ;;  %v4463_v46 = vpop.f32.mrb[47].mxu0  ;;  %v4982_v31 = vld [vmem:[#allocation3 + $0x27a] sm:$0xff] }
 0x55f   :  { %4790 = vst.msk [vmem:[#allocation3 + $0x2aa] sm:$0xff] %vm114_vm1, %v4725_v9  ;;  %v4724_v20 = vsel %vm4596_vm2, %v4454_v16, %v4660_v23  ;;  %v4464_v62 = vadd.f32 %v12495_v7, %v4463_v46  ;;  %5155 = vrot.lane.b32.xlu1 %v4982_v31, %s10219_s3  ;;  %v4981_v56 = vld [vmem:[#allocation3 + $0x272] sm:$0xff] }
 0x560   :  { %v12780_v59 = vld [vmem:[#allocation3 + $0x278] sm:$0xff]  ;;  %v12782_v25 = vld [vmem:[#allocation3 + $0x270] sm:$0xff]  ;;  %4789 = vst.msk [vmem:[#allocation3 + $0x2a2] sm:$0xff] %vm114_vm1, %v4724_v20  ;;  %vm4599_vm3 = vcmp.ge.f32.partialorder %v4469_v27, 0.0  ;;  %v4663_v41 = vmul.f32 0.1, %v4469_v27  ;;  %5153 = vrot.lane.b32.xlu0 %v4981_v56, %s10219_s3 }
 0x561   :  { %4918 = vst.msk [vmem:[#allocation5 + $0x168] sm:$0xff] %vm114_vm1, %v12780_v59  ;;  %4917 = vst.msk [vmem:[#allocation5 + $0x160] sm:$0xff] %vm114_vm1, %v12782_v25  ;;  %vm4598_vm4 = vcmp.ge.f32.partialorder %v4464_v62, 0.0  ;;  %v4662_v13 = vmul.f32 0.1, %v4464_v62  ;;  %v9870_v33 = vpop.f32.mrb[48].mxu0 }
 0x562   :  { %v4727_v26 = vsel %vm4599_vm3, %v4469_v27, %v4663_v41  ;;  %v4479_v53 = vadd.f32 %v9870_v33, %v12495_v7  ;;  %v4473_v24 = vpop.f32.mrb[49].mxu0  ;;  %v4984_v40 = vld [vmem:[#allocation3 + $0x292] sm:$0xff] }
 0x563   :  { %4792 = vst.msk [vmem:[#allocation3 + $0x2c2] sm:$0xff] %vm114_vm1, %v4727_v26  ;;  %v4726_v36 = vsel %vm4598_vm4, %v4464_v62, %v4662_v13  ;;  %v4474_v47 = vadd.f32 %v12495_v7, %v4473_v24  ;;  %5159 = vrot.lane.b32.xlu1 %v4984_v40, %s10219_s3  ;;  %v4983_v1 = vld [vmem:[#allocation3 + $0x28a] sm:$0xff] }
 0x564   :  { %v12794_v12 = vld [vmem:[#allocation3 + $0x290] sm:$0xff]  ;;  %v12796_v8 = vld [vmem:[#allocation3 + $0x288] sm:$0xff]  ;;  %4791 = vst.msk [vmem:[#allocation3 + $0x2ba] sm:$0xff] %vm114_vm1, %v4726_v36  ;;  %vm4601_vm6 = vcmp.ge.f32.partialorder %v4479_v53, 0.0  ;;  %v4665_v19 = vmul.f32 0.1, %v4479_v53  ;;  %5157 = vrot.lane.b32.xlu0 %v4983_v1, %s10219_s3 }
 0x565   :  { %4920 = vst.msk [vmem:[#allocation5 + $0x178] sm:$0xff] %vm114_vm1, %v12794_v12  ;;  %4919 = vst.msk [vmem:[#allocation5 + $0x170] sm:$0xff] %vm114_vm1, %v12796_v8  ;;  %vm4600_vm7 = vcmp.ge.f32.partialorder %v4474_v47, 0.0  ;;  %v4664_v16 = vmul.f32 0.1, %v4474_v47  ;;  %v9873_v44 = vpop.f32.mrb[50].mxu0 }
 0x566   :  { %v4729_v17 = vsel %vm4601_vm6, %v4479_v53, %v4665_v19  ;;  %v4489_v23 = vadd.f32 %v9873_v44, %v12495_v7  ;;  %v4483_v14 = vpop.f32.mrb[51].mxu0  ;;  %v4986_v9 = vld [vmem:[#allocation3 + $0x2aa] sm:$0xff] }
 0x567   :  { %4794 = vst.msk [vmem:[#allocation3 + $0x2da] sm:$0xff] %vm114_vm1, %v4729_v17  ;;  %v4728_v27 = vsel %vm4600_vm7, %v4474_v47, %v4664_v16  ;;  %v4484_v46 = vadd.f32 %v12495_v7, %v4483_v14  ;;  %5163 = vrot.lane.b32.xlu1 %v4986_v9, %s10219_s3  ;;  %v4985_v31 = vld [vmem:[#allocation3 + $0x2a2] sm:$0xff] }
 0x568   :  { %v12808_v20 = vld [vmem:[#allocation3 + $0x2a8] sm:$0xff]  ;;  %v12810_v62 = vld [vmem:[#allocation3 + $0x2a0] sm:$0xff]  ;;  %4793 = vst.msk [vmem:[#allocation3 + $0x2d2] sm:$0xff] %vm114_vm1, %v4728_v27  ;;  %vm4603_vm8 = vcmp.ge.f32.partialorder %v4489_v23, 0.0  ;;  %v4667_v56 = vmul.f32 0.1, %v4489_v23  ;;  %5161 = vrot.lane.b32.xlu0 %v4985_v31, %s10219_s3 }
 0x569   :  { %4922 = vst.msk [vmem:[#allocation5 + $0x188] sm:$0xff] %vm114_vm1, %v12808_v20  ;;  %4921 = vst.msk [vmem:[#allocation5 + $0x180] sm:$0xff] %vm114_vm1, %v12810_v62  ;;  %vm4602_vm9 = vcmp.ge.f32.partialorder %v4484_v46, 0.0  ;;  %v4666_v41 = vmul.f32 0.1, %v4484_v46  ;;  %v9876_v13 = vpop.f32.mrb[52].mxu0 }
 0x56a   :  { %v4731_v33 = vsel %vm4603_vm8, %v4489_v23, %v4667_v56  ;;  %v4499_v26 = vadd.f32 %v9876_v13, %v12495_v7  ;;  %v4493_v53 = vpop.f32.mrb[53].mxu0  ;;  %v4988_v24 = vld [vmem:[#allocation3 + $0x2c2] sm:$0xff]  ;;  %v12835_v23 = vld [vmem:[%s14539_s5] ss:$0 sm:$0xff]  ;;  %s10226_s5 = smov 40  }
 0x56b   :  { %4796 = vst.msk [vmem:[#allocation3 + $0x2f2] sm:$0xff] %vm114_vm1, %v4731_v33  ;;  %v4730_v40 = vsel %vm4602_vm9, %v4484_v46, %v4666_v41  ;;  %v4494_v36 = vadd.f32 %v12495_v7, %v4493_v53  ;;  %5167 = vrot.lane.b32.xlu1 %v4988_v24, %s10219_s3  ;;  %v4987_v47 = vld [vmem:[#allocation3 + $0x2ba] sm:$0xff] }
 0x56c   :  { %v12822_v1 = vld [vmem:[#allocation3 + $0x2c0] sm:$0xff]  ;;  %v12824_v19 = vld [vmem:[#allocation3 + $0x2b8] sm:$0xff]  ;;  %4795 = vst.msk [vmem:[#allocation3 + $0x2ea] sm:$0xff] %vm114_vm1, %v4730_v40  ;;  %vm4605_vm10 = vcmp.ge.f32.partialorder %v4499_v26, 0.0  ;;  %v4669_v16 = vmul.f32 0.1, %v4499_v26  ;;  %5165 = vrot.lane.b32.xlu0 %v4987_v47, %s10219_s3 }
 0x56d   :  { %4924 = vst.msk [vmem:[#allocation5 + $0x198] sm:$0xff] %vm114_vm1, %v12822_v1  ;;  %4923 = vst.msk [vmem:[#allocation5 + $0x190] sm:$0xff] %vm114_vm1, %v12824_v19  ;;  %vm4604_vm11 = vcmp.ge.f32.partialorder %v4494_v36, 0.0  ;;  %v4668_v7 = vmul.f32 0.1, %v4494_v36  ;;  %v9879_v44 = vpop.f32.mrb[54].mxu0 }
 0x56e   :  { %v4733_v17 = vsel %vm4605_vm10, %v4499_v26, %v4669_v16  ;;  %v4509_v14 = vadd.f32 %v12835_v23, %v9879_v44  ;;  %v4503_v9 = vpop.f32.mrb[55].mxu0  ;;  %v4990_v27 = vld [vmem:[#allocation3 + $0x2da] sm:$0xff]  ;;  %vm5642_vm10 = vcmask 195712  }
 0x56f   :  { %4798 = vst.msk [vmem:[#allocation3 + $0x30a] sm:$0xff] %vm114_vm1, %v4733_v17  ;;  %v4732_v46 = vsel %vm4604_vm11, %v4494_v36, %v4668_v7  ;;  %v4504_v31 = vadd.f32 %v12835_v23, %v4503_v9  ;;  %5171 = vrot.lane.b32.xlu1 %v4990_v27, %s10219_s3  ;;  %v4989_v56 = vld [vmem:[#allocation3 + $0x2d2] sm:$0xff]  ;;  %vm6412_vm11 = vcmask 326912  }
 0x570   :  { %v12841_v41 = vld [vmem:[#allocation3 + $0x2d8] sm:$0xff]  ;;  %v12843_v13 = vld [vmem:[#allocation3 + $0x2d0] sm:$0xff]  ;;  %4797 = vst.msk [vmem:[#allocation3 + $0x302] sm:$0xff] %vm114_vm1, %v4732_v46  ;;  %vm4607_vm12 = vcmp.ge.f32.partialorder %v4509_v14, 0.0  ;;  %v4671_v33 = vmul.f32 0.1, %v4509_v14  ;;  %5169 = vrot.lane.b32.xlu0 %v4989_v56, %s10219_s3 }
 0x571   :  { %4926 = vst.msk [vmem:[#allocation5 + $0x1a8] sm:$0xff] %vm114_vm1, %v12841_v41  ;;  %4925 = vst.msk [vmem:[#allocation5 + $0x1a0] sm:$0xff] %vm114_vm1, %v12843_v13  ;;  %vm4606_vm13 = vcmp.ge.f32.partialorder %v4504_v31, 0.0  ;;  %v4670_v26 = vmul.f32 0.1, %v4504_v31  ;;  %v9882_v53 = vpop.f32.mrb[56].mxu0 }
 0x572   :  { %v4735_v24 = vsel %vm4607_vm12, %v4509_v14, %v4671_v33  ;;  %v4519_v40 = vadd.f32 %v12835_v23, %v9882_v53  ;;  %v4513_v36 = vpop.f32.mrb[57].mxu0  ;;  %v4992_v47 = vld [vmem:[#allocation3 + $0x2f2] sm:$0xff]  ;;  %vm7183_vm12 = vcmask 458112  }
 0x573   :  { %4800 = vst.msk [vmem:[#allocation3 + $0x322] sm:$0xff] %vm114_vm1, %v4735_v24  ;;  %v4734_v16 = vsel %vm4606_vm13, %v4504_v31, %v4670_v26  ;;  %v4514_v7 = vadd.f32 %v12835_v23, %v4513_v36  ;;  %5175 = vrot.lane.b32.xlu1 %v4992_v47, %s10219_s3  ;;  %v4991_v44 = vld [vmem:[#allocation3 + $0x2ea] sm:$0xff]  ;;  %vm7568_vm13 = vcmask 523712  }
 0x574   :  { %v12855_v17 = vld [vmem:[#allocation3 + $0x2f0] sm:$0xff]  ;;  %v12857_v9 = vld [vmem:[#allocation3 + $0x2e8] sm:$0xff]  ;;  %4799 = vst.msk [vmem:[#allocation3 + $0x31a] sm:$0xff] %vm114_vm1, %v4734_v16  ;;  %vm4609_vm15 = vcmp.ge.f32.partialorder %v4519_v40, 0.0  ;;  %v4673_v14 = vmul.f32 0.1, %v4519_v40  ;;  %5173 = vrot.lane.b32.xlu0 %v4991_v44, %s10219_s3 }
 0x575   :  { %4928 = vst.msk [vmem:[#allocation5 + $0x1b8] sm:$0xff] %vm114_vm1, %v12855_v17  ;;  %4927 = vst.msk [vmem:[#allocation5 + $0x1b0] sm:$0xff] %vm114_vm1, %v12857_v9  ;;  %vm4608_vm2 = vcmp.ge.f32.partialorder %v4514_v7, 0.0  ;;  %v4672_v27 = vmul.f32 0.1, %v4514_v7  ;;  %v9885_v46 = vpop.f32.mrb[58].mxu0 }
 0x576   :  { %v4737_v31 = vsel %vm4609_vm15, %v4519_v40, %v4673_v14  ;;  %v4529_v56 = vadd.f32 %v12835_v23, %v9885_v46  ;;  %v4523_v33 = vpop.f32.mrb[59].mxu0  ;;  %v4994_v26 = vld [vmem:[#allocation3 + $0x30a] sm:$0xff]  ;;  %vm7953_vm15 = vcmask 589312  }
 0x577   :  { %4802 = vst.msk [vmem:[#allocation3 + $0x33a] sm:$0xff] %vm114_vm1, %v4737_v31  ;;  %v4736_v53 = vsel %vm4608_vm2, %v4514_v7, %v4672_v27  ;;  %v4524_v24 = vadd.f32 %v12835_v23, %v4523_v33  ;;  %5179 = vrot.lane.b32.xlu1 %v4994_v26, %s10219_s3  ;;  %v4993_v36 = vld [vmem:[#allocation3 + $0x302] sm:$0xff]  ;;  %vm8736_vm2 = vcmask 588800  }
 0x578   :  { %v12869_v47 = vld [vmem:[#allocation3 + $0x308] sm:$0xff]  ;;  %v12871_v16 = vld [vmem:[#allocation3 + $0x300] sm:$0xff]  ;;  %4801 = vst.msk [vmem:[#allocation3 + $0x332] sm:$0xff] %vm114_vm1, %v4736_v53  ;;  %vm4611_vm3 = vcmp.ge.f32.partialorder %v4529_v56, 0.0  ;;  %v4675_v40 = vmul.f32 0.1, %v4529_v56  ;;  %5177 = vrot.lane.b32.xlu0 %v4993_v36, %s10219_s3 }
 0x579   :  { %14589 = vst [vmem:[#allocation6_spill] sm:$0xff] %v12871_v16  ;;  %4930 = vst.msk [vmem:[#allocation5 + $0x1c8] sm:$0xff] %vm114_vm1, %v12869_v47  ;;  %vm4610_vm4 = vcmp.ge.f32.partialorder %v4524_v24, 0.0  ;;  %v4674_v7 = vmul.f32 0.1, %v4524_v24 }
 0x57a   :  { %4929 = vst.msk [vmem:[#allocation5 + $0x1c0] sm:$0xff] %vm114_vm1, %v12871_v16  ;;  %v4739_v44 = vsel %vm4611_vm3, %v4529_v56, %v4675_v40  ;;  %v4996_v14 = vld [vmem:[#allocation3 + $0x322] sm:$0xff] }
 0x57b   :  { %4804 = vst.msk [vmem:[#allocation3 + $0x352] sm:$0xff] %vm114_vm1, %v4739_v44  ;;  %v4738_v27 = vsel %vm4610_vm4, %v4524_v24, %v4674_v7  ;;  %5183 = vrot.lane.b32.xlu1 %v4996_v14, %s10219_s3  ;;  %v4995_v46 = vld [vmem:[#allocation3 + $0x31a] sm:$0xff] }
 0x57c   :  { %v12881_v31 = vld [vmem:[#allocation3 + $0x320] sm:$0xff]  ;;  %v12883_v33 = vld [vmem:[#allocation3 + $0x318] sm:$0xff]  ;;  %4803 = vst.msk [vmem:[#allocation3 + $0x34a] sm:$0xff] %vm114_vm1, %v4738_v27  ;;  %5181 = vrot.lane.b32.xlu0 %v4995_v46, %s10219_s3  ;;  %v5323_v46 = vld [vmem:[#allocation3 + $0xc] sm:$0xff] }
 0x57d   :  { %14590 = vst [vmem:[#allocation8_spill] sm:$0xff] %v12881_v31  ;;  %14591 = vst [vmem:[#allocation7_spill] sm:$0xff] %v12883_v33 }
 0x57e   :  { %4932 = vst.msk [vmem:[#allocation5 + $0x1d8] sm:$0xff] %vm114_vm1, %v12881_v31  ;;  %4931 = vst.msk [vmem:[#allocation5 + $0x1d0] sm:$0xff] %vm114_vm1, %v12883_v33  ;;  %v4998_v56 = vld [vmem:[#allocation3 + $0x33a] sm:$0xff] }
 0x57f   :  { %5187 = vrot.lane.b32.xlu1 %v4998_v56, %s10219_s3  ;;  %v4997_v26 = vld [vmem:[#allocation3 + $0x332] sm:$0xff] }
 0x580   :  { %v12892_v53 = vld [vmem:[#allocation3 + $0x338] sm:$0xff]  ;;  %v12894_v24 = vld [vmem:[#allocation3 + $0x330] sm:$0xff]  ;;  %5185 = vrot.lane.b32.xlu0 %v4997_v26, %s10219_s3  ;;  %v5322_v26 = vld [vmem:[#allocation3 + $0x4] sm:$0xff] }
 0x581   :  { %14592 = vst [vmem:[#allocation10_spill] sm:$0xff] %v12892_v53  ;;  %14593 = vst [vmem:[#allocation9_spill] sm:$0xff] %v12894_v24  ;;  %v5076_v36 = vpop.permute.xlu1 %5075 }
 0x582   :  { %4934 = vst.msk [vmem:[#allocation5 + $0x1e8] sm:$0xff] %vm114_vm1, %v12892_v53  ;;  %4933 = vst.msk [vmem:[#allocation5 + $0x1e0] sm:$0xff] %vm114_vm1, %v12894_v24  ;;  %v5074_v40 = vpop.permute.xlu0 %5073  ;;  %v5000_v7 = vld [vmem:[#allocation3 + $0x352] sm:$0xff] }
 0x583   :  { %5263 = vst.msk [vmem:[#allocation5 + $0x28] sm:$0xff] %vm5257_vm5, %v5076_v36  ;;  %5262 = vst.msk [vmem:[#allocation5 + $0x20] sm:$0xff] %vm5257_vm5, %v5074_v40  ;;  %5191 = vrot.lane.b32.xlu1 %v5000_v7, %s10219_s3  ;;  %v4999_v44 = vld [vmem:[#allocation3 + $0x34a] sm:$0xff] }
 0x584   :  { %v12904_v14 = vld [vmem:[#allocation3 + $0x350] sm:$0xff]  ;;  %v12906_v27 = vld [vmem:[#allocation3 + $0x348] sm:$0xff]  ;;  %5189 = vrot.lane.b32.xlu0 %v4999_v44, %s10219_s3  ;;  %v5324_v44 = vld [vmem:[#allocation3 + $0x1c] sm:$0xff] }
 0x585   :  { %14594 = vst [vmem:[#allocation12_spill] sm:$0xff] %v12904_v14  ;;  %14595 = vst [vmem:[#allocation11_spill] sm:$0xff] %v12906_v27  ;;  %v5080_v56 = vpop.permute.xlu1 %5079  ;;  %v5325_v40 = vld [vmem:[#allocation3 + $0x24] sm:$0xff] }
 0x586   :  { %4936 = vst.msk [vmem:[#allocation5 + $0x1f8] sm:$0xff] %vm114_vm1, %v12904_v14  ;;  %4935 = vst.msk [vmem:[#allocation5 + $0x1f0] sm:$0xff] %vm114_vm1, %v12906_v27  ;;  %v5078_v36 = vpop.permute.xlu0 %5077  ;;  %v5327_v27 = vld [vmem:[#allocation3 + $0x3c] sm:$0xff] }
 0x587   :  { %5265 = vst.msk [vmem:[#allocation5 + $0x38] sm:$0xff] %vm5257_vm5, %v5080_v56  ;;  %5264 = vst.msk [vmem:[#allocation5 + $0x30] sm:$0xff] %vm5257_vm5, %v5078_v36  ;;  %5452 = vrot.lane.b32.xlu1 %v5323_v46, %s10221_s25  ;;  %v5326_v46 = vld [vmem:[#allocation3 + $0x34] sm:$0xff] }
 0x588   :  { %5450 = vrot.lane.b32.xlu0 %v5322_v26, %s10221_s25 }
 0x589   :  { %v5084_v7 = vpop.permute.xlu1 %5083 }
 0x58a   :  { %5267 = vst.msk [vmem:[#allocation5 + $0x48] sm:$0xff] %vm5257_vm5, %v5084_v7  ;;  %v5082_v14 = vpop.permute.xlu0 %5081  ;;  %v5329_v7 = vld [vmem:[#allocation3 + $0x54] sm:$0xff] }
 0x58b   :  { %5266 = vst.msk [vmem:[#allocation5 + $0x40] sm:$0xff] %vm5257_vm5, %v5082_v14  ;;  %5456 = vrot.lane.b32.xlu1 %v5325_v40, %s10221_s25  ;;  %v5328_v40 = vld [vmem:[#allocation3 + $0x4c] sm:$0xff] }
 0x58c   :  { %5454 = vrot.lane.b32.xlu0 %v5324_v44, %s10221_s25 }
 0x58d   :  { %v5088_v56 = vpop.permute.xlu1 %5087 }
 0x58e   :  { %5269 = vst.msk [vmem:[#allocation5 + $0x58] sm:$0xff] %vm5257_vm5, %v5088_v56  ;;  %v5086_v36 = vpop.permute.xlu0 %5085 }
 0x58f   :  { %5268 = vst.msk [vmem:[#allocation5 + $0x50] sm:$0xff] %vm5257_vm5, %v5086_v36  ;;  %5460 = vrot.lane.b32.xlu1 %v5327_v27, %s10221_s25  ;;  %v5331_v27 = vld [vmem:[#allocation3 + $0x6c] sm:$0xff]  ;;  %v5330_v36 = vld [vmem:[#allocation3 + $0x64] sm:$0xff] }
 0x590   :  { %5458 = vrot.lane.b32.xlu0 %v5326_v46, %s10221_s25 }
 0x591   :  { %v5092_v26 = vpop.permute.xlu1 %5091 }
 0x592   :  { %5271 = vst.msk [vmem:[#allocation5 + $0x68] sm:$0xff] %vm5257_vm5, %v5092_v26  ;;  %v5090_v14 = vpop.permute.xlu0 %5089 }
 0x593   :  { %5270 = vst.msk [vmem:[#allocation5 + $0x60] sm:$0xff] %vm5257_vm5, %v5090_v14  ;;  %5464 = vrot.lane.b32.xlu1 %v5329_v7, %s10221_s25  ;;  %v5333_v14 = vld [vmem:[#allocation3 + $0x84] sm:$0xff]  ;;  %v5332_v7 = vld [vmem:[#allocation3 + $0x7c] sm:$0xff] }
 0x594   :  { %5462 = vrot.lane.b32.xlu0 %v5328_v40, %s10221_s25 }
 0x595   :  { %v5096_v44 = vpop.permute.xlu1 %5095 }
 0x596   :  { %5273 = vst.msk [vmem:[#allocation5 + $0x78] sm:$0xff] %vm5257_vm5, %v5096_v44  ;;  %v5094_v56 = vpop.permute.xlu0 %5093 }
 0x597   :  { %5272 = vst.msk [vmem:[#allocation5 + $0x70] sm:$0xff] %vm5257_vm5, %v5094_v56  ;;  %5468 = vrot.lane.b32.xlu1 %v5331_v27, %s10221_s25  ;;  %v5335_v56 = vld [vmem:[#allocation3 + $0x9c] sm:$0xff]  ;;  %v5334_v27 = vld [vmem:[#allocation3 + $0x94] sm:$0xff] }
 0x598   :  { %5466 = vrot.lane.b32.xlu0 %v5330_v36, %s10221_s25 }
 0x599   :  { %v5100_v46 = vpop.permute.xlu1 %5099 }
 0x59a   :  { %5275 = vst.msk [vmem:[#allocation5 + $0x88] sm:$0xff] %vm5257_vm5, %v5100_v46  ;;  %v5098_v26 = vpop.permute.xlu0 %5097 }
 0x59b   :  { %5274 = vst.msk [vmem:[#allocation5 + $0x80] sm:$0xff] %vm5257_vm5, %v5098_v26  ;;  %5472 = vrot.lane.b32.xlu1 %v5333_v14, %s10221_s25  ;;  %v5337_v26 = vld [vmem:[#allocation3 + $0xb4] sm:$0xff]  ;;  %v5336_v14 = vld [vmem:[#allocation3 + $0xac] sm:$0xff] }
 0x59c   :  { %5470 = vrot.lane.b32.xlu0 %v5332_v7, %s10221_s25 }
 0x59d   :  { %v5104_v40 = vpop.permute.xlu1 %5103 }
 0x59e   :  { %5277 = vst.msk [vmem:[#allocation5 + $0x98] sm:$0xff] %vm5257_vm5, %v5104_v40  ;;  %v5102_v44 = vpop.permute.xlu0 %5101 }
 0x59f   :  { %5276 = vst.msk [vmem:[#allocation5 + $0x90] sm:$0xff] %vm5257_vm5, %v5102_v44  ;;  %5476 = vrot.lane.b32.xlu1 %v5335_v56, %s10221_s25  ;;  %v5339_v44 = vld [vmem:[#allocation3 + $0xcc] sm:$0xff]  ;;  %v5338_v56 = vld [vmem:[#allocation3 + $0xc4] sm:$0xff] }
 0x5a0   :  { %5474 = vrot.lane.b32.xlu0 %v5334_v27, %s10221_s25 }
 0x5a1   :  { %v5108_v36 = vpop.permute.xlu1 %5107 }
 0x5a2   :  { %5279 = vst.msk [vmem:[#allocation5 + $0xa8] sm:$0xff] %vm5257_vm5, %v5108_v36  ;;  %v5106_v46 = vpop.permute.xlu0 %5105 }
 0x5a3   :  { %5278 = vst.msk [vmem:[#allocation5 + $0xa0] sm:$0xff] %vm5257_vm5, %v5106_v46  ;;  %5480 = vrot.lane.b32.xlu1 %v5337_v26, %s10221_s25  ;;  %v5341_v46 = vld [vmem:[#allocation3 + $0xe4] sm:$0xff]  ;;  %v5340_v26 = vld [vmem:[#allocation3 + $0xdc] sm:$0xff] }
 0x5a4   :  { %5478 = vrot.lane.b32.xlu0 %v5336_v14, %s10221_s25 }
 0x5a5   :  { %v5112_v7 = vpop.permute.xlu1 %5111 }
 0x5a6   :  { %5281 = vst.msk [vmem:[#allocation5 + $0xb8] sm:$0xff] %vm5257_vm5, %v5112_v7  ;;  %v5110_v40 = vpop.permute.xlu0 %5109 }
 0x5a7   :  { %5280 = vst.msk [vmem:[#allocation5 + $0xb0] sm:$0xff] %vm5257_vm5, %v5110_v40  ;;  %5484 = vrot.lane.b32.xlu1 %v5339_v44, %s10221_s25  ;;  %v5343_v40 = vld [vmem:[#allocation3 + $0xfc] sm:$0xff]  ;;  %v5342_v44 = vld [vmem:[#allocation3 + $0xf4] sm:$0xff] }
 0x5a8   :  { %5482 = vrot.lane.b32.xlu0 %v5338_v56, %s10221_s25 }
 0x5a9   :  { %v5116_v27 = vpop.permute.xlu1 %5115 }
 0x5aa   :  { %5283 = vst.msk [vmem:[#allocation5 + $0xc8] sm:$0xff] %vm5257_vm5, %v5116_v27  ;;  %v5114_v36 = vpop.permute.xlu0 %5113 }
 0x5ab   :  { %5282 = vst.msk [vmem:[#allocation5 + $0xc0] sm:$0xff] %vm5257_vm5, %v5114_v36  ;;  %5488 = vrot.lane.b32.xlu1 %v5341_v46, %s10221_s25  ;;  %v5345_v36 = vld [vmem:[#allocation3 + $0x114] sm:$0xff]  ;;  %v5344_v46 = vld [vmem:[#allocation3 + $0x10c] sm:$0xff] }
 0x5ac   :  { %5486 = vrot.lane.b32.xlu0 %v5340_v26, %s10221_s25 }
 0x5ad   :  { %v5120_v14 = vpop.permute.xlu1 %5119 }
 0x5ae   :  { %5285 = vst.msk [vmem:[#allocation5 + $0xd8] sm:$0xff] %vm5257_vm5, %v5120_v14  ;;  %v5118_v7 = vpop.permute.xlu0 %5117 }
 0x5af   :  { %5284 = vst.msk [vmem:[#allocation5 + $0xd0] sm:$0xff] %vm5257_vm5, %v5118_v7  ;;  %5492 = vrot.lane.b32.xlu1 %v5343_v40, %s10221_s25  ;;  %v5347_v7 = vld [vmem:[#allocation3 + $0x12c] sm:$0xff]  ;;  %v5346_v40 = vld [vmem:[#allocation3 + $0x124] sm:$0xff] }
 0x5b0   :  { %5490 = vrot.lane.b32.xlu0 %v5342_v44, %s10221_s25 }
 0x5b1   :  { %v5124_v56 = vpop.permute.xlu1 %5123 }
 0x5b2   :  { %5287 = vst.msk [vmem:[#allocation5 + $0xe8] sm:$0xff] %vm5257_vm5, %v5124_v56  ;;  %v5122_v27 = vpop.permute.xlu0 %5121 }
 0x5b3   :  { %5286 = vst.msk [vmem:[#allocation5 + $0xe0] sm:$0xff] %vm5257_vm5, %v5122_v27  ;;  %5496 = vrot.lane.b32.xlu1 %v5345_v36, %s10221_s25  ;;  %v5349_v27 = vld [vmem:[#allocation3 + $0x144] sm:$0xff]  ;;  %v5348_v36 = vld [vmem:[#allocation3 + $0x13c] sm:$0xff] }
 0x5b4   :  { %5494 = vrot.lane.b32.xlu0 %v5344_v46, %s10221_s25 }
 0x5b5   :  { %v5128_v26 = vpop.permute.xlu1 %5127 }
 0x5b6   :  { %5289 = vst.msk [vmem:[#allocation5 + $0xf8] sm:$0xff] %vm5257_vm5, %v5128_v26  ;;  %v5126_v14 = vpop.permute.xlu0 %5125 }
 0x5b7   :  { %5288 = vst.msk [vmem:[#allocation5 + $0xf0] sm:$0xff] %vm5257_vm5, %v5126_v14  ;;  %5500 = vrot.lane.b32.xlu1 %v5347_v7, %s10221_s25  ;;  %v5351_v14 = vld [vmem:[#allocation3 + $0x15c] sm:$0xff]  ;;  %v5350_v7 = vld [vmem:[#allocation3 + $0x154] sm:$0xff] }
 0x5b8   :  { %5498 = vrot.lane.b32.xlu0 %v5346_v40, %s10221_s25 }
 0x5b9   :  { %v5132_v44 = vpop.permute.xlu1 %5131 }
 0x5ba   :  { %5291 = vst.msk [vmem:[#allocation5 + $0x108] sm:$0xff] %vm5257_vm5, %v5132_v44  ;;  %v5130_v56 = vpop.permute.xlu0 %5129 }
 0x5bb   :  { %5290 = vst.msk [vmem:[#allocation5 + $0x100] sm:$0xff] %vm5257_vm5, %v5130_v56  ;;  %5504 = vrot.lane.b32.xlu1 %v5349_v27, %s10221_s25  ;;  %v5353_v56 = vld [vmem:[#allocation3 + $0x174] sm:$0xff]  ;;  %v5352_v27 = vld [vmem:[#allocation3 + $0x16c] sm:$0xff] }
 0x5bc   :  { %5502 = vrot.lane.b32.xlu0 %v5348_v36, %s10221_s25  ;;  %v5355_v36 = vld [vmem:[#allocation3 + $0x1ec] sm:$0xff] }
 0x5bd   :  { %v5136_v46 = vpop.permute.xlu1 %5135 }
 0x5be   :  { %5293 = vst.msk [vmem:[#allocation5 + $0x118] sm:$0xff] %vm5257_vm5, %v5136_v46  ;;  %v5134_v26 = vpop.permute.xlu0 %5133 }
 0x5bf   :  { %5292 = vst.msk [vmem:[#allocation5 + $0x110] sm:$0xff] %vm5257_vm5, %v5134_v26  ;;  %5508 = vrot.lane.b32.xlu1 %v5351_v14, %s10221_s25  ;;  %v5354_v26 = vld [vmem:[#allocation3 + $0x1e4] sm:$0xff] }
 0x5c0   :  { %5506 = vrot.lane.b32.xlu0 %v5350_v7, %s10221_s25  ;;  %v5357_v7 = vld [vmem:[#allocation3 + $0x204] sm:$0xff] }
 0x5c1   :  { %v5140_v40 = vpop.permute.xlu1 %5139 }
 0x5c2   :  { %5295 = vst.msk [vmem:[#allocation5 + $0x128] sm:$0xff] %vm5257_vm5, %v5140_v40  ;;  %v5138_v44 = vpop.permute.xlu0 %5137 }
 0x5c3   :  { %5294 = vst.msk [vmem:[#allocation5 + $0x120] sm:$0xff] %vm5257_vm5, %v5138_v44  ;;  %5512 = vrot.lane.b32.xlu1 %v5353_v56, %s10221_s25  ;;  %v5356_v44 = vld [vmem:[#allocation3 + $0x1fc] sm:$0xff] }
 0x5c4   :  { %5510 = vrot.lane.b32.xlu0 %v5352_v27, %s10221_s25  ;;  %v9888_v27 = vpop.f32.mrb[60].mxu0 }
 0x5c5   :  { %v5144_v46 = vpop.permute.xlu1 %5143  ;;  %v4533_v24 = vpop.f32.mrb[61].mxu0 }
 0x5c6   :  { %5297 = vst.msk [vmem:[#allocation5 + $0x138] sm:$0xff] %vm5257_vm5, %v5144_v46  ;;  %v5142_v14 = vpop.permute.xlu0 %5141 }
 0x5c7   :  { %5296 = vst.msk [vmem:[#allocation5 + $0x130] sm:$0xff] %vm5257_vm5, %v5142_v14  ;;  %5516 = vrot.lane.b32.xlu1 %v5355_v36, %s10221_s25  ;;  %v4539_v14 = vadd.f32 %v12835_v23, %v9888_v27 }
 0x5c8   :  { %5514 = vrot.lane.b32.xlu0 %v5354_v26, %s10221_s25  ;;  %v5359_v26 = vld [vmem:[#allocation3 + $0x21c] sm:$0xff] }
 0x5c9   :  { %v5148_v40 = vpop.permute.xlu1 %5147  ;;  %vm4613_vm6 = vcmp.ge.f32.partialorder %v4539_v14, 0.0 }
 0x5ca   :  { %5299 = vst.msk [vmem:[#allocation5 + $0x148] sm:$0xff] %vm5257_vm5, %v5148_v40  ;;  %v5146_v56 = vpop.permute.xlu0 %5145  ;;  %v5358_v40 = vld [vmem:[#allocation3 + $0x214] sm:$0xff] }
 0x5cb   :  { %5298 = vst.msk [vmem:[#allocation5 + $0x140] sm:$0xff] %vm5257_vm5, %v5146_v56  ;;  %5520 = vrot.lane.b32.xlu1 %v5357_v7, %s10221_s25  ;;  %v4677_v56 = vmul.f32 0.1, %v4539_v14  ;;  %v4534_v7 = vadd.f32 %v12835_v23, %v4533_v24  ;;  %v5360_v24 = vld [vmem:[#allocation3 + $0x22c] sm:$0xff] }
 0x5cc   :  { %5518 = vrot.lane.b32.xlu0 %v5356_v44, %s10221_s25  ;;  %v9891_v44 = vpop.f32.mrb[62].mxu0 }
 0x5cd   :  { %v5152_v46 = vpop.permute.xlu1 %5151  ;;  %v4741_v33 = vsel %vm4613_vm6, %v4539_v14, %v4677_v56  ;;  %vm4612_vm7 = vcmp.ge.f32.partialorder %v4534_v7, 0.0  ;;  %v4676_v27 = vmul.f32 0.1, %v4534_v7 }
 0x5ce   :  { %5301 = vst.msk [vmem:[#allocation5 + $0x158] sm:$0xff] %vm5257_vm5, %v5152_v46  ;;  %v5150_v36 = vpop.permute.xlu0 %5149  ;;  %v4549_v46 = vadd.f32 %v12835_v23, %v9891_v44 }
 0x5cf   :  { %5300 = vst.msk [vmem:[#allocation5 + $0x150] sm:$0xff] %vm5257_vm5, %v5150_v36  ;;  %5524 = vrot.lane.b32.xlu1 %v5359_v26, %s10221_s25  ;;  %v5361_v36 = vld [vmem:[#allocation3 + $0x234] sm:$0xff]  ;;  %v4543_v26 = vpop.f32.mrb[63].mxu0 }
 0x5d0   :  { %5522 = vrot.lane.b32.xlu0 %v5358_v40, %s10221_s25  ;;  %4806 = vst.msk [vmem:[#allocation3 + $0x36a] sm:$0xff] %vm114_vm1, %v4741_v33  ;;  %v4740_v40 = vsel %vm4612_vm7, %v4534_v7, %v4676_v27  ;;  %vm4615_vm8 = vcmp.ge.f32.partialorder %v4549_v46, 0.0  ;;  %v4679_v16 = vmul.f32 0.1, %v4549_v46  ;;  %v4544_v14 = vadd.f32 %v12835_v23, %v4543_v26  ;;  %v5362_v7 = vld [vmem:[#allocation3 + $0x244] sm:$0xff] }
 0x5d1   :  { %v5156_v53 = vpop.permute.xlu1 %5155  ;;  %4805 = vst.msk [vmem:[#allocation3 + $0x362] sm:$0xff] %vm114_vm1, %v4740_v40  ;;  %v5367_v40 = vld [vmem:[#allocation3 + $0x27c] sm:$0xff] }
 0x5d2   :  { %5303 = vst.msk [vmem:[#allocation5 + $0x168] sm:$0xff] %vm5257_vm5, %v5156_v53  ;;  %v5154_v31 = vpop.permute.xlu0 %5153  ;;  %v4743_v56 = vsel %vm4615_vm8, %v4549_v46, %v4679_v16  ;;  %vm4614_vm9 = vcmp.ge.f32.partialorder %v4544_v14, 0.0  ;;  %v4678_v44 = vmul.f32 0.1, %v4544_v14  ;;  %v5365_v46 = vld [vmem:[#allocation3 + $0x264] sm:$0xff] }
 0x5d3   :  { %5302 = vst.msk [vmem:[#allocation5 + $0x160] sm:$0xff] %vm5257_vm5, %v5154_v31  ;;  %5528 = vrot.lane.b32.xlu1 %v5361_v36, %s10221_s25  ;;  %v5363_v31 = vld [vmem:[#allocation3 + $0x24c] sm:$0xff]  ;;  %v5364_v36 = vld [vmem:[#allocation3 + $0x25c] sm:$0xff] }
 0x5d4   :  { %5526 = vrot.lane.b32.xlu0 %v5360_v24, %s10221_s25  ;;  %4808 = vst.msk [vmem:[#allocation3 + $0x382] sm:$0xff] %vm114_vm1, %v4743_v56  ;;  %v4742_v23 = vsel %vm4614_vm9, %v4544_v14, %v4678_v44  ;;  %v5366_v14 = vld [vmem:[#allocation3 + $0x274] sm:$0xff] }
 0x5d5   :  { %v5160_v53 = vpop.permute.xlu1 %5159  ;;  %4807 = vst.msk [vmem:[#allocation3 + $0x37a] sm:$0xff] %vm114_vm1, %v4742_v23  ;;  %v5369_v44 = vld [vmem:[#allocation3 + $0x294] sm:$0xff]  ;;  %v5371_v23 = vld [vmem:[#allocation3 + $0x2ac] sm:$0xff] }
 0x5d6   :  { %5305 = vst.msk [vmem:[#allocation5 + $0x178] sm:$0xff] %vm5257_vm5, %v5160_v53  ;;  %v5158_v33 = vpop.permute.xlu0 %5157 }
 0x5d7   :  { %5304 = vst.msk [vmem:[#allocation5 + $0x170] sm:$0xff] %vm5257_vm5, %v5158_v33  ;;  %5532 = vrot.lane.b32.xlu1 %v5363_v31, %s10221_s25  ;;  %v5368_v33 = vld [vmem:[#allocation3 + $0x28c] sm:$0xff] }
 0x5d8   :  { %5530 = vrot.lane.b32.xlu0 %v5362_v7, %s10221_s25 }
 0x5d9   :  { %v5164_v27 = vpop.permute.xlu1 %5163 }
 0x5da   :  { %5307 = vst.msk [vmem:[#allocation5 + $0x188] sm:$0xff] %vm5257_vm5, %v5164_v27  ;;  %v5162_v16 = vpop.permute.xlu0 %5161  ;;  %v5370_v27 = vld [vmem:[#allocation3 + $0x2a4] sm:$0xff] }
 0x5db   :  { %5306 = vst.msk [vmem:[#allocation5 + $0x180] sm:$0xff] %vm5257_vm5, %v5162_v16  ;;  %5536 = vrot.lane.b32.xlu1 %v5365_v46, %s10221_s25 }
 0x5dc   :  { %5534 = vrot.lane.b32.xlu0 %v5364_v36, %s10221_s25  ;;  %v5373_v36 = vld [vmem:[#allocation3 + $0x2c4] sm:$0xff] }
 0x5dd   :  { %v5168_v26 = vpop.permute.xlu1 %5167 }
 0x5de   :  { %5309 = vst.msk [vmem:[#allocation5 + $0x198] sm:$0xff] %vm5257_vm5, %v5168_v26  ;;  %v5166_v24 = vpop.permute.xlu0 %5165  ;;  %v5372_v26 = vld [vmem:[#allocation3 + $0x2bc] sm:$0xff] }
 0x5df   :  { %5308 = vst.msk [vmem:[#allocation5 + $0x190] sm:$0xff] %vm5257_vm5, %v5166_v24  ;;  %5540 = vrot.lane.b32.xlu1 %v5367_v40, %s10221_s25 }
 0x5e0   :  { %5538 = vrot.lane.b32.xlu0 %v5366_v14, %s10221_s25  ;;  %v5375_v14 = vld [vmem:[#allocation3 + $0x2dc] sm:$0xff] }
 0x5e1   :  { %v5172_v53 = vpop.permute.xlu1 %5171 }
 0x5e2   :  { %5311 = vst.msk [vmem:[#allocation5 + $0x1a8] sm:$0xff] %vm5257_vm5, %v5172_v53  ;;  %v5170_v56 = vpop.permute.xlu0 %5169  ;;  %v5374_v53 = vld [vmem:[#allocation3 + $0x2d4] sm:$0xff] }
 0x5e3   :  { %5310 = vst.msk [vmem:[#allocation5 + $0x1a0] sm:$0xff] %vm5257_vm5, %v5170_v56  ;;  %5544 = vrot.lane.b32.xlu1 %v5369_v44, %s10221_s25 }
 0x5e4   :  { %5542 = vrot.lane.b32.xlu0 %v5368_v33, %s10221_s25  ;;  %v5377_v33 = vld [vmem:[#allocation3 + $0x2f4] sm:$0xff] }
 0x5e5   :  { %v5176_v31 = vpop.permute.xlu1 %5175 }
 0x5e6   :  { %5313 = vst.msk [vmem:[#allocation5 + $0x1b8] sm:$0xff] %vm5257_vm5, %v5176_v31  ;;  %v5174_v7 = vpop.permute.xlu0 %5173  ;;  %v5376_v31 = vld [vmem:[#allocation3 + $0x2ec] sm:$0xff] }
 0x5e7   :  { %5312 = vst.msk [vmem:[#allocation5 + $0x1b0] sm:$0xff] %vm5257_vm5, %v5174_v7  ;;  %5548 = vrot.lane.b32.xlu1 %v5371_v23, %s10221_s25 }
 0x5e8   :  { %5546 = vrot.lane.b32.xlu0 %v5370_v27, %s10221_s25  ;;  %v5379_v27 = vld [vmem:[#allocation3 + $0x30c] sm:$0xff] }
 0x5e9   :  { %v5180_v16 = vpop.permute.xlu1 %5179 }
 0x5ea   :  { %5315 = vst.msk [vmem:[#allocation5 + $0x1c8] sm:$0xff] %vm5257_vm5, %v5180_v16  ;;  %v5178_v46 = vpop.permute.xlu0 %5177  ;;  %v5378_v16 = vld [vmem:[#allocation3 + $0x304] sm:$0xff] }
 0x5eb   :  { %5314 = vst.msk [vmem:[#allocation5 + $0x1c0] sm:$0xff] %vm5257_vm5, %v5178_v46  ;;  %5552 = vrot.lane.b32.xlu1 %v5373_v36, %s10221_s25 }
 0x5ec   :  { %5550 = vrot.lane.b32.xlu0 %v5372_v26, %s10221_s25  ;;  %v5381_v26 = vld [vmem:[#allocation3 + $0x324] sm:$0xff] }
 0x5ed   :  { %v5184_v24 = vpop.permute.xlu1 %5183 }
 0x5ee   :  { %5317 = vst.msk [vmem:[#allocation5 + $0x1d8] sm:$0xff] %vm5257_vm5, %v5184_v24  ;;  %v5182_v40 = vpop.permute.xlu0 %5181  ;;  %v5380_v24 = vld [vmem:[#allocation3 + $0x31c] sm:$0xff] }
 0x5ef   :  { %5316 = vst.msk [vmem:[#allocation5 + $0x1d0] sm:$0xff] %vm5257_vm5, %v5182_v40  ;;  %5556 = vrot.lane.b32.xlu1 %v5375_v14, %s10221_s25 }
 0x5f0   :  { %5554 = vrot.lane.b32.xlu0 %v5374_v53, %s10221_s25  ;;  %v5383_v53 = vld [vmem:[#allocation3 + $0x33c] sm:$0xff] }
 0x5f1   :  { %v5188_v56 = vpop.permute.xlu1 %5187 }
 0x5f2   :  { %5319 = vst.msk [vmem:[#allocation5 + $0x1e8] sm:$0xff] %vm5257_vm5, %v5188_v56  ;;  %v5186_v44 = vpop.permute.xlu0 %5185  ;;  %v5382_v56 = vld [vmem:[#allocation3 + $0x334] sm:$0xff] }
 0x5f3   :  { %5318 = vst.msk [vmem:[#allocation5 + $0x1e0] sm:$0xff] %vm5257_vm5, %v5186_v44  ;;  %5560 = vrot.lane.b32.xlu1 %v5377_v33, %s10221_s25 }
 0x5f4   :  { %5558 = vrot.lane.b32.xlu0 %v5376_v31, %s10221_s25  ;;  %v5385_v31 = vld [vmem:[#allocation3 + $0x354] sm:$0xff] }
 0x5f5   :  { %v5192_v7 = vpop.permute.xlu1 %5191 }
 0x5f6   :  { %5321 = vst.msk [vmem:[#allocation5 + $0x1f8] sm:$0xff] %vm5257_vm5, %v5192_v7  ;;  %v5190_v23 = vpop.permute.xlu0 %5189  ;;  %v5384_v7 = vld [vmem:[#allocation3 + $0x34c] sm:$0xff] }
 0x5f7   :  { %5320 = vst.msk [vmem:[#allocation5 + $0x1f0] sm:$0xff] %vm5257_vm5, %v5190_v23  ;;  %5564 = vrot.lane.b32.xlu1 %v5379_v27, %s10221_s25  ;;  %vm6027_vm5 = vcmask 261312  }
 0x5f8   :  { %5562 = vrot.lane.b32.xlu0 %v5378_v16, %s10221_s25 }
 0x5f9   :  { %v5453_v46 = vpop.permute.xlu1 %5452 }
 0x5fa   :  { %5644 = vst.msk [vmem:[#allocation5 + $0x8] sm:$0xff] %vm5642_vm10, %v5453_v46  ;;  %v5451_v36 = vpop.permute.xlu0 %5450 }
 0x5fb   :  { %5643 = vst.msk [vmem:[#allocation5] sm:$0xff] %vm5642_vm10, %v5451_v36  ;;  %5568 = vrot.lane.b32.xlu1 %v5381_v26, %s10221_s25 }
 0x5fc   :  { %5566 = vrot.lane.b32.xlu0 %v5380_v24, %s10221_s25 }
 0x5fd   :  { %v5457_v40 = vpop.permute.xlu1 %5456 }
 0x5fe   :  { %5646 = vst.msk [vmem:[#allocation5 + $0x18] sm:$0xff] %vm5642_vm10, %v5457_v40  ;;  %v5455_v14 = vpop.permute.xlu0 %5454 }
 0x5ff   :  { %5645 = vst.msk [vmem:[#allocation5 + $0x10] sm:$0xff] %vm5642_vm10, %v5455_v14  ;;  %5572 = vrot.lane.b32.xlu1 %v5383_v53, %s10221_s25 }
 0x600   :  { %5570 = vrot.lane.b32.xlu0 %v5382_v56, %s10221_s25 }
 0x601   :  { %v5461_v44 = vpop.permute.xlu1 %5460 }
 0x602   :  { %5648 = vst.msk [vmem:[#allocation5 + $0x28] sm:$0xff] %vm5642_vm10, %v5461_v44  ;;  %v5459_v33 = vpop.permute.xlu0 %5458 }
 0x603   :  { %5647 = vst.msk [vmem:[#allocation5 + $0x20] sm:$0xff] %vm5642_vm10, %v5459_v33  ;;  %5576 = vrot.lane.b32.xlu1 %v5385_v31, %s10221_s25 }
 0x604   :  { %5574 = vrot.lane.b32.xlu0 %v5384_v7, %s10221_s25 }
 0x605   :  { %v5465_v23 = vpop.permute.xlu1 %5464 }
 0x606   :  { %5650 = vst.msk [vmem:[#allocation5 + $0x38] sm:$0xff] %vm5642_vm10, %v5465_v23  ;;  %v5463_v27 = vpop.permute.xlu0 %5462 }
 0x607   :  { %5649 = vst.msk [vmem:[#allocation5 + $0x30] sm:$0xff] %vm5642_vm10, %v5463_v27  ;;  %5837 = vrot.lane.b32.xlu1 %v12512_v15, %s10223_s28 }
 0x608   :  { %5835 = vrot.lane.b32.xlu0 %v12514_v32, %s10223_s28 }
 0x609   :  { %v5469_v16 = vpop.permute.xlu1 %5468 }
 0x60a   :  { %5652 = vst.msk [vmem:[#allocation5 + $0x48] sm:$0xff] %vm5642_vm10, %v5469_v16  ;;  %v5467_v46 = vpop.permute.xlu0 %5466  ;;  %v14600_v16 = vld [vmem:[#allocation9_spill] sm:$0xff] }
 0x60b   :  { %5651 = vst.msk [vmem:[#allocation5 + $0x40] sm:$0xff] %vm5642_vm10, %v5467_v46  ;;  %5841 = vrot.lane.b32.xlu1 %v12526_v42, %s10223_s28 }
 0x60c   :  { %5839 = vrot.lane.b32.xlu0 %v12528_v63, %s10223_s28 }
 0x60d   :  { %v5473_v36 = vpop.permute.xlu1 %5472 }
 0x60e   :  { %5654 = vst.msk [vmem:[#allocation5 + $0x58] sm:$0xff] %vm5642_vm10, %v5473_v36  ;;  %v5471_v26 = vpop.permute.xlu0 %5470 }
 0x60f   :  { %5653 = vst.msk [vmem:[#allocation5 + $0x50] sm:$0xff] %vm5642_vm10, %v5471_v26  ;;  %5845 = vrot.lane.b32.xlu1 %v12540_v49, %s10223_s28  ;;  %v14601_v26 = vld [vmem:[#allocation12_spill] sm:$0xff] }
 0x610   :  { %5843 = vrot.lane.b32.xlu0 %v12542_v29, %s10223_s28 }
 0x611   :  { %v5477_v15 = vpop.permute.xlu1 %5476 }
 0x612   :  { %5656 = vst.msk [vmem:[#allocation5 + $0x68] sm:$0xff] %vm5642_vm10, %v5477_v15  ;;  %v5475_v32 = vpop.permute.xlu0 %5474  ;;  %v14602_v15 = vld [vmem:[#allocation11_spill] sm:$0xff] }
 0x613   :  { %5655 = vst.msk [vmem:[#allocation5 + $0x60] sm:$0xff] %vm5642_vm10, %v5475_v32  ;;  %5849 = vrot.lane.b32.xlu1 %v12554_v3, %s10223_s28 }
 0x614   :  { %5847 = vrot.lane.b32.xlu0 %v12556_v22, %s10223_s28 }
 0x615   :  { %v5481_v42 = vpop.permute.xlu1 %5480 }
 0x616   :  { %5658 = vst.msk [vmem:[#allocation5 + $0x78] sm:$0xff] %vm5642_vm10, %v5481_v42  ;;  %v5479_v63 = vpop.permute.xlu0 %5478 }
 0x617   :  { %5657 = vst.msk [vmem:[#allocation5 + $0x70] sm:$0xff] %vm5642_vm10, %v5479_v63  ;;  %5853 = vrot.lane.b32.xlu1 %v12568_v43, %s10223_s28  ;;  %v5768_v63 = vld [vmem:[#allocation3 + $0x368] sm:$0xff] }
 0x618   :  { %5851 = vrot.lane.b32.xlu0 %v12570_v60, %s10223_s28 }
 0x619   :  { %v5485_v49 = vpop.permute.xlu1 %5484 }
 0x61a   :  { %5660 = vst.msk [vmem:[#allocation5 + $0x88] sm:$0xff] %vm5642_vm10, %v5485_v49  ;;  %v5483_v29 = vpop.permute.xlu0 %5482  ;;  %v5767_v49 = vld [vmem:[#allocation3 + $0x360] sm:$0xff] }
 0x61b   :  { %5659 = vst.msk [vmem:[#allocation5 + $0x80] sm:$0xff] %vm5642_vm10, %v5483_v29  ;;  %5857 = vrot.lane.b32.xlu1 %v12582_v39, %s10223_s28 }
 0x61c   :  { %5855 = vrot.lane.b32.xlu0 %v12584_v37, %s10223_s28 }
 0x61d   :  { %v5489_v3 = vpop.permute.xlu1 %5488 }
 0x61e   :  { %5662 = vst.msk [vmem:[#allocation5 + $0x98] sm:$0xff] %vm5642_vm10, %v5489_v3  ;;  %v5487_v22 = vpop.permute.xlu0 %5486 }
 0x61f   :  { %5661 = vst.msk [vmem:[#allocation5 + $0x90] sm:$0xff] %vm5642_vm10, %v5487_v22  ;;  %5861 = vrot.lane.b32.xlu1 %v12596_v57, %s10223_s28  ;;  %v5770_v22 = vld [vmem:[#allocation3 + $0x380] sm:$0xff] }
 0x620   :  { %5859 = vrot.lane.b32.xlu0 %v12598_v58, %s10223_s28 }
 0x621   :  { %v5493_v43 = vpop.permute.xlu1 %5492 }
 0x622   :  { %5664 = vst.msk [vmem:[#allocation5 + $0xa8] sm:$0xff] %vm5642_vm10, %v5493_v43  ;;  %v5491_v60 = vpop.permute.xlu0 %5490  ;;  %v5769_v43 = vld [vmem:[#allocation3 + $0x378] sm:$0xff] }
 0x623   :  { %5663 = vst.msk [vmem:[#allocation5 + $0xa0] sm:$0xff] %vm5642_vm10, %v5491_v60  ;;  %5865 = vrot.lane.b32.xlu1 %v12610_v50, %s10223_s28 }
 0x624   :  { %5863 = vrot.lane.b32.xlu0 %v12612_v18, %s10223_s28 }
 0x625   :  { %v5497_v39 = vpop.permute.xlu1 %5496 }
 0x626   :  { %5666 = vst.msk [vmem:[#allocation5 + $0xb8] sm:$0xff] %vm5642_vm10, %v5497_v39  ;;  %v5495_v37 = vpop.permute.xlu0 %5494 }
 0x627   :  { %5665 = vst.msk [vmem:[#allocation5 + $0xb0] sm:$0xff] %vm5642_vm10, %v5495_v37  ;;  %5869 = vrot.lane.b32.xlu1 %v12624_v21, %s10223_s28  ;;  %v6093_v37 = vld [vmem:[#allocation3 + $0x3a] sm:$0xff] }
 0x628   :  { %5867 = vrot.lane.b32.xlu0 %v12626_v54, %s10223_s28 }
 0x629   :  { %v5501_v57 = vpop.permute.xlu1 %5500 }
 0x62a   :  { %5668 = vst.msk [vmem:[#allocation5 + $0xc8] sm:$0xff] %vm5642_vm10, %v5501_v57  ;;  %v5499_v58 = vpop.permute.xlu0 %5498  ;;  %v6092_v57 = vld [vmem:[#allocation3 + $0x32] sm:$0xff] }
 0x62b   :  { %5667 = vst.msk [vmem:[#allocation5 + $0xc0] sm:$0xff] %vm5642_vm10, %v5499_v58  ;;  %5873 = vrot.lane.b32.xlu1 %v12638_v45, %s10223_s28 }
 0x62c   :  { %5871 = vrot.lane.b32.xlu0 %v12640_v30, %s10223_s28 }
 0x62d   :  { %v5505_v50 = vpop.permute.xlu1 %5504 }
 0x62e   :  { %5670 = vst.msk [vmem:[#allocation5 + $0xd8] sm:$0xff] %vm5642_vm10, %v5505_v50  ;;  %v5503_v18 = vpop.permute.xlu0 %5502 }
 0x62f   :  { %5669 = vst.msk [vmem:[#allocation5 + $0xd0] sm:$0xff] %vm5642_vm10, %v5503_v18  ;;  %5877 = vrot.lane.b32.xlu1 %v12652_v5, %s10223_s28  ;;  %v6095_v18 = vld [vmem:[#allocation3 + $0x52] sm:$0xff] }
 0x630   :  { %5875 = vrot.lane.b32.xlu0 %v12654_v38, %s10223_s28 }
 0x631   :  { %v5509_v21 = vpop.permute.xlu1 %5508 }
 0x632   :  { %5672 = vst.msk [vmem:[#allocation5 + $0xe8] sm:$0xff] %vm5642_vm10, %v5509_v21  ;;  %v5507_v54 = vpop.permute.xlu0 %5506  ;;  %v6094_v21 = vld [vmem:[#allocation3 + $0x4a] sm:$0xff] }
 0x633   :  { %5671 = vst.msk [vmem:[#allocation5 + $0xe0] sm:$0xff] %vm5642_vm10, %v5507_v54  ;;  %5881 = vrot.lane.b32.xlu1 %v12667_v35, %s10223_s28 }
 0x634   :  { %5879 = vrot.lane.b32.xlu0 %v12669_v10, %s10223_s28 }
 0x635   :  { %v5513_v45 = vpop.permute.xlu1 %5512 }
 0x636   :  { %5674 = vst.msk [vmem:[#allocation5 + $0xf8] sm:$0xff] %vm5642_vm10, %v5513_v45  ;;  %v5511_v30 = vpop.permute.xlu0 %5510 }
 0x637   :  { %5673 = vst.msk [vmem:[#allocation5 + $0xf0] sm:$0xff] %vm5642_vm10, %v5511_v30  ;;  %5885 = vrot.lane.b32.xlu1 %v12683_v48, %s10223_s28  ;;  %v5736_v48 = vld [vmem:[#allocation3 + $0x188] sm:$0xff] }
 0x638   :  { %5883 = vrot.lane.b32.xlu0 %v12685_v6, %s10223_s28  ;;  %v5735_v6 = vld [vmem:[#allocation3 + $0x180] sm:$0xff]  ;;  %v6097_v30 = vld [vmem:[#allocation3 + $0x6a] sm:$0xff] }
 0x639   :  { %v5517_v5 = vpop.permute.xlu1 %5516 }
 0x63a   :  { %5676 = vst.msk [vmem:[#allocation5 + $0x108] sm:$0xff] %vm5642_vm10, %v5517_v5  ;;  %v5515_v38 = vpop.permute.xlu0 %5514  ;;  %v6096_v5 = vld [vmem:[#allocation3 + $0x62] sm:$0xff] }
 0x63b   :  { %5675 = vst.msk [vmem:[#allocation5 + $0x100] sm:$0xff] %vm5642_vm10, %v5515_v38  ;;  %5889 = vrot.lane.b32.xlu1 %v12698_v55, %s10223_s28  ;;  %v5738_v55 = vld [vmem:[#allocation3 + $0x1a0] sm:$0xff] }
 0x63c   :  { %5887 = vrot.lane.b32.xlu0 %v12700_v0, %s10223_s28  ;;  %v5737_v0 = vld [vmem:[#allocation3 + $0x198] sm:$0xff] }
 0x63d   :  { %v5521_v35 = vpop.permute.xlu1 %5520 }
 0x63e   :  { %5678 = vst.msk [vmem:[#allocation5 + $0x118] sm:$0xff] %vm5642_vm10, %v5521_v35  ;;  %v5519_v10 = vpop.permute.xlu0 %5518 }
 0x63f   :  { %5677 = vst.msk [vmem:[#allocation5 + $0x110] sm:$0xff] %vm5642_vm10, %v5519_v10  ;;  %5893 = vrot.lane.b32.xlu1 %v5736_v48, %s10223_s28  ;;  %v6099_v10 = vld [vmem:[#allocation3 + $0x82] sm:$0xff]  ;;  %v6098_v48 = vld [vmem:[#allocation3 + $0x7a] sm:$0xff] }
 0x640   :  { %5891 = vrot.lane.b32.xlu0 %v5735_v6, %s10223_s28 }
 0x641   :  { %v5525_v24 = vpop.permute.xlu1 %5524 }
 0x642   :  { %5680 = vst.msk [vmem:[#allocation5 + $0x128] sm:$0xff] %vm5642_vm10, %v5525_v24  ;;  %v5523_v40 = vpop.permute.xlu0 %5522 }
 0x643   :  { %5679 = vst.msk [vmem:[#allocation5 + $0x120] sm:$0xff] %vm5642_vm10, %v5523_v40  ;;  %5897 = vrot.lane.b32.xlu1 %v5738_v55, %s10223_s28  ;;  %v6101_v40 = vld [vmem:[#allocation3 + $0x9a] sm:$0xff]  ;;  %v6100_v55 = vld [vmem:[#allocation3 + $0x92] sm:$0xff] }
 0x644   :  { %5895 = vrot.lane.b32.xlu0 %v5737_v0, %s10223_s28 }
 0x645   :  { %v5529_v14 = vpop.permute.xlu1 %5528 }
 0x646   :  { %5682 = vst.msk [vmem:[#allocation5 + $0x138] sm:$0xff] %vm5642_vm10, %v5529_v14  ;;  %v5527_v53 = vpop.permute.xlu0 %5526 }
 0x647   :  { %5681 = vst.msk [vmem:[#allocation5 + $0x130] sm:$0xff] %vm5642_vm10, %v5527_v53  ;;  %5901 = vrot.lane.b32.xlu1 %v12724_v2, %s10223_s28  ;;  %v6103_v53 = vld [vmem:[#allocation3 + $0xb2] sm:$0xff] }
 0x648   :  { %5899 = vrot.lane.b32.xlu0 %v12726_v11, %s10223_s28 }
 0x649   :  { %v5533_v56 = vpop.permute.xlu1 %5532 }
 0x64a   :  { %5684 = vst.msk [vmem:[#allocation5 + $0x148] sm:$0xff] %vm5642_vm10, %v5533_v56  ;;  %v5531_v44 = vpop.permute.xlu0 %5530  ;;  %v6102_v56 = vld [vmem:[#allocation3 + $0xaa] sm:$0xff] }
 0x64b   :  { %5683 = vst.msk [vmem:[#allocation5 + $0x140] sm:$0xff] %vm5642_vm10, %v5531_v44  ;;  %5905 = vrot.lane.b32.xlu1 %v12738_v61, %s10223_s28 }
 0x64c   :  { %5903 = vrot.lane.b32.xlu0 %v12740_v51, %s10223_s28 }
 0x64d   :  { %v5537_v33 = vpop.permute.xlu1 %5536 }
 0x64e   :  { %5686 = vst.msk [vmem:[#allocation5 + $0x158] sm:$0xff] %vm5642_vm10, %v5537_v33  ;;  %v5535_v31 = vpop.permute.xlu0 %5534 }
 0x64f   :  { %5685 = vst.msk [vmem:[#allocation5 + $0x150] sm:$0xff] %vm5642_vm10, %v5535_v31  ;;  %5909 = vrot.lane.b32.xlu1 %v12752_v52, %s10223_s28  ;;  %v6105_v31 = vld [vmem:[#allocation3 + $0xca] sm:$0xff] }
 0x650   :  { %5907 = vrot.lane.b32.xlu0 %v12754_v34, %s10223_s28 }
 0x651   :  { %v5541_v2 = vpop.permute.xlu1 %5540 }
 0x652   :  { %5688 = vst.msk [vmem:[#allocation5 + $0x168] sm:$0xff] %vm5642_vm10, %v5541_v2  ;;  %v5539_v11 = vpop.permute.xlu0 %5538  ;;  %v6104_v2 = vld [vmem:[#allocation3 + $0xc2] sm:$0xff] }
 0x653   :  { %5687 = vst.msk [vmem:[#allocation5 + $0x160] sm:$0xff] %vm5642_vm10, %v5539_v11  ;;  %5913 = vrot.lane.b32.xlu1 %v12766_v4, %s10223_s28 }
 0x654   :  { %5911 = vrot.lane.b32.xlu0 %v12768_v28, %s10223_s28 }
 0x655   :  { %v5545_v61 = vpop.permute.xlu1 %5544 }
 0x656   :  { %5690 = vst.msk [vmem:[#allocation5 + $0x178] sm:$0xff] %vm5642_vm10, %v5545_v61  ;;  %v5543_v51 = vpop.permute.xlu0 %5542 }
 0x657   :  { %5689 = vst.msk [vmem:[#allocation5 + $0x170] sm:$0xff] %vm5642_vm10, %v5543_v51  ;;  %5917 = vrot.lane.b32.xlu1 %v12780_v59, %s10223_s28  ;;  %v6107_v51 = vld [vmem:[#allocation3 + $0xe2] sm:$0xff] }
 0x658   :  { %5915 = vrot.lane.b32.xlu0 %v12782_v25, %s10223_s28 }
 0x659   :  { %v5549_v52 = vpop.permute.xlu1 %5548 }
 0x65a   :  { %5692 = vst.msk [vmem:[#allocation5 + $0x188] sm:$0xff] %vm5642_vm10, %v5549_v52  ;;  %v5547_v34 = vpop.permute.xlu0 %5546  ;;  %v6106_v52 = vld [vmem:[#allocation3 + $0xda] sm:$0xff] }
 0x65b   :  { %5691 = vst.msk [vmem:[#allocation5 + $0x180] sm:$0xff] %vm5642_vm10, %v5547_v34  ;;  %5921 = vrot.lane.b32.xlu1 %v12794_v12, %s10223_s28 }
 0x65c   :  { %5919 = vrot.lane.b32.xlu0 %v12796_v8, %s10223_s28 }
 0x65d   :  { %v5553_v4 = vpop.permute.xlu1 %5552 }
 0x65e   :  { %5694 = vst.msk [vmem:[#allocation5 + $0x198] sm:$0xff] %vm5642_vm10, %v5553_v4  ;;  %v5551_v28 = vpop.permute.xlu0 %5550 }
 0x65f   :  { %5693 = vst.msk [vmem:[#allocation5 + $0x190] sm:$0xff] %vm5642_vm10, %v5551_v28  ;;  %5925 = vrot.lane.b32.xlu1 %v12808_v20, %s10223_s28  ;;  %v6109_v28 = vld [vmem:[#allocation3 + $0xfa] sm:$0xff] }
 0x660   :  { %5923 = vrot.lane.b32.xlu0 %v12810_v62, %s10223_s28 }
 0x661   :  { %v5557_v59 = vpop.permute.xlu1 %5556 }
 0x662   :  { %5696 = vst.msk [vmem:[#allocation5 + $0x1a8] sm:$0xff] %vm5642_vm10, %v5557_v59  ;;  %v5555_v25 = vpop.permute.xlu0 %5554  ;;  %v6108_v59 = vld [vmem:[#allocation3 + $0xf2] sm:$0xff] }
 0x663   :  { %5695 = vst.msk [vmem:[#allocation5 + $0x1a0] sm:$0xff] %vm5642_vm10, %v5555_v25  ;;  %5929 = vrot.lane.b32.xlu1 %v12822_v1, %s10223_s28 }
 0x664   :  { %5927 = vrot.lane.b32.xlu0 %v12824_v19, %s10223_s28 }
 0x665   :  { %v5561_v12 = vpop.permute.xlu1 %5560 }
 0x666   :  { %5698 = vst.msk [vmem:[#allocation5 + $0x1b8] sm:$0xff] %vm5642_vm10, %v5561_v12  ;;  %v5559_v8 = vpop.permute.xlu0 %5558 }
 0x667   :  { %5697 = vst.msk [vmem:[#allocation5 + $0x1b0] sm:$0xff] %vm5642_vm10, %v5559_v8  ;;  %5933 = vrot.lane.b32.xlu1 %v12841_v41, %s10223_s28  ;;  %v14596_v41 = vld [vmem:[#allocation6_spill] sm:$0xff]  ;;  %v6111_v8 = vld [vmem:[#allocation3 + $0x112] sm:$0xff] }
 0x668   :  { %5931 = vrot.lane.b32.xlu0 %v12843_v13, %s10223_s28 }
 0x669   :  { %v5565_v20 = vpop.permute.xlu1 %5564 }
 0x66a   :  { %5700 = vst.msk [vmem:[#allocation5 + $0x1c8] sm:$0xff] %vm5642_vm10, %v5565_v20  ;;  %v5563_v62 = vpop.permute.xlu0 %5562  ;;  %v6110_v20 = vld [vmem:[#allocation3 + $0x10a] sm:$0xff] }
 0x66b   :  { %5699 = vst.msk [vmem:[#allocation5 + $0x1c0] sm:$0xff] %vm5642_vm10, %v5563_v62  ;;  %5937 = vrot.lane.b32.xlu1 %v12855_v17, %s10223_s28  ;;  %v14597_v17 = vld [vmem:[#allocation8_spill] sm:$0xff] }
 0x66c   :  { %5935 = vrot.lane.b32.xlu0 %v12857_v9, %s10223_s28  ;;  %v14598_v9 = vld [vmem:[#allocation7_spill] sm:$0xff] }
 0x66d   :  { %v5569_v1 = vpop.permute.xlu1 %5568 }
 0x66e   :  { %5702 = vst.msk [vmem:[#allocation5 + $0x1d8] sm:$0xff] %vm5642_vm10, %v5569_v1  ;;  %v5567_v19 = vpop.permute.xlu0 %5566 }
 0x66f   :  { %5701 = vst.msk [vmem:[#allocation5 + $0x1d0] sm:$0xff] %vm5642_vm10, %v5567_v19  ;;  %5941 = vrot.lane.b32.xlu1 %v12869_v47, %s10223_s28  ;;  %v14599_v47 = vld [vmem:[#allocation10_spill] sm:$0xff]  ;;  %v6113_v19 = vld [vmem:[#allocation3 + $0x12a] sm:$0xff] }
 0x670   :  { %5939 = vrot.lane.b32.xlu0 %v14596_v41, %s10223_s28  ;;  %v6112_v41 = vld [vmem:[#allocation3 + $0x122] sm:$0xff] }
 0x671   :  { %v5573_v13 = vpop.permute.xlu1 %5572 }
 0x672   :  { %5704 = vst.msk [vmem:[#allocation5 + $0x1e8] sm:$0xff] %vm5642_vm10, %v5573_v13  ;;  %v5571_v7 = vpop.permute.xlu0 %5570 }
 0x673   :  { %5703 = vst.msk [vmem:[#allocation5 + $0x1e0] sm:$0xff] %vm5642_vm10, %v5571_v7  ;;  %5945 = vrot.lane.b32.xlu1 %v14597_v17, %s10223_s28  ;;  %v6115_v17 = vld [vmem:[#allocation3 + $0x142] sm:$0xff] }
 0x674   :  { %5943 = vrot.lane.b32.xlu0 %v14598_v9, %s10223_s28  ;;  %v6114_v9 = vld [vmem:[#allocation3 + $0x13a] sm:$0xff] }
 0x675   :  { %v5577_v23 = vpop.permute.xlu1 %5576 }
 0x676   :  { %5706 = vst.msk [vmem:[#allocation5 + $0x1f8] sm:$0xff] %vm5642_vm10, %v5577_v23  ;;  %v5575_v27 = vpop.permute.xlu0 %5574 }
 0x677   :  { %5705 = vst.msk [vmem:[#allocation5 + $0x1f0] sm:$0xff] %vm5642_vm10, %v5575_v27  ;;  %5949 = vrot.lane.b32.xlu1 %v14599_v47, %s10223_s28  ;;  %v6117_v47 = vld [vmem:[#allocation3 + $0x15a] sm:$0xff] }
 0x678   :  { %5947 = vrot.lane.b32.xlu0 %v14600_v16, %s10223_s28  ;;  %v6116_v16 = vld [vmem:[#allocation3 + $0x152] sm:$0xff] }
 0x679   :  { %v5838_v46 = vpop.permute.xlu1 %5837 }
 0x67a   :  { %6029 = vst.msk [vmem:[#allocation5 + $0x8] sm:$0xff] %vm6027_vm5, %v5838_v46  ;;  %v5836_v36 = vpop.permute.xlu0 %5835 }
 0x67b   :  { %6028 = vst.msk [vmem:[#allocation5] sm:$0xff] %vm6027_vm5, %v5836_v36  ;;  %5953 = vrot.lane.b32.xlu1 %v14601_v26, %s10223_s28  ;;  %v6119_v26 = vld [vmem:[#allocation3 + $0x172] sm:$0xff] }
 0x67c   :  { %5951 = vrot.lane.b32.xlu0 %v14602_v15, %s10223_s28  ;;  %v6118_v15 = vld [vmem:[#allocation3 + $0x16a] sm:$0xff] }
 0x67d   :  { %v5842_v32 = vpop.permute.xlu1 %5841 }
 0x67e   :  { %6031 = vst.msk [vmem:[#allocation5 + $0x18] sm:$0xff] %vm6027_vm5, %v5842_v32  ;;  %v5840_v42 = vpop.permute.xlu0 %5839 }
 0x67f   :  { %6030 = vst.msk [vmem:[#allocation5 + $0x10] sm:$0xff] %vm6027_vm5, %v5840_v42  ;;  %5957 = vrot.lane.b32.xlu1 %v5768_v63, %s10223_s28  ;;  %v6121_v63 = vld [vmem:[#allocation3 + $0x18a] sm:$0xff] }
 0x680   :  { %5955 = vrot.lane.b32.xlu0 %v5767_v49, %s10223_s28  ;;  %v6120_v49 = vld [vmem:[#allocation3 + $0x182] sm:$0xff] }
 0x681   :  { %v5846_v29 = vpop.permute.xlu1 %5845 }
 0x682   :  { %6033 = vst.msk [vmem:[#allocation5 + $0x28] sm:$0xff] %vm6027_vm5, %v5846_v29  ;;  %v5844_v3 = vpop.permute.xlu0 %5843 }
 0x683   :  { %6032 = vst.msk [vmem:[#allocation5 + $0x20] sm:$0xff] %vm6027_vm5, %v5844_v3  ;;  %5961 = vrot.lane.b32.xlu1 %v5770_v22, %s10223_s28  ;;  %v6123_v22 = vld [vmem:[#allocation3 + $0x1a2] sm:$0xff] }
 0x684   :  { %5959 = vrot.lane.b32.xlu0 %v5769_v43, %s10223_s28  ;;  %v6122_v43 = vld [vmem:[#allocation3 + $0x19a] sm:$0xff] }
 0x685   :  { %v5850_v60 = vpop.permute.xlu1 %5849 }
 0x686   :  { %6035 = vst.msk [vmem:[#allocation5 + $0x38] sm:$0xff] %vm6027_vm5, %v5850_v60  ;;  %v5848_v39 = vpop.permute.xlu0 %5847 }
 0x687   :  { %6034 = vst.msk [vmem:[#allocation5 + $0x30] sm:$0xff] %vm6027_vm5, %v5848_v39  ;;  %6222 = vrot.lane.b32.xlu1 %v6093_v37, %s10225_s17  ;;  %v6125_v37 = vld [vmem:[#allocation3 + $0x21a] sm:$0xff] }
 0x688   :  { %6220 = vrot.lane.b32.xlu0 %v6092_v57, %s10225_s17  ;;  %v6124_v57 = vld [vmem:[#allocation3 + $0x212] sm:$0xff] }
 0x689   :  { %v5854_v58 = vpop.permute.xlu1 %5853 }
 0x68a   :  { %6037 = vst.msk [vmem:[#allocation5 + $0x48] sm:$0xff] %vm6027_vm5, %v5854_v58  ;;  %v5852_v50 = vpop.permute.xlu0 %5851 }
 0x68b   :  { %6036 = vst.msk [vmem:[#allocation5 + $0x40] sm:$0xff] %vm6027_vm5, %v5852_v50  ;;  %6226 = vrot.lane.b32.xlu1 %v6095_v18, %s10225_s17  ;;  %v6127_v18 = vld [vmem:[#allocation3 + $0x232] sm:$0xff] }
 0x68c   :  { %6224 = vrot.lane.b32.xlu0 %v6094_v21, %s10225_s17  ;;  %v6126_v21 = vld [vmem:[#allocation3 + $0x22a] sm:$0xff] }
 0x68d   :  { %v5858_v54 = vpop.permute.xlu1 %5857 }
 0x68e   :  { %6039 = vst.msk [vmem:[#allocation5 + $0x58] sm:$0xff] %vm6027_vm5, %v5858_v54  ;;  %v5856_v45 = vpop.permute.xlu0 %5855 }
 0x68f   :  { %6038 = vst.msk [vmem:[#allocation5 + $0x50] sm:$0xff] %vm6027_vm5, %v5856_v45  ;;  %6230 = vrot.lane.b32.xlu1 %v6097_v30, %s10225_s17  ;;  %v6129_v30 = vld [vmem:[#allocation3 + $0x24a] sm:$0xff] }
 0x690   :  { %6228 = vrot.lane.b32.xlu0 %v6096_v5, %s10225_s17  ;;  %v6128_v5 = vld [vmem:[#allocation3 + $0x242] sm:$0xff] }
 0x691   :  { %v5862_v38 = vpop.permute.xlu1 %5861 }
 0x692   :  { %6041 = vst.msk [vmem:[#allocation5 + $0x68] sm:$0xff] %vm6027_vm5, %v5862_v38  ;;  %v5860_v35 = vpop.permute.xlu0 %5859 }
 0x693   :  { %6040 = vst.msk [vmem:[#allocation5 + $0x60] sm:$0xff] %vm6027_vm5, %v5860_v35  ;;  %6234 = vrot.lane.b32.xlu1 %v6099_v10, %s10225_s17  ;;  %v6131_v10 = vld [vmem:[#allocation3 + $0x262] sm:$0xff] }
 0x694   :  { %6232 = vrot.lane.b32.xlu0 %v6098_v48, %s10225_s17  ;;  %v6130_v48 = vld [vmem:[#allocation3 + $0x25a] sm:$0xff] }
 0x695   :  { %v5866_v6 = vpop.permute.xlu1 %5865 }
 0x696   :  { %6043 = vst.msk [vmem:[#allocation5 + $0x78] sm:$0xff] %vm6027_vm5, %v5866_v6  ;;  %v5864_v24 = vpop.permute.xlu0 %5863 }
 0x697   :  { %6042 = vst.msk [vmem:[#allocation5 + $0x70] sm:$0xff] %vm6027_vm5, %v5864_v24  ;;  %6238 = vrot.lane.b32.xlu1 %v6101_v40, %s10225_s17  ;;  %v6133_v40 = vld [vmem:[#allocation3 + $0x27a] sm:$0xff] }
 0x698   :  { %6236 = vrot.lane.b32.xlu0 %v6100_v55, %s10225_s17  ;;  %v6132_v55 = vld [vmem:[#allocation3 + $0x272] sm:$0xff] }
 0x699   :  { %v5870_v0 = vpop.permute.xlu1 %5869 }
 0x69a   :  { %6045 = vst.msk [vmem:[#allocation5 + $0x88] sm:$0xff] %vm6027_vm5, %v5870_v0  ;;  %v5868_v14 = vpop.permute.xlu0 %5867 }
 0x69b   :  { %6044 = vst.msk [vmem:[#allocation5 + $0x80] sm:$0xff] %vm6027_vm5, %v5868_v14  ;;  %6242 = vrot.lane.b32.xlu1 %v6103_v53, %s10225_s17  ;;  %v6135_v53 = vld [vmem:[#allocation3 + $0x292] sm:$0xff] }
 0x69c   :  { %6240 = vrot.lane.b32.xlu0 %v6102_v56, %s10225_s17  ;;  %v6134_v56 = vld [vmem:[#allocation3 + $0x28a] sm:$0xff] }
 0x69d   :  { %v5874_v44 = vpop.permute.xlu1 %5873 }
 0x69e   :  { %6047 = vst.msk [vmem:[#allocation5 + $0x98] sm:$0xff] %vm6027_vm5, %v5874_v44  ;;  %v5872_v33 = vpop.permute.xlu0 %5871 }
 0x69f   :  { %6046 = vst.msk [vmem:[#allocation5 + $0x90] sm:$0xff] %vm6027_vm5, %v5872_v33  ;;  %6246 = vrot.lane.b32.xlu1 %v6105_v31, %s10225_s17  ;;  %v6137_v31 = vld [vmem:[#allocation3 + $0x2aa] sm:$0xff] }
 0x6a0   :  { %6244 = vrot.lane.b32.xlu0 %v6104_v2, %s10225_s17  ;;  %v6136_v2 = vld [vmem:[#allocation3 + $0x2a2] sm:$0xff] }
 0x6a1   :  { %v5878_v11 = vpop.permute.xlu1 %5877 }
 0x6a2   :  { %6049 = vst.msk [vmem:[#allocation5 + $0xa8] sm:$0xff] %vm6027_vm5, %v5878_v11  ;;  %v5876_v61 = vpop.permute.xlu0 %5875 }
 0x6a3   :  { %6048 = vst.msk [vmem:[#allocation5 + $0xa0] sm:$0xff] %vm6027_vm5, %v5876_v61  ;;  %6250 = vrot.lane.b32.xlu1 %v6107_v51, %s10225_s17  ;;  %v6139_v51 = vld [vmem:[#allocation3 + $0x2c2] sm:$0xff] }
 0x6a4   :  { %6248 = vrot.lane.b32.xlu0 %v6106_v52, %s10225_s17  ;;  %v6138_v52 = vld [vmem:[#allocation3 + $0x2ba] sm:$0xff] }
 0x6a5   :  { %v5882_v34 = vpop.permute.xlu1 %5881 }
 0x6a6   :  { %6051 = vst.msk [vmem:[#allocation5 + $0xb8] sm:$0xff] %vm6027_vm5, %v5882_v34  ;;  %v5880_v4 = vpop.permute.xlu0 %5879 }
 0x6a7   :  { %6050 = vst.msk [vmem:[#allocation5 + $0xb0] sm:$0xff] %vm6027_vm5, %v5880_v4  ;;  %6254 = vrot.lane.b32.xlu1 %v6109_v28, %s10225_s17  ;;  %v6141_v28 = vld [vmem:[#allocation3 + $0x2da] sm:$0xff] }
 0x6a8   :  { %6252 = vrot.lane.b32.xlu0 %v6108_v59, %s10225_s17  ;;  %v6140_v59 = vld [vmem:[#allocation3 + $0x2d2] sm:$0xff] }
 0x6a9   :  { %v5886_v25 = vpop.permute.xlu1 %5885 }
 0x6aa   :  { %6053 = vst.msk [vmem:[#allocation5 + $0xc8] sm:$0xff] %vm6027_vm5, %v5886_v25  ;;  %v5884_v12 = vpop.permute.xlu0 %5883 }
 0x6ab   :  { %6052 = vst.msk [vmem:[#allocation5 + $0xc0] sm:$0xff] %vm6027_vm5, %v5884_v12  ;;  %6258 = vrot.lane.b32.xlu1 %v6111_v8, %s10225_s17  ;;  %v6143_v8 = vld [vmem:[#allocation3 + $0x2f2] sm:$0xff] }
 0x6ac   :  { %6256 = vrot.lane.b32.xlu0 %v6110_v20, %s10225_s17  ;;  %v6142_v20 = vld [vmem:[#allocation3 + $0x2ea] sm:$0xff] }
 0x6ad   :  { %v5890_v62 = vpop.permute.xlu1 %5889 }
 0x6ae   :  { %6055 = vst.msk [vmem:[#allocation5 + $0xd8] sm:$0xff] %vm6027_vm5, %v5890_v62  ;;  %v5888_v1 = vpop.permute.xlu0 %5887 }
 0x6af   :  { %6054 = vst.msk [vmem:[#allocation5 + $0xd0] sm:$0xff] %vm6027_vm5, %v5888_v1  ;;  %6262 = vrot.lane.b32.xlu1 %v6113_v19, %s10225_s17  ;;  %v6145_v19 = vld [vmem:[#allocation3 + $0x30a] sm:$0xff] }
 0x6b0   :  { %6260 = vrot.lane.b32.xlu0 %v6112_v41, %s10225_s17  ;;  %v6144_v41 = vld [vmem:[#allocation3 + $0x302] sm:$0xff] }
 0x6b1   :  { %v5894_v13 = vpop.permute.xlu1 %5893 }
 0x6b2   :  { %6057 = vst.msk [vmem:[#allocation5 + $0xe8] sm:$0xff] %vm6027_vm5, %v5894_v13  ;;  %v5892_v7 = vpop.permute.xlu0 %5891 }
 0x6b3   :  { %6056 = vst.msk [vmem:[#allocation5 + $0xe0] sm:$0xff] %vm6027_vm5, %v5892_v7  ;;  %6266 = vrot.lane.b32.xlu1 %v6115_v17, %s10225_s17  ;;  %v6147_v17 = vld [vmem:[#allocation3 + $0x322] sm:$0xff] }
 0x6b4   :  { %6264 = vrot.lane.b32.xlu0 %v6114_v9, %s10225_s17  ;;  %v6146_v9 = vld [vmem:[#allocation3 + $0x31a] sm:$0xff] }
 0x6b5   :  { %v5898_v23 = vpop.permute.xlu1 %5897 }
 0x6b6   :  { %6059 = vst.msk [vmem:[#allocation5 + $0xf8] sm:$0xff] %vm6027_vm5, %v5898_v23  ;;  %v5896_v27 = vpop.permute.xlu0 %5895 }
 0x6b7   :  { %6058 = vst.msk [vmem:[#allocation5 + $0xf0] sm:$0xff] %vm6027_vm5, %v5896_v27  ;;  %6270 = vrot.lane.b32.xlu1 %v6117_v47, %s10225_s17  ;;  %v6149_v47 = vld [vmem:[#allocation3 + $0x33a] sm:$0xff] }
 0x6b8   :  { %6268 = vrot.lane.b32.xlu0 %v6116_v16, %s10225_s17  ;;  %v6148_v16 = vld [vmem:[#allocation3 + $0x332] sm:$0xff] }
 0x6b9   :  { %v5902_v46 = vpop.permute.xlu1 %5901 }
 0x6ba   :  { %6061 = vst.msk [vmem:[#allocation5 + $0x108] sm:$0xff] %vm6027_vm5, %v5902_v46  ;;  %v5900_v36 = vpop.permute.xlu0 %5899 }
 0x6bb   :  { %6060 = vst.msk [vmem:[#allocation5 + $0x100] sm:$0xff] %vm6027_vm5, %v5900_v36  ;;  %6274 = vrot.lane.b32.xlu1 %v6119_v26, %s10225_s17  ;;  %v6151_v26 = vld [vmem:[#allocation3 + $0x352] sm:$0xff] }
 0x6bc   :  { %6272 = vrot.lane.b32.xlu0 %v6118_v15, %s10225_s17  ;;  %v6150_v15 = vld [vmem:[#allocation3 + $0x34a] sm:$0xff] }
 0x6bd   :  { %v5906_v32 = vpop.permute.xlu1 %5905 }
 0x6be   :  { %6063 = vst.msk [vmem:[#allocation5 + $0x118] sm:$0xff] %vm6027_vm5, %v5906_v32  ;;  %v5904_v42 = vpop.permute.xlu0 %5903 }
 0x6bf   :  { %6062 = vst.msk [vmem:[#allocation5 + $0x110] sm:$0xff] %vm6027_vm5, %v5904_v42  ;;  %6278 = vrot.lane.b32.xlu1 %v6121_v63, %s10225_s17  ;;  %v6153_v63 = vld [vmem:[#allocation3 + $0x36a] sm:$0xff] }
 0x6c0   :  { %6276 = vrot.lane.b32.xlu0 %v6120_v49, %s10225_s17  ;;  %v6152_v49 = vld [vmem:[#allocation3 + $0x362] sm:$0xff] }
 0x6c1   :  { %v5910_v29 = vpop.permute.xlu1 %5909 }
 0x6c2   :  { %6065 = vst.msk [vmem:[#allocation5 + $0x128] sm:$0xff] %vm6027_vm5, %v5910_v29  ;;  %v5908_v3 = vpop.permute.xlu0 %5907 }
 0x6c3   :  { %6064 = vst.msk [vmem:[#allocation5 + $0x120] sm:$0xff] %vm6027_vm5, %v5908_v3  ;;  %6282 = vrot.lane.b32.xlu1 %v6123_v22, %s10225_s17  ;;  %v6155_v22 = vld [vmem:[#allocation3 + $0x382] sm:$0xff] }
 0x6c4   :  { %6280 = vrot.lane.b32.xlu0 %v6122_v43, %s10225_s17  ;;  %v6154_v43 = vld [vmem:[#allocation3 + $0x37a] sm:$0xff] }
 0x6c5   :  { %v5914_v60 = vpop.permute.xlu1 %5913 }
 0x6c6   :  { %6067 = vst.msk [vmem:[#allocation5 + $0x138] sm:$0xff] %vm6027_vm5, %v5914_v60  ;;  %v5912_v39 = vpop.permute.xlu0 %5911 }
 0x6c7   :  { %6066 = vst.msk [vmem:[#allocation5 + $0x130] sm:$0xff] %vm6027_vm5, %v5912_v39  ;;  %6286 = vrot.lane.b32.xlu1 %v6125_v37, %s10225_s17  ;;  %v6478_v37 = vld [vmem:[#allocation3 + $0x3c] sm:$0xff] }
 0x6c8   :  { %6284 = vrot.lane.b32.xlu0 %v6124_v57, %s10225_s17  ;;  %v6477_v57 = vld [vmem:[#allocation3 + $0x34] sm:$0xff] }
 0x6c9   :  { %v5918_v58 = vpop.permute.xlu1 %5917 }
 0x6ca   :  { %6069 = vst.msk [vmem:[#allocation5 + $0x148] sm:$0xff] %vm6027_vm5, %v5918_v58  ;;  %v5916_v50 = vpop.permute.xlu0 %5915 }
 0x6cb   :  { %6068 = vst.msk [vmem:[#allocation5 + $0x140] sm:$0xff] %vm6027_vm5, %v5916_v50  ;;  %6290 = vrot.lane.b32.xlu1 %v6127_v18, %s10225_s17  ;;  %v6480_v18 = vld [vmem:[#allocation3 + $0x54] sm:$0xff] }
 0x6cc   :  { %6288 = vrot.lane.b32.xlu0 %v6126_v21, %s10225_s17  ;;  %v6479_v21 = vld [vmem:[#allocation3 + $0x4c] sm:$0xff] }
 0x6cd   :  { %v5922_v54 = vpop.permute.xlu1 %5921 }
 0x6ce   :  { %6071 = vst.msk [vmem:[#allocation5 + $0x158] sm:$0xff] %vm6027_vm5, %v5922_v54  ;;  %v5920_v45 = vpop.permute.xlu0 %5919 }
 0x6cf   :  { %6070 = vst.msk [vmem:[#allocation5 + $0x150] sm:$0xff] %vm6027_vm5, %v5920_v45  ;;  %6294 = vrot.lane.b32.xlu1 %v6129_v30, %s10225_s17  ;;  %v13370_v30 = vld [vmem:[#allocation3 + $0x6c] sm:$0xff] }
 0x6d0   :  { %6292 = vrot.lane.b32.xlu0 %v6128_v5, %s10225_s17  ;;  %v13375_v5 = vld [vmem:[#allocation3 + $0x64] sm:$0xff] }
 0x6d1   :  { %v5926_v38 = vpop.permute.xlu1 %5925 }
 0x6d2   :  { %6073 = vst.msk [vmem:[#allocation5 + $0x168] sm:$0xff] %vm6027_vm5, %v5926_v38  ;;  %v5924_v35 = vpop.permute.xlu0 %5923 }
 0x6d3   :  { %6072 = vst.msk [vmem:[#allocation5 + $0x160] sm:$0xff] %vm6027_vm5, %v5924_v35  ;;  %6298 = vrot.lane.b32.xlu1 %v6131_v10, %s10225_s17  ;;  %v13380_v10 = vld [vmem:[#allocation3 + $0x84] sm:$0xff] }
 0x6d4   :  { %6296 = vrot.lane.b32.xlu0 %v6130_v48, %s10225_s17  ;;  %v13385_v48 = vld [vmem:[#allocation3 + $0x7c] sm:$0xff] }
 0x6d5   :  { %v5930_v6 = vpop.permute.xlu1 %5929 }
 0x6d6   :  { %6075 = vst.msk [vmem:[#allocation5 + $0x178] sm:$0xff] %vm6027_vm5, %v5930_v6  ;;  %v5928_v24 = vpop.permute.xlu0 %5927 }
 0x6d7   :  { %6074 = vst.msk [vmem:[#allocation5 + $0x170] sm:$0xff] %vm6027_vm5, %v5928_v24  ;;  %6302 = vrot.lane.b32.xlu1 %v6133_v40, %s10225_s17  ;;  %v13390_v40 = vld [vmem:[#allocation3 + $0x9c] sm:$0xff] }
 0x6d8   :  { %6300 = vrot.lane.b32.xlu0 %v6132_v55, %s10225_s17  ;;  %v13395_v55 = vld [vmem:[#allocation3 + $0x94] sm:$0xff] }
 0x6d9   :  { %v5934_v0 = vpop.permute.xlu1 %5933 }
 0x6da   :  { %6077 = vst.msk [vmem:[#allocation5 + $0x188] sm:$0xff] %vm6027_vm5, %v5934_v0  ;;  %v5932_v14 = vpop.permute.xlu0 %5931 }
 0x6db   :  { %6076 = vst.msk [vmem:[#allocation5 + $0x180] sm:$0xff] %vm6027_vm5, %v5932_v14  ;;  %6306 = vrot.lane.b32.xlu1 %v6135_v53, %s10225_s17  ;;  %v13400_v53 = vld [vmem:[#allocation3 + $0xb4] sm:$0xff] }
 0x6dc   :  { %6304 = vrot.lane.b32.xlu0 %v6134_v56, %s10225_s17  ;;  %v13405_v56 = vld [vmem:[#allocation3 + $0xac] sm:$0xff] }
 0x6dd   :  { %v5938_v44 = vpop.permute.xlu1 %5937 }
 0x6de   :  { %6079 = vst.msk [vmem:[#allocation5 + $0x198] sm:$0xff] %vm6027_vm5, %v5938_v44  ;;  %v5936_v33 = vpop.permute.xlu0 %5935 }
 0x6df   :  { %6078 = vst.msk [vmem:[#allocation5 + $0x190] sm:$0xff] %vm6027_vm5, %v5936_v33  ;;  %6310 = vrot.lane.b32.xlu1 %v6137_v31, %s10225_s17  ;;  %v13410_v31 = vld [vmem:[#allocation3 + $0xcc] sm:$0xff] }
 0x6e0   :  { %6308 = vrot.lane.b32.xlu0 %v6136_v2, %s10225_s17  ;;  %v13415_v2 = vld [vmem:[#allocation3 + $0xc4] sm:$0xff] }
 0x6e1   :  { %v5942_v11 = vpop.permute.xlu1 %5941 }
 0x6e2   :  { %6081 = vst.msk [vmem:[#allocation5 + $0x1a8] sm:$0xff] %vm6027_vm5, %v5942_v11  ;;  %v5940_v61 = vpop.permute.xlu0 %5939 }
 0x6e3   :  { %6080 = vst.msk [vmem:[#allocation5 + $0x1a0] sm:$0xff] %vm6027_vm5, %v5940_v61  ;;  %6314 = vrot.lane.b32.xlu1 %v6139_v51, %s10225_s17  ;;  %v13420_v51 = vld [vmem:[#allocation3 + $0xe4] sm:$0xff] }
 0x6e4   :  { %6312 = vrot.lane.b32.xlu0 %v6138_v52, %s10225_s17  ;;  %v13425_v52 = vld [vmem:[#allocation3 + $0xdc] sm:$0xff] }
 0x6e5   :  { %v5946_v34 = vpop.permute.xlu1 %5945 }
 0x6e6   :  { %6083 = vst.msk [vmem:[#allocation5 + $0x1b8] sm:$0xff] %vm6027_vm5, %v5946_v34  ;;  %v5944_v4 = vpop.permute.xlu0 %5943 }
 0x6e7   :  { %6082 = vst.msk [vmem:[#allocation5 + $0x1b0] sm:$0xff] %vm6027_vm5, %v5944_v4  ;;  %6318 = vrot.lane.b32.xlu1 %v6141_v28, %s10225_s17  ;;  %v13430_v28 = vld [vmem:[#allocation3 + $0xfc] sm:$0xff] }
 0x6e8   :  { %6316 = vrot.lane.b32.xlu0 %v6140_v59, %s10225_s17  ;;  %v13435_v59 = vld [vmem:[#allocation3 + $0xf4] sm:$0xff] }
 0x6e9   :  { %v5950_v25 = vpop.permute.xlu1 %5949 }
 0x6ea   :  { %6085 = vst.msk [vmem:[#allocation5 + $0x1c8] sm:$0xff] %vm6027_vm5, %v5950_v25  ;;  %v5948_v12 = vpop.permute.xlu0 %5947 }
 0x6eb   :  { %6084 = vst.msk [vmem:[#allocation5 + $0x1c0] sm:$0xff] %vm6027_vm5, %v5948_v12  ;;  %6322 = vrot.lane.b32.xlu1 %v6143_v8, %s10225_s17  ;;  %v13440_v8 = vld [vmem:[#allocation3 + $0x114] sm:$0xff] }
 0x6ec   :  { %6320 = vrot.lane.b32.xlu0 %v6142_v20, %s10225_s17  ;;  %v13445_v20 = vld [vmem:[#allocation3 + $0x10c] sm:$0xff] }
 0x6ed   :  { %v5954_v62 = vpop.permute.xlu1 %5953 }
 0x6ee   :  { %6087 = vst.msk [vmem:[#allocation5 + $0x1d8] sm:$0xff] %vm6027_vm5, %v5954_v62  ;;  %v5952_v1 = vpop.permute.xlu0 %5951 }
 0x6ef   :  { %6086 = vst.msk [vmem:[#allocation5 + $0x1d0] sm:$0xff] %vm6027_vm5, %v5952_v1  ;;  %6326 = vrot.lane.b32.xlu1 %v6145_v19, %s10225_s17  ;;  %v13450_v19 = vld [vmem:[#allocation3 + $0x12c] sm:$0xff] }
 0x6f0   :  { %6324 = vrot.lane.b32.xlu0 %v6144_v41, %s10225_s17  ;;  %v13455_v41 = vld [vmem:[#allocation3 + $0x124] sm:$0xff] }
 0x6f1   :  { %v5958_v13 = vpop.permute.xlu1 %5957 }
 0x6f2   :  { %6089 = vst.msk [vmem:[#allocation5 + $0x1e8] sm:$0xff] %vm6027_vm5, %v5958_v13  ;;  %v5956_v7 = vpop.permute.xlu0 %5955  ;;  %v8121_v13 = vld [vmem:[#allocation2 + $0x181] sm:$0xff] }
 0x6f3   :  { %6088 = vst.msk [vmem:[#allocation5 + $0x1e0] sm:$0xff] %vm6027_vm5, %v5956_v7  ;;  %6330 = vrot.lane.b32.xlu1 %v6147_v17, %s10225_s17  ;;  %v8155_v7 = vld [vmem:[%s14540_s6] sm:$0xf]  ;;  %9939 = vmatprep.mubr.msk.f32.mxu1 %vm26_vm0, %v8121_v13  ;;  %v8122_v17 = vld [vmem:[#allocation2 + $0x189] sm:$0xff] }
 0x6f4   :  { %6328 = vrot.lane.b32.xlu0 %v6146_v9, %s10225_s17  ;;  %10128 = vmatprep.subr.msk.mxu1 %vm4163_vm14, %v8155_v7 }
 0x6f5   :  { %v5962_v23 = vpop.permute.xlu1 %5961  ;;  %9892 = vmatprep.subr.msk.mxu0 %vm4163_vm14, %v8155_v7  ;;  %10129 = vmatpush3.msk.msra.mxu1 %vm4163_vm14, %v8155_v7 }
 0x6f6   :  { %6091 = vst.msk [vmem:[#allocation5 + $0x1f8] sm:$0xff] %vm6027_vm5, %v5962_v23  ;;  %v5960_v27 = vpop.permute.xlu0 %5959  ;;  %9893 = vmatpush3.msk.msra.mxu0 %vm4163_vm14, %v8155_v7  ;;  %9940 = vmatmul.mubr.msk.f32.vlgmr.msra.gmra.mrb[0].mxu1 %vm26_vm0, %v8122_v17  ;;  %v6514_v7 = vld [vmem:[#allocation3 + $0x24c] sm:$0xff]  ;;  %v6513_v17 = vld [vmem:[#allocation3 + $0x244] sm:$0xff]  ;;  %vm6797_vm14 = vcmask 392512  }
 0x6f7   :  { %6090 = vst.msk [vmem:[#allocation5 + $0x1f0] sm:$0xff] %vm6027_vm5, %v5960_v27  ;;  %6334 = vrot.lane.b32.xlu1 %v6149_v47, %s10225_s17  ;;  %v13466_v27 = vld [vmem:[#allocation3 + $0x144] sm:$0xff]  ;;  %v13473_v47 = vld [vmem:[#allocation3 + $0x13c] sm:$0xff] }
 0x6f8   :  { %6332 = vrot.lane.b32.xlu0 %v6148_v16, %s10225_s17  ;;  %v8123_v16 = vld [vmem:[#allocation2 + $0x1c9] sm:$0xff] }
 0x6f9   :  { %v6223_v46 = vpop.permute.xlu1 %6222  ;;  %9942 = vmatprep.mubr.msk.f32.mxu1 %vm26_vm0, %v8123_v16 }
 0x6fa   :  { %6414 = vst.msk [vmem:[#allocation5 + $0x8] sm:$0xff] %vm6412_vm11, %v6223_v46  ;;  %v6221_v36 = vpop.permute.xlu0 %6220  ;;  %v8124_v46 = vld [vmem:[#allocation2 + $0x1d1] sm:$0xff] }
 0x6fb   :  { %6413 = vst.msk [vmem:[#allocation5] sm:$0xff] %vm6412_vm11, %v6221_v36  ;;  %6338 = vrot.lane.b32.xlu1 %v6151_v26, %s10225_s17  ;;  %9943 = vmatmul.mubr.msk.f32.gmra.mrb[2].mxu1 %vm26_vm0, %v8124_v46 }
 0x6fc   :  { %6336 = vrot.lane.b32.xlu0 %v6150_v15, %s10225_s17  ;;  %v13480_v15 = vld [vmem:[#allocation3 + $0x15c] sm:$0xff] }
 0x6fd   :  { %v6227_v32 = vpop.permute.xlu1 %6226 }
 0x6fe   :  { %6416 = vst.msk [vmem:[#allocation5 + $0x18] sm:$0xff] %vm6412_vm11, %v6227_v32  ;;  %v6225_v42 = vpop.permute.xlu0 %6224  ;;  %v13485_v32 = vld [vmem:[#allocation3 + $0x154] sm:$0xff] }
 0x6ff   :  { %6415 = vst.msk [vmem:[#allocation5 + $0x10] sm:$0xff] %vm6412_vm11, %v6225_v42  ;;  %6342 = vrot.lane.b32.xlu1 %v6153_v63, %s10225_s17  ;;  %v8125_v42 = vld [vmem:[#allocation2 + $0x1e1] sm:$0xff]  ;;  %v8126_v63 = vld [vmem:[#allocation2 + $0x1e9] sm:$0xff] }
 0x700   :  { %6340 = vrot.lane.b32.xlu0 %v6152_v49, %s10225_s17  ;;  %9945 = vmatprep.mubr.msk.f32.mxu1 %vm26_vm0, %v8125_v42  ;;  %v8139_v42 = vld [vmem:[#allocation2 + $0x289] sm:$0xff] }
 0x701   :  { %v6231_v29 = vpop.permute.xlu1 %6230  ;;  %9946 = vmatmul.mubr.msk.f32.gmra.mrb[4].mxu1 %vm26_vm0, %v8126_v63  ;;  %v8140_v63 = vld [vmem:[#allocation2 + $0x291] sm:$0xff] }
 0x702   :  { %6418 = vst.msk [vmem:[#allocation5 + $0x28] sm:$0xff] %vm6412_vm11, %v6231_v29  ;;  %v6229_v3 = vpop.permute.xlu0 %6228 }
 0x703   :  { %6417 = vst.msk [vmem:[#allocation5 + $0x20] sm:$0xff] %vm6412_vm11, %v6229_v3  ;;  %6346 = vrot.lane.b32.xlu1 %v6155_v22, %s10225_s17  ;;  %v13492_v3 = vld [vmem:[#allocation3 + $0x174] sm:$0xff]  ;;  %v13497_v22 = vld [vmem:[#allocation3 + $0x16c] sm:$0xff] }
 0x704   :  { %6344 = vrot.lane.b32.xlu0 %v6154_v43, %s10225_s17  ;;  %v8127_v43 = vld [vmem:[#allocation2 + $0x1f9] sm:$0xff] }
 0x705   :  { %v6235_v60 = vpop.permute.xlu1 %6234  ;;  %9948 = vmatprep.mubr.msk.f32.mxu1 %vm26_vm0, %v8127_v43  ;;  %v6518_v43 = vld [vmem:[#allocation3 + $0x27c] sm:$0xff] }
 0x706   :  { %6420 = vst.msk [vmem:[#allocation5 + $0x38] sm:$0xff] %vm6412_vm11, %v6235_v60  ;;  %v6233_v39 = vpop.permute.xlu0 %6232  ;;  %v8128_v60 = vld [vmem:[#allocation2 + $0x201] sm:$0xff] }
 0x707   :  { %6419 = vst.msk [vmem:[#allocation5 + $0x30] sm:$0xff] %vm6412_vm11, %v6233_v39  ;;  %6607 = vrot.lane.b32.xlu1 %v6478_v37, %s10226_s5  ;;  %9949 = vmatmul.mubr.msk.f32.gmra.mrb[6].mxu1 %vm26_vm0, %v8128_v60  ;;  %v6517_v60 = vld [vmem:[#allocation3 + $0x274] sm:$0xff] }
 0x708   :  { %6605 = vrot.lane.b32.xlu0 %v6477_v57, %s10226_s5  ;;  %v6506_v57 = vld [vmem:[#allocation3 + $0x18c] sm:$0xff] }
 0x709   :  { %v6239_v58 = vpop.permute.xlu1 %6238 }
 0x70a   :  { %6422 = vst.msk [vmem:[#allocation5 + $0x48] sm:$0xff] %vm6412_vm11, %v6239_v58  ;;  %v6237_v50 = vpop.permute.xlu0 %6236  ;;  %v6505_v58 = vld [vmem:[#allocation3 + $0x184] sm:$0xff] }
 0x70b   :  { %6421 = vst.msk [vmem:[#allocation5 + $0x40] sm:$0xff] %vm6412_vm11, %v6237_v50  ;;  %6611 = vrot.lane.b32.xlu1 %v6480_v18, %s10226_s5  ;;  %v8129_v50 = vld [vmem:[#allocation2 + $0x211] sm:$0xff]  ;;  %v8130_v18 = vld [vmem:[#allocation2 + $0x219] sm:$0xff] }
 0x70c   :  { %6609 = vrot.lane.b32.xlu0 %v6479_v21, %s10226_s5  ;;  %9951 = vmatprep.mubr.msk.f32.mxu1 %vm26_vm0, %v8129_v50  ;;  %v6520_v50 = vld [vmem:[#allocation3 + $0x294] sm:$0xff] }
 0x70d   :  { %v6243_v54 = vpop.permute.xlu1 %6242  ;;  %9952 = vmatmul.mubr.msk.f32.gmra.mrb[8].mxu1 %vm26_vm0, %v8130_v18  ;;  %v6519_v18 = vld [vmem:[#allocation3 + $0x28c] sm:$0xff] }
 0x70e   :  { %6424 = vst.msk [vmem:[#allocation5 + $0x58] sm:$0xff] %vm6412_vm11, %v6243_v54  ;;  %v6241_v45 = vpop.permute.xlu0 %6240 }
 0x70f   :  { %6423 = vst.msk [vmem:[#allocation5 + $0x50] sm:$0xff] %vm6412_vm11, %v6241_v45  ;;  %6615 = vrot.lane.b32.xlu1 %v13370_v30, %s10226_s5  ;;  %v6508_v45 = vld [vmem:[#allocation3 + $0x1a4] sm:$0xff] }
 0x710   :  { %6613 = vrot.lane.b32.xlu0 %v13375_v5, %s10226_s5 }
 0x711   :  { %v6247_v38 = vpop.permute.xlu1 %6246 }
 0x712   :  { %6426 = vst.msk [vmem:[#allocation5 + $0x68] sm:$0xff] %vm6412_vm11, %v6247_v38  ;;  %v6245_v35 = vpop.permute.xlu0 %6244  ;;  %v6507_v38 = vld [vmem:[#allocation3 + $0x19c] sm:$0xff] }
 0x713   :  { %6425 = vst.msk [vmem:[#allocation5 + $0x60] sm:$0xff] %vm6412_vm11, %v6245_v35  ;;  %6619 = vrot.lane.b32.xlu1 %v13380_v10, %s10226_s5  ;;  %v8131_v35 = vld [vmem:[#allocation2 + $0x229] sm:$0xff] }
 0x714   :  { %6617 = vrot.lane.b32.xlu0 %v13385_v48, %s10226_s5  ;;  %9954 = vmatprep.mubr.msk.f32.mxu1 %vm26_vm0, %v8131_v35  ;;  %v6522_v35 = vld [vmem:[#allocation3 + $0x2ac] sm:$0xff] }
 0x715   :  { %v6251_v6 = vpop.permute.xlu1 %6250 }
 0x716   :  { %6428 = vst.msk [vmem:[#allocation5 + $0x78] sm:$0xff] %vm6412_vm11, %v6251_v6  ;;  %v6249_v24 = vpop.permute.xlu0 %6248  ;;  %v8132_v6 = vld [vmem:[#allocation2 + $0x231] sm:$0xff] }
 0x717   :  { %6427 = vst.msk [vmem:[#allocation5 + $0x70] sm:$0xff] %vm6412_vm11, %v6249_v24  ;;  %6623 = vrot.lane.b32.xlu1 %v13390_v40, %s10226_s5  ;;  %9955 = vmatmul.mubr.msk.f32.gmra.mrb[10].mxu1 %vm26_vm0, %v8132_v6  ;;  %v6521_v6 = vld [vmem:[#allocation3 + $0x2a4] sm:$0xff] }
 0x718   :  { %6621 = vrot.lane.b32.xlu0 %v13395_v55, %s10226_s5 }
 0x719   :  { %v6255_v0 = vpop.permute.xlu1 %6254 }
 0x71a   :  { %6430 = vst.msk [vmem:[#allocation5 + $0x88] sm:$0xff] %vm6412_vm11, %v6255_v0  ;;  %v6253_v14 = vpop.permute.xlu0 %6252 }
 0x71b   :  { %6429 = vst.msk [vmem:[#allocation5 + $0x80] sm:$0xff] %vm6412_vm11, %v6253_v14  ;;  %6627 = vrot.lane.b32.xlu1 %v13400_v53, %s10226_s5  ;;  %v6510_v14 = vld [vmem:[#allocation3 + $0x21c] sm:$0xff] }
 0x71c   :  { %6625 = vrot.lane.b32.xlu0 %v13405_v56, %s10226_s5 }
 0x71d   :  { %v6259_v44 = vpop.permute.xlu1 %6258 }
 0x71e   :  { %6432 = vst.msk [vmem:[#allocation5 + $0x98] sm:$0xff] %vm6412_vm11, %v6259_v44  ;;  %v6257_v33 = vpop.permute.xlu0 %6256  ;;  %v6509_v44 = vld [vmem:[#allocation3 + $0x214] sm:$0xff] }
 0x71f   :  { %6431 = vst.msk [vmem:[#allocation5 + $0x90] sm:$0xff] %vm6412_vm11, %v6257_v33  ;;  %6631 = vrot.lane.b32.xlu1 %v13410_v31, %s10226_s5  ;;  %v8133_v33 = vld [vmem:[#allocation2 + $0x241] sm:$0xff] }
 0x720   :  { %6629 = vrot.lane.b32.xlu0 %v13415_v2, %s10226_s5  ;;  %9957 = vmatprep.mubr.msk.f32.mxu1 %vm26_vm0, %v8133_v33  ;;  %v6524_v33 = vld [vmem:[#allocation3 + $0x2c4] sm:$0xff] }
 0x721   :  { %v6263_v11 = vpop.permute.xlu1 %6262 }
 0x722   :  { %6434 = vst.msk [vmem:[#allocation5 + $0xa8] sm:$0xff] %vm6412_vm11, %v6263_v11  ;;  %v6261_v61 = vpop.permute.xlu0 %6260  ;;  %v8134_v11 = vld [vmem:[#allocation2 + $0x249] sm:$0xff] }
 0x723   :  { %6433 = vst.msk [vmem:[#allocation5 + $0xa0] sm:$0xff] %vm6412_vm11, %v6261_v61  ;;  %6635 = vrot.lane.b32.xlu1 %v13420_v51, %s10226_s5  ;;  %9958 = vmatmul.mubr.msk.f32.gmra.mrb[12].mxu1 %vm26_vm0, %v8134_v11  ;;  %v6523_v11 = vld [vmem:[#allocation3 + $0x2bc] sm:$0xff] }
 0x724   :  { %6633 = vrot.lane.b32.xlu0 %v13425_v52, %s10226_s5 }
 0x725   :  { %v6267_v34 = vpop.permute.xlu1 %6266 }
 0x726   :  { %6436 = vst.msk [vmem:[#allocation5 + $0xb8] sm:$0xff] %vm6412_vm11, %v6267_v34  ;;  %v6265_v4 = vpop.permute.xlu0 %6264 }
 0x727   :  { %6435 = vst.msk [vmem:[#allocation5 + $0xb0] sm:$0xff] %vm6412_vm11, %v6265_v4  ;;  %6639 = vrot.lane.b32.xlu1 %v13430_v28, %s10226_s5  ;;  %v6512_v4 = vld [vmem:[#allocation3 + $0x234] sm:$0xff] }
 0x728   :  { %6637 = vrot.lane.b32.xlu0 %v13435_v59, %s10226_s5 }
 0x729   :  { %v6271_v25 = vpop.permute.xlu1 %6270 }
 0x72a   :  { %6438 = vst.msk [vmem:[#allocation5 + $0xc8] sm:$0xff] %vm6412_vm11, %v6271_v25  ;;  %v6269_v12 = vpop.permute.xlu0 %6268  ;;  %v6511_v25 = vld [vmem:[#allocation3 + $0x22c] sm:$0xff] }
 0x72b   :  { %6437 = vst.msk [vmem:[#allocation5 + $0xc0] sm:$0xff] %vm6412_vm11, %v6269_v12  ;;  %6643 = vrot.lane.b32.xlu1 %v13440_v8, %s10226_s5  ;;  %v8135_v12 = vld [vmem:[#allocation2 + $0x259] sm:$0xff] }
 0x72c   :  { %6641 = vrot.lane.b32.xlu0 %v13445_v20, %s10226_s5  ;;  %9960 = vmatprep.mubr.msk.f32.mxu1 %vm26_vm0, %v8135_v12  ;;  %v8083_v12 = vld [vmem:[%s14541_s2 + $0x8] sm:$0xff] }
 0x72d   :  { %v6275_v62 = vpop.permute.xlu1 %6274 }
 0x72e   :  { %6440 = vst.msk [vmem:[#allocation5 + $0xd8] sm:$0xff] %vm6412_vm11, %v6275_v62  ;;  %v6273_v1 = vpop.permute.xlu0 %6272  ;;  %v8136_v62 = vld [vmem:[#allocation2 + $0x261] sm:$0xff] }
 0x72f   :  { %6439 = vst.msk [vmem:[#allocation5 + $0xd0] sm:$0xff] %vm6412_vm11, %v6273_v1  ;;  %6647 = vrot.lane.b32.xlu1 %v13450_v19, %s10226_s5  ;;  %9961 = vmatmul.mubr.msk.f32.gmra.mrb[14].mxu1 %vm26_vm0, %v8136_v62 }
 0x730   :  { %6645 = vrot.lane.b32.xlu0 %v13455_v41, %s10226_s5 }
 0x731   :  { %v6279_v9 = vpop.permute.xlu1 %6278 }
 0x732   :  { %6442 = vst.msk [vmem:[#allocation5 + $0xe8] sm:$0xff] %vm6412_vm11, %v6279_v9  ;;  %v6277_v23 = vpop.permute.xlu0 %6276  ;;  %v8137_v9 = vld [vmem:[#allocation2 + $0x271] sm:$0xff] }
 0x733   :  { %6441 = vst.msk [vmem:[#allocation5 + $0xe0] sm:$0xff] %vm6412_vm11, %v6277_v23  ;;  %6651 = vrot.lane.b32.xlu1 %v13466_v27, %s10226_s5  ;;  %9963 = vmatprep.mubr.msk.f32.mxu1 %vm26_vm0, %v8137_v9  ;;  %v8138_v23 = vld [vmem:[#allocation2 + $0x279] sm:$0xff]  ;;  %v8150_v9 = vld [vmem:[#allocation2 + $0x309] sm:$0xff] }
 0x734   :  { %6649 = vrot.lane.b32.xlu0 %v13473_v47, %s10226_s5  ;;  %9964 = vmatmul.mubr.msk.f32.gmra.mrb[16].mxu1 %vm26_vm0, %v8138_v23  ;;  %v8084_v23 = vld [vmem:[%s14541_s2 + $0x10] sm:$0xff] }
 0x735   :  { %v6283_v36 = vpop.permute.xlu1 %6282  ;;  %9966 = vmatprep.mubr.msk.f32.mxu1 %vm26_vm0, %v8139_v42  ;;  %v6528_v42 = vld [vmem:[#allocation3 + $0x2f4] sm:$0xff] }
 0x736   :  { %6444 = vst.msk [vmem:[#allocation5 + $0xf8] sm:$0xff] %vm6412_vm11, %v6283_v36  ;;  %v6281_v26 = vpop.permute.xlu0 %6280  ;;  %v6516_v36 = vld [vmem:[#allocation3 + $0x264] sm:$0xff] }
 0x737   :  { %6443 = vst.msk [vmem:[#allocation5 + $0xf0] sm:$0xff] %vm6412_vm11, %v6281_v26  ;;  %6655 = vrot.lane.b32.xlu1 %v13480_v15, %s10226_s5  ;;  %v6515_v26 = vld [vmem:[#allocation3 + $0x25c] sm:$0xff] }
 0x738   :  { %6653 = vrot.lane.b32.xlu0 %v13485_v32, %s10226_s5  ;;  %9967 = vmatmul.mubr.msk.f32.gmra.mrb[18].mxu1 %vm26_vm0, %v8140_v63  ;;  %v6527_v63 = vld [vmem:[#allocation3 + $0x2ec] sm:$0xff] }
 0x739   :  { %v6287_v49 = vpop.permute.xlu1 %6286 }
 0x73a   :  { %6446 = vst.msk [vmem:[#allocation5 + $0x108] sm:$0xff] %vm6412_vm11, %v6287_v49  ;;  %v6285_v29 = vpop.permute.xlu0 %6284 }
 0x73b   :  { %6445 = vst.msk [vmem:[#allocation5 + $0x100] sm:$0xff] %vm6412_vm11, %v6285_v29  ;;  %6659 = vrot.lane.b32.xlu1 %v13492_v3, %s10226_s5 }
 0x73c   :  { %6657 = vrot.lane.b32.xlu0 %v13497_v22, %s10226_s5 }
 0x73d   :  { %v6291_v39 = vpop.permute.xlu1 %6290 }
 0x73e   :  { %6448 = vst.msk [vmem:[#allocation5 + $0x118] sm:$0xff] %vm6412_vm11, %v6291_v39  ;;  %v6289_v37 = vpop.permute.xlu0 %6288  ;;  %v8141_v39 = vld [vmem:[#allocation2 + $0x2a1] sm:$0xff] }
 0x73f   :  { %6447 = vst.msk [vmem:[#allocation5 + $0x110] sm:$0xff] %vm6412_vm11, %v6289_v37  ;;  %6663 = vrot.lane.b32.xlu1 %v6506_v57, %s10226_s5  ;;  %9969 = vmatprep.mubr.msk.f32.mxu1 %vm26_vm0, %v8141_v39  ;;  %v8142_v37 = vld [vmem:[#allocation2 + $0x2a9] sm:$0xff] }
 0x740   :  { %6661 = vrot.lane.b32.xlu0 %v6505_v58, %s10226_s5  ;;  %9970 = vmatmul.mubr.msk.f32.gmra.mrb[20].mxu1 %vm26_vm0, %v8142_v37 }
 0x741   :  { %v6295_v21 = vpop.permute.xlu1 %6294 }
 0x742   :  { %6450 = vst.msk [vmem:[#allocation5 + $0x128] sm:$0xff] %vm6412_vm11, %v6295_v21  ;;  %v6293_v54 = vpop.permute.xlu0 %6292  ;;  %v8143_v21 = vld [vmem:[#allocation2 + $0x2b9] sm:$0xff] }
 0x743   :  { %6449 = vst.msk [vmem:[#allocation5 + $0x120] sm:$0xff] %vm6412_vm11, %v6293_v54  ;;  %6667 = vrot.lane.b32.xlu1 %v6508_v45, %s10226_s5  ;;  %9972 = vmatprep.mubr.msk.f32.mxu1 %vm26_vm0, %v8143_v21  ;;  %v8144_v54 = vld [vmem:[#allocation2 + $0x2c1] sm:$0xff]  ;;  %v8154_v21 = vld [vmem:[#allocation2 + $0x339] sm:$0xff] }
 0x744   :  { %6665 = vrot.lane.b32.xlu0 %v6507_v38, %s10226_s5  ;;  %9973 = vmatmul.mubr.msk.f32.gmra.mrb[22].mxu1 %vm26_vm0, %v8144_v54  ;;  %v8088_v54 = vld [vmem:[%s14541_s2 + $0x30] sm:$0xff] }
 0x745   :  { %v6299_v24 = vpop.permute.xlu1 %6298 }
 0x746   :  { %6452 = vst.msk [vmem:[#allocation5 + $0x138] sm:$0xff] %vm6412_vm11, %v6299_v24  ;;  %v6297_v0 = vpop.permute.xlu0 %6296  ;;  %v8145_v24 = vld [vmem:[#allocation2 + $0x2d1] sm:$0xff] }
 0x747   :  { %6451 = vst.msk [vmem:[#allocation5 + $0x130] sm:$0xff] %vm6412_vm11, %v6297_v0  ;;  %6671 = vrot.lane.b32.xlu1 %v6510_v14, %s10226_s5  ;;  %9975 = vmatprep.mubr.msk.f32.mxu1 %vm26_vm0, %v8145_v24  ;;  %v8146_v0 = vld [vmem:[#allocation2 + $0x2d9] sm:$0xff]  ;;  %v10210_v24 = vld [vmem:[#allocation3 + $0x62] sm:$0xff] }
 0x748   :  { %6669 = vrot.lane.b32.xlu0 %v6509_v44, %s10226_s5  ;;  %9976 = vmatmul.mubr.msk.f32.gmra.mrb[24].mxu1 %vm26_vm0, %v8146_v0  ;;  %v6864_v0 = vld [vmem:[#allocation3 + $0x68] sm:$0xff] }
 0x749   :  { %v6303_v61 = vpop.permute.xlu1 %6302 }
 0x74a   :  { %6454 = vst.msk [vmem:[#allocation5 + $0x148] sm:$0xff] %vm6412_vm11, %v6303_v61  ;;  %v6301_v34 = vpop.permute.xlu0 %6300  ;;  %v8147_v61 = vld [vmem:[#allocation2 + $0x2e9] sm:$0xff] }
 0x74b   :  { %6453 = vst.msk [vmem:[#allocation5 + $0x140] sm:$0xff] %vm6412_vm11, %v6301_v34  ;;  %6675 = vrot.lane.b32.xlu1 %v6512_v4, %s10226_s5  ;;  %9978 = vmatprep.mubr.msk.f32.mxu1 %vm26_vm0, %v8147_v61  ;;  %v8148_v34 = vld [vmem:[#allocation2 + $0x2f1] sm:$0xff]  ;;  %v8092_v61 = vld [vmem:[#allocation2 + $0x21] sm:$0xff] }
 0x74c   :  { %6673 = vrot.lane.b32.xlu0 %v6511_v25, %s10226_s5  ;;  %v8082_v25 = vld [vmem:[%s14541_s2] sm:$0xff]  ;;  %9979 = vmatmul.mubr.msk.f32.gmra.mrb[26].mxu1 %vm26_vm0, %v8148_v34  ;;  %v10211_v34 = vld [vmem:[#allocation3 + $0x6a] sm:$0xff] }
 0x74d   :  { %v6307_v1 = vpop.permute.xlu1 %6306 }
 0x74e   :  { %6456 = vst.msk [vmem:[#allocation5 + $0x158] sm:$0xff] %vm6412_vm11, %v6307_v1  ;;  %v6305_v13 = vpop.permute.xlu0 %6304  ;;  %v6526_v1 = vld [vmem:[#allocation3 + $0x2dc] sm:$0xff] }
 0x74f   :  { %6455 = vst.msk [vmem:[#allocation5 + $0x150] sm:$0xff] %vm6412_vm11, %v6305_v13  ;;  %6679 = vrot.lane.b32.xlu1 %v6514_v7, %s10226_s5  ;;  %v10112_v13 = vpack.c.bf16 %v8083_v12, %v8082_v25  ;;  %v6525_v7 = vld [vmem:[#allocation3 + $0x2d4] sm:$0xff] }
 0x750   :  { %6677 = vrot.lane.b32.xlu0 %v6513_v17, %s10226_s5  ;;  %v8149_v17 = vld [vmem:[#allocation2 + $0x301] sm:$0xff]  ;;  %v6865_v12 = vld [vmem:[#allocation3 + $0x78] sm:$0xff] }
 0x751   :  { %v6311_v16 = vpop.permute.xlu1 %6310  ;;  %10113 = vmatprep.subr.bf16.mxu1 %v10112_v13  ;;  %9981 = vmatprep.mubr.msk.f32.mxu1 %vm26_vm0, %v8149_v17 }
 0x752   :  { %6458 = vst.msk [vmem:[#allocation5 + $0x168] sm:$0xff] %vm6412_vm11, %v6311_v16  ;;  %v6309_v46 = vpop.permute.xlu0 %6308  ;;  %v8085_v16 = vld [vmem:[%s14541_s2 + $0x18] sm:$0xff]  ;;  %10115 = vmatpush3.bf16.msra.mxu1 %v10112_v13  ;;  %v6866_v13 = vld [vmem:[#allocation3 + $0x80] sm:$0xff] }
 0x753   :  { %6457 = vst.msk [vmem:[#allocation5 + $0x160] sm:$0xff] %vm6412_vm11, %v6309_v46  ;;  %6683 = vrot.lane.b32.xlu1 %v6516_v36, %s10226_s5  ;;  %v10116_v36 = vpack.c.bf16 %v8085_v16, %v8084_v23  ;;  %9982 = vmatmul.mubr.msk.f32.gmra.mrb[28].mxu1 %vm26_vm0, %v8150_v9  ;;  %v8093_v9 = vld [vmem:[#allocation2 + $0x31] sm:$0xff]  ;;  %v10213_v23 = vld [vmem:[#allocation3 + $0x82] sm:$0xff] }
 0x754   :  { %6681 = vrot.lane.b32.xlu0 %v6515_v26, %s10226_s5 }
 0x755   :  { %v6315_v49 = vpop.permute.xlu1 %6314  ;;  %10117 = vmatprep.subr.bf16.mxu1 %v10116_v36 }
 0x756   :  { %6460 = vst.msk [vmem:[#allocation5 + $0x178] sm:$0xff] %vm6412_vm11, %v6315_v49  ;;  %v6313_v29 = vpop.permute.xlu0 %6312  ;;  %v8151_v49 = vld [vmem:[#allocation2 + $0x319] sm:$0xff]  ;;  %10119 = vmatpush3.bf16.msra.mxu1 %v10116_v36  ;;  %v6867_v36 = vld [vmem:[#allocation3 + $0x90] sm:$0xff] }
 0x757   :  { %6459 = vst.msk [vmem:[#allocation5 + $0x170] sm:$0xff] %vm6412_vm11, %v6313_v29  ;;  %6687 = vrot.lane.b32.xlu1 %v6518_v43, %s10226_s5  ;;  %v8152_v29 = vld [vmem:[#allocation2 + $0x321] sm:$0xff]  ;;  %9984 = vmatprep.mubr.msk.f32.mxu1 %vm26_vm0, %v8151_v49 }
 0x758   :  { %6685 = vrot.lane.b32.xlu0 %v6517_v60, %s10226_s5  ;;  %v8086_v43 = vld [vmem:[%s14541_s2 + $0x20] sm:$0xff]  ;;  %v8087_v60 = vld [vmem:[%s14541_s2 + $0x28] sm:$0xff]  ;;  %9985 = vmatmul.mubr.msk.f32.gmra.mrb[30].mxu1 %vm26_vm0, %v8152_v29 }
 0x759   :  { %v6319_v57 = vpop.permute.xlu1 %6318  ;;  %v10120_v37 = vpack.c.bf16 %v8087_v60, %v8086_v43  ;;  %v8095_v43 = vld [vmem:[#allocation2 + $0x49] sm:$0xff]  ;;  %v10215_v60 = vld [vmem:[#allocation3 + $0x9a] sm:$0xff] }
 0x75a   :  { %6462 = vst.msk [vmem:[#allocation5 + $0x188] sm:$0xff] %vm6412_vm11, %v6319_v57  ;;  %v6317_v58 = vpop.permute.xlu0 %6316 }
 0x75b   :  { %6461 = vst.msk [vmem:[#allocation5 + $0x180] sm:$0xff] %vm6412_vm11, %v6317_v58  ;;  %6691 = vrot.lane.b32.xlu1 %v6520_v50, %s10226_s5  ;;  %v6863_v58 = vld [vmem:[#allocation3 + $0x60] sm:$0xff]  ;;  %10121 = vmatprep.subr.bf16.mxu1 %v10120_v37 }
 0x75c   :  { %6689 = vrot.lane.b32.xlu0 %v6519_v18, %s10226_s5  ;;  %v6529_v50 = vld [vmem:[#allocation3 + $0x304] sm:$0xff]  ;;  %v8153_v18 = vld [vmem:[#allocation2 + $0x331] sm:$0xff]  ;;  %10123 = vmatpush3.bf16.msra.mxu1 %v10120_v37 }
 0x75d   :  { %v6323_v45 = vpop.permute.xlu1 %6322  ;;  %9987 = vmatprep.mubr.msk.f32.mxu1 %vm26_vm0, %v8153_v18  ;;  %v6870_v18 = vld [vmem:[#allocation3 + $0xb0] sm:$0xff] }
 0x75e   :  { %6464 = vst.msk [vmem:[#allocation5 + $0x198] sm:$0xff] %vm6412_vm11, %v6323_v45  ;;  %v6321_v38 = vpop.permute.xlu0 %6320  ;;  %v8089_v45 = vld [vmem:[%s14541_s2 + $0x38] sm:$0xff]  ;;  %9988 = vmatmul.mubr.msk.f32.gmra.mrb[32].mxu1 %vm26_vm0, %v8154_v21 }
 0x75f   :  { %6463 = vst.msk [vmem:[#allocation5 + $0x190] sm:$0xff] %vm6412_vm11, %v6321_v38  ;;  %6695 = vrot.lane.b32.xlu1 %v6522_v35, %s10226_s5  ;;  %v10124_v35 = vpack.c.bf16 %v8089_v45, %v8088_v54  ;;  %v8097_v45 = vld [vmem:[#allocation2 + $0x61] sm:$0xff] }
 0x760   :  { %6693 = vrot.lane.b32.xlu0 %v6521_v6, %s10226_s5 }
 0x761   :  { %v6327_v14 = vpop.permute.xlu1 %6326  ;;  %10125 = vmatprep.subr.bf16.mxu1 %v10124_v35 }
 0x762   :  { %6466 = vst.msk [vmem:[#allocation5 + $0x1a8] sm:$0xff] %vm6412_vm11, %v6327_v14  ;;  %v6325_v44 = vpop.permute.xlu0 %6324  ;;  %v8090_v14 = vld [vmem:[%s14541_s2 + $0x40] sm:$0xff]  ;;  %10127 = vmatpush3.bf16.msra.mxu1 %v10124_v35 }
 0x763   :  { %6465 = vst.msk [vmem:[#allocation5 + $0x1a0] sm:$0xff] %vm6412_vm11, %v6325_v44  ;;  %6699 = vrot.lane.b32.xlu1 %v6524_v33, %s10226_s5  ;;  %10006 = vmatprep.subr.mxu1 %v8090_v14 }
 0x764   :  { %6697 = vrot.lane.b32.xlu0 %v6523_v11, %s10226_s5  ;;  %v8091_v11 = vld [vmem:[#allocation2 + $0x19] sm:$0xff] }
 0x765   :  { %v6331_v4 = vpop.permute.xlu1 %6330  ;;  %9894 = vmatprep.mubr.msk.f32.mxu0 %vm26_vm0, %v8091_v11 }
 0x766   :  { %6468 = vst.msk [vmem:[#allocation5 + $0x1b8] sm:$0xff] %vm6412_vm11, %v6331_v4  ;;  %v6329_v62 = vpop.permute.xlu0 %6328  ;;  %9895 = vmatmul.mubr.msk.f32.vlgmr.msra.gmra.mrb[64].mxu0 %vm26_vm0, %v8092_v61  ;;  %10007 = vmatpush3.msra.mxu1 %v8090_v14  ;;  %v7256_v14 = vld [vmem:[#allocation3 + $0xc2] sm:$0xff]  ;;  %v8099_v61 = vld [vmem:[#allocation2 + $0x79] sm:$0xff] }
 0x767   :  { %6467 = vst.msk [vmem:[#allocation5 + $0x1b0] sm:$0xff] %vm6412_vm11, %v6329_v62  ;;  %6703 = vrot.lane.b32.xlu1 %v6526_v1, %s10226_s5  ;;  %v10212_v1 = vld [vmem:[#allocation3 + $0x7a] sm:$0xff]  ;;  %9897 = vmatprep.mubr.msk.f32.mxu0 %vm26_vm0, %v8093_v9 }
 0x768   :  { %6701 = vrot.lane.b32.xlu0 %v6525_v7, %s10226_s5  ;;  %v8102_v9 = vld [vmem:[#allocation2 + $0x99] sm:$0xff] }
 0x769   :  { %v6335_v46 = vpop.permute.xlu1 %6334 }
 0x76a   :  { %6470 = vst.msk [vmem:[#allocation5 + $0x1c8] sm:$0xff] %vm6412_vm11, %v6335_v46  ;;  %v6333_v26 = vpop.permute.xlu0 %6332 }
 0x76b   :  { %6469 = vst.msk [vmem:[#allocation5 + $0x1c0] sm:$0xff] %vm6412_vm11, %v6333_v26  ;;  %6707 = vrot.lane.b32.xlu1 %v6528_v42, %s10226_s5  ;;  %v10214_v42 = vld [vmem:[#allocation3 + $0x92] sm:$0xff] }
 0x76c   :  { %6705 = vrot.lane.b32.xlu0 %v6527_v63, %s10226_s5  ;;  %v6868_v63 = vld [vmem:[#allocation3 + $0x98] sm:$0xff] }
 0x76d   :  { %v6339_v39 = vpop.permute.xlu1 %6338 }
 0x76e   :  { %6472 = vst.msk [vmem:[#allocation5 + $0x1d8] sm:$0xff] %vm6412_vm11, %v6339_v39  ;;  %v6337_v57 = vpop.permute.xlu0 %6336 }
 0x76f   :  { %6471 = vst.msk [vmem:[#allocation5 + $0x1d0] sm:$0xff] %vm6412_vm11, %v6337_v57  ;;  %6991 = vrot.lane.b32.xlu1 %v6863_v58, %s10227_s8  ;;  %v6869_v57 = vld [vmem:[#allocation3 + $0xa8] sm:$0xff] }
 0x770   :  { %6709 = vrot.lane.b32.xlu0 %v6529_v50, %s10226_s5  ;;  %v10216_v50 = vld [vmem:[#allocation3 + $0xaa] sm:$0xff] }
 0x771   :  { %v6343_v38 = vpop.permute.xlu1 %6342 }
 0x772   :  { %6474 = vst.msk [vmem:[#allocation5 + $0x1e8] sm:$0xff] %vm6412_vm11, %v6343_v38  ;;  %v6341_v6 = vpop.permute.xlu0 %6340  ;;  %v8098_v38 = vld [vmem:[#allocation2 + $0x69] sm:$0xff] }
 0x773   :  { %6473 = vst.msk [vmem:[#allocation5 + $0x1e0] sm:$0xff] %vm6412_vm11, %v6341_v6  ;;  %7376 = vrot.lane.b32.xlu1 %v10210_v24, %s10228_s13  ;;  %v6871_v24 = vld [vmem:[#allocation3 + $0xc0] sm:$0xff] }
 0x774   :  { %6993 = vrot.lane.b32.xlu0 %v6864_v0, %s10227_s8 }
 0x775   :  { %v6347_v44 = vpop.permute.xlu1 %6346 }
 0x776   :  { %6476 = vst.msk [vmem:[#allocation5 + $0x1f8] sm:$0xff] %vm6412_vm11, %v6347_v44  ;;  %v6345_v33 = vpop.permute.xlu0 %6344  ;;  %v6872_v44 = vld [vmem:[#allocation3 + $0xc8] sm:$0xff] }
 0x777   :  { %6475 = vst.msk [vmem:[#allocation5 + $0x1f0] sm:$0xff] %vm6412_vm11, %v6345_v33  ;;  %7761 = vrot.lane.b32.xlu1 %v13375_v5, %s10229_s16 }
 0x778   :  { %7378 = vrot.lane.b32.xlu0 %v10211_v34, %s10228_s13  ;;  %v8100_v34 = vld [vmem:[#allocation2 + $0x81] sm:$0xff] }
 0x779   :  { %v6608_v4 = vpop.permute.xlu1 %6607 }
 0x77a   :  { %6799 = vst.msk [vmem:[#allocation5 + $0x8] sm:$0xff] %vm6797_vm14, %v6608_v4  ;;  %v6606_v25 = vpop.permute.xlu0 %6605 }
 0x77b   :  { %6798 = vst.msk [vmem:[#allocation5] sm:$0xff] %vm6797_vm14, %v6606_v25  ;;  %6995 = vrot.lane.b32.xlu1 %v6865_v12, %s10227_s8  ;;  %v6873_v12 = vld [vmem:[#allocation3 + $0xd8] sm:$0xff] }
 0x77c   :  { %7763 = vrot.lane.b32.xlu0 %v13370_v30, %s10229_s16  ;;  %v8094_v30 = vld [vmem:[#allocation2 + $0x39] sm:$0xff] }
 0x77d   :  { %v6612_v5 = vpop.permute.xlu1 %6611  ;;  %9898 = vmatmul.mubr.msk.f32.gmra.mrb[66].mxu0 %vm26_vm0, %v8094_v30 }
 0x77e   :  { %6801 = vst.msk [vmem:[#allocation5 + $0x18] sm:$0xff] %vm6797_vm14, %v6612_v5  ;;  %v6610_v62 = vpop.permute.xlu0 %6609  ;;  %9900 = vmatprep.mubr.msk.f32.mxu0 %vm26_vm0, %v8095_v43 }
 0x77f   :  { %6800 = vst.msk [vmem:[#allocation5 + $0x10] sm:$0xff] %vm6797_vm14, %v6610_v62  ;;  %7380 = vrot.lane.b32.xlu1 %v10212_v1, %s10228_s13  ;;  %v7258_v62 = vld [vmem:[#allocation3 + $0xda] sm:$0xff] }
 0x780   :  { %6997 = vrot.lane.b32.xlu0 %v6866_v13, %s10227_s8  ;;  %v6874_v1 = vld [vmem:[#allocation3 + $0xe0] sm:$0xff] }
 0x781   :  { %v6616_v7 = vpop.permute.xlu1 %6615 }
 0x782   :  { %6803 = vst.msk [vmem:[#allocation5 + $0x28] sm:$0xff] %vm6797_vm14, %v6616_v7  ;;  %v6614_v17 = vpop.permute.xlu0 %6613 }
 0x783   :  { %6802 = vst.msk [vmem:[#allocation5 + $0x20] sm:$0xff] %vm6797_vm14, %v6614_v17  ;;  %7765 = vrot.lane.b32.xlu1 %v13385_v48, %s10229_s16  ;;  %v8101_v17 = vld [vmem:[#allocation2 + $0x91] sm:$0xff] }
 0x784   :  { %7382 = vrot.lane.b32.xlu0 %v10213_v23, %s10228_s13 }
 0x785   :  { %v6620_v16 = vpop.permute.xlu1 %6619 }
 0x786   :  { %6805 = vst.msk [vmem:[#allocation5 + $0x38] sm:$0xff] %vm6797_vm14, %v6620_v16  ;;  %v6618_v46 = vpop.permute.xlu0 %6617  ;;  %v6875_v16 = vld [vmem:[#allocation3 + $0xf0] sm:$0xff] }
 0x787   :  { %6804 = vst.msk [vmem:[#allocation5 + $0x30] sm:$0xff] %vm6797_vm14, %v6618_v46  ;;  %6999 = vrot.lane.b32.xlu1 %v6867_v36, %s10227_s8  ;;  %v7260_v36 = vld [vmem:[#allocation3 + $0xf2] sm:$0xff] }
 0x788   :  { %7767 = vrot.lane.b32.xlu0 %v13380_v10, %s10229_s16  ;;  %v8096_v10 = vld [vmem:[#allocation2 + $0x51] sm:$0xff] }
 0x789   :  { %v6624_v48 = vpop.permute.xlu1 %6623  ;;  %9901 = vmatmul.mubr.msk.f32.gmra.mrb[68].mxu0 %vm26_vm0, %v8096_v10  ;;  %v6877_v10 = vld [vmem:[#allocation3 + $0x108] sm:$0xff] }
 0x78a   :  { %6807 = vst.msk [vmem:[#allocation5 + $0x48] sm:$0xff] %vm6797_vm14, %v6624_v48  ;;  %v6622_v26 = vpop.permute.xlu0 %6621  ;;  %9903 = vmatprep.mubr.msk.f32.mxu0 %vm26_vm0, %v8097_v45  ;;  %v6876_v48 = vld [vmem:[#allocation3 + $0xf8] sm:$0xff] }
 0x78b   :  { %6806 = vst.msk [vmem:[#allocation5 + $0x40] sm:$0xff] %vm6797_vm14, %v6622_v26  ;;  %7384 = vrot.lane.b32.xlu1 %v10214_v42, %s10228_s13 }
 0x78c   :  { %7001 = vrot.lane.b32.xlu0 %v6868_v63, %s10227_s8  ;;  %v8103_v63 = vld [vmem:[#allocation2 + $0xa9] sm:$0xff] }
 0x78d   :  { %v6628_v49 = vpop.permute.xlu1 %6627  ;;  %9904 = vmatmul.mubr.msk.f32.gmra.mrb[70].mxu0 %vm26_vm0, %v8098_v38  ;;  %v6880_v38 = vld [vmem:[#allocation3 + $0x128] sm:$0xff] }
 0x78e   :  { %6809 = vst.msk [vmem:[#allocation5 + $0x58] sm:$0xff] %vm6797_vm14, %v6628_v49  ;;  %v6626_v29 = vpop.permute.xlu0 %6625  ;;  %9906 = vmatprep.mubr.msk.f32.mxu0 %vm26_vm0, %v8099_v61  ;;  %v8104_v49 = vld [vmem:[#allocation2 + $0xb1] sm:$0xff]  ;;  %v6882_v61 = vld [vmem:[#allocation3 + $0x140] sm:$0xff] }
 0x78f   :  { %6808 = vst.msk [vmem:[#allocation5 + $0x50] sm:$0xff] %vm6797_vm14, %v6626_v29  ;;  %7769 = vrot.lane.b32.xlu1 %v13395_v55, %s10229_s16 }
 0x790   :  { %7386 = vrot.lane.b32.xlu0 %v10215_v60, %s10228_s13 }
 0x791   :  { %v6632_v39 = vpop.permute.xlu1 %6631  ;;  %9907 = vmatmul.mubr.msk.f32.gmra.mrb[72].mxu0 %vm26_vm0, %v8100_v34 }
 0x792   :  { %6811 = vst.msk [vmem:[#allocation5 + $0x68] sm:$0xff] %vm6797_vm14, %v6632_v39  ;;  %v6630_v37 = vpop.permute.xlu0 %6629  ;;  %9909 = vmatprep.mubr.msk.f32.mxu0 %vm26_vm0, %v8101_v17  ;;  %v7262_v39 = vld [vmem:[#allocation3 + $0x10a] sm:$0xff] }
 0x793   :  { %6810 = vst.msk [vmem:[#allocation5 + $0x60] sm:$0xff] %vm6797_vm14, %v6630_v37  ;;  %7003 = vrot.lane.b32.xlu1 %v6869_v57, %s10227_s8  ;;  %v6878_v37 = vld [vmem:[#allocation3 + $0x110] sm:$0xff] }
 0x794   :  { %7771 = vrot.lane.b32.xlu0 %v13390_v40, %s10229_s16  ;;  %v7255_v40 = vld [vmem:[#allocation3 + $0xb2] sm:$0xff] }
 0x795   :  { %v6636_v55 = vpop.permute.xlu1 %6635  ;;  %9910 = vmatmul.mubr.msk.f32.gmra.mrb[74].mxu0 %vm26_vm0, %v8102_v9  ;;  %v8112_v9 = vld [vmem:[#allocation2 + $0x111] sm:$0xff] }
 0x796   :  { %6813 = vst.msk [vmem:[#allocation5 + $0x78] sm:$0xff] %vm6797_vm14, %v6636_v55  ;;  %v6634_v58 = vpop.permute.xlu0 %6633  ;;  %9912 = vmatprep.mubr.msk.f32.mxu0 %vm26_vm0, %v8103_v63 }
 0x797   :  { %6812 = vst.msk [vmem:[#allocation5 + $0x70] sm:$0xff] %vm6797_vm14, %v6634_v58  ;;  %7388 = vrot.lane.b32.xlu1 %v10216_v50, %s10228_s13  ;;  %v8105_v58 = vld [vmem:[#allocation2 + $0xc1] sm:$0xff]  ;;  %v8106_v50 = vld [vmem:[#allocation2 + $0xc9] sm:$0xff] }
 0x798   :  { %7005 = vrot.lane.b32.xlu0 %v6870_v18, %s10227_s8 }
 0x799   :  { %v6640_v21 = vpop.permute.xlu1 %6639  ;;  %9913 = vmatmul.mubr.msk.f32.gmra.mrb[76].mxu0 %vm26_vm0, %v8104_v49  ;;  %v8114_v49 = vld [vmem:[#allocation2 + $0x129] sm:$0xff] }
 0x79a   :  { %6815 = vst.msk [vmem:[#allocation5 + $0x88] sm:$0xff] %vm6797_vm14, %v6640_v21  ;;  %v6638_v54 = vpop.permute.xlu0 %6637  ;;  %9915 = vmatprep.mubr.msk.f32.mxu0 %vm26_vm0, %v8105_v58 }
 0x79b   :  { %6814 = vst.msk [vmem:[#allocation5 + $0x80] sm:$0xff] %vm6797_vm14, %v6638_v54  ;;  %7773 = vrot.lane.b32.xlu1 %v13405_v56, %s10229_s16  ;;  %v6879_v54 = vld [vmem:[#allocation3 + $0x120] sm:$0xff] }
 0x79c   :  { %7390 = vrot.lane.b32.xlu0 %v7255_v40, %s10228_s13  ;;  %v7264_v40 = vld [vmem:[#allocation3 + $0x122] sm:$0xff] }
 0x79d   :  { %v6644_v35 = vpop.permute.xlu1 %6643  ;;  %9916 = vmatmul.mubr.msk.f32.gmra.mrb[78].mxu0 %vm26_vm0, %v8106_v50  ;;  %v7273_v50 = vld [vmem:[#allocation3 + $0x18a] sm:$0xff] }
 0x79e   :  { %6817 = vst.msk [vmem:[#allocation5 + $0x98] sm:$0xff] %vm6797_vm14, %v6644_v35  ;;  %v6642_v6 = vpop.permute.xlu0 %6641 }
 0x79f   :  { %6816 = vst.msk [vmem:[#allocation5 + $0x90] sm:$0xff] %vm6797_vm14, %v6642_v6  ;;  %7007 = vrot.lane.b32.xlu1 %v6871_v24, %s10227_s8  ;;  %v8107_v24 = vld [vmem:[#allocation2 + $0xd9] sm:$0xff] }
 0x7a0   :  { %7775 = vrot.lane.b32.xlu0 %v13400_v53, %s10229_s16  ;;  %v7257_v53 = vld [vmem:[#allocation3 + $0xca] sm:$0xff]  ;;  %9918 = vmatprep.mubr.msk.f32.mxu0 %vm26_vm0, %v8107_v24 }
 0x7a1   :  { %v6648_v56 = vpop.permute.xlu1 %6647 }
 0x7a2   :  { %6819 = vst.msk [vmem:[#allocation5 + $0xa8] sm:$0xff] %vm6797_vm14, %v6648_v56  ;;  %v6646_v0 = vpop.permute.xlu0 %6645  ;;  %v8108_v56 = vld [vmem:[#allocation2 + $0xe1] sm:$0xff] }
 0x7a3   :  { %6818 = vst.msk [vmem:[#allocation5 + $0xa0] sm:$0xff] %vm6797_vm14, %v6646_v0  ;;  %7392 = vrot.lane.b32.xlu1 %v7256_v14, %s10228_s13  ;;  %9919 = vmatmul.mubr.msk.f32.gmra.mrb[80].mxu0 %vm26_vm0, %v8108_v56 }
 0x7a4   :  { %7009 = vrot.lane.b32.xlu0 %v6872_v44, %s10227_s8  ;;  %v6881_v44 = vld [vmem:[#allocation3 + $0x138] sm:$0xff] }
 0x7a5   :  { %v6652_v33 = vpop.permute.xlu1 %6651 }
 0x7a6   :  { %6821 = vst.msk [vmem:[#allocation5 + $0xb8] sm:$0xff] %vm6797_vm14, %v6652_v33  ;;  %v6650_v11 = vpop.permute.xlu0 %6649 }
 0x7a7   :  { %6820 = vst.msk [vmem:[#allocation5 + $0xb0] sm:$0xff] %vm6797_vm14, %v6650_v11  ;;  %7777 = vrot.lane.b32.xlu1 %v13415_v2, %s10229_s16  ;;  %v7266_v11 = vld [vmem:[#allocation3 + $0x13a] sm:$0xff] }
 0x7a8   :  { %7394 = vrot.lane.b32.xlu0 %v7257_v53, %s10228_s13 }
 0x7a9   :  { %v6656_v4 = vpop.permute.xlu1 %6655 }
 0x7aa   :  { %6823 = vst.msk [vmem:[#allocation5 + $0xc8] sm:$0xff] %vm6797_vm14, %v6656_v4  ;;  %v6654_v25 = vpop.permute.xlu0 %6653  ;;  %v8109_v4 = vld [vmem:[#allocation2 + $0xf1] sm:$0xff] }
 0x7ab   :  { %6822 = vst.msk [vmem:[#allocation5 + $0xc0] sm:$0xff] %vm6797_vm14, %v6654_v25  ;;  %7011 = vrot.lane.b32.xlu1 %v6873_v12, %s10227_s8  ;;  %9921 = vmatprep.mubr.msk.f32.mxu0 %vm26_vm0, %v8109_v4  ;;  %v8110_v25 = vld [vmem:[#allocation2 + $0xf9] sm:$0xff]  ;;  %v7660_v4 = vld [vmem:[#allocation3 + $0x1a4] sm:$0xff] }
 0x7ac   :  { %7779 = vrot.lane.b32.xlu0 %v13410_v31, %s10229_s16  ;;  %v7259_v31 = vld [vmem:[#allocation3 + $0xe2] sm:$0xff]  ;;  %9922 = vmatmul.mubr.msk.f32.gmra.mrb[82].mxu0 %vm26_vm0, %v8110_v25 }
 0x7ad   :  { %v6660_v2 = vpop.permute.xlu1 %6659 }
 0x7ae   :  { %6825 = vst.msk [vmem:[#allocation5 + $0xd8] sm:$0xff] %vm6797_vm14, %v6660_v2  ;;  %v6658_v5 = vpop.permute.xlu0 %6657 }
 0x7af   :  { %6824 = vst.msk [vmem:[#allocation5 + $0xd0] sm:$0xff] %vm6797_vm14, %v6658_v5  ;;  %7396 = vrot.lane.b32.xlu1 %v7258_v62, %s10228_s13  ;;  %v6883_v5 = vld [vmem:[#allocation3 + $0x150] sm:$0xff] }
 0x7b0   :  { %7013 = vrot.lane.b32.xlu0 %v6874_v1, %s10227_s8  ;;  %v7268_v1 = vld [vmem:[#allocation3 + $0x152] sm:$0xff] }
 0x7b1   :  { %v6664_v13 = vpop.permute.xlu1 %6663 }
 0x7b2   :  { %6827 = vst.msk [vmem:[#allocation5 + $0xe8] sm:$0xff] %vm6797_vm14, %v6664_v13  ;;  %v6662_v7 = vpop.permute.xlu0 %6661  ;;  %v6884_v13 = vld [vmem:[#allocation3 + $0x158] sm:$0xff] }
 0x7b3   :  { %6826 = vst.msk [vmem:[#allocation5 + $0xe0] sm:$0xff] %vm6797_vm14, %v6662_v7  ;;  %7781 = vrot.lane.b32.xlu1 %v13425_v52, %s10229_s16 }
 0x7b4   :  { %7398 = vrot.lane.b32.xlu0 %v7259_v31, %s10228_s13  ;;  %v8111_v31 = vld [vmem:[#allocation2 + $0x109] sm:$0xff] }
 0x7b5   :  { %v6668_v30 = vpop.permute.xlu1 %6667  ;;  %9924 = vmatprep.mubr.msk.f32.mxu0 %vm26_vm0, %v8111_v31  ;;  %v6893_v31 = vld [vmem:[#allocation3 + $0x1c8] sm:$0xff] }
 0x7b6   :  { %6829 = vst.msk [vmem:[#allocation5 + $0xf8] sm:$0xff] %vm6797_vm14, %v6668_v30  ;;  %v6666_v23 = vpop.permute.xlu0 %6665  ;;  %9925 = vmatmul.mubr.msk.f32.gmra.mrb[84].mxu0 %vm26_vm0, %v8112_v9 }
 0x7b7   :  { %6828 = vst.msk [vmem:[#allocation5 + $0xf0] sm:$0xff] %vm6797_vm14, %v6666_v23  ;;  %7015 = vrot.lane.b32.xlu1 %v6875_v16, %s10227_s8 }
 0x7b8   :  { %7783 = vrot.lane.b32.xlu0 %v13420_v51, %s10229_s16  ;;  %v7261_v51 = vld [vmem:[#allocation3 + $0xfa] sm:$0xff] }
 0x7b9   :  { %v6672_v52 = vpop.permute.xlu1 %6671 }
 0x7ba   :  { %6831 = vst.msk [vmem:[#allocation5 + $0x108] sm:$0xff] %vm6797_vm14, %v6672_v52  ;;  %v6670_v46 = vpop.permute.xlu0 %6669  ;;  %v6885_v52 = vld [vmem:[#allocation3 + $0x168] sm:$0xff] }
 0x7bb   :  { %6830 = vst.msk [vmem:[#allocation5 + $0x100] sm:$0xff] %vm6797_vm14, %v6670_v46  ;;  %7400 = vrot.lane.b32.xlu1 %v7260_v36, %s10228_s13  ;;  %v7270_v36 = vld [vmem:[#allocation3 + $0x16a] sm:$0xff] }
 0x7bc   :  { %7017 = vrot.lane.b32.xlu0 %v6876_v48, %s10227_s8 }
 0x7bd   :  { %v6676_v26 = vpop.permute.xlu1 %6675 }
 0x7be   :  { %6833 = vst.msk [vmem:[#allocation5 + $0x118] sm:$0xff] %vm6797_vm14, %v6676_v26  ;;  %v6674_v42 = vpop.permute.xlu0 %6673  ;;  %v6886_v26 = vld [vmem:[#allocation3 + $0x170] sm:$0xff] }
 0x7bf   :  { %6832 = vst.msk [vmem:[#allocation5 + $0x110] sm:$0xff] %vm6797_vm14, %v6674_v42  ;;  %7785 = vrot.lane.b32.xlu1 %v13435_v59, %s10229_s16 }
 0x7c0   :  { %7402 = vrot.lane.b32.xlu0 %v7261_v51, %s10228_s13  ;;  %v7271_v51 = vld [vmem:[#allocation3 + $0x172] sm:$0xff] }
 0x7c1   :  { %v6680_v29 = vpop.permute.xlu1 %6679 }
 0x7c2   :  { %6835 = vst.msk [vmem:[#allocation5 + $0x128] sm:$0xff] %vm6797_vm14, %v6680_v29  ;;  %v6678_v43 = vpop.permute.xlu0 %6677 }
 0x7c3   :  { %6834 = vst.msk [vmem:[#allocation5 + $0x120] sm:$0xff] %vm6797_vm14, %v6678_v43  ;;  %7019 = vrot.lane.b32.xlu1 %v6877_v10, %s10227_s8 }
 0x7c4   :  { %7787 = vrot.lane.b32.xlu0 %v13430_v28, %s10229_s16  ;;  %v7263_v28 = vld [vmem:[#allocation3 + $0x112] sm:$0xff] }
 0x7c5   :  { %v6684_v59 = vpop.permute.xlu1 %6683 }
 0x7c6   :  { %6837 = vst.msk [vmem:[#allocation5 + $0x138] sm:$0xff] %vm6797_vm14, %v6684_v59  ;;  %v6682_v60 = vpop.permute.xlu0 %6681  ;;  %v6887_v59 = vld [vmem:[#allocation3 + $0x180] sm:$0xff] }
 0x7c7   :  { %6836 = vst.msk [vmem:[#allocation5 + $0x130] sm:$0xff] %vm6797_vm14, %v6682_v60  ;;  %7404 = vrot.lane.b32.xlu1 %v7262_v39, %s10228_s13  ;;  %v7272_v39 = vld [vmem:[#allocation3 + $0x182] sm:$0xff] }
 0x7c8   :  { %7021 = vrot.lane.b32.xlu0 %v6878_v37, %s10227_s8 }
 0x7c9   :  { %v6688_v57 = vpop.permute.xlu1 %6687 }
 0x7ca   :  { %6839 = vst.msk [vmem:[#allocation5 + $0x148] sm:$0xff] %vm6797_vm14, %v6688_v57  ;;  %v6686_v55 = vpop.permute.xlu0 %6685  ;;  %v6888_v57 = vld [vmem:[#allocation3 + $0x188] sm:$0xff] }
 0x7cb   :  { %6838 = vst.msk [vmem:[#allocation5 + $0x140] sm:$0xff] %vm6797_vm14, %v6686_v55  ;;  %7789 = vrot.lane.b32.xlu1 %v13445_v20, %s10229_s16 }
 0x7cc   :  { %7406 = vrot.lane.b32.xlu0 %v7263_v28, %s10228_s13  ;;  %v8115_v28 = vld [vmem:[#allocation2 + $0x139] sm:$0xff] }
 0x7cd   :  { %v6692_v18 = vpop.permute.xlu1 %6691 }
 0x7ce   :  { %6841 = vst.msk [vmem:[#allocation5 + $0x158] sm:$0xff] %vm6797_vm14, %v6692_v18  ;;  %v6690_v21 = vpop.permute.xlu0 %6689  ;;  %v8116_v18 = vld [vmem:[#allocation2 + $0x141] sm:$0xff] }
 0x7cf   :  { %6840 = vst.msk [vmem:[#allocation5 + $0x150] sm:$0xff] %vm6797_vm14, %v6690_v21  ;;  %7023 = vrot.lane.b32.xlu1 %v6879_v54, %s10227_s8 }
 0x7d0   :  { %7791 = vrot.lane.b32.xlu0 %v13440_v8, %s10229_s16  ;;  %v7265_v8 = vld [vmem:[#allocation3 + $0x12a] sm:$0xff] }
 0x7d1   :  { %v6696_v20 = vpop.permute.xlu1 %6695 }
 0x7d2   :  { %6843 = vst.msk [vmem:[#allocation5 + $0x168] sm:$0xff] %vm6797_vm14, %v6696_v20  ;;  %v6694_v45 = vpop.permute.xlu0 %6693 }
 0x7d3   :  { %6842 = vst.msk [vmem:[#allocation5 + $0x160] sm:$0xff] %vm6797_vm14, %v6694_v45  ;;  %7408 = vrot.lane.b32.xlu1 %v7264_v40, %s10228_s13  ;;  %v6889_v45 = vld [vmem:[#allocation3 + $0x198] sm:$0xff]  ;;  %v7658_v40 = vld [vmem:[#allocation3 + $0x18c] sm:$0xff] }
 0x7d4   :  { %7025 = vrot.lane.b32.xlu0 %v6880_v38, %s10227_s8 }
 0x7d5   :  { %v6700_v35 = vpop.permute.xlu1 %6699 }
 0x7d6   :  { %6845 = vst.msk [vmem:[#allocation5 + $0x178] sm:$0xff] %vm6797_vm14, %v6700_v35  ;;  %v6698_v6 = vpop.permute.xlu0 %6697 }
 0x7d7   :  { %6844 = vst.msk [vmem:[#allocation5 + $0x170] sm:$0xff] %vm6797_vm14, %v6698_v6  ;;  %7793 = vrot.lane.b32.xlu1 %v13455_v41, %s10229_s16  ;;  %v7274_v6 = vld [vmem:[#allocation3 + $0x19a] sm:$0xff] }
 0x7d8   :  { %7410 = vrot.lane.b32.xlu0 %v7265_v8, %s10228_s13  ;;  %v6890_v8 = vld [vmem:[#allocation3 + $0x1a0] sm:$0xff] }
 0x7d9   :  { %v6704_v0 = vpop.permute.xlu1 %6703 }
 0x7da   :  { %6847 = vst.msk [vmem:[#allocation5 + $0x188] sm:$0xff] %vm6797_vm14, %v6704_v0  ;;  %v6702_v14 = vpop.permute.xlu0 %6701 }
 0x7db   :  { %6846 = vst.msk [vmem:[#allocation5 + $0x180] sm:$0xff] %vm6797_vm14, %v6702_v14  ;;  %7027 = vrot.lane.b32.xlu1 %v6881_v44, %s10227_s8  ;;  %v7659_v14 = vld [vmem:[#allocation3 + $0x19c] sm:$0xff]  ;;  %v8117_v44 = vld [vmem:[#allocation2 + $0x151] sm:$0xff] }
 0x7dc   :  { %7795 = vrot.lane.b32.xlu0 %v13450_v19, %s10229_s16  ;;  %v7267_v19 = vld [vmem:[#allocation3 + $0x142] sm:$0xff] }
 0x7dd   :  { %v6708_v41 = vpop.permute.xlu1 %6707 }
 0x7de   :  { %6849 = vst.msk [vmem:[#allocation5 + $0x198] sm:$0xff] %vm6797_vm14, %v6708_v41  ;;  %v6706_v33 = vpop.permute.xlu0 %6705  ;;  %v7275_v41 = vld [vmem:[#allocation3 + $0x1a2] sm:$0xff] }
 0x7df   :  { %6848 = vst.msk [vmem:[#allocation5 + $0x190] sm:$0xff] %vm6797_vm14, %v6706_v33  ;;  %7412 = vrot.lane.b32.xlu1 %v7266_v11, %s10228_s13  ;;  %v8118_v33 = vld [vmem:[#allocation2 + $0x159] sm:$0xff]  ;;  %v6891_v11 = vld [vmem:[#allocation3 + $0x1b0] sm:$0xff] }
 0x7e0   :  { %7029 = vrot.lane.b32.xlu0 %v6882_v61, %s10227_s8 }
 0x7e1   :  { %v6992_v53 = vpop.permute.xlu1 %6991 }
 0x7e2   :  { %7184 = vst.msk [vmem:[#allocation5] sm:$0xff] %vm7183_vm12, %v6992_v53  ;;  %v6710_v34 = vpop.permute.xlu0 %6709 }
 0x7e3   :  { %6850 = vst.msk [vmem:[#allocation5 + $0x1a0] sm:$0xff] %vm6797_vm14, %v6710_v34  ;;  %7797 = vrot.lane.b32.xlu1 %v13473_v47, %s10229_s16 }
 0x7e4   :  { %7414 = vrot.lane.b32.xlu0 %v7267_v19, %s10228_s13  ;;  %v7276_v19 = vld [vmem:[#allocation3 + $0x1b2] sm:$0xff] }
 0x7e5   :  { %v7377_v12 = vpop.permute.xlu1 %7376 }
 0x7e6   :  { %7569 = vst.msk [vmem:[#allocation5] sm:$0xff] %vm7568_vm13, %v7377_v12  ;;  %v6994_v2 = vpop.permute.xlu0 %6993  ;;  %v6892_v12 = vld [vmem:[#allocation3 + $0x1b8] sm:$0xff] }
 0x7e7   :  { %7185 = vst.msk [vmem:[#allocation5 + $0x8] sm:$0xff] %vm7183_vm12, %v6994_v2  ;;  %7031 = vrot.lane.b32.xlu1 %v6883_v5, %s10227_s8 }
 0x7e8   :  { %7799 = vrot.lane.b32.xlu0 %v13466_v27, %s10229_s16  ;;  %v7269_v27 = vld [vmem:[#allocation3 + $0x15a] sm:$0xff] }
 0x7e9   :  { %v7762_v47 = vpop.permute.xlu1 %7761 }
 0x7ea   :  { %7954 = vst.msk [vmem:[#allocation5] sm:$0xff] %vm7953_vm15, %v7762_v47  ;;  %v7379_v62 = vpop.permute.xlu0 %7378  ;;  %v7661_v47 = vld [vmem:[#allocation3 + $0x1b4] sm:$0xff] }
 0x7eb   :  { %7570 = vst.msk [vmem:[#allocation5 + $0x8] sm:$0xff] %vm7568_vm13, %v7379_v62  ;;  %7416 = vrot.lane.b32.xlu1 %v7268_v1, %s10228_s13  ;;  %v7277_v1 = vld [vmem:[#allocation3 + $0x1ba] sm:$0xff] }
 0x7ec   :  { %7033 = vrot.lane.b32.xlu0 %v6884_v13, %s10227_s8 }
 0x7ed   :  { %v6996_v7 = vpop.permute.xlu1 %6995 }
 0x7ee   :  { %7186 = vst.msk [vmem:[#allocation5 + $0x10] sm:$0xff] %vm7183_vm12, %v6996_v7  ;;  %v7764_v17 = vpop.permute.xlu0 %7763  ;;  %v8119_v7 = vld [vmem:[#allocation2 + $0x169] sm:$0xff] }
 0x7ef   :  { %7955 = vst.msk [vmem:[#allocation5 + $0x8] sm:$0xff] %vm7953_vm15, %v7764_v17  ;;  %7801 = vrot.lane.b32.xlu1 %v13485_v32, %s10229_s16  ;;  %v8120_v17 = vld [vmem:[#allocation2 + $0x171] sm:$0xff] }
 0x7f0   :  { %7418 = vrot.lane.b32.xlu0 %v7269_v27, %s10228_s13 }
 0x7f1   :  { %v7381_v30 = vpop.permute.xlu1 %7380  ;;  %v8018_v23 = vld [vmem:[#allocation5] sm:$0xff] }
 0x7f2   :  { %7571 = vst.msk [vmem:[#allocation5 + $0x10] sm:$0xff] %vm7568_vm13, %v7381_v30  ;;  %10008 = vmatprep.mubr.msk.f32.mxu1 %vm8736_vm2, %v8018_v23  ;;  %v6998_v16 = vpop.permute.xlu0 %6997  ;;  %v7662_v30 = vld [vmem:[#allocation3 + $0x1bc] sm:$0xff] }
 0x7f3   :  { %7187 = vst.msk [vmem:[#allocation5 + $0x18] sm:$0xff] %vm7183_vm12, %v6998_v16  ;;  %7035 = vrot.lane.b32.xlu1 %v6885_v52, %s10227_s8  ;;  %v7278_v16 = vld [vmem:[#allocation3 + $0x1ca] sm:$0xff] }
 0x7f4   :  { %7803 = vrot.lane.b32.xlu0 %v13480_v15, %s10229_s16  ;;  %v8113_v15 = vld [vmem:[#allocation2 + $0x121] sm:$0xff] }
 0x7f5   :  { %v7766_v32 = vpop.permute.xlu1 %7765  ;;  %9927 = vmatprep.mubr.msk.f32.mxu0 %vm26_vm0, %v8113_v15 }
 0x7f6   :  { %7956 = vst.msk [vmem:[#allocation5 + $0x10] sm:$0xff] %vm7953_vm15, %v7766_v32  ;;  %v7383_v46 = vpop.permute.xlu0 %7382  ;;  %v8019_v48 = vld [vmem:[#allocation5 + $0x8] sm:$0xff]  ;;  %9928 = vmatmul.mubr.msk.f32.gmra.mrb[86].mxu0 %vm26_vm0, %v8114_v49  ;;  %v6894_v32 = vld [vmem:[#allocation3 + $0x1d0] sm:$0xff] }
 0x7f7   :  { %7572 = vst.msk [vmem:[#allocation5 + $0x18] sm:$0xff] %vm7568_vm13, %v7383_v46  ;;  %7420 = vrot.lane.b32.xlu1 %v7270_v36, %s10228_s13  ;;  %10009 = vmatmul.mubr.msk.f32.vlgmr.msra.gmra.mrb[34].mxu1 %vm8736_vm2, %v8019_v48  ;;  %v7663_v48 = vld [vmem:[#allocation3 + $0x1cc] sm:$0xff]  ;;  %v7664_v49 = vld [vmem:[#allocation3 + $0x1d4] sm:$0xff] }
 0x7f8   :  { %7037 = vrot.lane.b32.xlu0 %v6886_v26, %s10227_s8  ;;  %9930 = vmatprep.mubr.msk.f32.mxu0 %vm26_vm0, %v8115_v28 }
 0x7f9   :  { %v7000_v42 = vpop.permute.xlu1 %6999 }
 0x7fa   :  { %7188 = vst.msk [vmem:[#allocation5 + $0x20] sm:$0xff] %vm7183_vm12, %v7000_v42  ;;  %v7768_v63 = vpop.permute.xlu0 %7767  ;;  %9931 = vmatmul.mubr.msk.f32.gmra.mrb[88].mxu0 %vm26_vm0, %v8116_v18  ;;  %v7279_v42 = vld [vmem:[#allocation3 + $0x1d2] sm:$0xff] }
 0x7fb   :  { %7957 = vst.msk [vmem:[#allocation5 + $0x18] sm:$0xff] %vm7953_vm15, %v7768_v63  ;;  %7805 = vrot.lane.b32.xlu1 %v13497_v22, %s10229_s16  ;;  %9933 = vmatprep.mubr.msk.f32.mxu0 %vm26_vm0, %v8117_v44  ;;  %v6897_v18 = vld [vmem:[#allocation3 + $0x258] sm:$0xff]  ;;  %v6899_v44 = vld [vmem:[#allocation3 + $0x270] sm:$0xff] }
 0x7fc   :  { %7422 = vrot.lane.b32.xlu0 %v7271_v51, %s10228_s13 }
 0x7fd   :  { %v7385_v29 = vpop.permute.xlu1 %7384  ;;  %v8020_v43 = vld [vmem:[#allocation5 + $0x10] sm:$0xff] }
 0x7fe   :  { %7573 = vst.msk [vmem:[#allocation5 + $0x20] sm:$0xff] %vm7568_vm13, %v7385_v29  ;;  %10011 = vmatprep.mubr.msk.f32.mxu1 %vm8736_vm2, %v8020_v43  ;;  %v7002_v10 = vpop.permute.xlu0 %7001  ;;  %9934 = vmatmul.mubr.msk.f32.gmra.mrb[90].mxu0 %vm26_vm0, %v8118_v33  ;;  %v6895_v43 = vld [vmem:[#allocation3 + $0x240] sm:$0xff] }
 0x7ff   :  { %7189 = vst.msk [vmem:[#allocation5 + $0x28] sm:$0xff] %vm7183_vm12, %v7002_v10  ;;  %7039 = vrot.lane.b32.xlu1 %v6887_v59, %s10227_s8  ;;  %9936 = vmatprep.mubr.msk.f32.mxu0 %vm26_vm0, %v8119_v7  ;;  %v7670_v7 = vld [vmem:[#allocation3 + $0x27c] sm:$0xff] }
 0x800   :  { %7807 = vrot.lane.b32.xlu0 %v13492_v3, %s10229_s16  ;;  %v7657_v3 = vld [vmem:[#allocation3 + $0x184] sm:$0xff] }
 0x801   :  { %v7770_v22 = vpop.permute.xlu1 %7769 }
 0x802   :  { %7958 = vst.msk [vmem:[#allocation5 + $0x20] sm:$0xff] %vm7953_vm15, %v7770_v22  ;;  %v7387_v60 = vpop.permute.xlu0 %7386  ;;  %v8021_v37 = vld [vmem:[#allocation5 + $0x18] sm:$0xff]  ;;  %9937 = vmatmul.mubr.msk.f32.gmra.mrb[92].mxu0 %vm26_vm0, %v8120_v17  ;;  %v7280_v22 = vld [vmem:[#allocation3 + $0x242] sm:$0xff] }
 0x803   :  { %7574 = vst.msk [vmem:[#allocation5 + $0x28] sm:$0xff] %vm7568_vm13, %v7387_v60  ;;  %7424 = vrot.lane.b32.xlu1 %v7272_v39, %s10228_s13  ;;  %10012 = vmatmul.mubr.msk.f32.gmra.mrb[36].mxu1 %vm8736_vm2, %v8021_v37  ;;  %v6896_v39 = vld [vmem:[#allocation3 + $0x248] sm:$0xff] }
 0x804   :  { %7041 = vrot.lane.b32.xlu0 %v6888_v57, %s10227_s8 }
 0x805   :  { %v7004_v55 = vpop.permute.xlu1 %7003 }
 0x806   :  { %7190 = vst.msk [vmem:[#allocation5 + $0x30] sm:$0xff] %vm7183_vm12, %v7004_v55  ;;  %v7772_v58 = vpop.permute.xlu0 %7771  ;;  %v7665_v55 = vld [vmem:[#allocation3 + $0x244] sm:$0xff] }
 0x807   :  { %7959 = vst.msk [vmem:[#allocation5 + $0x28] sm:$0xff] %vm7953_vm15, %v7772_v58  ;;  %7809 = vrot.lane.b32.xlu1 %v7657_v3, %s10229_s16  ;;  %v7281_v58 = vld [vmem:[#allocation3 + $0x24a] sm:$0xff] }
 0x808   :  { %7426 = vrot.lane.b32.xlu0 %v7273_v50, %s10228_s13 }
 0x809   :  { %v7389_v21 = vpop.permute.xlu1 %7388  ;;  %v8022_v54 = vld [vmem:[#allocation5 + $0x20] sm:$0xff] }
 0x80a   :  { %7575 = vst.msk [vmem:[#allocation5 + $0x30] sm:$0xff] %vm7568_vm13, %v7389_v21  ;;  %10014 = vmatprep.mubr.msk.f32.mxu1 %vm8736_vm2, %v8022_v54  ;;  %v7006_v20 = vpop.permute.xlu0 %7005  ;;  %v7666_v21 = vld [vmem:[#allocation3 + $0x24c] sm:$0xff] }
 0x80b   :  { %7191 = vst.msk [vmem:[#allocation5 + $0x38] sm:$0xff] %vm7183_vm12, %v7006_v20  ;;  %7043 = vrot.lane.b32.xlu1 %v6889_v45, %s10227_s8  ;;  %v7282_v45 = vld [vmem:[#allocation3 + $0x25a] sm:$0xff] }
 0x80c   :  { %7811 = vrot.lane.b32.xlu0 %v7658_v40, %s10229_s16 }
 0x80d   :  { %v7774_v38 = vpop.permute.xlu1 %7773 }
 0x80e   :  { %7960 = vst.msk [vmem:[#allocation5 + $0x30] sm:$0xff] %vm7953_vm15, %v7774_v38  ;;  %v7391_v35 = vpop.permute.xlu0 %7390  ;;  %v8023_v24 = vld [vmem:[#allocation5 + $0x28] sm:$0xff]  ;;  %v6898_v38 = vld [vmem:[#allocation3 + $0x260] sm:$0xff] }
 0x80f   :  { %7576 = vst.msk [vmem:[#allocation5 + $0x38] sm:$0xff] %vm7568_vm13, %v7391_v35  ;;  %7428 = vrot.lane.b32.xlu1 %v7274_v6, %s10228_s13  ;;  %10015 = vmatmul.mubr.msk.f32.gmra.mrb[38].mxu1 %vm8736_vm2, %v8023_v24  ;;  %v7667_v24 = vld [vmem:[#allocation3 + $0x25c] sm:$0xff] }
 0x810   :  { %7045 = vrot.lane.b32.xlu0 %v6890_v8, %s10227_s8  ;;  %v7283_v8 = vld [vmem:[#allocation3 + $0x262] sm:$0xff] }
 0x811   :  { %v7008_v56 = vpop.permute.xlu1 %7007 }
 0x812   :  { %7192 = vst.msk [vmem:[#allocation5 + $0x40] sm:$0xff] %vm7183_vm12, %v7008_v56  ;;  %v7776_v0 = vpop.permute.xlu0 %7775 }
 0x813   :  { %7961 = vst.msk [vmem:[#allocation5 + $0x38] sm:$0xff] %vm7953_vm15, %v7776_v0  ;;  %7813 = vrot.lane.b32.xlu1 %v7659_v14, %s10229_s16 }
 0x814   :  { %7430 = vrot.lane.b32.xlu0 %v7275_v41, %s10228_s13  ;;  %v7668_v41 = vld [vmem:[#allocation3 + $0x264] sm:$0xff] }
 0x815   :  { %v7393_v61 = vpop.permute.xlu1 %7392  ;;  %v8024_v53 = vld [vmem:[#allocation5 + $0x30] sm:$0xff] }
 0x816   :  { %7577 = vst.msk [vmem:[#allocation5 + $0x40] sm:$0xff] %vm7568_vm13, %v7393_v61  ;;  %v7010_v34 = vpop.permute.xlu0 %7009  ;;  %10017 = vmatprep.mubr.msk.f32.mxu1 %vm8736_vm2, %v8024_v53  ;;  %v7284_v61 = vld [vmem:[#allocation3 + $0x272] sm:$0xff] }
 0x817   :  { %7193 = vst.msk [vmem:[#allocation5 + $0x48] sm:$0xff] %vm7183_vm12, %v7010_v34  ;;  %7047 = vrot.lane.b32.xlu1 %v6891_v11, %s10227_s8  ;;  %v6900_v34 = vld [vmem:[#allocation3 + $0x278] sm:$0xff] }
 0x818   :  { %7815 = vrot.lane.b32.xlu0 %v7660_v4, %s10229_s16 }
 0x819   :  { %v7778_v25 = vpop.permute.xlu1 %7777 }
 0x81a   :  { %7962 = vst.msk [vmem:[#allocation5 + $0x40] sm:$0xff] %vm7953_vm15, %v7778_v25  ;;  %v7395_v2 = vpop.permute.xlu0 %7394  ;;  %v8025_v5 = vld [vmem:[#allocation5 + $0x38] sm:$0xff] }
 0x81b   :  { %7578 = vst.msk [vmem:[#allocation5 + $0x48] sm:$0xff] %vm7568_vm13, %v7395_v2  ;;  %7432 = vrot.lane.b32.xlu1 %v7276_v19, %s10228_s13  ;;  %10018 = vmatmul.mubr.msk.f32.gmra.mrb[40].mxu1 %vm8736_vm2, %v8025_v5  ;;  %v7669_v2 = vld [vmem:[#allocation3 + $0x274] sm:$0xff] }
 0x81c   :  { %7049 = vrot.lane.b32.xlu0 %v6892_v12, %s10227_s8  ;;  %v7285_v5 = vld [vmem:[#allocation3 + $0x27a] sm:$0xff] }
 0x81d   :  { %v7012_v62 = vpop.permute.xlu1 %7011 }
 0x81e   :  { %7194 = vst.msk [vmem:[#allocation5 + $0x50] sm:$0xff] %vm7183_vm12, %v7012_v62  ;;  %v7780_v13 = vpop.permute.xlu0 %7779 }
 0x81f   :  { %7963 = vst.msk [vmem:[#allocation5 + $0x48] sm:$0xff] %vm7953_vm15, %v7780_v13  ;;  %7817 = vrot.lane.b32.xlu1 %v7661_v47, %s10229_s16  ;;  %v6901_v13 = vld [vmem:[#allocation3 + $0x288] sm:$0xff] }
 0x820   :  { %7434 = vrot.lane.b32.xlu0 %v7277_v1, %s10228_s13 }
 0x821   :  { %v7397_v27 = vpop.permute.xlu1 %7396  ;;  %v8026_v9 = vld [vmem:[#allocation5 + $0x40] sm:$0xff] }
 0x822   :  { %7579 = vst.msk [vmem:[#allocation5 + $0x50] sm:$0xff] %vm7568_vm13, %v7397_v27  ;;  %v7014_v23 = vpop.permute.xlu0 %7013  ;;  %10020 = vmatprep.mubr.msk.f32.mxu1 %vm8736_vm2, %v8026_v9  ;;  %v7286_v27 = vld [vmem:[#allocation3 + $0x28a] sm:$0xff] }
 0x823   :  { %7195 = vst.msk [vmem:[#allocation5 + $0x58] sm:$0xff] %vm7183_vm12, %v7014_v23  ;;  %7051 = vrot.lane.b32.xlu1 %v6893_v31, %s10227_s8 }
 0x824   :  { %7819 = vrot.lane.b32.xlu0 %v7662_v30, %s10229_s16  ;;  %v6902_v30 = vld [vmem:[#allocation3 + $0x290] sm:$0xff] }
 0x825   :  { %v7782_v52 = vpop.permute.xlu1 %7781 }
 0x826   :  { %7964 = vst.msk [vmem:[#allocation5 + $0x50] sm:$0xff] %vm7953_vm15, %v7782_v52  ;;  %v7399_v46 = vpop.permute.xlu0 %7398  ;;  %v8027_v36 = vld [vmem:[#allocation5 + $0x48] sm:$0xff] }
 0x827   :  { %7580 = vst.msk [vmem:[#allocation5 + $0x58] sm:$0xff] %vm7568_vm13, %v7399_v46  ;;  %7436 = vrot.lane.b32.xlu1 %v7278_v16, %s10228_s13  ;;  %10021 = vmatmul.mubr.msk.f32.gmra.mrb[42].mxu1 %vm8736_vm2, %v8027_v36  ;;  %v7671_v46 = vld [vmem:[#allocation3 + $0x28c] sm:$0xff] }
 0x828   :  { %7053 = vrot.lane.b32.xlu0 %v6894_v32, %s10227_s8  ;;  %v7287_v36 = vld [vmem:[#allocation3 + $0x292] sm:$0xff] }
 0x829   :  { %v7016_v26 = vpop.permute.xlu1 %7015 }
 0x82a   :  { %7196 = vst.msk [vmem:[#allocation5 + $0x60] sm:$0xff] %vm7183_vm12, %v7016_v26  ;;  %v7784_v63 = vpop.permute.xlu0 %7783 }
 0x82b   :  { %7965 = vst.msk [vmem:[#allocation5 + $0x58] sm:$0xff] %vm7953_vm15, %v7784_v63  ;;  %7821 = vrot.lane.b32.xlu1 %v7663_v48, %s10229_s16  ;;  %v6903_v63 = vld [vmem:[#allocation3 + $0x2a0] sm:$0xff] }
 0x82c   :  { %7438 = vrot.lane.b32.xlu0 %v7279_v42, %s10228_s13 }
 0x82d   :  { %v7401_v15 = vpop.permute.xlu1 %7400  ;;  %v8028_v51 = vld [vmem:[#allocation5 + $0x50] sm:$0xff] }
 0x82e   :  { %7581 = vst.msk [vmem:[#allocation5 + $0x60] sm:$0xff] %vm7568_vm13, %v7401_v15  ;;  %v7018_v29 = vpop.permute.xlu0 %7017  ;;  %10023 = vmatprep.mubr.msk.f32.mxu1 %vm8736_vm2, %v8028_v51  ;;  %v7672_v15 = vld [vmem:[#allocation3 + $0x294] sm:$0xff] }
 0x82f   :  { %7197 = vst.msk [vmem:[#allocation5 + $0x68] sm:$0xff] %vm7183_vm12, %v7018_v29  ;;  %7055 = vrot.lane.b32.xlu1 %v6895_v43, %s10227_s8  ;;  %v7288_v29 = vld [vmem:[#allocation3 + $0x2a2] sm:$0xff] }
 0x830   :  { %7823 = vrot.lane.b32.xlu0 %v7664_v49, %s10229_s16 }
 0x831   :  { %v7786_v10 = vpop.permute.xlu1 %7785 }
 0x832   :  { %7966 = vst.msk [vmem:[#allocation5 + $0x60] sm:$0xff] %vm7953_vm15, %v7786_v10  ;;  %v7403_v59 = vpop.permute.xlu0 %7402  ;;  %v8029_v60 = vld [vmem:[#allocation5 + $0x58] sm:$0xff]  ;;  %v6904_v10 = vld [vmem:[#allocation3 + $0x2a8] sm:$0xff] }
 0x833   :  { %7582 = vst.msk [vmem:[#allocation5 + $0x68] sm:$0xff] %vm7568_vm13, %v7403_v59  ;;  %7440 = vrot.lane.b32.xlu1 %v7280_v22, %s10228_s13  ;;  %10024 = vmatmul.mubr.msk.f32.gmra.mrb[44].mxu1 %vm8736_vm2, %v8029_v60 }
 0x834   :  { %7057 = vrot.lane.b32.xlu0 %v6896_v39, %s10227_s8 }
 0x835   :  { %v7020_v37 = vpop.permute.xlu1 %7019 }
 0x836   :  { %7198 = vst.msk [vmem:[#allocation5 + $0x70] sm:$0xff] %vm7183_vm12, %v7020_v37  ;;  %v7788_v57 = vpop.permute.xlu0 %7787  ;;  %v7673_v37 = vld [vmem:[#allocation3 + $0x2a4] sm:$0xff] }
 0x837   :  { %7967 = vst.msk [vmem:[#allocation5 + $0x68] sm:$0xff] %vm7953_vm15, %v7788_v57  ;;  %7825 = vrot.lane.b32.xlu1 %v7665_v55, %s10229_s16  ;;  %v7289_v57 = vld [vmem:[#allocation3 + $0x2aa] sm:$0xff] }
 0x838   :  { %7442 = vrot.lane.b32.xlu0 %v7281_v58, %s10228_s13 }
 0x839   :  { %v7405_v3 = vpop.permute.xlu1 %7404  ;;  %v8030_v28 = vld [vmem:[#allocation5 + $0x60] sm:$0xff]  ;;  %v13898_v4 = vpop.f32.mrb[64].mxu0 }
 0x83a   :  { %7583 = vst.msk [vmem:[#allocation5 + $0x70] sm:$0xff] %vm7568_vm13, %v7405_v3  ;;  %v7022_v50 = vpop.permute.xlu0 %7021  ;;  %10026 = vmatprep.mubr.msk.f32.mxu1 %vm8736_vm2, %v8030_v28  ;;  %v13901_v25 = vpop.f32.mrb[65].mxu0  ;;  %v6905_v28 = vld [vmem:[#allocation3 + $0x2b8] sm:$0xff] }
 0x83b   :  { %7199 = vst.msk [vmem:[#allocation5 + $0x78] sm:$0xff] %vm7183_vm12, %v7022_v50  ;;  %7059 = vrot.lane.b32.xlu1 %v6897_v18, %s10227_s8  ;;  %v7674_v50 = vld [vmem:[#allocation3 + $0x2ac] sm:$0xff] }
 0x83c   :  { %7827 = vrot.lane.b32.xlu0 %v7666_v21, %s10229_s16 }
 0x83d   :  { %v7790_v54 = vpop.permute.xlu1 %7789 }
 0x83e   :  { %7968 = vst.msk [vmem:[#allocation5 + $0x70] sm:$0xff] %vm7953_vm15, %v7790_v54  ;;  %v7407_v20 = vpop.permute.xlu0 %7406  ;;  %v8031_v40 = vld [vmem:[#allocation5 + $0x68] sm:$0xff]  ;;  %v7290_v54 = vld [vmem:[#allocation3 + $0x2ba] sm:$0xff] }
 0x83f   :  { %7584 = vst.msk [vmem:[#allocation5 + $0x78] sm:$0xff] %vm7568_vm13, %v7407_v20  ;;  %7444 = vrot.lane.b32.xlu1 %v7282_v45, %s10228_s13  ;;  %10027 = vmatmul.mubr.msk.f32.gmra.mrb[46].mxu1 %vm8736_vm2, %v8031_v40  ;;  %v6906_v45 = vld [vmem:[#allocation3 + $0x2c0] sm:$0xff] }
 0x840   :  { %7061 = vrot.lane.b32.xlu0 %v6898_v38, %s10227_s8 }
 0x841   :  { %v7024_v35 = vpop.permute.xlu1 %7023 }
 0x842   :  { %7200 = vst.msk [vmem:[#allocation5 + $0x80] sm:$0xff] %vm7183_vm12, %v7024_v35  ;;  %v7792_v6 = vpop.permute.xlu0 %7791 }
 0x843   :  { %7969 = vst.msk [vmem:[#allocation5 + $0x78] sm:$0xff] %vm7953_vm15, %v7792_v6  ;;  %7829 = vrot.lane.b32.xlu1 %v7667_v24, %s10229_s16  ;;  %v7675_v24 = vld [vmem:[#allocation3 + $0x2bc] sm:$0xff] }
 0x844   :  { %7446 = vrot.lane.b32.xlu0 %v7283_v8, %s10228_s13  ;;  %v7291_v8 = vld [vmem:[#allocation3 + $0x2c2] sm:$0xff] }
 0x845   :  { %v7409_v56 = vpop.permute.xlu1 %7408  ;;  %v8032_v0 = vld [vmem:[#allocation5 + $0x70] sm:$0xff] }
 0x846   :  { %7585 = vst.msk [vmem:[#allocation5 + $0x80] sm:$0xff] %vm7568_vm13, %v7409_v56  ;;  %v7026_v14 = vpop.permute.xlu0 %7025  ;;  %10029 = vmatprep.mubr.msk.f32.mxu1 %vm8736_vm2, %v8032_v0 }
 0x847   :  { %7201 = vst.msk [vmem:[#allocation5 + $0x88] sm:$0xff] %vm7183_vm12, %v7026_v14  ;;  %7063 = vrot.lane.b32.xlu1 %v6899_v44, %s10227_s8  ;;  %v6907_v44 = vld [vmem:[#allocation3 + $0x2d0] sm:$0xff] }
 0x848   :  { %7831 = vrot.lane.b32.xlu0 %v7668_v41, %s10229_s16  ;;  %v7676_v41 = vld [vmem:[#allocation3 + $0x2c4] sm:$0xff] }
 0x849   :  { %v7794_v33 = vpop.permute.xlu1 %7793 }
 0x84a   :  { %7970 = vst.msk [vmem:[#allocation5 + $0x80] sm:$0xff] %vm7953_vm15, %v7794_v33  ;;  %v7411_v11 = vpop.permute.xlu0 %7410  ;;  %v8033_v53 = vld [vmem:[#allocation5 + $0x78] sm:$0xff] }
 0x84b   :  { %7586 = vst.msk [vmem:[#allocation5 + $0x88] sm:$0xff] %vm7568_vm13, %v7411_v11  ;;  %7448 = vrot.lane.b32.xlu1 %v7284_v61, %s10228_s13  ;;  %10030 = vmatmul.mubr.msk.f32.gmra.mrb[48].mxu1 %vm8736_vm2, %v8033_v53  ;;  %v7292_v61 = vld [vmem:[#allocation3 + $0x2d2] sm:$0xff] }
 0x84c   :  { %7065 = vrot.lane.b32.xlu0 %v6900_v34, %s10227_s8  ;;  %v6908_v34 = vld [vmem:[#allocation3 + $0x2d8] sm:$0xff] }
 0x84d   :  { %v7028_v19 = vpop.permute.xlu1 %7027 }
 0x84e   :  { %7202 = vst.msk [vmem:[#allocation5 + $0x90] sm:$0xff] %vm7183_vm12, %v7028_v19  ;;  %v7796_v12 = vpop.permute.xlu0 %7795 }
 0x84f   :  { %7971 = vst.msk [vmem:[#allocation5 + $0x88] sm:$0xff] %vm7953_vm15, %v7796_v12  ;;  %7833 = vrot.lane.b32.xlu1 %v7669_v2, %s10229_s16 }
 0x850   :  { %7450 = vrot.lane.b32.xlu0 %v7285_v5, %s10228_s13  ;;  %v13916_v23 = vpop.f32.mrb[66].mxu0 }
 0x851   :  { %v7413_v47 = vpop.permute.xlu1 %7412  ;;  %v8034_v62 = vld [vmem:[#allocation5 + $0x80] sm:$0xff]  ;;  %v13919_v52 = vpop.f32.mrb[67].mxu0 }
 0x852   :  { %7587 = vst.msk [vmem:[#allocation5 + $0x90] sm:$0xff] %vm7568_vm13, %v7413_v47  ;;  %v7030_v1 = vpop.permute.xlu0 %7029  ;;  %10032 = vmatprep.mubr.msk.f32.mxu1 %vm8736_vm2, %v8034_v62  ;;  %v7677_v47 = vld [vmem:[#allocation3 + $0x2d4] sm:$0xff] }
 0x853   :  { %7203 = vst.msk [vmem:[#allocation5 + $0x98] sm:$0xff] %vm7183_vm12, %v7030_v1  ;;  %7067 = vrot.lane.b32.xlu1 %v6901_v13, %s10227_s8  ;;  %v7293_v62 = vld [vmem:[#allocation3 + $0x2da] sm:$0xff] }
 0x854   :  { %7835 = vrot.lane.b32.xlu0 %v7670_v7, %s10229_s16 }
 0x855   :  { %v7798_v17 = vpop.permute.xlu1 %7797 }
 0x856   :  { %7972 = vst.msk [vmem:[#allocation5 + $0x90] sm:$0xff] %vm7953_vm15, %v7798_v17  ;;  %v7415_v31 = vpop.permute.xlu0 %7414  ;;  %v8035_v9 = vld [vmem:[#allocation5 + $0x88] sm:$0xff] }
 0x857   :  { %7588 = vst.msk [vmem:[#allocation5 + $0x98] sm:$0xff] %vm7568_vm13, %v7415_v31  ;;  %7452 = vrot.lane.b32.xlu1 %v7286_v27, %s10228_s13  ;;  %10033 = vmatmul.mubr.msk.f32.gmra.mrb[50].mxu1 %vm8736_vm2, %v8035_v9  ;;  %v6909_v17 = vld [vmem:[#allocation3 + $0x2e8] sm:$0xff]  ;;  %v7678_v31 = vld [vmem:[#allocation3 + $0x2dc] sm:$0xff] }
 0x858   :  { %7069 = vrot.lane.b32.xlu0 %v6902_v30, %s10227_s8  ;;  %v7294_v30 = vld [vmem:[#allocation3 + $0x2ea] sm:$0xff] }
 0x859   :  { %v7032_v16 = vpop.permute.xlu1 %7031 }
 0x85a   :  { %7204 = vst.msk [vmem:[#allocation5 + $0xa0] sm:$0xff] %vm7183_vm12, %v7032_v16  ;;  %v7800_v32 = vpop.permute.xlu0 %7799 }
 0x85b   :  { %7973 = vst.msk [vmem:[#allocation5 + $0x98] sm:$0xff] %vm7953_vm15, %v7800_v32  ;;  %7837 = vrot.lane.b32.xlu1 %v7671_v46, %s10229_s16  ;;  %v6910_v32 = vld [vmem:[#allocation3 + $0x2f0] sm:$0xff] }
 0x85c   :  { %7454 = vrot.lane.b32.xlu0 %v7287_v36, %s10228_s13  ;;  %v13934_v59 = vpop.f32.mrb[68].mxu0 }
 0x85d   :  { %v7417_v48 = vpop.permute.xlu1 %7416  ;;  %v8036_v26 = vld [vmem:[#allocation5 + $0x90] sm:$0xff]  ;;  %v13937_v60 = vpop.f32.mrb[69].mxu0 }
 0x85e   :  { %7589 = vst.msk [vmem:[#allocation5 + $0xa0] sm:$0xff] %vm7568_vm13, %v7417_v48  ;;  %v7034_v42 = vpop.permute.xlu0 %7033  ;;  %10035 = vmatprep.mubr.msk.f32.mxu1 %vm8736_vm2, %v8036_v26 }
 0x85f   :  { %7205 = vst.msk [vmem:[#allocation5 + $0xa8] sm:$0xff] %vm7183_vm12, %v7034_v42  ;;  %7071 = vrot.lane.b32.xlu1 %v6903_v63, %s10227_s8  ;;  %v7679_v42 = vld [vmem:[#allocation3 + $0x2ec] sm:$0xff] }
 0x860   :  { %7839 = vrot.lane.b32.xlu0 %v7672_v15, %s10229_s16  ;;  %v13952_v40 = vpop.f32.mrb[70].mxu0  ;;  %v7295_v63 = vld [vmem:[#allocation3 + $0x2f2] sm:$0xff] }
 0x861   :  { %v7802_v51 = vpop.permute.xlu1 %7801  ;;  %v13955_v35 = vpop.f32.mrb[71].mxu0 }
 0x862   :  { %7974 = vst.msk [vmem:[#allocation5 + $0xa0] sm:$0xff] %vm7953_vm15, %v7802_v51  ;;  %v7419_v49 = vpop.permute.xlu0 %7418  ;;  %v8037_v43 = vld [vmem:[#allocation5 + $0x98] sm:$0xff] }
 0x863   :  { %7590 = vst.msk [vmem:[#allocation5 + $0xa8] sm:$0xff] %vm7568_vm13, %v7419_v49  ;;  %7456 = vrot.lane.b32.xlu1 %v7288_v29, %s10228_s13  ;;  %10036 = vmatmul.mubr.msk.f32.gmra.mrb[52].mxu1 %vm8736_vm2, %v8037_v43  ;;  %v6911_v29 = vld [vmem:[#allocation3 + $0x300] sm:$0xff]  ;;  %v7680_v43 = vld [vmem:[#allocation3 + $0x2f4] sm:$0xff] }
 0x864   :  { %7073 = vrot.lane.b32.xlu0 %v6904_v10, %s10227_s8  ;;  %v13970_v19 = vpop.f32.mrb[72].mxu0 }
 0x865   :  { %v7036_v22 = vpop.permute.xlu1 %7035  ;;  %v13973_v2 = vpop.f32.mrb[73].mxu0 }
 0x866   :  { %7206 = vst.msk [vmem:[#allocation5 + $0xb0] sm:$0xff] %vm7183_vm12, %v7036_v22  ;;  %v7804_v39 = vpop.permute.xlu0 %7803 }
 0x867   :  { %7975 = vst.msk [vmem:[#allocation5 + $0xa8] sm:$0xff] %vm7953_vm15, %v7804_v39  ;;  %7841 = vrot.lane.b32.xlu1 %v7673_v37, %s10229_s16  ;;  %v7296_v39 = vld [vmem:[#allocation3 + $0x302] sm:$0xff] }
 0x868   :  { %7458 = vrot.lane.b32.xlu0 %v7289_v57, %s10228_s13  ;;  %v13988_v46 = vpop.f32.mrb[74].mxu0  ;;  %v6912_v57 = vld [vmem:[#allocation3 + $0x308] sm:$0xff] }
 0x869   :  { %v7421_v55 = vpop.permute.xlu1 %7420  ;;  %v8038_v58 = vld [vmem:[#allocation5 + $0xa0] sm:$0xff]  ;;  %v13991_v48 = vpop.f32.mrb[75].mxu0 }
 0x86a   :  { %7591 = vst.msk [vmem:[#allocation5 + $0xb0] sm:$0xff] %vm7568_vm13, %v7421_v55  ;;  %v7038_v3 = vpop.permute.xlu0 %7037  ;;  %10038 = vmatprep.mubr.msk.f32.mxu1 %vm8736_vm2, %v8038_v58 }
 0x86b   :  { %7207 = vst.msk [vmem:[#allocation5 + $0xb8] sm:$0xff] %vm7183_vm12, %v7038_v3  ;;  %7075 = vrot.lane.b32.xlu1 %v6905_v28, %s10227_s8 }
 0x86c   :  { %7843 = vrot.lane.b32.xlu0 %v7674_v50, %s10229_s16  ;;  %v14006_v55 = vpop.f32.mrb[76].mxu0  ;;  %v7681_v50 = vld [vmem:[#allocation3 + $0x304] sm:$0xff] }
 0x86d   :  { %v7806_v18 = vpop.permute.xlu1 %7805  ;;  %v14009_v3 = vpop.f32.mrb[77].mxu0 }
 0x86e   :  { %7976 = vst.msk [vmem:[#allocation5 + $0xb0] sm:$0xff] %vm7953_vm15, %v7806_v18  ;;  %v7423_v21 = vpop.permute.xlu0 %7422  ;;  %v8039_v20 = vld [vmem:[#allocation5 + $0xa8] sm:$0xff] }
 0x86f   :  { %7592 = vst.msk [vmem:[#allocation5 + $0xb8] sm:$0xff] %vm7568_vm13, %v7423_v21  ;;  %7460 = vrot.lane.b32.xlu1 %v7290_v54, %s10228_s13  ;;  %10039 = vmatmul.mubr.msk.f32.gmra.mrb[54].mxu1 %vm8736_vm2, %v8039_v20  ;;  %v7297_v18 = vld [vmem:[#allocation3 + $0x30a] sm:$0xff] }
 0x870   :  { %7077 = vrot.lane.b32.xlu0 %v6906_v45, %s10227_s8  ;;  %v6913_v45 = vld [vmem:[#allocation3 + $0x318] sm:$0xff] }
 0x871   :  { %v7040_v38 = vpop.permute.xlu1 %7039 }
 0x872   :  { %7208 = vst.msk [vmem:[#allocation5 + $0xc0] sm:$0xff] %vm7183_vm12, %v7040_v38  ;;  %v7808_v6 = vpop.permute.xlu0 %7807  ;;  %v7682_v38 = vld [vmem:[#allocation3 + $0x30c] sm:$0xff] }
 0x873   :  { %7977 = vst.msk [vmem:[#allocation5 + $0xb8] sm:$0xff] %vm7953_vm15, %v7808_v6  ;;  %7845 = vrot.lane.b32.xlu1 %v7675_v24, %s10229_s16 }
 0x874   :  { %7462 = vrot.lane.b32.xlu0 %v7291_v8, %s10228_s13  ;;  %v7298_v8 = vld [vmem:[#allocation3 + $0x31a] sm:$0xff] }
 0x875   :  { %v7425_v56 = vpop.permute.xlu1 %7424  ;;  %v8040_v0 = vld [vmem:[#allocation5 + $0xb0] sm:$0xff] }
 0x876   :  { %7593 = vst.msk [vmem:[#allocation5 + $0xc0] sm:$0xff] %vm7568_vm13, %v7425_v56  ;;  %v7042_v14 = vpop.permute.xlu0 %7041  ;;  %10041 = vmatprep.mubr.msk.f32.mxu1 %vm8736_vm2, %v8040_v0  ;;  %v6914_v0 = vld [vmem:[#allocation3 + $0x320] sm:$0xff] }
 0x877   :  { %7209 = vst.msk [vmem:[#allocation5 + $0xc8] sm:$0xff] %vm7183_vm12, %v7042_v14  ;;  %7079 = vrot.lane.b32.xlu1 %v6907_v44, %s10227_s8  ;;  %v14024_v14 = vpop.f32.mrb[78].mxu0 }
 0x878   :  { %7847 = vrot.lane.b32.xlu0 %v7676_v41, %s10229_s16  ;;  %v14027_v41 = vpop.f32.mrb[79].mxu0 }
 0x879   :  { %v7810_v33 = vpop.permute.xlu1 %7809 }
 0x87a   :  { %7978 = vst.msk [vmem:[#allocation5 + $0xc0] sm:$0xff] %vm7953_vm15, %v7810_v33  ;;  %v7427_v11 = vpop.permute.xlu0 %7426  ;;  %v8041_v53 = vld [vmem:[#allocation5 + $0xb8] sm:$0xff] }
 0x87b   :  { %7594 = vst.msk [vmem:[#allocation5 + $0xc8] sm:$0xff] %vm7568_vm13, %v7427_v11  ;;  %7464 = vrot.lane.b32.xlu1 %v7292_v61, %s10228_s13  ;;  %10042 = vmatmul.mubr.msk.f32.gmra.mrb[56].mxu1 %vm8736_vm2, %v8041_v53  ;;  %v7683_v11 = vld [vmem:[#allocation3 + $0x31c] sm:$0xff] }
 0x87c   :  { %7081 = vrot.lane.b32.xlu0 %v6908_v34, %s10227_s8  ;;  %v7299_v61 = vld [vmem:[#allocation3 + $0x322] sm:$0xff] }
 0x87d   :  { %v7044_v12 = vpop.permute.xlu1 %7043 }
 0x87e   :  { %7210 = vst.msk [vmem:[#allocation5 + $0xd0] sm:$0xff] %vm7183_vm12, %v7044_v12  ;;  %v7812_v5 = vpop.permute.xlu0 %7811 }
 0x87f   :  { %7979 = vst.msk [vmem:[#allocation5 + $0xc8] sm:$0xff] %vm7953_vm15, %v7812_v5  ;;  %7849 = vrot.lane.b32.xlu1 %v7677_v47, %s10229_s16  ;;  %v7684_v5 = vld [vmem:[#allocation3 + $0x324] sm:$0xff] }
 0x880   :  { %7466 = vrot.lane.b32.xlu0 %v7293_v62, %s10228_s13 }
 0x881   :  { %v7429_v1 = vpop.permute.xlu1 %7428  ;;  %v8042_v13 = vld [vmem:[#allocation5 + $0xc0] sm:$0xff] }
 0x882   :  { %7595 = vst.msk [vmem:[#allocation5 + $0xd0] sm:$0xff] %vm7568_vm13, %v7429_v1  ;;  %v7046_v7 = vpop.permute.xlu0 %7045  ;;  %10044 = vmatprep.mubr.msk.f32.mxu1 %vm8736_vm2, %v8042_v13  ;;  %v6916_v1 = vld [vmem:[#allocation3 + $0x338] sm:$0xff] }
 0x883   :  { %7211 = vst.msk [vmem:[#allocation5 + $0xd8] sm:$0xff] %vm7183_vm12, %v7046_v7  ;;  %7083 = vrot.lane.b32.xlu1 %v6909_v17, %s10227_s8  ;;  %v6915_v7 = vld [vmem:[#allocation3 + $0x330] sm:$0xff]  ;;  %v14042_v17 = vpop.f32.mrb[80].mxu0 }
 0x884   :  { %7851 = vrot.lane.b32.xlu0 %v7678_v31, %s10229_s16 }
 0x885   :  { %v7814_v27 = vpop.permute.xlu1 %7813 }
 0x886   :  { %7980 = vst.msk [vmem:[#allocation5 + $0xd0] sm:$0xff] %vm7953_vm15, %v7814_v27  ;;  %v7431_v9 = vpop.permute.xlu0 %7430  ;;  %v8043_v16 = vld [vmem:[#allocation5 + $0xc8] sm:$0xff]  ;;  %v14045_v27 = vpop.f32.mrb[81].mxu0 }
 0x887   :  { %7596 = vst.msk [vmem:[#allocation5 + $0xd8] sm:$0xff] %vm7568_vm13, %v7431_v9  ;;  %7468 = vrot.lane.b32.xlu1 %v7294_v30, %s10228_s13  ;;  %10045 = vmatmul.mubr.msk.f32.gmra.mrb[58].mxu1 %vm8736_vm2, %v8043_v16  ;;  %v7301_v30 = vld [vmem:[#allocation3 + $0x33a] sm:$0xff]  ;;  %v7300_v16 = vld [vmem:[#allocation3 + $0x332] sm:$0xff] }
 0x888   :  { %7085 = vrot.lane.b32.xlu0 %v6910_v32, %s10227_s8 }
 0x889   :  { %v7048_v36 = vpop.permute.xlu1 %7047 }
 0x88a   :  { %7212 = vst.msk [vmem:[#allocation5 + $0xe0] sm:$0xff] %vm7183_vm12, %v7048_v36  ;;  %v7816_v26 = vpop.permute.xlu0 %7815 }
 0x88b   :  { %7981 = vst.msk [vmem:[#allocation5 + $0xd8] sm:$0xff] %vm7953_vm15, %v7816_v26  ;;  %7853 = vrot.lane.b32.xlu1 %v7679_v42, %s10229_s16  ;;  %v7685_v42 = vld [vmem:[#allocation3 + $0x334] sm:$0xff] }
 0x88c   :  { %7470 = vrot.lane.b32.xlu0 %v7295_v63, %s10228_s13 }
 0x88d   :  { %v7433_v15 = vpop.permute.xlu1 %7432  ;;  %v8044_v51 = vld [vmem:[#allocation5 + $0xd0] sm:$0xff] }
 0x88e   :  { %7597 = vst.msk [vmem:[#allocation5 + $0xe0] sm:$0xff] %vm7568_vm13, %v7433_v15  ;;  %v7050_v49 = vpop.permute.xlu0 %7049  ;;  %10047 = vmatprep.mubr.msk.f32.mxu1 %vm8736_vm2, %v8044_v51 }
 0x88f   :  { %7213 = vst.msk [vmem:[#allocation5 + $0xe8] sm:$0xff] %vm7183_vm12, %v7050_v49  ;;  %7087 = vrot.lane.b32.xlu1 %v6911_v29, %s10227_s8  ;;  %v7686_v49 = vld [vmem:[#allocation3 + $0x33c] sm:$0xff]  ;;  %v14060_v29 = vpop.f32.mrb[82].mxu0 }
 0x890   :  { %7855 = vrot.lane.b32.xlu0 %v7680_v43, %s10229_s16 }
 0x891   :  { %v7818_v10 = vpop.permute.xlu1 %7817 }
 0x892   :  { %7982 = vst.msk [vmem:[#allocation5 + $0xe0] sm:$0xff] %vm7953_vm15, %v7818_v10  ;;  %v7435_v22 = vpop.permute.xlu0 %7434  ;;  %v8045_v37 = vld [vmem:[#allocation5 + $0xd8] sm:$0xff]  ;;  %v14063_v10 = vpop.f32.mrb[83].mxu0 }
 0x893   :  { %7598 = vst.msk [vmem:[#allocation5 + $0xe8] sm:$0xff] %vm7568_vm13, %v7435_v22  ;;  %7472 = vrot.lane.b32.xlu1 %v7296_v39, %s10228_s13  ;;  %10048 = vmatmul.mubr.msk.f32.gmra.mrb[60].mxu1 %vm8736_vm2, %v8045_v37  ;;  %v6918_v39 = vld [vmem:[#allocation3 + $0x350] sm:$0xff]  ;;  %v6917_v37 = vld [vmem:[#allocation3 + $0x348] sm:$0xff] }
 0x894   :  { %7089 = vrot.lane.b32.xlu0 %v6912_v57, %s10227_s8 }
 0x895   :  { %v7052_v58 = vpop.permute.xlu1 %7051 }
 0x896   :  { %7214 = vst.msk [vmem:[#allocation5 + $0xf0] sm:$0xff] %vm7183_vm12, %v7052_v58  ;;  %v7820_v28 = vpop.permute.xlu0 %7819 }
 0x897   :  { %7983 = vst.msk [vmem:[#allocation5 + $0xe8] sm:$0xff] %vm7953_vm15, %v7820_v28  ;;  %7857 = vrot.lane.b32.xlu1 %v7681_v50, %s10229_s16  ;;  %v7303_v50 = vld [vmem:[#allocation3 + $0x352] sm:$0xff] }
 0x898   :  { %7474 = vrot.lane.b32.xlu0 %v7297_v18, %s10228_s13  ;;  %v7302_v18 = vld [vmem:[#allocation3 + $0x34a] sm:$0xff] }
 0x899   :  { %v7437_v21 = vpop.permute.xlu1 %7436  ;;  %v8046_v54 = vld [vmem:[#allocation5 + $0xe0] sm:$0xff] }
 0x89a   :  { %7599 = vst.msk [vmem:[#allocation5 + $0xf0] sm:$0xff] %vm7568_vm13, %v7437_v21  ;;  %v7054_v20 = vpop.permute.xlu0 %7053  ;;  %10050 = vmatprep.mubr.msk.f32.mxu1 %vm8736_vm2, %v8046_v54 }
 0x89b   :  { %7215 = vst.msk [vmem:[#allocation5 + $0xf8] sm:$0xff] %vm7183_vm12, %v7054_v20  ;;  %7091 = vrot.lane.b32.xlu1 %v6913_v45, %s10227_s8  ;;  %v7687_v45 = vld [vmem:[#allocation3 + $0x34c] sm:$0xff] }
 0x89c   :  { %7859 = vrot.lane.b32.xlu0 %v7682_v38, %s10229_s16 }
 0x89d   :  { %v7822_v6 = vpop.permute.xlu1 %7821 }
 0x89e   :  { %7984 = vst.msk [vmem:[#allocation5 + $0xf0] sm:$0xff] %vm7953_vm15, %v7822_v6  ;;  %v7439_v24 = vpop.permute.xlu0 %7438  ;;  %v8047_v56 = vld [vmem:[#allocation5 + $0xe8] sm:$0xff] }
 0x89f   :  { %7600 = vst.msk [vmem:[#allocation5 + $0xf8] sm:$0xff] %vm7568_vm13, %v7439_v24  ;;  %7476 = vrot.lane.b32.xlu1 %v7298_v8, %s10228_s13  ;;  %10051 = vmatmul.mubr.msk.f32.gmra.mrb[62].mxu1 %vm8736_vm2, %v8047_v56  ;;  %v7688_v56 = vld [vmem:[#allocation3 + $0x354] sm:$0xff] }
 0x8a0   :  { %7093 = vrot.lane.b32.xlu0 %v6914_v0, %s10227_s8 }
 0x8a1   :  { %v7056_v44 = vpop.permute.xlu1 %7055 }
 0x8a2   :  { %7216 = vst.msk [vmem:[#allocation5 + $0x100] sm:$0xff] %vm7183_vm12, %v7056_v44  ;;  %v7824_v33 = vpop.permute.xlu0 %7823 }
 0x8a3   :  { %7985 = vst.msk [vmem:[#allocation5 + $0xf8] sm:$0xff] %vm7953_vm15, %v7824_v33  ;;  %7861 = vrot.lane.b32.xlu1 %v7683_v11, %s10229_s16 }
 0x8a4   :  { %7478 = vrot.lane.b32.xlu0 %v7299_v61, %s10228_s13  ;;  %v6920_v61 = vld [vmem:[#allocation3 + $0x368] sm:$0xff] }
 0x8a5   :  { %v7441_v53 = vpop.permute.xlu1 %7440  ;;  %v8048_v34 = vld [vmem:[#allocation5 + $0xf0] sm:$0xff] }
 0x8a6   :  { %7601 = vst.msk [vmem:[#allocation5 + $0x100] sm:$0xff] %vm7568_vm13, %v7441_v53  ;;  %v7058_v12 = vpop.permute.xlu0 %7057  ;;  %10053 = vmatprep.mubr.msk.f32.mxu1 %vm8736_vm2, %v8048_v34 }
 0x8a7   :  { %7217 = vst.msk [vmem:[#allocation5 + $0x108] sm:$0xff] %vm7183_vm12, %v7058_v12  ;;  %6711 = vrot.lane.b32.xlu1 %v7682_v38, %s10226_s5  ;;  %v14078_v38 = vpop.f32.mrb[84].mxu0  ;;  %v6919_v12 = vld [vmem:[#allocation3 + $0x360] sm:$0xff] }
 0x8a8   :  { %7863 = vrot.lane.b32.xlu0 %v7684_v5, %s10229_s16  ;;  %v14081_v24 = vpop.f32.mrb[85].mxu0 }
 0x8a9   :  { %v7826_v47 = vpop.permute.xlu1 %7825 }
 0x8aa   :  { %7986 = vst.msk [vmem:[#allocation5 + $0x100] sm:$0xff] %vm7953_vm15, %v7826_v47  ;;  %v7443_v62 = vpop.permute.xlu0 %7442  ;;  %v8049_v13 = vld [vmem:[#allocation5 + $0xf8] sm:$0xff] }
 0x8ab   :  { %7602 = vst.msk [vmem:[#allocation5 + $0x108] sm:$0xff] %vm7568_vm13, %v7443_v62  ;;  %7097 = vrot.lane.b32.xlu1 %v6916_v1, %s10227_s8  ;;  %10054 = vmatmul.mubr.msk.f32.gmra.mrb[0].mxu1 %vm8736_vm2, %v8049_v13  ;;  %v7305_v62 = vld [vmem:[#allocation3 + $0x36a] sm:$0xff] }
 0x8ac   :  { %7095 = vrot.lane.b32.xlu0 %v6915_v7, %s10227_s8 }
 0x8ad   :  { %v7060_v31 = vpop.permute.xlu1 %7059 }
 0x8ae   :  { %7218 = vst.msk [vmem:[#allocation5 + $0x110] sm:$0xff] %vm7183_vm12, %v7060_v31  ;;  %v7828_v9 = vpop.permute.xlu0 %7827 }
 0x8af   :  { %7987 = vst.msk [vmem:[#allocation5 + $0x108] sm:$0xff] %vm7953_vm15, %v7828_v9  ;;  %7482 = vrot.lane.b32.xlu1 %v7301_v30, %s10228_s13  ;;  %v7689_v30 = vld [vmem:[#allocation3 + $0x364] sm:$0xff] }
 0x8b0   :  { %7480 = vrot.lane.b32.xlu0 %v7300_v16, %s10228_s13 }
 0x8b1   :  { %v7445_v32 = vpop.permute.xlu1 %7444  ;;  %v8050_v36 = vld [vmem:[#allocation5 + $0x100] sm:$0xff] }
 0x8b2   :  { %7603 = vst.msk [vmem:[#allocation5 + $0x110] sm:$0xff] %vm7568_vm13, %v7445_v32  ;;  %v7062_v26 = vpop.permute.xlu0 %7061  ;;  %10056 = vmatprep.mubr.msk.f32.mxu1 %vm8736_vm2, %v8050_v36 }
 0x8b3   :  { %7219 = vst.msk [vmem:[#allocation5 + $0x118] sm:$0xff] %vm7183_vm12, %v7062_v26  ;;  %6713 = vrot.lane.b32.xlu1 %v7683_v11, %s10226_s5 }
 0x8b4   :  { %7865 = vrot.lane.b32.xlu0 %v7685_v42, %s10229_s16 }
 0x8b5   :  { %v7830_v63 = vpop.permute.xlu1 %7829 }
 0x8b6   :  { %7988 = vst.msk [vmem:[#allocation5 + $0x110] sm:$0xff] %vm7953_vm15, %v7830_v63  ;;  %v7447_v15 = vpop.permute.xlu0 %7446  ;;  %v8051_v51 = vld [vmem:[#allocation5 + $0x108] sm:$0xff] }
 0x8b7   :  { %7604 = vst.msk [vmem:[#allocation5 + $0x118] sm:$0xff] %vm7568_vm13, %v7447_v15  ;;  %6715 = vrot.lane.b32.xlu1 %v7684_v5, %s10226_s5  ;;  %10057 = vmatmul.mubr.msk.f32.gmra.mrb[2].mxu1 %vm8736_vm2, %v8051_v51  ;;  %v7690_v15 = vld [vmem:[#allocation3 + $0x36c] sm:$0xff] }
 0x8b8   :  { %7867 = vrot.lane.b32.xlu0 %v7686_v49, %s10229_s16 }
 0x8b9   :  { %v7064_v43 = vpop.permute.xlu1 %7063 }
 0x8ba   :  { %7220 = vst.msk [vmem:[#allocation5 + $0x120] sm:$0xff] %vm7183_vm12, %v7064_v43  ;;  %v7832_v22 = vpop.permute.xlu0 %7831  ;;  %v6922_v43 = vld [vmem:[#allocation3 + $0x380] sm:$0xff] }
 0x8bb   :  { %7989 = vst.msk [vmem:[#allocation5 + $0x118] sm:$0xff] %vm7953_vm15, %v7832_v22  ;;  %7101 = vrot.lane.b32.xlu1 %v6918_v39, %s10227_s8 }
 0x8bc   :  { %7099 = vrot.lane.b32.xlu0 %v6917_v37, %s10227_s8 }
 0x8bd   :  { %v7449_v57 = vpop.permute.xlu1 %7448  ;;  %v8052_v58 = vld [vmem:[#allocation5 + $0x110] sm:$0xff] }
 0x8be   :  { %7605 = vst.msk [vmem:[#allocation5 + $0x120] sm:$0xff] %vm7568_vm13, %v7449_v57  ;;  %v7066_v28 = vpop.permute.xlu0 %7065  ;;  %10059 = vmatprep.mubr.msk.f32.mxu1 %vm8736_vm2, %v8052_v58 }
 0x8bf   :  { %7221 = vst.msk [vmem:[#allocation5 + $0x128] sm:$0xff] %vm7183_vm12, %v7066_v28  ;;  %7486 = vrot.lane.b32.xlu1 %v7303_v50, %s10228_s13  ;;  %v7307_v28 = vld [vmem:[#allocation3 + $0x382] sm:$0xff]  ;;  %v7306_v50 = vld [vmem:[#allocation3 + $0x37a] sm:$0xff] }
 0x8c0   :  { %7484 = vrot.lane.b32.xlu0 %v7302_v18, %s10228_s13 }
 0x8c1   :  { %v7834_v21 = vpop.permute.xlu1 %7833 }
 0x8c2   :  { %7990 = vst.msk [vmem:[#allocation5 + $0x120] sm:$0xff] %vm7953_vm15, %v7834_v21  ;;  %v7451_v54 = vpop.permute.xlu0 %7450  ;;  %v8053_v20 = vld [vmem:[#allocation5 + $0x118] sm:$0xff] }
 0x8c3   :  { %7606 = vst.msk [vmem:[#allocation5 + $0x128] sm:$0xff] %vm7568_vm13, %v7451_v54  ;;  %6717 = vrot.lane.b32.xlu1 %v7685_v42, %s10226_s5  ;;  %10060 = vmatmul.mubr.msk.f32.gmra.mrb[4].mxu1 %vm8736_vm2, %v8053_v20 }
 0x8c4   :  { %7869 = vrot.lane.b32.xlu0 %v7687_v45, %s10229_s16 }
 0x8c5   :  { %v7068_v6 = vpop.permute.xlu1 %7067 }
 0x8c6   :  { %7222 = vst.msk [vmem:[#allocation5 + $0x130] sm:$0xff] %vm7183_vm12, %v7068_v6  ;;  %v7836_v8 = vpop.permute.xlu0 %7835 }
 0x8c7   :  { %7991 = vst.msk [vmem:[#allocation5 + $0x128] sm:$0xff] %vm7953_vm15, %v7836_v8  ;;  %6719 = vrot.lane.b32.xlu1 %v7686_v49, %s10226_s5  ;;  %v7691_v8 = vld [vmem:[#allocation3 + $0x37c] sm:$0xff] }
 0x8c8   :  { %7871 = vrot.lane.b32.xlu0 %v7688_v56, %s10229_s16 }
 0x8c9   :  { %v7453_v0 = vpop.permute.xlu1 %7452  ;;  %v8054_v44 = vld [vmem:[#allocation5 + $0x120] sm:$0xff]  ;;  %v14106_v13 = vpop.f32.mrb[86].mxu0 }
 0x8ca   :  { %7607 = vst.msk [vmem:[#allocation5 + $0x130] sm:$0xff] %vm7568_vm13, %v7453_v0  ;;  %v10010_v33 = vpop.f32.mrb[34].mxu1  ;;  %v7070_v11 = vpop.permute.xlu0 %7069  ;;  %10062 = vmatprep.mubr.msk.f32.mxu1 %vm8736_vm2, %v8054_v44 }
 0x8cb   :  { %v9001_v53 = vadd.f32 %v10010_v33, %v13898_v4  ;;  %7223 = vst.msk [vmem:[#allocation5 + $0x138] sm:$0xff] %vm7183_vm12, %v7070_v11  ;;  %7105 = vrot.lane.b32.xlu1 %v6920_v61, %s10227_s8  ;;  %v8995_v34 = vpop.f32.mrb[35].mxu1  ;;  %v14109_v31 = vpop.f32.mrb[87].mxu0  ;;  %v6924_v11 = vld [vmem:[#allocation3 + $0x398] sm:$0xff] }
 0x8cc   :  { %v8996_v5 = vadd.f32 %v8995_v34, %v13901_v25  ;;  %7103 = vrot.lane.b32.xlu0 %v6919_v12, %s10227_s8  ;;  %v7304_v25 = vld [vmem:[#allocation3 + $0x362] sm:$0xff] }
 0x8cd   :  { %9315 = vst.msk [vmem:[%s14542_s7 + $0x8] sm:$0xff] %vm114_vm1, %v9001_v53  ;;  %v7838_v47 = vpop.permute.xlu1 %7837  ;;  %v14134_v39 = vpop.f32.mrb[88].mxu0  ;;  %v6923_v53 = vld [vmem:[#allocation3 + $0x390] sm:$0xff] }
 0x8ce   :  { %9314 = vst.msk [vmem:[%s14542_s7] sm:$0xff] %vm114_vm1, %v8996_v5  ;;  %v7455_v4 = vpop.permute.xlu0 %7454  ;;  %v8055_v1 = vld [vmem:[#allocation5 + $0x128] sm:$0xff]  ;;  %v14137_v57 = vpop.f32.mrb[89].mxu0  ;;  %v7309_v5 = vld [vmem:[#allocation3 + $0x39a] sm:$0xff] }
 0x8cf   :  { %7992 = vst.msk [vmem:[#allocation5 + $0x130] sm:$0xff] %vm7953_vm15, %v7838_v47  ;;  %7490 = vrot.lane.b32.xlu1 %v7305_v62, %s10228_s13  ;;  %10063 = vmatmul.mubr.msk.f32.gmra.mrb[6].mxu1 %vm8736_vm2, %v8055_v1  ;;  %v7308_v62 = vld [vmem:[#allocation3 + $0x392] sm:$0xff] }
 0x8d0   :  { %7608 = vst.msk [vmem:[#allocation5 + $0x138] sm:$0xff] %vm7568_vm13, %v7455_v4  ;;  %7488 = vrot.lane.b32.xlu0 %v7304_v25, %s10228_s13 }
 0x8d1   :  { %v7072_v7 = vpop.permute.xlu1 %7071  ;;  %v14162_v33 = vpop.f32.mrb[90].mxu0 }
 0x8d2   :  { %7224 = vst.msk [vmem:[#allocation5 + $0x140] sm:$0xff] %vm7183_vm12, %v7072_v7  ;;  %v7840_v9 = vpop.permute.xlu0 %7839  ;;  %v14165_v34 = vpop.f32.mrb[91].mxu0 }
 0x8d3   :  { %7993 = vst.msk [vmem:[#allocation5 + $0x138] sm:$0xff] %vm7953_vm15, %v7840_v9  ;;  %6721 = vrot.lane.b32.xlu1 %v7687_v45, %s10226_s5 }
 0x8d4   :  { %7873 = vrot.lane.b32.xlu0 %v7689_v30, %s10229_s16 }
 0x8d5   :  { %v7457_v16 = vpop.permute.xlu1 %7456 }
 0x8d6   :  { %v8056_v32 = vld [vmem:[#allocation5 + $0x130] sm:$0xff]  ;;  %7609 = vst.msk [vmem:[#allocation5 + $0x140] sm:$0xff] %vm7568_vm13, %v7457_v16  ;;  %v10013_v36 = vpop.f32.mrb[36].mxu1  ;;  %v7074_v26 = vpop.permute.xlu0 %7073 }
 0x8d7   :  { %10065 = vmatprep.mubr.msk.f32.mxu1 %vm8736_vm2, %v8056_v32  ;;  %v9011_v42 = vadd.f32 %v10013_v36, %v13916_v23  ;;  %7225 = vst.msk [vmem:[#allocation5 + $0x148] sm:$0xff] %vm7183_vm12, %v7074_v26  ;;  %6723 = vrot.lane.b32.xlu1 %v7688_v56, %s10226_s5  ;;  %v9005_v63 = vpop.f32.mrb[37].mxu1  ;;  %v7693_v32 = vld [vmem:[#allocation3 + $0x394] sm:$0xff] }
 0x8d8   :  { %v9006_v51 = vadd.f32 %v9005_v63, %v13919_v52  ;;  %7875 = vrot.lane.b32.xlu0 %v7690_v15, %s10229_s16  ;;  %v6921_v52 = vld [vmem:[#allocation3 + $0x378] sm:$0xff] }
 0x8d9   :  { %9317 = vst.msk [vmem:[%s14542_s7 + $0x18] sm:$0xff] %vm114_vm1, %v9011_v42  ;;  %v7842_v49 = vpop.permute.xlu1 %7841  ;;  %v7694_v42 = vld [vmem:[#allocation3 + $0x39c] sm:$0xff] }
 0x8da   :  { %9316 = vst.msk [vmem:[%s14542_s7 + $0x10] sm:$0xff] %vm114_vm1, %v9006_v51  ;;  %v7459_v23 = vpop.permute.xlu0 %7458  ;;  %v8057_v22 = vld [vmem:[#allocation5 + $0x138] sm:$0xff]  ;;  %v6926_v51 = vld [vmem:[#allocation3 + $0x3b0] sm:$0xff] }
 0x8db   :  { %7994 = vst.msk [vmem:[#allocation5 + $0x140] sm:$0xff] %vm7953_vm15, %v7842_v49  ;;  %7109 = vrot.lane.b32.xlu1 %v6922_v43, %s10227_s8  ;;  %10066 = vmatmul.mubr.msk.f32.gmra.mrb[8].mxu1 %vm8736_vm2, %v8057_v22  ;;  %v6925_v43 = vld [vmem:[#allocation3 + $0x3a8] sm:$0xff] }
 0x8dc   :  { %7610 = vst.msk [vmem:[#allocation5 + $0x148] sm:$0xff] %vm7568_vm13, %v7459_v23  ;;  %7107 = vrot.lane.b32.xlu0 %v6921_v52, %s10227_s8 }
 0x8dd   :  { %v7076_v37 = vpop.permute.xlu1 %7075 }
 0x8de   :  { %7226 = vst.msk [vmem:[#allocation5 + $0x150] sm:$0xff] %vm7183_vm12, %v7076_v37  ;;  %v7844_v58 = vpop.permute.xlu0 %7843 }
 0x8df   :  { %7995 = vst.msk [vmem:[#allocation5 + $0x148] sm:$0xff] %vm7953_vm15, %v7844_v58  ;;  %7494 = vrot.lane.b32.xlu1 %v7307_v28, %s10228_s13 }
 0x8e0   :  { %7492 = vrot.lane.b32.xlu0 %v7306_v50, %s10228_s13  ;;  %v7311_v50 = vld [vmem:[#allocation3 + $0x3b2] sm:$0xff] }
 0x8e1   :  { %v7461_v18 = vpop.permute.xlu1 %7460 }
 0x8e2   :  { %v8058_v21 = vld [vmem:[#allocation5 + $0x140] sm:$0xff]  ;;  %7611 = vst.msk [vmem:[#allocation5 + $0x150] sm:$0xff] %vm7568_vm13, %v7461_v18  ;;  %v10016_v54 = vpop.f32.mrb[38].mxu1  ;;  %v7078_v20 = vpop.permute.xlu0 %7077 }
 0x8e3   :  { %10068 = vmatprep.mubr.msk.f32.mxu1 %vm8736_vm2, %v8058_v21  ;;  %v9021_v45 = vadd.f32 %v10016_v54, %v13934_v59  ;;  %7227 = vst.msk [vmem:[#allocation5 + $0x158] sm:$0xff] %vm7183_vm12, %v7078_v20  ;;  %6725 = vrot.lane.b32.xlu1 %v7689_v30, %s10226_s5  ;;  %v9015_v6 = vpop.f32.mrb[39].mxu1  ;;  %v7310_v21 = vld [vmem:[#allocation3 + $0x3aa] sm:$0xff] }
 0x8e4   :  { %v9016_v56 = vadd.f32 %v9015_v6, %v13937_v60  ;;  %7877 = vrot.lane.b32.xlu0 %v7691_v8, %s10229_s16  ;;  %v7692_v60 = vld [vmem:[#allocation3 + $0x384] sm:$0xff] }
 0x8e5   :  { %9319 = vst.msk [vmem:[%s14542_s7 + $0x28] sm:$0xff] %vm114_vm1, %v9021_v45  ;;  %v7846_v0 = vpop.permute.xlu1 %7845  ;;  %v7695_v45 = vld [vmem:[#allocation3 + $0x3ac] sm:$0xff] }
 0x8e6   :  { %9318 = vst.msk [vmem:[%s14542_s7 + $0x20] sm:$0xff] %vm114_vm1, %v9016_v56  ;;  %v7463_v59 = vpop.permute.xlu0 %7462  ;;  %v8059_v44 = vld [vmem:[#allocation5 + $0x148] sm:$0xff] }
 0x8e7   :  { %7996 = vst.msk [vmem:[#allocation5 + $0x150] sm:$0xff] %vm7953_vm15, %v7846_v0  ;;  %6727 = vrot.lane.b32.xlu1 %v7690_v15, %s10226_s5  ;;  %10069 = vmatmul.mubr.msk.f32.gmra.mrb[10].mxu1 %vm8736_vm2, %v8059_v44 }
 0x8e8   :  { %7612 = vst.msk [vmem:[#allocation5 + $0x158] sm:$0xff] %vm7568_vm13, %v7463_v59  ;;  %7879 = vrot.lane.b32.xlu0 %v7692_v60, %s10229_s16 }
 0x8e9   :  { %v7080_v61 = vpop.permute.xlu1 %7079 }
 0x8ea   :  { %7228 = vst.msk [vmem:[#allocation5 + $0x160] sm:$0xff] %vm7183_vm12, %v7080_v61  ;;  %v7848_v12 = vpop.permute.xlu0 %7847 }
 0x8eb   :  { %7997 = vst.msk [vmem:[#allocation5 + $0x158] sm:$0xff] %vm7953_vm15, %v7848_v12  ;;  %7113 = vrot.lane.b32.xlu1 %v6924_v11, %s10227_s8 }
 0x8ec   :  { %7111 = vrot.lane.b32.xlu0 %v6923_v53, %s10227_s8 }
 0x8ed   :  { %v7465_v47 = vpop.permute.xlu1 %7464 }
 0x8ee   :  { %v8060_v4 = vld [vmem:[#allocation5 + $0x150] sm:$0xff]  ;;  %7613 = vst.msk [vmem:[#allocation5 + $0x160] sm:$0xff] %vm7568_vm13, %v7465_v47  ;;  %v7082_v1 = vpop.permute.xlu0 %7081  ;;  %v10019_v25 = vpop.f32.mrb[40].mxu1 }
 0x8ef   :  { %10071 = vmatprep.mubr.msk.f32.mxu1 %vm8736_vm2, %v8060_v4  ;;  %7229 = vst.msk [vmem:[#allocation5 + $0x168] sm:$0xff] %vm7183_vm12, %v7082_v1  ;;  %v9031_v7 = vadd.f32 %v10019_v25, %v13952_v40  ;;  %7498 = vrot.lane.b32.xlu1 %v7309_v5, %s10228_s13  ;;  %v9025_v9 = vpop.f32.mrb[41].mxu1 }
 0x8f0   :  { %v9026_v30 = vadd.f32 %v9025_v9, %v13955_v35  ;;  %7496 = vrot.lane.b32.xlu0 %v7308_v62, %s10228_s13  ;;  %v14190_v35 = vpop.f32.mrb[92].mxu0 }
 0x8f1   :  { %9321 = vst.msk [vmem:[%s14542_s7 + $0x38] sm:$0xff] %vm114_vm1, %v9031_v7  ;;  %v7850_v16 = vpop.permute.xlu1 %7849  ;;  %v14193_v63 = vpop.f32.mrb[93].mxu0 }
 0x8f2   :  { %9320 = vst.msk [vmem:[%s14542_s7 + $0x30] sm:$0xff] %vm114_vm1, %v9026_v30  ;;  %v7467_v40 = vpop.permute.xlu0 %7466  ;;  %v8061_v36 = vld [vmem:[#allocation5 + $0x158] sm:$0xff] }
 0x8f3   :  { %7998 = vst.msk [vmem:[#allocation5 + $0x160] sm:$0xff] %vm7953_vm15, %v7850_v16  ;;  %6729 = vrot.lane.b32.xlu1 %v7691_v8, %s10226_s5  ;;  %10072 = vmatmul.mubr.msk.f32.gmra.mrb[12].mxu1 %vm8736_vm2, %v8061_v36 }
 0x8f4   :  { %7614 = vst.msk [vmem:[#allocation5 + $0x168] sm:$0xff] %vm7568_vm13, %v7467_v40  ;;  %7881 = vrot.lane.b32.xlu0 %v7693_v32, %s10229_s16 }
 0x8f5   :  { %v7084_v26 = vpop.permute.xlu1 %7083 }
 0x8f6   :  { %7230 = vst.msk [vmem:[#allocation5 + $0x170] sm:$0xff] %vm7183_vm12, %v7084_v26  ;;  %v7852_v15 = vpop.permute.xlu0 %7851 }
 0x8f7   :  { %7999 = vst.msk [vmem:[#allocation5 + $0x168] sm:$0xff] %vm7953_vm15, %v7852_v15  ;;  %6731 = vrot.lane.b32.xlu1 %v7692_v60, %s10226_s5 }
 0x8f8   :  { %7883 = vrot.lane.b32.xlu0 %v7694_v42, %s10229_s16 }
 0x8f9   :  { %v7469_v49 = vpop.permute.xlu1 %7468 }
 0x8fa   :  { %v8062_v23 = vld [vmem:[#allocation5 + $0x160] sm:$0xff]  ;;  %7615 = vst.msk [vmem:[#allocation5 + $0x170] sm:$0xff] %vm7568_vm13, %v7469_v49  ;;  %v7086_v22 = vpop.permute.xlu0 %7085  ;;  %v10022_v52 = vpop.f32.mrb[42].mxu1 }
 0x8fb   :  { %10074 = vmatprep.mubr.msk.f32.mxu1 %vm8736_vm2, %v8062_v23  ;;  %7231 = vst.msk [vmem:[#allocation5 + $0x178] sm:$0xff] %vm7183_vm12, %v7086_v22  ;;  %v9041_v37 = vadd.f32 %v10022_v52, %v13970_v19  ;;  %v9035_v58 = vpop.f32.mrb[43].mxu1  ;;  %7117 = vrot.lane.b32.xlu1 %v6926_v51, %s10227_s8 }
 0x8fc   :  { %v9036_v28 = vadd.f32 %v9035_v58, %v13973_v2  ;;  %7115 = vrot.lane.b32.xlu0 %v6925_v43, %s10227_s8  ;;  %v7696_v2 = vld [vmem:[#allocation3 + $0x3b4] sm:$0xff] }
 0x8fd   :  { %9323 = vst.msk [vmem:[%s14542_s7 + $0x48] sm:$0xff] %vm114_vm1, %v9041_v37  ;;  %v7854_v18 = vpop.permute.xlu1 %7853 }
 0x8fe   :  { %9322 = vst.msk [vmem:[%s14542_s7 + $0x40] sm:$0xff] %vm114_vm1, %v9036_v28  ;;  %v7471_v19 = vpop.permute.xlu0 %7470  ;;  %v8063_v54 = vld [vmem:[#allocation5 + $0x168] sm:$0xff] }
 0x8ff   :  { %8000 = vst.msk [vmem:[#allocation5 + $0x170] sm:$0xff] %vm7953_vm15, %v7854_v18  ;;  %10075 = vmatmul.mubr.msk.f32.gmra.mrb[14].mxu1 %vm8736_vm2, %v8063_v54  ;;  %7502 = vrot.lane.b32.xlu1 %v7311_v50, %s10228_s13 }
 0x900   :  { %7616 = vst.msk [vmem:[#allocation5 + $0x178] sm:$0xff] %vm7568_vm13, %v7471_v19  ;;  %7500 = vrot.lane.b32.xlu0 %v7310_v21, %s10228_s13 }
 0x901   :  { %v7088_v20 = vpop.permute.xlu1 %7087 }
 0x902   :  { %7232 = vst.msk [vmem:[#allocation5 + $0x180] sm:$0xff] %vm7183_vm12, %v7088_v20  ;;  %v7856_v6 = vpop.permute.xlu0 %7855 }
 0x903   :  { %8001 = vst.msk [vmem:[#allocation5 + $0x178] sm:$0xff] %vm7953_vm15, %v7856_v6  ;;  %7887 = vrot.lane.b32.xlu1 %v7696_v2, %s10229_s16 }
 0x904   :  { %7885 = vrot.lane.b32.xlu0 %v7695_v45, %s10229_s16 }
 0x905   :  { %v7473_v8 = vpop.permute.xlu1 %7472 }
 0x906   :  { %v8064_v56 = vld [vmem:[#allocation5 + $0x170] sm:$0xff]  ;;  %7617 = vst.msk [vmem:[#allocation5 + $0x180] sm:$0xff] %vm7568_vm13, %v7473_v8  ;;  %v7090_v0 = vpop.permute.xlu0 %7089  ;;  %v10025_v59 = vpop.f32.mrb[44].mxu1 }
 0x907   :  { %10077 = vmatprep.mubr.msk.f32.mxu1 %vm8736_vm2, %v8064_v56  ;;  %7233 = vst.msk [vmem:[#allocation5 + $0x188] sm:$0xff] %vm7183_vm12, %v7090_v0  ;;  %v9051_v44 = vadd.f32 %v10025_v59, %v13988_v46  ;;  %v9045_v60 = vpop.f32.mrb[45].mxu1 }
 0x908   :  { %v9046_v11 = vadd.f32 %v9045_v60, %v13991_v48 }
 0x909   :  { %9325 = vst.msk [vmem:[%s14542_s7 + $0x58] sm:$0xff] %vm114_vm1, %v9051_v44  ;;  %v7858_v61 = vpop.permute.xlu1 %7857 }
 0x90a   :  { %9324 = vst.msk [vmem:[%s14542_s7 + $0x50] sm:$0xff] %vm114_vm1, %v9046_v11  ;;  %v7475_v53 = vpop.permute.xlu0 %7474  ;;  %v8065_v12 = vld [vmem:[#allocation5 + $0x178] sm:$0xff] }
 0x90b   :  { %8002 = vst.msk [vmem:[#allocation5 + $0x180] sm:$0xff] %vm7953_vm15, %v7858_v61  ;;  %10078 = vmatmul.mubr.msk.f32.gmra.mrb[16].mxu1 %vm8736_vm2, %v8065_v12 }
 0x90c   :  { %7618 = vst.msk [vmem:[#allocation5 + $0x188] sm:$0xff] %vm7568_vm13, %v7475_v53 }
 0x90d   :  { %v7092_v46 = vpop.permute.xlu1 %7091 }
 0x90e   :  { %7234 = vst.msk [vmem:[#allocation5 + $0x190] sm:$0xff] %vm7183_vm12, %v7092_v46  ;;  %v7860_v48 = vpop.permute.xlu0 %7859 }
 0x90f   :  { %8003 = vst.msk [vmem:[#allocation5 + $0x188] sm:$0xff] %vm7953_vm15, %v7860_v48 }
 0x911   :  { %v7477_v5 = vpop.permute.xlu1 %7476 }
 0x912   :  { %v8066_v47 = vld [vmem:[#allocation5 + $0x180] sm:$0xff]  ;;  %7619 = vst.msk [vmem:[#allocation5 + $0x190] sm:$0xff] %vm7568_vm13, %v7477_v5  ;;  %v7094_v4 = vpop.permute.xlu0 %7093  ;;  %v10028_v62 = vpop.f32.mrb[46].mxu1 }
 0x913   :  { %10080 = vmatprep.mubr.msk.f32.mxu1 %vm8736_vm2, %v8066_v47  ;;  %7235 = vst.msk [vmem:[#allocation5 + $0x198] sm:$0xff] %vm7183_vm12, %v7094_v4  ;;  %v9061_v1 = vadd.f32 %v10028_v62, %v14006_v55  ;;  %v9055_v25 = vpop.f32.mrb[47].mxu1 }
 0x914   :  { %v9056_v7 = vadd.f32 %v9055_v25, %v14009_v3 }
 0x915   :  { %9327 = vst.msk [vmem:[%s14542_s7 + $0x68] sm:$0xff] %vm114_vm1, %v9061_v1  ;;  %v7862_v9 = vpop.permute.xlu1 %7861 }
 0x916   :  { %9326 = vst.msk [vmem:[%s14542_s7 + $0x60] sm:$0xff] %vm114_vm1, %v9056_v7  ;;  %v7479_v30 = vpop.permute.xlu0 %7478  ;;  %v8067_v16 = vld [vmem:[#allocation5 + $0x188] sm:$0xff] }
 0x917   :  { %8004 = vst.msk [vmem:[#allocation5 + $0x190] sm:$0xff] %vm7953_vm15, %v7862_v9  ;;  %10081 = vmatmul.mubr.msk.f32.gmra.mrb[18].mxu1 %vm8736_vm2, %v8067_v16 }
 0x918   :  { %7620 = vst.msk [vmem:[#allocation5 + $0x198] sm:$0xff] %vm7568_vm13, %v7479_v30 }
 0x919   :  { %v6712_v55 = vpop.permute.xlu1 %6711 }
 0x91a   :  { %6851 = vst.msk [vmem:[#allocation5 + $0x1a8] sm:$0xff] %vm6797_vm14, %v6712_v55  ;;  %v7864_v3 = vpop.permute.xlu0 %7863 }
 0x91b   :  { %8005 = vst.msk [vmem:[#allocation5 + $0x198] sm:$0xff] %vm7953_vm15, %v7864_v3 }
 0x91d   :  { %v7098_v32 = vpop.permute.xlu1 %7097 }
 0x91e   :  { %v8068_v40 = vld [vmem:[#allocation5 + $0x190] sm:$0xff]  ;;  %7237 = vst.msk [vmem:[#allocation5 + $0x1a8] sm:$0xff] %vm7183_vm12, %v7098_v32  ;;  %v7096_v36 = vpop.permute.xlu0 %7095  ;;  %v10031_v26 = vpop.f32.mrb[48].mxu1 }
 0x91f   :  { %10083 = vmatprep.mubr.msk.f32.mxu1 %vm8736_vm2, %v8068_v40  ;;  %7236 = vst.msk [vmem:[#allocation5 + $0x1a0] sm:$0xff] %vm7183_vm12, %v7096_v36  ;;  %v9071_v42 = vadd.f32 %v10031_v26, %v14024_v14  ;;  %v9065_v15 = vpop.f32.mrb[49].mxu1 }
 0x920   :  { %v9066_v51 = vadd.f32 %v9065_v15, %v14027_v41 }
 0x921   :  { %9329 = vst.msk [vmem:[%s14542_s7 + $0x78] sm:$0xff] %vm114_vm1, %v9071_v42  ;;  %v7483_v49 = vpop.permute.xlu1 %7482 }
 0x922   :  { %9328 = vst.msk [vmem:[%s14542_s7 + $0x70] sm:$0xff] %vm114_vm1, %v9066_v51  ;;  %v7481_v23 = vpop.permute.xlu0 %7480  ;;  %v8069_v43 = vld [vmem:[#allocation5 + $0x198] sm:$0xff] }
 0x923   :  { %7622 = vst.msk [vmem:[#allocation5 + $0x1a8] sm:$0xff] %vm7568_vm13, %v7483_v49  ;;  %7621 = vst.msk [vmem:[#allocation5 + $0x1a0] sm:$0xff] %vm7568_vm13, %v7481_v23  ;;  %10084 = vmatmul.mubr.msk.f32.gmra.mrb[20].mxu1 %vm8736_vm2, %v8069_v43 }
 0x925   :  { %v6714_v14 = vpop.permute.xlu1 %6713 }
 0x926   :  { %6852 = vst.msk [vmem:[#allocation5 + $0x1b0] sm:$0xff] %vm6797_vm14, %v6714_v14  ;;  %v7866_v41 = vpop.permute.xlu0 %7865 }
 0x927   :  { %8006 = vst.msk [vmem:[#allocation5 + $0x1a0] sm:$0xff] %vm7953_vm15, %v7866_v41 }
 0x929   :  { %v6716_v22 = vpop.permute.xlu1 %6715 }
 0x92a   :  { %6853 = vst.msk [vmem:[#allocation5 + $0x1b8] sm:$0xff] %vm6797_vm14, %v6716_v22  ;;  %v7868_v52 = vpop.permute.xlu0 %7867  ;;  %v10034_v37 = vpop.f32.mrb[50].mxu1 }
 0x92b   :  { %8007 = vst.msk [vmem:[#allocation5 + $0x1a8] sm:$0xff] %vm7953_vm15, %v7868_v52  ;;  %v9081_v58 = vadd.f32 %v10034_v37, %v14042_v17  ;;  %v9075_v28 = vpop.f32.mrb[51].mxu1 }
 0x92c   :  { %v9076_v50 = vadd.f32 %v9075_v28, %v14045_v27 }
 0x92d   :  { %9331 = vst.msk [vmem:[%s14542_s7 + $0x88] sm:$0xff] %vm114_vm1, %v9081_v58  ;;  %v7102_v18 = vpop.permute.xlu1 %7101 }
 0x92e   :  { %9330 = vst.msk [vmem:[%s14542_s7 + $0x80] sm:$0xff] %vm114_vm1, %v9076_v50  ;;  %v7100_v21 = vpop.permute.xlu0 %7099  ;;  %v8070_v19 = vld [vmem:[#allocation5 + $0x1a0] sm:$0xff] }
 0x92f   :  { %7239 = vst.msk [vmem:[#allocation5 + $0x1b8] sm:$0xff] %vm7183_vm12, %v7102_v18  ;;  %7238 = vst.msk [vmem:[#allocation5 + $0x1b0] sm:$0xff] %vm7183_vm12, %v7100_v21  ;;  %10086 = vmatprep.mubr.msk.f32.mxu1 %vm8736_vm2, %v8070_v19 }
 0x931   :  { %v7487_v17 = vpop.permute.xlu1 %7486 }
 0x932   :  { %7624 = vst.msk [vmem:[#allocation5 + $0x1b8] sm:$0xff] %vm7568_vm13, %v7487_v17  ;;  %v7485_v27 = vpop.permute.xlu0 %7484  ;;  %v8071_v54 = vld [vmem:[#allocation5 + $0x1a8] sm:$0xff] }
 0x933   :  { %7623 = vst.msk [vmem:[#allocation5 + $0x1b0] sm:$0xff] %vm7568_vm13, %v7485_v27  ;;  %10087 = vmatmul.mubr.msk.f32.gmra.mrb[22].mxu1 %vm8736_vm2, %v8071_v54 }
 0x935   :  { %v6718_v2 = vpop.permute.xlu1 %6717 }
 0x936   :  { %6854 = vst.msk [vmem:[#allocation5 + $0x1c0] sm:$0xff] %vm6797_vm14, %v6718_v2  ;;  %v7870_v20 = vpop.permute.xlu0 %7869  ;;  %v10037_v45 = vpop.f32.mrb[52].mxu1 }
 0x937   :  { %8008 = vst.msk [vmem:[#allocation5 + $0x1b0] sm:$0xff] %vm7953_vm15, %v7870_v20  ;;  %v9091_v6 = vadd.f32 %v10037_v45, %v14060_v29  ;;  %v9085_v8 = vpop.f32.mrb[53].mxu1 }
 0x938   :  { %v9086_v56 = vadd.f32 %v9085_v8, %v14063_v10 }
 0x939   :  { %9333 = vst.msk [vmem:[%s14542_s7 + $0x98] sm:$0xff] %vm114_vm1, %v9091_v6  ;;  %v6720_v0 = vpop.permute.xlu1 %6719 }
 0x93a   :  { %9332 = vst.msk [vmem:[%s14542_s7 + $0x90] sm:$0xff] %vm114_vm1, %v9086_v56  ;;  %v7872_v59 = vpop.permute.xlu0 %7871 }
 0x93b   :  { %6855 = vst.msk [vmem:[#allocation5 + $0x1c8] sm:$0xff] %vm6797_vm14, %v6720_v0 }
 0x93c   :  { %8009 = vst.msk [vmem:[#allocation5 + $0x1b8] sm:$0xff] %vm7953_vm15, %v7872_v59 }
 0x93d   :  { %v7106_v29 = vpop.permute.xlu1 %7105 }
 0x93e   :  { %7241 = vst.msk [vmem:[#allocation5 + $0x1c8] sm:$0xff] %vm7183_vm12, %v7106_v29  ;;  %v7104_v10 = vpop.permute.xlu0 %7103  ;;  %v8072_v44 = vld [vmem:[#allocation5 + $0x1b0] sm:$0xff] }
 0x93f   :  { %7240 = vst.msk [vmem:[#allocation5 + $0x1c0] sm:$0xff] %vm7183_vm12, %v7104_v10  ;;  %10089 = vmatprep.mubr.msk.f32.mxu1 %vm8736_vm2, %v8072_v44 }
 0x941   :  { %v7491_v60 = vpop.permute.xlu1 %7490 }
 0x942   :  { %7626 = vst.msk [vmem:[#allocation5 + $0x1c8] sm:$0xff] %vm7568_vm13, %v7491_v60  ;;  %v7489_v11 = vpop.permute.xlu0 %7488  ;;  %v10040_v61 = vpop.f32.mrb[54].mxu1 }
 0x943   :  { %v8073_v53 = vld [vmem:[#allocation5 + $0x1b8] sm:$0xff]  ;;  %7625 = vst.msk [vmem:[#allocation5 + $0x1c0] sm:$0xff] %vm7568_vm13, %v7489_v11  ;;  %v9101_v12 = vadd.f32 %v10040_v61, %v14078_v38  ;;  %v9095_v46 = vpop.f32.mrb[55].mxu1 }
 0x944   :  { %10090 = vmatmul.mubr.msk.f32.gmra.mrb[24].mxu1 %vm8736_vm2, %v8073_v53  ;;  %v9096_v48 = vadd.f32 %v9095_v46, %v14081_v24 }
 0x945   :  { %9335 = vst.msk [vmem:[%s14542_s7 + $0xa8] sm:$0xff] %vm114_vm1, %v9101_v12  ;;  %v6722_v5 = vpop.permute.xlu1 %6721 }
 0x946   :  { %9334 = vst.msk [vmem:[%s14542_s7 + $0xa0] sm:$0xff] %vm114_vm1, %v9096_v48  ;;  %v7874_v47 = vpop.permute.xlu0 %7873 }
 0x947   :  { %6856 = vst.msk [vmem:[#allocation5 + $0x1d0] sm:$0xff] %vm6797_vm14, %v6722_v5 }
 0x948   :  { %8010 = vst.msk [vmem:[#allocation5 + $0x1c0] sm:$0xff] %vm7953_vm15, %v7874_v47 }
 0x949   :  { %v6724_v38 = vpop.permute.xlu1 %6723 }
 0x94a   :  { %6857 = vst.msk [vmem:[#allocation5 + $0x1d8] sm:$0xff] %vm6797_vm14, %v6724_v38  ;;  %v7876_v24 = vpop.permute.xlu0 %7875 }
 0x94b   :  { %8011 = vst.msk [vmem:[#allocation5 + $0x1c8] sm:$0xff] %vm7953_vm15, %v7876_v24 }
 0x94d   :  { %v7110_v4 = vpop.permute.xlu1 %7109 }
 0x94e   :  { %7243 = vst.msk [vmem:[#allocation5 + $0x1d8] sm:$0xff] %vm7183_vm12, %v7110_v4  ;;  %v7108_v62 = vpop.permute.xlu0 %7107  ;;  %v10043_v1 = vpop.f32.mrb[56].mxu1 }
 0x94f   :  { %v8074_v25 = vld [vmem:[#allocation5 + $0x1c0] sm:$0xff]  ;;  %7242 = vst.msk [vmem:[#allocation5 + $0x1d0] sm:$0xff] %vm7183_vm12, %v7108_v62  ;;  %v9111_v7 = vadd.f32 %v10043_v1, %v14106_v13  ;;  %v9105_v9 = vpop.f32.mrb[57].mxu1 }
 0x950   :  { %10092 = vmatprep.mubr.msk.f32.mxu1 %vm8736_vm2, %v8074_v25  ;;  %v9106_v30 = vadd.f32 %v9105_v9, %v14109_v31 }
 0x951   :  { %9337 = vst.msk [vmem:[%s14542_s7 + $0xb8] sm:$0xff] %vm114_vm1, %v9111_v7  ;;  %v7495_v16 = vpop.permute.xlu1 %7494 }
 0x952   :  { %9336 = vst.msk [vmem:[%s14542_s7 + $0xb0] sm:$0xff] %vm114_vm1, %v9106_v30  ;;  %v7493_v55 = vpop.permute.xlu0 %7492  ;;  %v8075_v13 = vld [vmem:[#allocation5 + $0x1c8] sm:$0xff] }
 0x953   :  { %7628 = vst.msk [vmem:[#allocation5 + $0x1d8] sm:$0xff] %vm7568_vm13, %v7495_v16  ;;  %7627 = vst.msk [vmem:[#allocation5 + $0x1d0] sm:$0xff] %vm7568_vm13, %v7493_v55  ;;  %10093 = vmatmul.mubr.msk.f32.gmra.mrb[26].mxu1 %vm8736_vm2, %v8075_v13 }
 0x955   :  { %v6726_v31 = vpop.permute.xlu1 %6725 }
 0x956   :  { %6858 = vst.msk [vmem:[#allocation5 + $0x1e0] sm:$0xff] %vm6797_vm14, %v6726_v31  ;;  %v7878_v3 = vpop.permute.xlu0 %7877 }
 0x957   :  { %8012 = vst.msk [vmem:[#allocation5 + $0x1d0] sm:$0xff] %vm7953_vm15, %v7878_v3 }
 0x959   :  { %v6728_v32 = vpop.permute.xlu1 %6727 }
 0x95a   :  { %6859 = vst.msk [vmem:[#allocation5 + $0x1e8] sm:$0xff] %vm6797_vm14, %v6728_v32  ;;  %v7880_v40 = vpop.permute.xlu0 %7879  ;;  %v10046_v36 = vpop.f32.mrb[58].mxu1 }
 0x95b   :  { %8013 = vst.msk [vmem:[#allocation5 + $0x1d8] sm:$0xff] %vm7953_vm15, %v7880_v40  ;;  %v9121_v26 = vadd.f32 %v10046_v36, %v14134_v39  ;;  %v9115_v42 = vpop.f32.mrb[59].mxu1 }
 0x95c   :  { %v9116_v15 = vadd.f32 %v9115_v42, %v14137_v57 }
 0x95d   :  { %9339 = vst.msk [vmem:[%s14542_s7 + $0xc8] sm:$0xff] %vm114_vm1, %v9121_v26  ;;  %v7114_v51 = vpop.permute.xlu1 %7113 }
 0x95e   :  { %9338 = vst.msk [vmem:[%s14542_s7 + $0xc0] sm:$0xff] %vm114_vm1, %v9116_v15  ;;  %v7112_v49 = vpop.permute.xlu0 %7111  ;;  %v8076_v23 = vld [vmem:[#allocation5 + $0x1d0] sm:$0xff] }
 0x95f   :  { %7245 = vst.msk [vmem:[#allocation5 + $0x1e8] sm:$0xff] %vm7183_vm12, %v7114_v51  ;;  %7244 = vst.msk [vmem:[#allocation5 + $0x1e0] sm:$0xff] %vm7183_vm12, %v7112_v49  ;;  %10095 = vmatprep.mubr.msk.f32.mxu1 %vm8736_vm2, %v8076_v23 }
 0x961   :  { %v7499_v39 = vpop.permute.xlu1 %7498 }
 0x962   :  { %7630 = vst.msk [vmem:[#allocation5 + $0x1e8] sm:$0xff] %vm7568_vm13, %v7499_v39  ;;  %v7497_v57 = vpop.permute.xlu0 %7496  ;;  %v8077_v43 = vld [vmem:[#allocation5 + $0x1d8] sm:$0xff] }
 0x963   :  { %7629 = vst.msk [vmem:[#allocation5 + $0x1e0] sm:$0xff] %vm7568_vm13, %v7497_v57  ;;  %10096 = vmatmul.mubr.msk.f32.gmra.mrb[28].mxu1 %vm8736_vm2, %v8077_v43 }
 0x965   :  { %v6730_v14 = vpop.permute.xlu1 %6729 }
 0x966   :  { %6860 = vst.msk [vmem:[#allocation5 + $0x1f0] sm:$0xff] %vm6797_vm14, %v6730_v14  ;;  %v7882_v41 = vpop.permute.xlu0 %7881  ;;  %v10049_v22 = vpop.f32.mrb[60].mxu1 }
 0x967   :  { %8014 = vst.msk [vmem:[#allocation5 + $0x1e0] sm:$0xff] %vm7953_vm15, %v7882_v41  ;;  %v9131_v52 = vadd.f32 %v10049_v22, %v14162_v33  ;;  %v9125_v37 = vpop.f32.mrb[61].mxu1 }
 0x968   :  { %v9126_v58 = vadd.f32 %v9125_v37, %v14165_v34 }
 0x969   :  { %9341 = vst.msk [vmem:[%s14542_s7 + $0xd8] sm:$0xff] %vm114_vm1, %v9131_v52  ;;  %v6732_v28 = vpop.permute.xlu1 %6731 }
 0x96a   :  { %9340 = vst.msk [vmem:[%s14542_s7 + $0xd0] sm:$0xff] %vm114_vm1, %v9126_v58  ;;  %v7884_v50 = vpop.permute.xlu0 %7883 }
 0x96b   :  { %6861 = vst.msk [vmem:[#allocation5 + $0x1f8] sm:$0xff] %vm6797_vm14, %v6732_v28 }
 0x96c   :  { %8015 = vst.msk [vmem:[#allocation5 + $0x1e8] sm:$0xff] %vm7953_vm15, %v7884_v50 }
 0x96d   :  { %v7118_v33 = vpop.permute.xlu1 %7117 }
 0x96e   :  { %v7116_v18 = vpop.permute.xlu0 %7115  ;;  %7247 = vst.msk [vmem:[#allocation5 + $0x1f8] sm:$0xff] %vm7183_vm12, %v7118_v33  ;;  %v8078_v34 = vld [vmem:[#allocation5 + $0x1e0] sm:$0xff] }
 0x96f   :  { %7246 = vst.msk [vmem:[#allocation5 + $0x1f0] sm:$0xff] %vm7183_vm12, %v7116_v18  ;;  %10098 = vmatprep.mubr.msk.f32.mxu1 %vm8736_vm2, %v8078_v34 }
 0x971   :  { %v7503_v21 = vpop.permute.xlu1 %7502 }
 0x972   :  { %v7501_v19 = vpop.permute.xlu0 %7500  ;;  %v10052_v17 = vpop.f32.mrb[62].mxu1  ;;  %7632 = vst.msk [vmem:[#allocation5 + $0x1f8] sm:$0xff] %vm7568_vm13, %v7503_v21 }
 0x973   :  { %v8079_v27 = vld [vmem:[#allocation5 + $0x1e8] sm:$0xff]  ;;  %7631 = vst.msk [vmem:[#allocation5 + $0x1f0] sm:$0xff] %vm7568_vm13, %v7501_v19  ;;  %v9141_v54 = vadd.f32 %v10052_v17, %v14190_v35  ;;  %v9135_v2 = vpop.f32.mrb[63].mxu1 }
 0x974   :  { %10099 = vmatmul.mubr.msk.f32.gmra.mrb[30].mxu1 %vm8736_vm2, %v8079_v27  ;;  %v9136_v20 = vadd.f32 %v9135_v2, %v14193_v63 }
 0x975   :  { %9343 = vst.msk [vmem:[%s14542_s7 + $0xe8] sm:$0xff] %vm114_vm1, %v9141_v54  ;;  %v7888_v45 = vpop.permute.xlu1 %7887 }
 0x976   :  { %9342 = vst.msk [vmem:[%s14542_s7 + $0xe0] sm:$0xff] %vm114_vm1, %v9136_v20  ;;  %v7886_v6 = vpop.permute.xlu0 %7885 }
 0x977   :  { %8017 = vst.msk [vmem:[#allocation5 + $0x1f8] sm:$0xff] %vm7953_vm15, %v7888_v45  ;;  %8016 = vst.msk [vmem:[#allocation5 + $0x1f0] sm:$0xff] %vm7953_vm15, %v7886_v6 }
 0x97e   :  { %v8081_v35 = vld [vmem:[#allocation5 + $0x1f8] sm:$0xff]  ;;  %v10055_v8 = vpop.f32.mrb[0].mxu1  ;;  %v8080_v56 = vld [vmem:[#allocation5 + $0x1f0] sm:$0xff] }
 0x97f   :  { %9345 = vst.msk [vmem:[%s14542_s7 + $0xf8] sm:$0xff] %vm114_vm1, %v10055_v8  ;;  %v9145_v63 = vpop.f32.mrb[1].mxu1  ;;  %10101 = vmatprep.mubr.msk.f32.mxu1 %vm8736_vm2, %v8080_v56 }
 0x980   :  { %9344 = vst.msk [vmem:[%s14542_s7 + $0xf0] sm:$0xff] %vm114_vm1, %v9145_v63  ;;  %10102 = vmatmul.mubr.msk.f32.gmra.mrb[32].mxu1 %vm8736_vm2, %v8081_v35 }
 0x98a   :  { %v10058_v0 = vpop.f32.mrb[2].mxu1 }
 0x98b   :  { %9347 = vst.msk [vmem:[%s14542_s7 + $0x108] sm:$0xff] %vm114_vm1, %v10058_v0  ;;  %v9155_v59 = vpop.f32.mrb[3].mxu1 }
 0x98c   :  { %9346 = vst.msk [vmem:[%s14542_s7 + $0x100] sm:$0xff] %vm114_vm1, %v9155_v59 }
 0x996   :  { %v10061_v29 = vpop.f32.mrb[4].mxu1 }
 0x997   :  { %9349 = vst.msk [vmem:[%s14542_s7 + $0x118] sm:$0xff] %vm114_vm1, %v10061_v29  ;;  %v9165_v10 = vpop.f32.mrb[5].mxu1 }
 0x998   :  { %9348 = vst.msk [vmem:[%s14542_s7 + $0x110] sm:$0xff] %vm114_vm1, %v9165_v10 }
 0x9a2   :  { %v10064_v44 = vpop.f32.mrb[6].mxu1 }
 0x9a3   :  { %9351 = vst.msk [vmem:[%s14542_s7 + $0x128] sm:$0xff] %vm114_vm1, %v10064_v44  ;;  %v9175_v60 = vpop.f32.mrb[7].mxu1 }
 0x9a4   :  { %9350 = vst.msk [vmem:[%s14542_s7 + $0x120] sm:$0xff] %vm114_vm1, %v9175_v60 }
 0x9ae   :  { %v10067_v11 = vpop.f32.mrb[8].mxu1 }
 0x9af   :  { %9353 = vst.msk [vmem:[%s14542_s7 + $0x138] sm:$0xff] %vm114_vm1, %v10067_v11  ;;  %v9185_v61 = vpop.f32.mrb[9].mxu1 }
 0x9b0   :  { %9352 = vst.msk [vmem:[%s14542_s7 + $0x130] sm:$0xff] %vm114_vm1, %v9185_v61 }
 0x9ba   :  { %v10070_v53 = vpop.f32.mrb[10].mxu1 }
 0x9bb   :  { %9355 = vst.msk [vmem:[%s14542_s7 + $0x148] sm:$0xff] %vm114_vm1, %v10070_v53  ;;  %v9195_v12 = vpop.f32.mrb[11].mxu1 }
 0x9bc   :  { %9354 = vst.msk [vmem:[%s14542_s7 + $0x140] sm:$0xff] %vm114_vm1, %v9195_v12 }
 0x9c6   :  { %v10073_v46 = vpop.f32.mrb[12].mxu1 }
 0x9c7   :  { %9357 = vst.msk [vmem:[%s14542_s7 + $0x158] sm:$0xff] %vm114_vm1, %v10073_v46  ;;  %v9205_v48 = vpop.f32.mrb[13].mxu1 }
 0x9c8   :  { %9356 = vst.msk [vmem:[%s14542_s7 + $0x150] sm:$0xff] %vm114_vm1, %v9205_v48 }
 0x9d2   :  { %v10076_v5 = vpop.f32.mrb[14].mxu1 }
 0x9d3   :  { %9359 = vst.msk [vmem:[%s14542_s7 + $0x168] sm:$0xff] %vm114_vm1, %v10076_v5  ;;  %v9215_v47 = vpop.f32.mrb[15].mxu1 }
 0x9d4   :  { %9358 = vst.msk [vmem:[%s14542_s7 + $0x160] sm:$0xff] %vm114_vm1, %v9215_v47 }
 0x9de   :  { %v10079_v38 = vpop.f32.mrb[16].mxu1 }
 0x9df   :  { %9361 = vst.msk [vmem:[%s14542_s7 + $0x178] sm:$0xff] %vm114_vm1, %v10079_v38  ;;  %v9225_v24 = vpop.f32.mrb[17].mxu1 }
 0x9e0   :  { %9360 = vst.msk [vmem:[%s14542_s7 + $0x170] sm:$0xff] %vm114_vm1, %v9225_v24 }
 0x9ea   :  { %v10082_v4 = vpop.f32.mrb[18].mxu1 }
 0x9eb   :  { %9363 = vst.msk [vmem:[%s14542_s7 + $0x188] sm:$0xff] %vm114_vm1, %v10082_v4  ;;  %v9235_v62 = vpop.f32.mrb[19].mxu1 }
 0x9ec   :  { %9362 = vst.msk [vmem:[%s14542_s7 + $0x180] sm:$0xff] %vm114_vm1, %v9235_v62 }
 0x9f6   :  { %v10085_v1 = vpop.f32.mrb[20].mxu1 }
 0x9f7   :  { %9365 = vst.msk [vmem:[%s14542_s7 + $0x198] sm:$0xff] %vm114_vm1, %v10085_v1  ;;  %v9245_v25 = vpop.f32.mrb[21].mxu1 }
 0x9f8   :  { %9364 = vst.msk [vmem:[%s14542_s7 + $0x190] sm:$0xff] %vm114_vm1, %v9245_v25 }
 0xa06   :  { %v10088_v7 = vpop.f32.mrb[22].mxu1 }
 0xa07   :  { %9367 = vst.msk [vmem:[%s14542_s7 + $0x1a8] sm:$0xff] %vm114_vm1, %v10088_v7  ;;  %v9255_v9 = vpop.f32.mrb[23].mxu1 }
 0xa08   :  { %9366 = vst.msk [vmem:[%s14542_s7 + $0x1a0] sm:$0xff] %vm114_vm1, %v9255_v9 }
 0xa17   :  { %v10091_v30 = vpop.f32.mrb[24].mxu1 }
 0xa18   :  { %9369 = vst.msk [vmem:[%s14542_s7 + $0x1b8] sm:$0xff] %vm114_vm1, %v10091_v30  ;;  %v9265_v16 = vpop.f32.mrb[25].mxu1 }
 0xa19   :  { %9368 = vst.msk [vmem:[%s14542_s7 + $0x1b0] sm:$0xff] %vm114_vm1, %v9265_v16 }
 0xa26   :  { %v10094_v55 = vpop.f32.mrb[26].mxu1 }
 0xa27   :  { %9371 = vst.msk [vmem:[%s14542_s7 + $0x1c8] sm:$0xff] %vm114_vm1, %v10094_v55  ;;  %v9275_v13 = vpop.f32.mrb[27].mxu1 }
 0xa28   :  { %9370 = vst.msk [vmem:[%s14542_s7 + $0x1c0] sm:$0xff] %vm114_vm1, %v9275_v13 }
 0xa36   :  { %v10097_v31 = vpop.f32.mrb[28].mxu1 }
 0xa37   :  { %9373 = vst.msk [vmem:[%s14542_s7 + $0x1d8] sm:$0xff] %vm114_vm1, %v10097_v31  ;;  %v9285_v3 = vpop.f32.mrb[29].mxu1 }
 0xa38   :  { %9372 = vst.msk [vmem:[%s14542_s7 + $0x1d0] sm:$0xff] %vm114_vm1, %v9285_v3 }
 0xa47   :  { %v10100_v32 = vpop.f32.mrb[30].mxu1 }
 0xa48   :  { %9375 = vst.msk [vmem:[%s14542_s7 + $0x1e8] sm:$0xff] %vm114_vm1, %v10100_v32  ;;  %v9295_v40 = vpop.f32.mrb[31].mxu1 }
 0xa49   :  { %9374 = vst.msk [vmem:[%s14542_s7 + $0x1e0] sm:$0xff] %vm114_vm1, %v9295_v40 }
 0xa53   :  { %v10103_v36 = vpop.f32.mrb[32].mxu1 }
 0xa54   :  { %9377 = vst.msk [vmem:[%s14542_s7 + $0x1f8] sm:$0xff] %vm114_vm1, %v10103_v36  ;;  %v9305_v26 = vpop.f32.mrb[33].mxu1 }
 0xa55   :  { %9376 = vst.msk [vmem:[%s14542_s7 + $0x1f0] sm:$0xff] %vm114_vm1, %v9305_v26 }

</bundles_post_ra>
